<compile_context>
chip_gen: v6e
topology: v6e:2x2x1
jax: 0.10.0
libtpu: 0.0.40
codegen_flags: <defaults>
</compile_context>

<pallas_src>
import functools

import jax
import jax.numpy as jnp
from jax.experimental import pallas as pl
from jax.experimental.pallas import tpu as pltpu


def _lstm_fc_kernel(x_ref,      # (T*Bp, Ip)   time-major, batch padded to Bp
                    wih1_ref,   # (Ip,  4*Hp)
                    whh1_ref,   # (Hp,  4*Hp)
                    b1_ref,     # (1,   4*Hp)  b_ih + b_hh (layer 1)
                    w2_ref,     # (2*Hp,4*Hp)  stacked [wih2 ; whh2]
                    b2_ref,     # (1,   4*Hp)  b_ih + b_hh (layer 2)
                    wfc_ref,    # (Hp,  Op)
                    bfc_ref,    # (1,   Op)
                    out_ref,    # (Bp,  Op)
                    g1_ref,     # VMEM scratch (T*Bp, 4*Hp): layer-1 input proj
                    *, seq_len, batch_padded):
    T, Bp = seq_len, batch_padded
    Hp = whh1_ref.shape[0]

    def act(gates, c):
        # lane-aligned gate slices (each gate occupies its own 128-lane block)
        i = jax.nn.sigmoid(gates[:, 0 * Hp:1 * Hp])
        f = jax.nn.sigmoid(gates[:, 1 * Hp:2 * Hp])
        g = jnp.tanh(gates[:, 2 * Hp:3 * Hp])
        o = jax.nn.sigmoid(gates[:, 3 * Hp:4 * Hp])
        c_new = f * c + i * g
        return o * jnp.tanh(c_new), c_new

    def act_zero_state(gates):
        # Peeled t=0 cell: h = c = 0, so the f*c branch vanishes.
        i = jax.nn.sigmoid(gates[:, 0 * Hp:1 * Hp])
        g = jnp.tanh(gates[:, 2 * Hp:3 * Hp])
        o = jax.nn.sigmoid(gates[:, 3 * Hp:4 * Hp])
        c_new = i * g
        return o * jnp.tanh(c_new), c_new

    def g1_block(t):
        # row block [t*Bp, (t+1)*Bp) == timestep t; Bp=8-aligned, unmasked load
        return g1_ref[t * Bp:(t + 1) * Bp, :]

    def l1_cell(t, h, c):
        gates = g1_block(t) + jnp.dot(h, whh1_ref[...],
                                      preferred_element_type=jnp.float32)
        return act(gates, c)

    def l2_first_cell(h1_t):
        # layer-2 t=0: zero state -> only the wih2 half of the stacked weight.
        gates = (jnp.dot(h1_t, w2_ref[0:Hp, :],
                         preferred_element_type=jnp.float32) + b2_ref[...])
        return act_zero_state(gates)

    def l2_cell(h1_t, h2, c2):
        # K = 2*Hp = 256 fused matmul fills the 256-deep MXU on v6e/v7x:
        # input projection + recurrent matmul in a single MXU push.
        lhs = jnp.concatenate([h1_t, h2], axis=-1)          # (Bp, 2*Hp)
        gates = (jnp.dot(lhs, w2_ref[...],
                         preferred_element_type=jnp.float32) + b2_ref[...])
        return act(gates, c2)

    # ---- layer-1 input projection, batched over all timesteps --------------
    # One MXU matmul off the serial critical path; bias folded in.
    g1_ref[...] = (jnp.dot(x_ref[...], wih1_ref[...],
                           preferred_element_type=jnp.float32) + b1_ref[...])

    # ---- wavefront-interleaved recurrence -----------------------------------
    # step s emits layer-1 cell s and layer-2 cell s-1 (data independent);
    # serial chain is T+1 cells instead of 2T.
    h1, c1 = act_zero_state(g1_block(0))          # layer-1 cell 0 (peeled)

    h2 = c2 = None
    for s in range(1, T):                         # static full unroll (T small)
        h1_next, c1_next = l1_cell(s, h1, c1)     # layer-1 cell s
        if s == 1:
            h2, c2 = l2_first_cell(h1)            # layer-2 cell 0 (peeled)
        else:
            h2, c2 = l2_cell(h1, h2, c2)          # layer-2 cell s-1
        h1, c1 = h1_next, c1_next

    # Epilogue: layer-2 cell T-1.
    if T == 1:
        h2, c2 = l2_first_cell(h1)
    else:
        h2, c2 = l2_cell(h1, h2, c2)

    # ---- FC head on the last layer-2 hidden state ---------------------------
    # Lane/sublane-dense padded output store (unmasked vst).
    out_ref[...] = (jnp.dot(h2, wfc_ref[...],
                            preferred_element_type=jnp.float32)
                    + bfc_ref[...]).astype(out_ref.dtype)


def _pad_gate_cols(w, H, Hp):
    """(..., 4H) -> (..., 4Hp): each gate block zero-padded from H to Hp lanes."""
    pad = [(0, 0)] * (w.ndim - 1) + [(0, Hp - H)]
    return jnp.concatenate(
        [jnp.pad(w[..., k * H:(k + 1) * H], pad) for k in range(4)], axis=-1)


def _pad_rows(w, n, np_):
    """(n, ...) -> (np_, ...): zero-pad the contraction (input-feature) rows."""
    return jnp.pad(w, [(0, np_ - n)] + [(0, 0)] * (w.ndim - 1))


def lstm_model_forward(x, params):
    """x: (B, T, I) float32 (PyTorch batch_first).  Returns (B, output_size)."""
    B, T, I = x.shape
    H = params["whh1"].shape[0]
    O = params["wfc"].shape[1]
    Hp = ((H + 127) // 128) * 128          # lane-aligned per-gate width
    Bp = ((B + 7) // 8) * 8                # sublane-aligned padded batch
    Ip = ((I + 7) // 8) * 8                # sublane-aligned layer-1 contraction
    Op = ((O + 127) // 128) * 128          # lane-dense FC output width

    # time-major, batch padded to a full sublane tile, flattened to 2D rows of
    # Bp per timestep: row block [t*Bp, (t+1)*Bp) == timestep t.
    x_tm = jnp.transpose(x, (1, 0, 2)).astype(jnp.float32)        # (T, B, I)
    x_tm = jnp.pad(x_tm, ((0, 0), (0, Bp - B), (0, Ip - I)))      # (T, Bp, Ip)
    x2d = x_tm.reshape(T * Bp, Ip)

    wih1 = _pad_rows(_pad_gate_cols(params["wih1"], H, Hp), I, Ip)    # (Ip,4Hp)
    whh1 = _pad_rows(_pad_gate_cols(params["whh1"], H, Hp), H, Hp)    # (Hp,4Hp)
    b1 = _pad_gate_cols(params["b1"], H, Hp)                          # (1, 4Hp)
    wih2 = _pad_rows(_pad_gate_cols(params["wih2"], H, Hp), H, Hp)    # (Hp,4Hp)
    whh2 = _pad_rows(_pad_gate_cols(params["whh2"], H, Hp), H, Hp)    # (Hp,4Hp)
    w2 = jnp.concatenate([wih2, whh2], axis=0)                        # (2Hp,4Hp)
    b2 = _pad_gate_cols(params["b2"], H, Hp)                          # (1, 4Hp)
    wfc = jnp.pad(_pad_rows(params["wfc"], H, Hp),
                  ((0, 0), (0, Op - O)))                              # (Hp, Op)
    bfc = jnp.pad(params["bfc"], ((0, 0), (0, Op - O)))               # (1, Op)

    kernel = functools.partial(_lstm_fc_kernel, seq_len=T, batch_padded=Bp)
    vmem = pl.BlockSpec(memory_space=pltpu.MemorySpace.VMEM)
    # NOTE: no grid -> single TensorCore; at Bp=8 a per-step cross-core handoff
    # costs more than a whole cell.  Add a "parallel" batch grid axis only when
    # B >= ~16.  If T*Bp grows, tile g1 over time chunks and set
    # vmem_limit_bytes (today total VMEM use is ~1 MiB).
    out = pl.pallas_call(
        kernel,
        out_shape=jax.ShapeDtypeStruct((Bp, Op), jnp.float32),
        in_specs=[vmem] * 8,
        out_specs=vmem,
        scratch_shapes=[
            pltpu.VMEM((T * Bp, 4 * Hp), jnp.float32),   # layer-1 input proj
        ],
    )(x2d, wih1, whh1, b1, w2, b2, wfc, bfc)
    return out[:B, :O]


def init_params(key, input_size=3, hidden_size=50, output_size=3 * 20):
    """Deterministic init mimicking PyTorch's U(-1/sqrt(H), 1/sqrt(H))."""
    H, I, O = hidden_size, input_size, output_size
    bound = 1.0 / jnp.sqrt(jnp.float32(H))
    ks = jax.random.split(key, 11)

    def u(k, shape):
        return jax.random.uniform(k, shape, jnp.float32, -bound, bound)

    # weights stored pre-transposed (unpadded): (in_features, 4H) / (H, O);
    # PyTorch gate order [i, f, g, o]; b_ih + b_hh folded into one bias.
    params = {
        "wih1": u(ks[0], (I, 4 * H)),
        "whh1": u(ks[1], (H, 4 * H)),
        "b1":   u(ks[2], (1, 4 * H)) + u(ks[3], (1, 4 * H)),
        "wih2": u(ks[4], (H, 4 * H)),
        "whh2": u(ks[5], (H, 4 * H)),
        "b2":   u(ks[6], (1, 4 * H)) + u(ks[7], (1, 4 * H)),
        "wfc":  u(ks[8], (H, O)),
        "bfc":  u(ks[9], (1, O)),
    }
    return params


def _reference_forward(x, params):
    """Pure-JAX reference (mirrors the PyTorch forward) for a sanity check."""
    H = params["whh1"].shape[0]

    def cell(x_t, h, c, wih, whh, b):
        g = x_t @ wih + h @ whh + b
        i = jax.nn.sigmoid(g[:, 0 * H:1 * H])
        f = jax.nn.sigmoid(g[:, 1 * H:2 * H])
        gg = jnp.tanh(g[:, 2 * H:3 * H])
        o = jax.nn.sigmoid(g[:, 3 * H:4 * H])
        c = f * c + i * gg
        h = o * jnp.tanh(c)
        return h, c

    def run_layer(seq, wih, whh, b):
        B = seq.shape[1]
        h0 = jnp.zeros((B, H), jnp.float32)
        c0 = jnp.zeros((B, H), jnp.float32)

        def scan_fn(carry, x_t):
            h, c = carry
            h, c = cell(x_t, h, c, wih, whh, b)
            return (h, c), h

        (_, _), hs = jax.lax.scan(scan_fn, (h0, c0), seq)
        return hs                                    # (T, B, H)

    seq = jnp.transpose(x, (1, 0, 2))                # (T, B, I)
    h1 = run_layer(seq, params["wih1"], params["whh1"], params["b1"])
    h2 = run_layer(h1, params["wih2"], params["whh2"], params["b2"])
    return h2[-1] @ params["wfc"] + params["bfc"]    # (B, O)


if __name__ == "__main__":
    key = jax.random.PRNGKey(0)
    k_param, k_x = jax.random.split(key)

    B, T, I, H, O = 2, 8, 3, 50, 60
    params = init_params(k_param, input_size=I, hidden_size=H, output_size=O)
    x = jax.random.normal(k_x, (B, T, I), jnp.float32)

    fwd = jax.jit(functools.partial(lstm_model_forward, params=params))
    out = fwd(x)
    jax.block_until_ready(out)

    ref = _reference_forward(x, params)
    assert out.shape == (B, O)
    assert jnp.allclose(out, ref, atol=2e-4, rtol=2e-4), "mismatch vs reference"

    print("KERNEL_OK")
</pallas_src>

<mosaic_0001>
module attributes {stable_mosaic.version = 11 : i64} {
  func.func @_lstm_fc_kernel(%arg0: memref<64x8xf32, #tpu.memory_space<vmem>>, %arg1: memref<8x512xf32, #tpu.memory_space<vmem>>, %arg2: memref<128x512xf32, #tpu.memory_space<vmem>>, %arg3: memref<1x512xf32, #tpu.memory_space<vmem>>, %arg4: memref<256x512xf32, #tpu.memory_space<vmem>>, %arg5: memref<1x512xf32, #tpu.memory_space<vmem>>, %arg6: memref<128x128xf32, #tpu.memory_space<vmem>>, %arg7: memref<1x128xf32, #tpu.memory_space<vmem>>, %arg8: memref<8x128xf32, #tpu.memory_space<vmem>>, %arg9: memref<64x512xf32, #tpu.memory_space<vmem>>) attributes {dimension_semantics = [], scalar_prefetch = 0 : i64, scratch_operands = 1 : i64, tpu.core_type = #tpu.core_type<tc>} {
    %c0 = arith.constant 0 : index
    %c0_0 = arith.constant 0 : index
    %0 = vector.load %arg0[%c0, %c0_0] : memref<64x8xf32, #tpu.memory_space<vmem>>, vector<64x8xf32>
    %c0_1 = arith.constant 0 : index
    %c0_2 = arith.constant 0 : index
    %1 = vector.load %arg1[%c0_1, %c0_2] : memref<8x512xf32, #tpu.memory_space<vmem>>, vector<8x512xf32>
    %cst = arith.constant dense<0.000000e+00> : vector<64x512xf32>
    %2 = tpu.matmul %0, %1, %cst {dimension_numbers = #tpu.dot_dimension_numbers<[1], [0], [0], [1], [0, 0, 1, 1], [], []>} : vector<64x8xf32>, vector<8x512xf32>, vector<64x512xf32> -> vector<64x512xf32>
    %c0_3 = arith.constant 0 : index
    %c0_4 = arith.constant 0 : index
    %3 = vector.load %arg3[%c0_3, %c0_4] : memref<1x512xf32, #tpu.memory_space<vmem>>, vector<1x512xf32>
    %4 = vector.broadcast %3 : vector<1x512xf32> to vector<64x512xf32>
    %5 = arith.addf %2, %4 : vector<64x512xf32>
    %c0_5 = arith.constant 0 : index
    %c0_6 = arith.constant 0 : index
    %6 = vector.load %arg9[%c0_5, %c0_6] : memref<64x512xf32, #tpu.memory_space<vmem>>, vector<64x512xf32>
    tpu.vector_store %arg9[%c0_5, %c0_6], %5 {strides = array<i32>} : memref<64x512xf32, #tpu.memory_space<vmem>>, vector<64x512xf32>,
    %c0_7 = arith.constant 0 : index
    %c0_8 = arith.constant 0 : index
    %7 = vector.load %arg9[%c0_7, %c0_8] : memref<64x512xf32, #tpu.memory_space<vmem>>, vector<8x512xf32>
    %8 = vector.extract_strided_slice %7 {offsets = [0, 0], sizes = [8, 128], strides = [1, 1]} : vector<8x512xf32> to vector<8x128xf32>
    %9 = arith.negf %8 : vector<8x128xf32>
    %10 = math.exp %9 : vector<8x128xf32>
    %cst_9 = arith.constant 1.000000e+00 : f32
    %11 = vector.broadcast %cst_9 : f32 to vector<8x128xf32>
    %12 = arith.addf %11, %10 : vector<8x128xf32>
    %13 = arith.divf %11, %12 : vector<8x128xf32>
    %14 = vector.extract_strided_slice %7 {offsets = [0, 256], sizes = [8, 128], strides = [1, 1]} : vector<8x512xf32> to vector<8x128xf32>
    %15 = math.tanh %14 : vector<8x128xf32>
    %16 = vector.extract_strided_slice %7 {offsets = [0, 384], sizes = [8, 128], strides = [1, 1]} : vector<8x512xf32> to vector<8x128xf32>
    %17 = arith.negf %16 : vector<8x128xf32>
    %18 = math.exp %17 : vector<8x128xf32>
    %cst_10 = arith.constant 1.000000e+00 : f32
    %19 = vector.broadcast %cst_10 : f32 to vector<8x128xf32>
    %20 = arith.addf %19, %18 : vector<8x128xf32>
    %21 = arith.divf %19, %20 : vector<8x128xf32>
    %22 = arith.mulf %13, %15 : vector<8x128xf32>
    %23 = math.tanh %22 : vector<8x128xf32>
    %24 = arith.mulf %21, %23 : vector<8x128xf32>
    %c8 = arith.constant 8 : index
    %c0_11 = arith.constant 0 : index
    %25 = vector.load %arg9[%c8, %c0_11] : memref<64x512xf32, #tpu.memory_space<vmem>>, vector<8x512xf32>
    %c0_12 = arith.constant 0 : index
    %c0_13 = arith.constant 0 : index
    %26 = vector.load %arg2[%c0_12, %c0_13] : memref<128x512xf32, #tpu.memory_space<vmem>>, vector<128x512xf32>
    %cst_14 = arith.constant dense<0.000000e+00> : vector<8x512xf32>
    %27 = tpu.matmul %24, %26, %cst_14 {dimension_numbers = #tpu.dot_dimension_numbers<[1], [0], [0], [1], [0, 0, 1, 1], [], []>} : vector<8x128xf32>, vector<128x512xf32>, vector<8x512xf32> -> vector<8x512xf32>
    %28 = arith.addf %25, %27 : vector<8x512xf32>
    %29 = vector.extract_strided_slice %28 {offsets = [0, 0], sizes = [8, 128], strides = [1, 1]} : vector<8x512xf32> to vector<8x128xf32>
    %30 = arith.negf %29 : vector<8x128xf32>
    %31 = math.exp %30 : vector<8x128xf32>
    %cst_15 = arith.constant 1.000000e+00 : f32
    %32 = vector.broadcast %cst_15 : f32 to vector<8x128xf32>
    %33 = arith.addf %32, %31 : vector<8x128xf32>
    %34 = arith.divf %32, %33 : vector<8x128xf32>
    %35 = vector.extract_strided_slice %28 {offsets = [0, 128], sizes = [8, 128], strides = [1, 1]} : vector<8x512xf32> to vector<8x128xf32>
    %36 = arith.negf %35 : vector<8x128xf32>
    %37 = math.exp %36 : vector<8x128xf32>
    %cst_16 = arith.constant 1.000000e+00 : f32
    %38 = vector.broadcast %cst_16 : f32 to vector<8x128xf32>
    %39 = arith.addf %38, %37 : vector<8x128xf32>
    %40 = arith.divf %38, %39 : vector<8x128xf32>
    %41 = vector.extract_strided_slice %28 {offsets = [0, 256], sizes = [8, 128], strides = [1, 1]} : vector<8x512xf32> to vector<8x128xf32>
    %42 = math.tanh %41 : vector<8x128xf32>
    %43 = vector.extract_strided_slice %28 {offsets = [0, 384], sizes = [8, 128], strides = [1, 1]} : vector<8x512xf32> to vector<8x128xf32>
    %44 = arith.negf %43 : vector<8x128xf32>
    %45 = math.exp %44 : vector<8x128xf32>
    %cst_17 = arith.constant 1.000000e+00 : f32
    %46 = vector.broadcast %cst_17 : f32 to vector<8x128xf32>
    %47 = arith.addf %46, %45 : vector<8x128xf32>
    %48 = arith.divf %46, %47 : vector<8x128xf32>
    %49 = arith.mulf %40, %22 : vector<8x128xf32>
    %50 = arith.mulf %34, %42 : vector<8x128xf32>
    %51 = arith.addf %49, %50 : vector<8x128xf32>
    %52 = math.tanh %51 : vector<8x128xf32>
    %53 = arith.mulf %48, %52 : vector<8x128xf32>
    %c0_18 = arith.constant 0 : index
    %c0_19 = arith.constant 0 : index
    %54 = vector.load %arg4[%c0_18, %c0_19] : memref<256x512xf32, #tpu.memory_space<vmem>>, vector<128x512xf32>
    %cst_20 = arith.constant dense<0.000000e+00> : vector<8x512xf32>
    %55 = tpu.matmul %24, %54, %cst_20 {dimension_numbers = #tpu.dot_dimension_numbers<[1], [0], [0], [1], [0, 0, 1, 1], [], []>} : vector<8x128xf32>, vector<128x512xf32>, vector<8x512xf32> -> vector<8x512xf32>
    %c0_21 = arith.constant 0 : index
    %c0_22 = arith.constant 0 : index
    %56 = vector.load %arg5[%c0_21, %c0_22] : memref<1x512xf32, #tpu.memory_space<vmem>>, vector<1x512xf32>
    %57 = vector.broadcast %56 : vector<1x512xf32> to vector<8x512xf32>
    %58 = arith.addf %55, %57 : vector<8x512xf32>
    %59 = vector.extract_strided_slice %58 {offsets = [0, 0], sizes = [8, 128], strides = [1, 1]} : vector<8x512xf32> to vector<8x128xf32>
    %60 = arith.negf %59 : vector<8x128xf32>
    %61 = math.exp %60 : vector<8x128xf32>
    %cst_23 = arith.constant 1.000000e+00 : f32
    %62 = vector.broadcast %cst_23 : f32 to vector<8x128xf32>
    %63 = arith.addf %62, %61 : vector<8x128xf32>
    %64 = arith.divf %62, %63 : vector<8x128xf32>
    %65 = vector.extract_strided_slice %58 {offsets = [0, 256], sizes = [8, 128], strides = [1, 1]} : vector<8x512xf32> to vector<8x128xf32>
    %66 = math.tanh %65 : vector<8x128xf32>
    %67 = vector.extract_strided_slice %58 {offsets = [0, 384], sizes = [8, 128], strides = [1, 1]} : vector<8x512xf32> to vector<8x128xf32>
    %68 = arith.negf %67 : vector<8x128xf32>
    %69 = math.exp %68 : vector<8x128xf32>
    %cst_24 = arith.constant 1.000000e+00 : f32
    %70 = vector.broadcast %cst_24 : f32 to vector<8x128xf32>
    %71 = arith.addf %70, %69 : vector<8x128xf32>
    %72 = arith.divf %70, %71 : vector<8x128xf32>
    %73 = arith.mulf %64, %66 : vector<8x128xf32>
    %74 = math.tanh %73 : vector<8x128xf32>
    %75 = arith.mulf %72, %74 : vector<8x128xf32>
    %c16 = arith.constant 16 : index
    %c0_25 = arith.constant 0 : index
    %76 = vector.load %arg9[%c16, %c0_25] : memref<64x512xf32, #tpu.memory_space<vmem>>, vector<8x512xf32>
    %c0_26 = arith.constant 0 : index
    %c0_27 = arith.constant 0 : index
    %77 = vector.load %arg2[%c0_26, %c0_27] : memref<128x512xf32, #tpu.memory_space<vmem>>, vector<128x512xf32>
    %cst_28 = arith.constant dense<0.000000e+00> : vector<8x512xf32>
    %78 = tpu.matmul %53, %77, %cst_28 {dimension_numbers = #tpu.dot_dimension_numbers<[1], [0], [0], [1], [0, 0, 1, 1], [], []>} : vector<8x128xf32>, vector<128x512xf32>, vector<8x512xf32> -> vector<8x512xf32>
    %79 = arith.addf %76, %78 : vector<8x512xf32>
    %80 = vector.extract_strided_slice %79 {offsets = [0, 0], sizes = [8, 128], strides = [1, 1]} : vector<8x512xf32> to vector<8x128xf32>
    %81 = arith.negf %80 : vector<8x128xf32>
    %82 = math.exp %81 : vector<8x128xf32>
    %cst_29 = arith.constant 1.000000e+00 : f32
    %83 = vector.broadcast %cst_29 : f32 to vector<8x128xf32>
    %84 = arith.addf %83, %82 : vector<8x128xf32>
    %85 = arith.divf %83, %84 : vector<8x128xf32>
    %86 = vector.extract_strided_slice %79 {offsets = [0, 128], sizes = [8, 128], strides = [1, 1]} : vector<8x512xf32> to vector<8x128xf32>
    %87 = arith.negf %86 : vector<8x128xf32>
    %88 = math.exp %87 : vector<8x128xf32>
    %cst_30 = arith.constant 1.000000e+00 : f32
    %89 = vector.broadcast %cst_30 : f32 to vector<8x128xf32>
    %90 = arith.addf %89, %88 : vector<8x128xf32>
    %91 = arith.divf %89, %90 : vector<8x128xf32>
    %92 = vector.extract_strided_slice %79 {offsets = [0, 256], sizes = [8, 128], strides = [1, 1]} : vector<8x512xf32> to vector<8x128xf32>
    %93 = math.tanh %92 : vector<8x128xf32>
    %94 = vector.extract_strided_slice %79 {offsets = [0, 384], sizes = [8, 128], strides = [1, 1]} : vector<8x512xf32> to vector<8x128xf32>
    %95 = arith.negf %94 : vector<8x128xf32>
    %96 = math.exp %95 : vector<8x128xf32>
    %cst_31 = arith.constant 1.000000e+00 : f32
    %97 = vector.broadcast %cst_31 : f32 to vector<8x128xf32>
    %98 = arith.addf %97, %96 : vector<8x128xf32>
    %99 = arith.divf %97, %98 : vector<8x128xf32>
    %100 = arith.mulf %91, %51 : vector<8x128xf32>
    %101 = arith.mulf %85, %93 : vector<8x128xf32>
    %102 = arith.addf %100, %101 : vector<8x128xf32>
    %103 = math.tanh %102 : vector<8x128xf32>
    %104 = arith.mulf %99, %103 : vector<8x128xf32>
    %105 = tpu.concatenate %53, %75 in 1 : vector<8x128xf32>, vector<8x128xf32> -> vector<8x256xf32>
    %c0_32 = arith.constant 0 : index
    %c0_33 = arith.constant 0 : index
    %106 = vector.load %arg4[%c0_32, %c0_33] : memref<256x512xf32, #tpu.memory_space<vmem>>, vector<256x512xf32>
    %cst_34 = arith.constant dense<0.000000e+00> : vector<8x512xf32>
    %107 = tpu.matmul %105, %106, %cst_34 {dimension_numbers = #tpu.dot_dimension_numbers<[1], [0], [0], [1], [0, 0, 1, 1], [], []>} : vector<8x256xf32>, vector<256x512xf32>, vector<8x512xf32> -> vector<8x512xf32>
    %c0_35 = arith.constant 0 : index
    %c0_36 = arith.constant 0 : index
    %108 = vector.load %arg5[%c0_35, %c0_36] : memref<1x512xf32, #tpu.memory_space<vmem>>, vector<1x512xf32>
    %109 = vector.broadcast %108 : vector<1x512xf32> to vector<8x512xf32>
    %110 = arith.addf %107, %109 : vector<8x512xf32>
    %111 = vector.extract_strided_slice %110 {offsets = [0, 0], sizes = [8, 128], strides = [1, 1]} : vector<8x512xf32> to vector<8x128xf32>
    %112 = arith.negf %111 : vector<8x128xf32>
    %113 = math.exp %112 : vector<8x128xf32>
    %cst_37 = arith.constant 1.000000e+00 : f32
    %114 = vector.broadcast %cst_37 : f32 to vector<8x128xf32>
    %115 = arith.addf %114, %113 : vector<8x128xf32>
    %116 = arith.divf %114, %115 : vector<8x128xf32>
    %117 = vector.extract_strided_slice %110 {offsets = [0, 128], sizes = [8, 128], strides = [1, 1]} : vector<8x512xf32> to vector<8x128xf32>
    %118 = arith.negf %117 : vector<8x128xf32>
    %119 = math.exp %118 : vector<8x128xf32>
    %cst_38 = arith.constant 1.000000e+00 : f32
    %120 = vector.broadcast %cst_38 : f32 to vector<8x128xf32>
    %121 = arith.addf %120, %119 : vector<8x128xf32>
    %122 = arith.divf %120, %121 : vector<8x128xf32>
    %123 = vector.extract_strided_slice %110 {offsets = [0, 256], sizes = [8, 128], strides = [1, 1]} : vector<8x512xf32> to vector<8x128xf32>
    %124 = math.tanh %123 : vector<8x128xf32>
    %125 = vector.extract_strided_slice %110 {offsets = [0, 384], sizes = [8, 128], strides = [1, 1]} : vector<8x512xf32> to vector<8x128xf32>
    %126 = arith.negf %125 : vector<8x128xf32>
    %127 = math.exp %126 : vector<8x128xf32>
    %cst_39 = arith.constant 1.000000e+00 : f32
    %128 = vector.broadcast %cst_39 : f32 to vector<8x128xf32>
    %129 = arith.addf %128, %127 : vector<8x128xf32>
    %130 = arith.divf %128, %129 : vector<8x128xf32>
    %131 = arith.mulf %122, %73 : vector<8x128xf32>
    %132 = arith.mulf %116, %124 : vector<8x128xf32>
    %133 = arith.addf %131, %132 : vector<8x128xf32>
    %134 = math.tanh %133 : vector<8x128xf32>
    %135 = arith.mulf %130, %134 : vector<8x128xf32>
    %c24 = arith.constant 24 : index
    %c0_40 = arith.constant 0 : index
    %136 = vector.load %arg9[%c24, %c0_40] : memref<64x512xf32, #tpu.memory_space<vmem>>, vector<8x512xf32>
    %c0_41 = arith.constant 0 : index
    %c0_42 = arith.constant 0 : index
    %137 = vector.load %arg2[%c0_41, %c0_42] : memref<128x512xf32, #tpu.memory_space<vmem>>, vector<128x512xf32>
    %cst_43 = arith.constant dense<0.000000e+00> : vector<8x512xf32>
    %138 = tpu.matmul %104, %137, %cst_43 {dimension_numbers = #tpu.dot_dimension_numbers<[1], [0], [0], [1], [0, 0, 1, 1], [], []>} : vector<8x128xf32>, vector<128x512xf32>, vector<8x512xf32> -> vector<8x512xf32>
    %139 = arith.addf %136, %138 : vector<8x512xf32>
    %140 = vector.extract_strided_slice %139 {offsets = [0, 0], sizes = [8, 128], strides = [1, 1]} : vector<8x512xf32> to vector<8x128xf32>
    %141 = arith.negf %140 : vector<8x128xf32>
    %142 = math.exp %141 : vector<8x128xf32>
    %cst_44 = arith.constant 1.000000e+00 : f32
    %143 = vector.broadcast %cst_44 : f32 to vector<8x128xf32>
    %144 = arith.addf %143, %142 : vector<8x128xf32>
    %145 = arith.divf %143, %144 : vector<8x128xf32>
    %146 = vector.extract_strided_slice %139 {offsets = [0, 128], sizes = [8, 128], strides = [1, 1]} : vector<8x512xf32> to vector<8x128xf32>
    %147 = arith.negf %146 : vector<8x128xf32>
    %148 = math.exp %147 : vector<8x128xf32>
    %cst_45 = arith.constant 1.000000e+00 : f32
    %149 = vector.broadcast %cst_45 : f32 to vector<8x128xf32>
    %150 = arith.addf %149, %148 : vector<8x128xf32>
    %151 = arith.divf %149, %150 : vector<8x128xf32>
    %152 = vector.extract_strided_slice %139 {offsets = [0, 256], sizes = [8, 128], strides = [1, 1]} : vector<8x512xf32> to vector<8x128xf32>
    %153 = math.tanh %152 : vector<8x128xf32>
    %154 = vector.extract_strided_slice %139 {offsets = [0, 384], sizes = [8, 128], strides = [1, 1]} : vector<8x512xf32> to vector<8x128xf32>
    %155 = arith.negf %154 : vector<8x128xf32>
    %156 = math.exp %155 : vector<8x128xf32>
    %cst_46 = arith.constant 1.000000e+00 : f32
    %157 = vector.broadcast %cst_46 : f32 to vector<8x128xf32>
    %158 = arith.addf %157, %156 : vector<8x128xf32>
    %159 = arith.divf %157, %158 : vector<8x128xf32>
    %160 = arith.mulf %151, %102 : vector<8x128xf32>
    %161 = arith.mulf %145, %153 : vector<8x128xf32>
    %162 = arith.addf %160, %161 : vector<8x128xf32>
    %163 = math.tanh %162 : vector<8x128xf32>
    %164 = arith.mulf %159, %163 : vector<8x128xf32>
    %165 = tpu.concatenate %104, %135 in 1 : vector<8x128xf32>, vector<8x128xf32> -> vector<8x256xf32>
    %c0_47 = arith.constant 0 : index
    %c0_48 = arith.constant 0 : index
    %166 = vector.load %arg4[%c0_47, %c0_48] : memref<256x512xf32, #tpu.memory_space<vmem>>, vector<256x512xf32>
    %cst_49 = arith.constant dense<0.000000e+00> : vector<8x512xf32>
    %167 = tpu.matmul %165, %166, %cst_49 {dimension_numbers = #tpu.dot_dimension_numbers<[1], [0], [0], [1], [0, 0, 1, 1], [], []>} : vector<8x256xf32>, vector<256x512xf32>, vector<8x512xf32> -> vector<8x512xf32>
    %c0_50 = arith.constant 0 : index
    %c0_51 = arith.constant 0 : index
    %168 = vector.load %arg5[%c0_50, %c0_51] : memref<1x512xf32, #tpu.memory_space<vmem>>, vector<1x512xf32>
    %169 = vector.broadcast %168 : vector<1x512xf32> to vector<8x512xf32>
    %170 = arith.addf %167, %169 : vector<8x512xf32>
    %171 = vector.extract_strided_slice %170 {offsets = [0, 0], sizes = [8, 128], strides = [1, 1]} : vector<8x512xf32> to vector<8x128xf32>
    %172 = arith.negf %171 : vector<8x128xf32>
    %173 = math.exp %172 : vector<8x128xf32>
    %cst_52 = arith.constant 1.000000e+00 : f32
    %174 = vector.broadcast %cst_52 : f32 to vector<8x128xf32>
    %175 = arith.addf %174, %173 : vector<8x128xf32>
    %176 = arith.divf %174, %175 : vector<8x128xf32>
    %177 = vector.extract_strided_slice %170 {offsets = [0, 128], sizes = [8, 128], strides = [1, 1]} : vector<8x512xf32> to vector<8x128xf32>
    %178 = arith.negf %177 : vector<8x128xf32>
    %179 = math.exp %178 : vector<8x128xf32>
    %cst_53 = arith.constant 1.000000e+00 : f32
    %180 = vector.broadcast %cst_53 : f32 to vector<8x128xf32>
    %181 = arith.addf %180, %179 : vector<8x128xf32>
    %182 = arith.divf %180, %181 : vector<8x128xf32>
    %183 = vector.extract_strided_slice %170 {offsets = [0, 256], sizes = [8, 128], strides = [1, 1]} : vector<8x512xf32> to vector<8x128xf32>
    %184 = math.tanh %183 : vector<8x128xf32>
    %185 = vector.extract_strided_slice %170 {offsets = [0, 384], sizes = [8, 128], strides = [1, 1]} : vector<8x512xf32> to vector<8x128xf32>
    %186 = arith.negf %185 : vector<8x128xf32>
    %187 = math.exp %186 : vector<8x128xf32>
    %cst_54 = arith.constant 1.000000e+00 : f32
    %188 = vector.broadcast %cst_54 : f32 to vector<8x128xf32>
    %189 = arith.addf %188, %187 : vector<8x128xf32>
    %190 = arith.divf %188, %189 : vector<8x128xf32>
    %191 = arith.mulf %182, %133 : vector<8x128xf32>
    %192 = arith.mulf %176, %184 : vector<8x128xf32>
    %193 = arith.addf %191, %192 : vector<8x128xf32>
    %194 = math.tanh %193 : vector<8x128xf32>
    %195 = arith.mulf %190, %194 : vector<8x128xf32>
    %c32 = arith.constant 32 : index
    %c0_55 = arith.constant 0 : index
    %196 = vector.load %arg9[%c32, %c0_55] : memref<64x512xf32, #tpu.memory_space<vmem>>, vector<8x512xf32>
    %c0_56 = arith.constant 0 : index
    %c0_57 = arith.constant 0 : index
    %197 = vector.load %arg2[%c0_56, %c0_57] : memref<128x512xf32, #tpu.memory_space<vmem>>, vector<128x512xf32>
    %cst_58 = arith.constant dense<0.000000e+00> : vector<8x512xf32>
    %198 = tpu.matmul %164, %197, %cst_58 {dimension_numbers = #tpu.dot_dimension_numbers<[1], [0], [0], [1], [0, 0, 1, 1], [], []>} : vector<8x128xf32>, vector<128x512xf32>, vector<8x512xf32> -> vector<8x512xf32>
    %199 = arith.addf %196, %198 : vector<8x512xf32>
    %200 = vector.extract_strided_slice %199 {offsets = [0, 0], sizes = [8, 128], strides = [1, 1]} : vector<8x512xf32> to vector<8x128xf32>
    %201 = arith.negf %200 : vector<8x128xf32>
    %202 = math.exp %201 : vector<8x128xf32>
    %cst_59 = arith.constant 1.000000e+00 : f32
    %203 = vector.broadcast %cst_59 : f32 to vector<8x128xf32>
    %204 = arith.addf %203, %202 : vector<8x128xf32>
    %205 = arith.divf %203, %204 : vector<8x128xf32>
    %206 = vector.extract_strided_slice %199 {offsets = [0, 128], sizes = [8, 128], strides = [1, 1]} : vector<8x512xf32> to vector<8x128xf32>
    %207 = arith.negf %206 : vector<8x128xf32>
    %208 = math.exp %207 : vector<8x128xf32>
    %cst_60 = arith.constant 1.000000e+00 : f32
    %209 = vector.broadcast %cst_60 : f32 to vector<8x128xf32>
    %210 = arith.addf %209, %208 : vector<8x128xf32>
    %211 = arith.divf %209, %210 : vector<8x128xf32>
    %212 = vector.extract_strided_slice %199 {offsets = [0, 256], sizes = [8, 128], strides = [1, 1]} : vector<8x512xf32> to vector<8x128xf32>
    %213 = math.tanh %212 : vector<8x128xf32>
    %214 = vector.extract_strided_slice %199 {offsets = [0, 384], sizes = [8, 128], strides = [1, 1]} : vector<8x512xf32> to vector<8x128xf32>
    %215 = arith.negf %214 : vector<8x128xf32>
    %216 = math.exp %215 : vector<8x128xf32>
    %cst_61 = arith.constant 1.000000e+00 : f32
    %217 = vector.broadcast %cst_61 : f32 to vector<8x128xf32>
    %218 = arith.addf %217, %216 : vector<8x128xf32>
    %219 = arith.divf %217, %218 : vector<8x128xf32>
    %220 = arith.mulf %211, %162 : vector<8x128xf32>
    %221 = arith.mulf %205, %213 : vector<8x128xf32>
    %222 = arith.addf %220, %221 : vector<8x128xf32>
    %223 = math.tanh %222 : vector<8x128xf32>
    %224 = arith.mulf %219, %223 : vector<8x128xf32>
    %225 = tpu.concatenate %164, %195 in 1 : vector<8x128xf32>, vector<8x128xf32> -> vector<8x256xf32>
    %c0_62 = arith.constant 0 : index
    %c0_63 = arith.constant 0 : index
    %226 = vector.load %arg4[%c0_62, %c0_63] : memref<256x512xf32, #tpu.memory_space<vmem>>, vector<256x512xf32>
    %cst_64 = arith.constant dense<0.000000e+00> : vector<8x512xf32>
    %227 = tpu.matmul %225, %226, %cst_64 {dimension_numbers = #tpu.dot_dimension_numbers<[1], [0], [0], [1], [0, 0, 1, 1], [], []>} : vector<8x256xf32>, vector<256x512xf32>, vector<8x512xf32> -> vector<8x512xf32>
    %c0_65 = arith.constant 0 : index
    %c0_66 = arith.constant 0 : index
    %228 = vector.load %arg5[%c0_65, %c0_66] : memref<1x512xf32, #tpu.memory_space<vmem>>, vector<1x512xf32>
    %229 = vector.broadcast %228 : vector<1x512xf32> to vector<8x512xf32>
    %230 = arith.addf %227, %229 : vector<8x512xf32>
    %231 = vector.extract_strided_slice %230 {offsets = [0, 0], sizes = [8, 128], strides = [1, 1]} : vector<8x512xf32> to vector<8x128xf32>
    %232 = arith.negf %231 : vector<8x128xf32>
    %233 = math.exp %232 : vector<8x128xf32>
    %cst_67 = arith.constant 1.000000e+00 : f32
    %234 = vector.broadcast %cst_67 : f32 to vector<8x128xf32>
    %235 = arith.addf %234, %233 : vector<8x128xf32>
    %236 = arith.divf %234, %235 : vector<8x128xf32>
    %237 = vector.extract_strided_slice %230 {offsets = [0, 128], sizes = [8, 128], strides = [1, 1]} : vector<8x512xf32> to vector<8x128xf32>
    %238 = arith.negf %237 : vector<8x128xf32>
    %239 = math.exp %238 : vector<8x128xf32>
    %cst_68 = arith.constant 1.000000e+00 : f32
    %240 = vector.broadcast %cst_68 : f32 to vector<8x128xf32>
    %241 = arith.addf %240, %239 : vector<8x128xf32>
    %242 = arith.divf %240, %241 : vector<8x128xf32>
    %243 = vector.extract_strided_slice %230 {offsets = [0, 256], sizes = [8, 128], strides = [1, 1]} : vector<8x512xf32> to vector<8x128xf32>
    %244 = math.tanh %243 : vector<8x128xf32>
    %245 = vector.extract_strided_slice %230 {offsets = [0, 384], sizes = [8, 128], strides = [1, 1]} : vector<8x512xf32> to vector<8x128xf32>
    %246 = arith.negf %245 : vector<8x128xf32>
    %247 = math.exp %246 : vector<8x128xf32>
    %cst_69 = arith.constant 1.000000e+00 : f32
    %248 = vector.broadcast %cst_69 : f32 to vector<8x128xf32>
    %249 = arith.addf %248, %247 : vector<8x128xf32>
    %250 = arith.divf %248, %249 : vector<8x128xf32>
    %251 = arith.mulf %242, %193 : vector<8x128xf32>
    %252 = arith.mulf %236, %244 : vector<8x128xf32>
    %253 = arith.addf %251, %252 : vector<8x128xf32>
    %254 = math.tanh %253 : vector<8x128xf32>
    %255 = arith.mulf %250, %254 : vector<8x128xf32>
    %c40 = arith.constant 40 : index
    %c0_70 = arith.constant 0 : index
    %256 = vector.load %arg9[%c40, %c0_70] : memref<64x512xf32, #tpu.memory_space<vmem>>, vector<8x512xf32>
    %c0_71 = arith.constant 0 : index
    %c0_72 = arith.constant 0 : index
    %257 = vector.load %arg2[%c0_71, %c0_72] : memref<128x512xf32, #tpu.memory_space<vmem>>, vector<128x512xf32>
    %cst_73 = arith.constant dense<0.000000e+00> : vector<8x512xf32>
    %258 = tpu.matmul %224, %257, %cst_73 {dimension_numbers = #tpu.dot_dimension_numbers<[1], [0], [0], [1], [0, 0, 1, 1], [], []>} : vector<8x128xf32>, vector<128x512xf32>, vector<8x512xf32> -> vector<8x512xf32>
    %259 = arith.addf %256, %258 : vector<8x512xf32>
    %260 = vector.extract_strided_slice %259 {offsets = [0, 0], sizes = [8, 128], strides = [1, 1]} : vector<8x512xf32> to vector<8x128xf32>
    %261 = arith.negf %260 : vector<8x128xf32>
    %262 = math.exp %261 : vector<8x128xf32>
    %cst_74 = arith.constant 1.000000e+00 : f32
    %263 = vector.broadcast %cst_74 : f32 to vector<8x128xf32>
    %264 = arith.addf %263, %262 : vector<8x128xf32>
    %265 = arith.divf %263, %264 : vector<8x128xf32>
    %266 = vector.extract_strided_slice %259 {offsets = [0, 128], sizes = [8, 128], strides = [1, 1]} : vector<8x512xf32> to vector<8x128xf32>
    %267 = arith.negf %266 : vector<8x128xf32>
    %268 = math.exp %267 : vector<8x128xf32>
    %cst_75 = arith.constant 1.000000e+00 : f32
    %269 = vector.broadcast %cst_75 : f32 to vector<8x128xf32>
    %270 = arith.addf %269, %268 : vector<8x128xf32>
    %271 = arith.divf %269, %270 : vector<8x128xf32>
    %272 = vector.extract_strided_slice %259 {offsets = [0, 256], sizes = [8, 128], strides = [1, 1]} : vector<8x512xf32> to vector<8x128xf32>
    %273 = math.tanh %272 : vector<8x128xf32>
    %274 = vector.extract_strided_slice %259 {offsets = [0, 384], sizes = [8, 128], strides = [1, 1]} : vector<8x512xf32> to vector<8x128xf32>
    %275 = arith.negf %274 : vector<8x128xf32>
    %276 = math.exp %275 : vector<8x128xf32>
    %cst_76 = arith.constant 1.000000e+00 : f32
    %277 = vector.broadcast %cst_76 : f32 to vector<8x128xf32>
    %278 = arith.addf %277, %276 : vector<8x128xf32>
    %279 = arith.divf %277, %278 : vector<8x128xf32>
    %280 = arith.mulf %271, %222 : vector<8x128xf32>
    %281 = arith.mulf %265, %273 : vector<8x128xf32>
    %282 = arith.addf %280, %281 : vector<8x128xf32>
    %283 = math.tanh %282 : vector<8x128xf32>
    %284 = arith.mulf %279, %283 : vector<8x128xf32>
    %285 = tpu.concatenate %224, %255 in 1 : vector<8x128xf32>, vector<8x128xf32> -> vector<8x256xf32>
    %c0_77 = arith.constant 0 : index
    %c0_78 = arith.constant 0 : index
    %286 = vector.load %arg4[%c0_77, %c0_78] : memref<256x512xf32, #tpu.memory_space<vmem>>, vector<256x512xf32>
    %cst_79 = arith.constant dense<0.000000e+00> : vector<8x512xf32>
    %287 = tpu.matmul %285, %286, %cst_79 {dimension_numbers = #tpu.dot_dimension_numbers<[1], [0], [0], [1], [0, 0, 1, 1], [], []>} : vector<8x256xf32>, vector<256x512xf32>, vector<8x512xf32> -> vector<8x512xf32>
    %c0_80 = arith.constant 0 : index
    %c0_81 = arith.constant 0 : index
    %288 = vector.load %arg5[%c0_80, %c0_81] : memref<1x512xf32, #tpu.memory_space<vmem>>, vector<1x512xf32>
    %289 = vector.broadcast %288 : vector<1x512xf32> to vector<8x512xf32>
    %290 = arith.addf %287, %289 : vector<8x512xf32>
    %291 = vector.extract_strided_slice %290 {offsets = [0, 0], sizes = [8, 128], strides = [1, 1]} : vector<8x512xf32> to vector<8x128xf32>
    %292 = arith.negf %291 : vector<8x128xf32>
    %293 = math.exp %292 : vector<8x128xf32>
    %cst_82 = arith.constant 1.000000e+00 : f32
    %294 = vector.broadcast %cst_82 : f32 to vector<8x128xf32>
    %295 = arith.addf %294, %293 : vector<8x128xf32>
    %296 = arith.divf %294, %295 : vector<8x128xf32>
    %297 = vector.extract_strided_slice %290 {offsets = [0, 128], sizes = [8, 128], strides = [1, 1]} : vector<8x512xf32> to vector<8x128xf32>
    %298 = arith.negf %297 : vector<8x128xf32>
    %299 = math.exp %298 : vector<8x128xf32>
    %cst_83 = arith.constant 1.000000e+00 : f32
    %300 = vector.broadcast %cst_83 : f32 to vector<8x128xf32>
    %301 = arith.addf %300, %299 : vector<8x128xf32>
    %302 = arith.divf %300, %301 : vector<8x128xf32>
    %303 = vector.extract_strided_slice %290 {offsets = [0, 256], sizes = [8, 128], strides = [1, 1]} : vector<8x512xf32> to vector<8x128xf32>
    %304 = math.tanh %303 : vector<8x128xf32>
    %305 = vector.extract_strided_slice %290 {offsets = [0, 384], sizes = [8, 128], strides = [1, 1]} : vector<8x512xf32> to vector<8x128xf32>
    %306 = arith.negf %305 : vector<8x128xf32>
    %307 = math.exp %306 : vector<8x128xf32>
    %cst_84 = arith.constant 1.000000e+00 : f32
    %308 = vector.broadcast %cst_84 : f32 to vector<8x128xf32>
    %309 = arith.addf %308, %307 : vector<8x128xf32>
    %310 = arith.divf %308, %309 : vector<8x128xf32>
    %311 = arith.mulf %302, %253 : vector<8x128xf32>
    %312 = arith.mulf %296, %304 : vector<8x128xf32>
    %313 = arith.addf %311, %312 : vector<8x128xf32>
    %314 = math.tanh %313 : vector<8x128xf32>
    %315 = arith.mulf %310, %314 : vector<8x128xf32>
    %c48 = arith.constant 48 : index
    %c0_85 = arith.constant 0 : index
    %316 = vector.load %arg9[%c48, %c0_85] : memref<64x512xf32, #tpu.memory_space<vmem>>, vector<8x512xf32>
    %c0_86 = arith.constant 0 : index
    %c0_87 = arith.constant 0 : index
    %317 = vector.load %arg2[%c0_86, %c0_87] : memref<128x512xf32, #tpu.memory_space<vmem>>, vector<128x512xf32>
    %cst_88 = arith.constant dense<0.000000e+00> : vector<8x512xf32>
    %318 = tpu.matmul %284, %317, %cst_88 {dimension_numbers = #tpu.dot_dimension_numbers<[1], [0], [0], [1], [0, 0, 1, 1], [], []>} : vector<8x128xf32>, vector<128x512xf32>, vector<8x512xf32> -> vector<8x512xf32>
    %319 = arith.addf %316, %318 : vector<8x512xf32>
    %320 = vector.extract_strided_slice %319 {offsets = [0, 0], sizes = [8, 128], strides = [1, 1]} : vector<8x512xf32> to vector<8x128xf32>
    %321 = arith.negf %320 : vector<8x128xf32>
    %322 = math.exp %321 : vector<8x128xf32>
    %cst_89 = arith.constant 1.000000e+00 : f32
    %323 = vector.broadcast %cst_89 : f32 to vector<8x128xf32>
    %324 = arith.addf %323, %322 : vector<8x128xf32>
    %325 = arith.divf %323, %324 : vector<8x128xf32>
    %326 = vector.extract_strided_slice %319 {offsets = [0, 128], sizes = [8, 128], strides = [1, 1]} : vector<8x512xf32> to vector<8x128xf32>
    %327 = arith.negf %326 : vector<8x128xf32>
    %328 = math.exp %327 : vector<8x128xf32>
    %cst_90 = arith.constant 1.000000e+00 : f32
    %329 = vector.broadcast %cst_90 : f32 to vector<8x128xf32>
    %330 = arith.addf %329, %328 : vector<8x128xf32>
    %331 = arith.divf %329, %330 : vector<8x128xf32>
    %332 = vector.extract_strided_slice %319 {offsets = [0, 256], sizes = [8, 128], strides = [1, 1]} : vector<8x512xf32> to vector<8x128xf32>
    %333 = math.tanh %332 : vector<8x128xf32>
    %334 = vector.extract_strided_slice %319 {offsets = [0, 384], sizes = [8, 128], strides = [1, 1]} : vector<8x512xf32> to vector<8x128xf32>
    %335 = arith.negf %334 : vector<8x128xf32>
    %336 = math.exp %335 : vector<8x128xf32>
    %cst_91 = arith.constant 1.000000e+00 : f32
    %337 = vector.broadcast %cst_91 : f32 to vector<8x128xf32>
    %338 = arith.addf %337, %336 : vector<8x128xf32>
    %339 = arith.divf %337, %338 : vector<8x128xf32>
    %340 = arith.mulf %331, %282 : vector<8x128xf32>
    %341 = arith.mulf %325, %333 : vector<8x128xf32>
    %342 = arith.addf %340, %341 : vector<8x128xf32>
    %343 = math.tanh %342 : vector<8x128xf32>
    %344 = arith.mulf %339, %343 : vector<8x128xf32>
    %345 = tpu.concatenate %284, %315 in 1 : vector<8x128xf32>, vector<8x128xf32> -> vector<8x256xf32>
    %c0_92 = arith.constant 0 : index
    %c0_93 = arith.constant 0 : index
    %346 = vector.load %arg4[%c0_92, %c0_93] : memref<256x512xf32, #tpu.memory_space<vmem>>, vector<256x512xf32>
    %cst_94 = arith.constant dense<0.000000e+00> : vector<8x512xf32>
    %347 = tpu.matmul %345, %346, %cst_94 {dimension_numbers = #tpu.dot_dimension_numbers<[1], [0], [0], [1], [0, 0, 1, 1], [], []>} : vector<8x256xf32>, vector<256x512xf32>, vector<8x512xf32> -> vector<8x512xf32>
    %c0_95 = arith.constant 0 : index
    %c0_96 = arith.constant 0 : index
    %348 = vector.load %arg5[%c0_95, %c0_96] : memref<1x512xf32, #tpu.memory_space<vmem>>, vector<1x512xf32>
    %349 = vector.broadcast %348 : vector<1x512xf32> to vector<8x512xf32>
    %350 = arith.addf %347, %349 : vector<8x512xf32>
    %351 = vector.extract_strided_slice %350 {offsets = [0, 0], sizes = [8, 128], strides = [1, 1]} : vector<8x512xf32> to vector<8x128xf32>
    %352 = arith.negf %351 : vector<8x128xf32>
    %353 = math.exp %352 : vector<8x128xf32>
    %cst_97 = arith.constant 1.000000e+00 : f32
    %354 = vector.broadcast %cst_97 : f32 to vector<8x128xf32>
    %355 = arith.addf %354, %353 : vector<8x128xf32>
    %356 = arith.divf %354, %355 : vector<8x128xf32>
    %357 = vector.extract_strided_slice %350 {offsets = [0, 128], sizes = [8, 128], strides = [1, 1]} : vector<8x512xf32> to vector<8x128xf32>
    %358 = arith.negf %357 : vector<8x128xf32>
    %359 = math.exp %358 : vector<8x128xf32>
    %cst_98 = arith.constant 1.000000e+00 : f32
    %360 = vector.broadcast %cst_98 : f32 to vector<8x128xf32>
    %361 = arith.addf %360, %359 : vector<8x128xf32>
    %362 = arith.divf %360, %361 : vector<8x128xf32>
    %363 = vector.extract_strided_slice %350 {offsets = [0, 256], sizes = [8, 128], strides = [1, 1]} : vector<8x512xf32> to vector<8x128xf32>
    %364 = math.tanh %363 : vector<8x128xf32>
    %365 = vector.extract_strided_slice %350 {offsets = [0, 384], sizes = [8, 128], strides = [1, 1]} : vector<8x512xf32> to vector<8x128xf32>
    %366 = arith.negf %365 : vector<8x128xf32>
    %367 = math.exp %366 : vector<8x128xf32>
    %cst_99 = arith.constant 1.000000e+00 : f32
    %368 = vector.broadcast %cst_99 : f32 to vector<8x128xf32>
    %369 = arith.addf %368, %367 : vector<8x128xf32>
    %370 = arith.divf %368, %369 : vector<8x128xf32>
    %371 = arith.mulf %362, %313 : vector<8x128xf32>
    %372 = arith.mulf %356, %364 : vector<8x128xf32>
    %373 = arith.addf %371, %372 : vector<8x128xf32>
    %374 = math.tanh %373 : vector<8x128xf32>
    %375 = arith.mulf %370, %374 : vector<8x128xf32>
    %c56 = arith.constant 56 : index
    %c0_100 = arith.constant 0 : index
    %376 = vector.load %arg9[%c56, %c0_100] : memref<64x512xf32, #tpu.memory_space<vmem>>, vector<8x512xf32>
    %c0_101 = arith.constant 0 : index
    %c0_102 = arith.constant 0 : index
    %377 = vector.load %arg2[%c0_101, %c0_102] : memref<128x512xf32, #tpu.memory_space<vmem>>, vector<128x512xf32>
    %cst_103 = arith.constant dense<0.000000e+00> : vector<8x512xf32>
    %378 = tpu.matmul %344, %377, %cst_103 {dimension_numbers = #tpu.dot_dimension_numbers<[1], [0], [0], [1], [0, 0, 1, 1], [], []>} : vector<8x128xf32>, vector<128x512xf32>, vector<8x512xf32> -> vector<8x512xf32>
    %379 = arith.addf %376, %378 : vector<8x512xf32>
    %380 = vector.extract_strided_slice %379 {offsets = [0, 0], sizes = [8, 128], strides = [1, 1]} : vector<8x512xf32> to vector<8x128xf32>
    %381 = arith.negf %380 : vector<8x128xf32>
    %382 = math.exp %381 : vector<8x128xf32>
    %cst_104 = arith.constant 1.000000e+00 : f32
    %383 = vector.broadcast %cst_104 : f32 to vector<8x128xf32>
    %384 = arith.addf %383, %382 : vector<8x128xf32>
    %385 = arith.divf %383, %384 : vector<8x128xf32>
    %386 = vector.extract_strided_slice %379 {offsets = [0, 128], sizes = [8, 128], strides = [1, 1]} : vector<8x512xf32> to vector<8x128xf32>
    %387 = arith.negf %386 : vector<8x128xf32>
    %388 = math.exp %387 : vector<8x128xf32>
    %cst_105 = arith.constant 1.000000e+00 : f32
    %389 = vector.broadcast %cst_105 : f32 to vector<8x128xf32>
    %390 = arith.addf %389, %388 : vector<8x128xf32>
    %391 = arith.divf %389, %390 : vector<8x128xf32>
    %392 = vector.extract_strided_slice %379 {offsets = [0, 256], sizes = [8, 128], strides = [1, 1]} : vector<8x512xf32> to vector<8x128xf32>
    %393 = math.tanh %392 : vector<8x128xf32>
    %394 = vector.extract_strided_slice %379 {offsets = [0, 384], sizes = [8, 128], strides = [1, 1]} : vector<8x512xf32> to vector<8x128xf32>
    %395 = arith.negf %394 : vector<8x128xf32>
    %396 = math.exp %395 : vector<8x128xf32>
    %cst_106 = arith.constant 1.000000e+00 : f32
    %397 = vector.broadcast %cst_106 : f32 to vector<8x128xf32>
    %398 = arith.addf %397, %396 : vector<8x128xf32>
    %399 = arith.divf %397, %398 : vector<8x128xf32>
    %400 = arith.mulf %391, %342 : vector<8x128xf32>
    %401 = arith.mulf %385, %393 : vector<8x128xf32>
    %402 = arith.addf %400, %401 : vector<8x128xf32>
    %403 = math.tanh %402 : vector<8x128xf32>
    %404 = arith.mulf %399, %403 : vector<8x128xf32>
    %405 = tpu.concatenate %344, %375 in 1 : vector<8x128xf32>, vector<8x128xf32> -> vector<8x256xf32>
    %c0_107 = arith.constant 0 : index
    %c0_108 = arith.constant 0 : index
    %406 = vector.load %arg4[%c0_107, %c0_108] : memref<256x512xf32, #tpu.memory_space<vmem>>, vector<256x512xf32>
    %cst_109 = arith.constant dense<0.000000e+00> : vector<8x512xf32>
    %407 = tpu.matmul %405, %406, %cst_109 {dimension_numbers = #tpu.dot_dimension_numbers<[1], [0], [0], [1], [0, 0, 1, 1], [], []>} : vector<8x256xf32>, vector<256x512xf32>, vector<8x512xf32> -> vector<8x512xf32>
    %c0_110 = arith.constant 0 : index
    %c0_111 = arith.constant 0 : index
    %408 = vector.load %arg5[%c0_110, %c0_111] : memref<1x512xf32, #tpu.memory_space<vmem>>, vector<1x512xf32>
    %409 = vector.broadcast %408 : vector<1x512xf32> to vector<8x512xf32>
    %410 = arith.addf %407, %409 : vector<8x512xf32>
    %411 = vector.extract_strided_slice %410 {offsets = [0, 0], sizes = [8, 128], strides = [1, 1]} : vector<8x512xf32> to vector<8x128xf32>
    %412 = arith.negf %411 : vector<8x128xf32>
    %413 = math.exp %412 : vector<8x128xf32>
    %cst_112 = arith.constant 1.000000e+00 : f32
    %414 = vector.broadcast %cst_112 : f32 to vector<8x128xf32>
    %415 = arith.addf %414, %413 : vector<8x128xf32>
    %416 = arith.divf %414, %415 : vector<8x128xf32>
    %417 = vector.extract_strided_slice %410 {offsets = [0, 128], sizes = [8, 128], strides = [1, 1]} : vector<8x512xf32> to vector<8x128xf32>
    %418 = arith.negf %417 : vector<8x128xf32>
    %419 = math.exp %418 : vector<8x128xf32>
    %cst_113 = arith.constant 1.000000e+00 : f32
    %420 = vector.broadcast %cst_113 : f32 to vector<8x128xf32>
    %421 = arith.addf %420, %419 : vector<8x128xf32>
    %422 = arith.divf %420, %421 : vector<8x128xf32>
    %423 = vector.extract_strided_slice %410 {offsets = [0, 256], sizes = [8, 128], strides = [1, 1]} : vector<8x512xf32> to vector<8x128xf32>
    %424 = math.tanh %423 : vector<8x128xf32>
    %425 = vector.extract_strided_slice %410 {offsets = [0, 384], sizes = [8, 128], strides = [1, 1]} : vector<8x512xf32> to vector<8x128xf32>
    %426 = arith.negf %425 : vector<8x128xf32>
    %427 = math.exp %426 : vector<8x128xf32>
    %cst_114 = arith.constant 1.000000e+00 : f32
    %428 = vector.broadcast %cst_114 : f32 to vector<8x128xf32>
    %429 = arith.addf %428, %427 : vector<8x128xf32>
    %430 = arith.divf %428, %429 : vector<8x128xf32>
    %431 = arith.mulf %422, %373 : vector<8x128xf32>
    %432 = arith.mulf %416, %424 : vector<8x128xf32>
    %433 = arith.addf %431, %432 : vector<8x128xf32>
    %434 = math.tanh %433 : vector<8x128xf32>
    %435 = arith.mulf %430, %434 : vector<8x128xf32>
    %436 = tpu.concatenate %404, %435 in 1 : vector<8x128xf32>, vector<8x128xf32> -> vector<8x256xf32>
    %c0_115 = arith.constant 0 : index
    %c0_116 = arith.constant 0 : index
    %437 = vector.load %arg4[%c0_115, %c0_116] : memref<256x512xf32, #tpu.memory_space<vmem>>, vector<256x512xf32>
    %cst_117 = arith.constant dense<0.000000e+00> : vector<8x512xf32>
    %438 = tpu.matmul %436, %437, %cst_117 {dimension_numbers = #tpu.dot_dimension_numbers<[1], [0], [0], [1], [0, 0, 1, 1], [], []>} : vector<8x256xf32>, vector<256x512xf32>, vector<8x512xf32> -> vector<8x512xf32>
    %c0_118 = arith.constant 0 : index
    %c0_119 = arith.constant 0 : index
    %439 = vector.load %arg5[%c0_118, %c0_119] : memref<1x512xf32, #tpu.memory_space<vmem>>, vector<1x512xf32>
    %440 = vector.broadcast %439 : vector<1x512xf32> to vector<8x512xf32>
    %441 = arith.addf %438, %440 : vector<8x512xf32>
    %442 = vector.extract_strided_slice %441 {offsets = [0, 0], sizes = [8, 128], strides = [1, 1]} : vector<8x512xf32> to vector<8x128xf32>
    %443 = arith.negf %442 : vector<8x128xf32>
    %444 = math.exp %443 : vector<8x128xf32>
    %cst_120 = arith.constant 1.000000e+00 : f32
    %445 = vector.broadcast %cst_120 : f32 to vector<8x128xf32>
    %446 = arith.addf %445, %444 : vector<8x128xf32>
    %447 = arith.divf %445, %446 : vector<8x128xf32>
    %448 = vector.extract_strided_slice %441 {offsets = [0, 128], sizes = [8, 128], strides = [1, 1]} : vector<8x512xf32> to vector<8x128xf32>
    %449 = arith.negf %448 : vector<8x128xf32>
    %450 = math.exp %449 : vector<8x128xf32>
    %cst_121 = arith.constant 1.000000e+00 : f32
    %451 = vector.broadcast %cst_121 : f32 to vector<8x128xf32>
    %452 = arith.addf %451, %450 : vector<8x128xf32>
    %453 = arith.divf %451, %452 : vector<8x128xf32>
    %454 = vector.extract_strided_slice %441 {offsets = [0, 256], sizes = [8, 128], strides = [1, 1]} : vector<8x512xf32> to vector<8x128xf32>
    %455 = math.tanh %454 : vector<8x128xf32>
    %456 = vector.extract_strided_slice %441 {offsets = [0, 384], sizes = [8, 128], strides = [1, 1]} : vector<8x512xf32> to vector<8x128xf32>
    %457 = arith.negf %456 : vector<8x128xf32>
    %458 = math.exp %457 : vector<8x128xf32>
    %cst_122 = arith.constant 1.000000e+00 : f32
    %459 = vector.broadcast %cst_122 : f32 to vector<8x128xf32>
    %460 = arith.addf %459, %458 : vector<8x128xf32>
    %461 = arith.divf %459, %460 : vector<8x128xf32>
    %462 = arith.mulf %453, %433 : vector<8x128xf32>
    %463 = arith.mulf %447, %455 : vector<8x128xf32>
    %464 = arith.addf %462, %463 : vector<8x128xf32>
    %465 = math.tanh %464 : vector<8x128xf32>
    %466 = arith.mulf %461, %465 : vector<8x128xf32>
    %c0_123 = arith.constant 0 : index
    %c0_124 = arith.constant 0 : index
    %467 = vector.load %arg6[%c0_123, %c0_124] : memref<128x128xf32, #tpu.memory_space<vmem>>, vector<128x128xf32>
    %cst_125 = arith.constant dense<0.000000e+00> : vector<8x128xf32>
    %468 = tpu.matmul %466, %467, %cst_125 {dimension_numbers = #tpu.dot_dimension_numbers<[1], [0], [0], [1], [0, 0, 1, 1], [], []>} : vector<8x128xf32>, vector<128x128xf32>, vector<8x128xf32> -> vector<8x128xf32>
    %c0_126 = arith.constant 0 : index
    %c0_127 = arith.constant 0 : index
    %469 = vector.load %arg7[%c0_126, %c0_127] : memref<1x128xf32, #tpu.memory_space<vmem>>, vector<1x128xf32>
    %470 = vector.broadcast %469 : vector<1x128xf32> to vector<8x128xf32>
    %471 = arith.addf %468, %470 : vector<8x128xf32>
    %c0_128 = arith.constant 0 : index
    %c0_129 = arith.constant 0 : index
    %472 = vector.load %arg8[%c0_128, %c0_129] : memref<8x128xf32, #tpu.memory_space<vmem>>, vector<8x128xf32>
    tpu.vector_store %arg8[%c0_128, %c0_129], %471 {strides = array<i32>} : memref<8x128xf32, #tpu.memory_space<vmem>>, vector<8x128xf32>,
    return
  }
}

</mosaic_0001>

<bundles_post_ra>
// kernel: lstm_model_forward.1
= control target key start
LH: loop header
LB: loop body
LE: loop exit
PB: predicated region body
PF: predicated region fallthrough
CT: control target
= control target key end

     0   :  { %13 = vsyncpa [#allocation4], 0  ;;  %s7357_s0 = inlined_call_operand.vmem [shape: f32[64,8], index: 0, kind: input, shape index: {}]   ;;  %s7358_s1 = inlined_call_operand.vmem [shape: f32[8,512], index: 1, kind: input, shape index: {}]   ;;  %s7359_s2 = inlined_call_operand.hbm [shape: f32[128,512], index: 2, kind: input, shape index: {}]   ;;  %s7360_s3 = inlined_call_operand.vmem [shape: f32[1,512], index: 3, kind: input, shape index: {}]   ;;  %s7361_s4 = inlined_call_operand.hbm [shape: f32[256,512], index: 4, kind: input, shape index: {}]   ;;  %s7362_s5 = inlined_call_operand.vmem [shape: f32[1,512], index: 5, kind: input, shape index: {}]   ;;  %s7363_s6 = inlined_call_operand.hbm [shape: f32[128,128], index: 6, kind: input, shape index: {}]   ;;  %s7364_s7 = inlined_call_operand.vmem [shape: f32[1,128], index: 7, kind: input, shape index: {}]   ;;  %s7365_s8 = inlined_call_operand.vmem [shape: f32[8,128], index: 8, kind: output, shape index: {}]  }
   0x1   :  { %14 = vsyncpa [#allocation6], 0  ;;  %s4269_s27 = smov [#allocation5]   ;;  %s4270_s29 = smov [#allocation3]  }
   0x2   :  { %s38_s28 = sshll.u32 %s4269_s27, 4  ;;  %s24_s30 = sshll.u32 %s4270_s29, 4  ;;  %s39_s28 = int_to_ptr.vmem [resolvable:$true] %s38_s28  ;;  %s25_s30 = int_to_ptr.vmem [resolvable:$true] %s24_s30 }
   0x3   :  { %s4213_s9 = scalar_lea.vmem %s39_s28, 16384  ;;  %p4218_p1 = scmp.lt.s32.totalorder %s39_s28, %s39_s28 }
   0x4   :  { %p4214_p0 = scmp.ne.s32.totalorder %s39_s28, %s4213_s9  ;;  %p4219_p2 = scmp.lt.s32.totalorder %s4213_s9, %s4213_s9 }
   0x6   :  { %p4220_p3 = por %p4219_p2, %p4218_p1 }
   0x8   :  { %p4221_p4 = pnand %p4220_p3, %p4214_p0 }
   0xa   :  { %4224 = shalt.err (!%p4221_p4)
}
   0xb   :  { %s4271_s10 = smov 512   ;;  %s4272_s11 = smov 32  }
   0xc   :  { %44 = dma.hbm_to_vmem [thread:$0]  %s7361_s4, 16384, %s39_s28, [#allocation6], %s4271_s10, %s4271_s10, %s4272_s11  }
   0xd   :  { %s4233_s14 = scalar_lea.vmem %s25_s30, 8192  ;;  %p4238_p6 = scmp.lt.s32.totalorder %s25_s30, %s25_s30 }
   0xe   :  { %p4234_p5 = scmp.ne.s32.totalorder %s25_s30, %s4233_s14  ;;  %p4239_p7 = scmp.lt.s32.totalorder %s4233_s14, %s4233_s14 }
  0x10   :  { %p4240_p8 = por %p4239_p7, %p4238_p6 }
  0x12   :  { %p4241_p9 = pnand %p4240_p8, %p4234_p5 }
  0x14   :  { %4244 = shalt.err (!%p4241_p9)
}
  0x15   :  { %30 = dma.hbm_to_vmem [thread:$0]  %s7359_s2, 8192, %s25_s30, [#allocation4], %s4271_s10, %s4271_s10, %s4272_s11  }
  0x16   :  { %s4273_s17 = smov [#allocation7]  }
  0x17   :  { %s52_s18 = sshll.u32 %s4273_s17, 4  ;;  %s53_s18 = int_to_ptr.vmem [resolvable:$true] %s52_s18 }
  0x18   :  { %s4253_s19 = scalar_lea.vmem %s53_s18, 2048  ;;  %p4258_p11 = scmp.lt.s32.totalorder %s53_s18, %s53_s18 }
  0x19   :  { %p4254_p10 = scmp.ne.s32.totalorder %s53_s18, %s4253_s19  ;;  %p4259_p12 = scmp.lt.s32.totalorder %s4253_s19, %s4253_s19 }
  0x1b   :  { %p4260_p13 = por %p4259_p12, %p4258_p11 }
  0x1d   :  { %p4261_p0 = pnand %p4260_p13, %p4254_p10 }
  0x1f   :  { %4264 = shalt.err (!%p4261_p0)
}
  0x20   :  { %s4274_s4 = smov 128   ;;  %s4275_s20 = smov 8  }
  0x21   :  { %58 = dma.hbm_to_vmem [thread:$0]  %s7363_s6, 2048, %s53_s18, [#allocation6], %s4274_s4, %s4274_s4, %s4275_s20  }
  0x22   :  { %4265 = dma.done.wait [#allocation4], 8192  }
  0x23   :  { %4266 = vsyncadd [#allocation4], 4294959104 }
  0x24   :  { %4267 = dma.done.wait [#allocation6], 18432  }
  0x25   :  { %4268 = vsyncadd [#allocation6], 4294948864  ;;  %v7368_v0 = vmov 0.0   ;;  %v79_v1 = vld [vmem:[%s7358_s1 + $0x8] sm:$0xff]  ;;  %v78_v2 = vld [vmem:[%s7358_s1] sm:$0xff]  ;;  %vm104_vm0 = vcmask 64512  }
  0x26   :  { %193 = vmatprep.mubr.f32.mxu0 %v7368_v0  ;;  %306 = vmatprep.mubr.f32.mxu1 %v7368_v0  ;;  %v70_v3 = vld [vmem:[%s7357_s0] sm:$0xff]  ;;  %v81_v4 = vld [vmem:[%s7358_s1 + $0x18] sm:$0xff]  ;;  %v80_v5 = vld [vmem:[%s7358_s1 + $0x10] sm:$0xff]  ;;  %vm4277_vm1 = vmmov 0  }
  0x27   :  { %159 = vmatprep.subr.mxu0 %v79_v1  ;;  %272 = vmatprep.subr.mxu1 %v81_v4  ;;  %v4353_v6 = vld [vmem:[#allocation3 + $0x1e8] sm:$0xff]  ;;  %v4355_v7 = vld [vmem:[#allocation3 + $0x1f8] sm:$0xff]  ;;  %v4359_v8 = vld [vmem:[#allocation3 + $0x1e0] sm:$0xff] }
  0x28   :  { %160 = vmatpush1.msra.mxu0 %v78_v2  ;;  %273 = vmatpush1.msra.mxu1 %v80_v5  ;;  %v4361_v9 = vld [vmem:[#allocation3 + $0x1f0] sm:$0xff]  ;;  %v4365_v10 = vld [vmem:[#allocation3 + $0x1c8] sm:$0xff]  ;;  %v4367_v11 = vld [vmem:[#allocation3 + $0x1d8] sm:$0xff] }
  0x29   :  { %3321 = vmatmul.mubr.msk.f32.vlgmr.msra.gmra.mxu0 %vm104_vm0, %v70_v3  ;;  %3329 = vmatmul.mubr.msk.f32.vlgmr.msra.gmra.mxu1 %vm104_vm0, %v70_v3  ;;  %v71_v12 = vld [vmem:[%s7357_s0 + $0x8] sm:$0xff]  ;;  %v4374_v13 = vld [vmem:[#allocation3 + $0x1c0] sm:$0xff]  ;;  %v4376_v14 = vld [vmem:[#allocation3 + $0x1d0] sm:$0xff] }
  0x2a   :  { %199 = vmatprep.mubr.f32.mxu0 %v7368_v0  ;;  %312 = vmatprep.mubr.f32.mxu1 %v7368_v0  ;;  %v4380_v15 = vld [vmem:[#allocation3 + $0x1a8] sm:$0xff]  ;;  %v4382_v16 = vld [vmem:[#allocation3 + $0x1b8] sm:$0xff]  ;;  %v4386_v17 = vld [vmem:[#allocation3 + $0x1a0] sm:$0xff] }
  0x2b   :  { %474 = vmatprep.subr.mxu0 %v4353_v6  ;;  %545 = vmatprep.subr.mxu1 %v4355_v7  ;;  %v4388_v18 = vld [vmem:[#allocation3 + $0x1b0] sm:$0xff]  ;;  %v4392_v19 = vld [vmem:[#allocation3 + $0x188] sm:$0xff]  ;;  %v4394_v20 = vld [vmem:[#allocation3 + $0x198] sm:$0xff] }
  0x2c   :  { %475 = vmatpush1.msra.mxu0 %v4359_v8  ;;  %546 = vmatpush1.msra.mxu1 %v4361_v9  ;;  %v72_v21 = vld [vmem:[%s7357_s0 + $0x10] sm:$0xff]  ;;  %v4401_v22 = vld [vmem:[#allocation3 + $0x180] sm:$0xff]  ;;  %v4407_v24 = vld [vmem:[#allocation3 + $0x168] sm:$0xff] }
  0x2d   :  { %476 = vmatprep.subr.mxu0 %v4365_v10  ;;  %547 = vmatprep.subr.mxu1 %v4367_v11  ;;  %v4403_v23 = vld [vmem:[#allocation3 + $0x190] sm:$0xff]  ;;  %v4411_v25 = vld [vmem:[#allocation3 + $0x178] sm:$0xff]  ;;  %v4415_v26 = vld [vmem:[#allocation3 + $0x160] sm:$0xff] }
  0x2e   :  { %3322 = vmatmul.mubr.msk.f32.gmra.mxu0 %vm104_vm0, %v71_v12  ;;  %548 = vmatpush1.msra.mxu1 %v4376_v14  ;;  %v4417_v27 = vld [vmem:[#allocation3 + $0x170] sm:$0xff]  ;;  %v4421_v28 = vld [vmem:[#allocation3 + $0x148] sm:$0xff]  ;;  %v4425_v29 = vld [vmem:[#allocation3 + $0x158] sm:$0xff] }
  0x2f   :  { %477 = vmatpush1.msra.mxu0 %v4374_v13  ;;  %549 = vmatprep.subr.mxu1 %v4382_v16  ;;  %v73_v30 = vld [vmem:[%s7357_s0 + $0x18] sm:$0xff]  ;;  %v4432_v31 = vld [vmem:[#allocation3 + $0x140] sm:$0xff]  ;;  %v4434_v32 = vld [vmem:[#allocation3 + $0x150] sm:$0xff] }
  0x30   :  { %478 = vmatprep.subr.mxu0 %v4380_v15  ;;  %3330 = vmatmul.mubr.msk.f32.gmra.mxu1 %vm104_vm0, %v71_v12  ;;  %v4438_v33 = vld [vmem:[#allocation3 + $0x128] sm:$0xff]  ;;  %v4442_v34 = vld [vmem:[#allocation3 + $0x138] sm:$0xff]  ;;  %v4446_v35 = vld [vmem:[#allocation3 + $0x120] sm:$0xff] }
  0x31   :  { %479 = vmatpush1.msra.mxu0 %v4386_v17  ;;  %550 = vmatpush1.msra.mxu1 %v4388_v18  ;;  %v4448_v36 = vld [vmem:[#allocation3 + $0x130] sm:$0xff]  ;;  %v4452_v37 = vld [vmem:[#allocation3 + $0x108] sm:$0xff]  ;;  %v4456_v38 = vld [vmem:[#allocation3 + $0x118] sm:$0xff] }
  0x32   :  { %205 = vmatprep.mubr.f32.mxu0 %v7368_v0  ;;  %480 = vmatprep.subr.mxu0 %v4392_v19  ;;  %v74_v39 = vld [vmem:[%s7357_s0 + $0x20] sm:$0xff]  ;;  %v4465_v41 = vld [vmem:[#allocation3 + $0x110] sm:$0xff]  ;;  %v4469_v42 = vld [vmem:[#allocation3 + $0xe8] sm:$0xff] }
  0x33   :  { %551 = vmatprep.subr.mxu1 %v4394_v20  ;;  %3323 = vmatmul.mubr.msk.f32.gmra.mxu0 %vm104_vm0, %v72_v21  ;;  %v4463_v40 = vld [vmem:[#allocation3 + $0x100] sm:$0xff]  ;;  %v4473_v43 = vld [vmem:[#allocation3 + $0xf8] sm:$0xff]  ;;  %v4479_v45 = vld [vmem:[#allocation3 + $0xf0] sm:$0xff] }
  0x34   :  { %481 = vmatpush1.msra.mxu0 %v4401_v22  ;;  %552 = vmatpush1.msra.mxu1 %v4403_v23  ;;  %v4477_v44 = vld [vmem:[#allocation3 + $0xe0] sm:$0xff]  ;;  %v4483_v46 = vld [vmem:[#allocation3 + $0xc8] sm:$0xff]  ;;  %v4487_v47 = vld [vmem:[#allocation3 + $0xd8] sm:$0xff] }
  0x35   :  { %318 = vmatprep.mubr.f32.mxu1 %v7368_v0  ;;  %482 = vmatprep.subr.mxu0 %v4407_v24  ;;  %v75_v48 = vld [vmem:[%s7357_s0 + $0x28] sm:$0xff]  ;;  %v4494_v49 = vld [vmem:[#allocation3 + $0xc0] sm:$0xff]  ;;  %v4496_v50 = vld [vmem:[#allocation3 + $0xd0] sm:$0xff] }
  0x36   :  { %553 = vmatprep.subr.mxu1 %v4411_v25  ;;  %3331 = vmatmul.mubr.msk.f32.gmra.mxu1 %vm104_vm0, %v72_v21  ;;  %v4500_v51 = vld [vmem:[#allocation3 + $0xa8] sm:$0xff]  ;;  %v4504_v52 = vld [vmem:[#allocation3 + $0xb8] sm:$0xff]  ;;  %v4508_v53 = vld [vmem:[#allocation3 + $0xa0] sm:$0xff] }
  0x37   :  { %483 = vmatpush1.msra.mxu0 %v4415_v26  ;;  %554 = vmatpush1.msra.mxu1 %v4417_v27  ;;  %v4510_v54 = vld [vmem:[#allocation3 + $0xb0] sm:$0xff]  ;;  %v4514_v55 = vld [vmem:[#allocation3 + $0x88] sm:$0xff]  ;;  %v4518_v56 = vld [vmem:[#allocation3 + $0x98] sm:$0xff] }
  0x38   :  { %211 = vmatprep.mubr.f32.mxu0 %v7368_v0  ;;  %484 = vmatprep.subr.mxu0 %v4421_v28  ;;  %v76_v57 = vld [vmem:[%s7357_s0 + $0x30] sm:$0xff]  ;;  %v4525_v58 = vld [vmem:[#allocation3 + $0x80] sm:$0xff]  ;;  %v4531_v60 = vld [vmem:[#allocation3 + $0x68] sm:$0xff] }
  0x39   :  { %555 = vmatprep.subr.mxu1 %v4425_v29  ;;  %3324 = vmatmul.mubr.msk.f32.gmra.mxu0 %vm104_vm0, %v73_v30  ;;  %7852 = vst [vmem:[#allocation10_spill] sm:$0xff] %v4525_v58  ;;  %v4527_v59 = vld [vmem:[#allocation3 + $0x90] sm:$0xff]  ;;  %7854 = vst [vmem:[#allocation12_spill] sm:$0xff] %v4531_v60  ;;  %v4535_v61 = vld [vmem:[#allocation3 + $0x78] sm:$0xff] }
  0x3a   :  { %485 = vmatpush1.msra.mxu0 %v4432_v31  ;;  %556 = vmatpush1.msra.mxu1 %v4434_v32  ;;  %7853 = vst [vmem:[#allocation11_spill] sm:$0xff] %v4527_v59  ;;  %7855 = vst [vmem:[#allocation13_spill] sm:$0xff] %v4535_v61  ;;  %v4539_v62 = vld [vmem:[#allocation3 + $0x60] sm:$0xff]  ;;  %v4541_v63 = vld [vmem:[#allocation3 + $0x70] sm:$0xff] }
  0x3b   :  { %324 = vmatprep.mubr.f32.mxu1 %v7368_v0  ;;  %486 = vmatprep.subr.mxu0 %v4438_v33  ;;  %7856 = vst [vmem:[#allocation14_spill] sm:$0xff] %v4539_v62  ;;  %7857 = vst [vmem:[#allocation15_spill] sm:$0xff] %v4541_v63  ;;  %v4545_v1 = vld [vmem:[#allocation3 + $0x48] sm:$0xff]  ;;  %v4549_v2 = vld [vmem:[#allocation3 + $0x58] sm:$0xff] }
  0x3c   :  { %557 = vmatprep.subr.mxu1 %v4442_v34  ;;  %3332 = vmatmul.mubr.msk.f32.gmra.mxu1 %vm104_vm0, %v73_v30  ;;  %7858 = vst [vmem:[#allocation16_spill] sm:$0xff] %v4545_v1  ;;  %7859 = vst [vmem:[#allocation17_spill] sm:$0xff] %v4549_v2  ;;  %v77_v3 = vld [vmem:[%s7357_s0 + $0x38] sm:$0xff]  ;;  %v4556_v4 = vld [vmem:[#allocation3 + $0x40] sm:$0xff] }
  0x3d   :  { %487 = vmatpush1.msra.mxu0 %v4446_v35  ;;  %558 = vmatpush1.msra.mxu1 %v4448_v36  ;;  %7860 = vst [vmem:[#allocation18_spill] sm:$0xff] %v4556_v4  ;;  %v4558_v5 = vld [vmem:[#allocation3 + $0x50] sm:$0xff]  ;;  %v4562_v12 = vld [vmem:[#allocation3 + $0x28] sm:$0xff]  ;;  %v4566_v21 = vld [vmem:[#allocation3 + $0x38] sm:$0xff] }
  0x3e   :  { %217 = vmatprep.mubr.f32.mxu0 %v7368_v0  ;;  %488 = vmatprep.subr.mxu0 %v4452_v37  ;;  %7861 = vst [vmem:[#allocation19_spill] sm:$0xff] %v4558_v5  ;;  %7862 = vst [vmem:[#allocation20_spill] sm:$0xff] %v4562_v12  ;;  %v4570_v30 = vld [vmem:[#allocation3 + $0x20] sm:$0xff] }
  0x3f   :  { %559 = vmatprep.subr.mxu1 %v4456_v38  ;;  %3325 = vmatmul.mubr.msk.f32.gmra.mxu0 %vm104_vm0, %v74_v39  ;;  %7863 = vst [vmem:[#allocation21_spill] sm:$0xff] %v4566_v21  ;;  %7864 = vst [vmem:[#allocation22_spill] sm:$0xff] %v4570_v30 }
  0x40   :  { %489 = vmatpush1.msra.mxu0 %v4463_v40  ;;  %560 = vmatpush1.msra.mxu1 %v4465_v41 }
  0x41   :  { %330 = vmatprep.mubr.f32.mxu1 %v7368_v0  ;;  %490 = vmatprep.subr.mxu0 %v4469_v42 }
  0x42   :  { %561 = vmatprep.subr.mxu1 %v4473_v43  ;;  %3333 = vmatmul.mubr.msk.f32.gmra.mxu1 %vm104_vm0, %v74_v39  ;;  %v4572_v39 = vld [vmem:[#allocation3 + $0x30] sm:$0xff] }
  0x43   :  { %491 = vmatpush1.msra.mxu0 %v4477_v44  ;;  %562 = vmatpush1.msra.mxu1 %v4479_v45  ;;  %7865 = vst [vmem:[#allocation23_spill] sm:$0xff] %v4572_v39 }
  0x44   :  { %223 = vmatprep.mubr.f32.mxu0 %v7368_v0  ;;  %492 = vmatprep.subr.mxu0 %v4483_v46 }
  0x45   :  { %563 = vmatprep.subr.mxu1 %v4487_v47  ;;  %3326 = vmatmul.mubr.msk.f32.gmra.mxu0 %vm104_vm0, %v75_v48 }
  0x46   :  { %493 = vmatpush1.msra.mxu0 %v4494_v49  ;;  %564 = vmatpush1.msra.mxu1 %v4496_v50 }
  0x47   :  { %336 = vmatprep.mubr.f32.mxu1 %v7368_v0  ;;  %494 = vmatprep.subr.mxu0 %v4500_v51 }
  0x48   :  { %565 = vmatprep.subr.mxu1 %v4504_v52  ;;  %3334 = vmatmul.mubr.msk.f32.gmra.mxu1 %vm104_vm0, %v75_v48  ;;  %v4576_v48 = vld [vmem:[#allocation3 + $0x8] sm:$0xff] }
  0x49   :  { %495 = vmatpush1.msra.mxu0 %v4508_v53  ;;  %566 = vmatpush1.msra.mxu1 %v4510_v54  ;;  %7866 = vst [vmem:[#allocation24_spill] sm:$0xff] %v4576_v48 }
  0x4a   :  { %229 = vmatprep.mubr.f32.mxu0 %v7368_v0  ;;  %496 = vmatprep.subr.mxu0 %v4514_v55 }
  0x4b   :  { %567 = vmatprep.subr.mxu1 %v4518_v56  ;;  %3327 = vmatmul.mubr.msk.f32.gmra.mxu0 %vm104_vm0, %v76_v57 }
  0x4c   :  { %497 = vmatpush1.msra.mxu0 %v4525_v58  ;;  %568 = vmatpush1.msra.mxu1 %v4527_v59 }
  0x4d   :  { %342 = vmatprep.mubr.f32.mxu1 %v7368_v0  ;;  %498 = vmatprep.subr.mxu0 %v4531_v60 }
  0x4e   :  { %569 = vmatprep.subr.mxu1 %v4535_v61  ;;  %3335 = vmatmul.mubr.msk.f32.gmra.mxu1 %vm104_vm0, %v76_v57  ;;  %v4578_v57 = vld [vmem:[#allocation3 + $0x18] sm:$0xff] }
  0x4f   :  { %499 = vmatpush1.msra.mxu0 %v4539_v62  ;;  %570 = vmatpush1.msra.mxu1 %v4541_v63  ;;  %7867 = vst [vmem:[#allocation25_spill] sm:$0xff] %v4578_v57 }
  0x50   :  { %235 = vmatprep.mubr.f32.mxu0 %v7368_v0  ;;  %500 = vmatprep.subr.mxu0 %v4545_v1 }
  0x51   :  { %571 = vmatprep.subr.mxu1 %v4549_v2  ;;  %3328 = vmatmul.mubr.msk.f32.gmra.mxu0 %vm104_vm0, %v77_v3  ;;  %v4582_v2 = vld [vmem:[#allocation3] sm:$0xff] }
  0x52   :  { %501 = vmatpush1.msra.mxu0 %v4556_v4  ;;  %572 = vmatpush1.msra.mxu1 %v4558_v5  ;;  %7868 = vst [vmem:[#allocation26_spill] sm:$0xff] %v4582_v2  ;;  %v4584_v4 = vld [vmem:[#allocation3 + $0x10] sm:$0xff] }
  0x53   :  { %348 = vmatprep.mubr.f32.mxu1 %v7368_v0  ;;  %502 = vmatprep.subr.mxu0 %v4562_v12  ;;  %7869 = vst [vmem:[#allocation27_spill] sm:$0xff] %v4584_v4  ;;  %v4590_v0 = vld [vmem:[#allocation5 + $0x1e8] sm:$0xff]  ;;  %v4592_v12 = vld [vmem:[#allocation5 + $0x1f8] sm:$0xff] }
  0x54   :  { %573 = vmatprep.subr.mxu1 %v4566_v21  ;;  %3336 = vmatmul.mubr.msk.f32.gmra.mxu1 %vm104_vm0, %v77_v3  ;;  %7870 = vst [vmem:[#allocation28_spill] sm:$0xff] %v4590_v0  ;;  %7871 = vst [vmem:[#allocation29_spill] sm:$0xff] %v4592_v12  ;;  %v7872_v3 = vmov 0.0  }
  0x55   :  { %503 = vmatpush1.msra.mxu0 %v4570_v30  ;;  %574 = vmatpush1.msra.mxu1 %v4572_v39  ;;  %v84_v39 = vlaneseq  ;;  %v4606_v30 = vld [vmem:[%s7360_s3] sm:$0xf] }
  0x56   :  { %504 = vmatprep.subr.mxu0 %v4576_v48  ;;  %575 = vmatprep.subr.mxu1 %v4578_v57 }
  0x57   :  { %505 = vmatpush1.msra.mxu0 %v4582_v2  ;;  %576 = vmatpush1.msra.mxu1 %v4584_v4  ;;  %v4600_v48 = vshrl.u32 %v84_v39, 7 }
  0x58   :  { %538 = vmatprep.mubr.f32.mxu0 %v7872_v3  ;;  %609 = vmatprep.mubr.f32.mxu1 %v7872_v3 }
  0x59   :  { %730 = vmatprep.subr.mxu0 %v4590_v0  ;;  %800 = vmatprep.subr.mxu1 %v4592_v12  ;;  %v7384_v57 = vsub.s32 0, %v4600_v48  ;;  %v7388_v0 = vsub.s32 3, %v4600_v48  ;;  %v7392_v62 = vsub.s32 2, %v4600_v48 }
  0x5b   :  { %v4611_v4 = vrot.slane %v4606_v30, %v7384_v57  ;;  %v4618_v1 = vrot.slane %v4606_v30, %v7388_v0  ;;  %v4625_v61 = vrot.slane %v4606_v30, %v7392_v62 }
  0x5d   :  { %7873 = vst [vmem:[#allocation30_spill] sm:$0xff] %v4611_v4  ;;  %7874 = vst [vmem:[#allocation31_spill] sm:$0xff] %v4618_v1 }
  0x5e   :  { %7875 = vst [vmem:[#allocation32_spill] sm:$0xff] %v4625_v61 }
  0xe9   :  { %v195_v2 = vpop.f32.mrf.mxu0  ;;  %v308_v21 = vpop.f32.mrf.mxu1 }
  0xea   :  { %v196_v12 = vadd.f32 %v195_v2, %v4611_v4 }
  0xeb   :  { %v197_v39 = vpop.f32.mrf.mxu0  ;;  %v310_v63 = vpop.f32.mrf.mxu1 }
  0xec   :  { %v3337_v5 = vmul.f32 -1.442695, %v196_v12  ;;  %v311_v57 = vadd.f32 %v310_v63, %v4618_v1  ;;  %v309_v39 = vadd.f32 %v308_v21, %v4625_v61  ;;  %v4635_v21 = vld [vmem:[#allocation5 + $0x1f0] sm:$0xff] }
  0xed   :  { %7876 = vst [vmem:[#allocation33_spill] sm:$0xff] %v4635_v21 }
  0xee   :  { %3445 = vpow2.f32 %v3337_v5  ;;  %v3338_v2 = vmul.f32 -1.442695, %v311_v57  ;;  %v4633_v57 = vld [vmem:[#allocation5 + $0x1e0] sm:$0xff] }
  0xf0   :  { %3447 = vpow2.f32 %v3338_v2  ;;  %v4637_v2 = vld [vmem:[#allocation5 + $0x1c8] sm:$0xff] }
  0xf1   :  { %3449 = vtanh.f32 %v309_v39  ;;  %7877 = vst [vmem:[#allocation34_spill] sm:$0xff] %v4637_v2  ;;  %v4655_v39 = vld [vmem:[#allocation5 + $0x1a0] sm:$0xff] }
  0xf2   :  { %7883 = vst [vmem:[#allocation40_spill] sm:$0xff] %v4655_v39 }
  0xfb   :  { %v3446_v12 = vpop.eup %3445 }
  0xfc   :  { %v393_v4 = vadd.f32 1.0, %v3446_v12  ;;  %v4657_v12 = vld [vmem:[#allocation5 + $0x1b0] sm:$0xff] }
  0xfd   :  { %v3448_v0 = vpop.eup %3447  ;;  %7884 = vst [vmem:[#allocation41_spill] sm:$0xff] %v4657_v12 }
  0xfe   :  { %3451 = vrcp.f32 %v393_v4  ;;  %v400_v5 = vadd.f32 1.0, %v3448_v0  ;;  %v3450_v60 = vpop.eup %3449  ;;  %v4639_v4 = vld [vmem:[#allocation5 + $0x1d8] sm:$0xff]  ;;  %v4643_v0 = vld [vmem:[#allocation5 + $0x1c0] sm:$0xff] }
  0xff   :  { %7878 = vst [vmem:[#allocation35_spill] sm:$0xff] %v4639_v4  ;;  %7879 = vst [vmem:[#allocation36_spill] sm:$0xff] %v4643_v0 }
 0x100   :  { %3453 = vrcp.f32 %v400_v5  ;;  %v4661_v5 = vld [vmem:[#allocation5 + $0x188] sm:$0xff] }
 0x101   :  { %7885 = vst [vmem:[#allocation42_spill] sm:$0xff] %v4661_v5 }
 0x10b   :  { %v3452_v59 = vpop.eup %3451 }
 0x10c   :  { %v4628_v58 = vmul.f32 %v3452_v59, %v3450_v60  ;;  %v4645_v59 = vld [vmem:[#allocation5 + $0x1d0] sm:$0xff]  ;;  %v4649_v60 = vld [vmem:[#allocation5 + $0x1a8] sm:$0xff] }
 0x10d   :  { %v3454_v63 = vpop.eup %3453  ;;  %7880 = vst [vmem:[#allocation37_spill] sm:$0xff] %v4645_v59  ;;  %7881 = vst [vmem:[#allocation38_spill] sm:$0xff] %v4649_v60 }
 0x10e   :  { %3455 = vtanh.f32 %v4628_v58 }
 0x11b   :  { %v3456_v62 = vpop.eup %3455 }
 0x11c   :  { %v4631_v1 = vmul.f32 %v3456_v62, %v3454_v63  ;;  %v4651_v62 = vld [vmem:[#allocation5 + $0x1b8] sm:$0xff] }
 0x11d   :  { %7882 = vst [vmem:[#allocation39_spill] sm:$0xff] %v4651_v62  ;;  %v4663_v63 = vld [vmem:[#allocation5 + $0x198] sm:$0xff] }
 0x11e   :  { %539 = vmatmul.mubr.f32.vlgmr.msra.gmra.mxu0 %v4631_v1  ;;  %610 = vmatmul.mubr.f32.vlgmr.msra.gmra.mxu1 %v4631_v1  ;;  %7886 = vst [vmem:[#allocation43_spill] sm:$0xff] %v4663_v63 }
 0x11f   :  { %731 = vmatpush1.msra.mxu0 %v4633_v57  ;;  %801 = vmatpush1.msra.mxu1 %v4635_v21  ;;  %v4667_v21 = vld [vmem:[#allocation5 + $0x180] sm:$0xff] }
 0x120   :  { %732 = vmatprep.subr.mxu0 %v4637_v2  ;;  %802 = vmatprep.subr.mxu1 %v4639_v4  ;;  %7887 = vst [vmem:[#allocation44_spill] sm:$0xff] %v4667_v21  ;;  %v4669_v2 = vld [vmem:[#allocation5 + $0x190] sm:$0xff]  ;;  %v4673_v4 = vld [vmem:[#allocation5 + $0x168] sm:$0xff] }
 0x121   :  { %733 = vmatpush1.msra.mxu0 %v4643_v0  ;;  %803 = vmatpush1.msra.mxu1 %v4645_v59  ;;  %7888 = vst [vmem:[#allocation45_spill] sm:$0xff] %v4669_v2  ;;  %7889 = vst [vmem:[#allocation46_spill] sm:$0xff] %v4673_v4  ;;  %v4675_v0 = vld [vmem:[#allocation5 + $0x178] sm:$0xff]  ;;  %v4679_v59 = vld [vmem:[#allocation5 + $0x160] sm:$0xff] }
 0x122   :  { %734 = vmatprep.subr.mxu0 %v4649_v60  ;;  %804 = vmatprep.subr.mxu1 %v4651_v62  ;;  %7890 = vst [vmem:[#allocation47_spill] sm:$0xff] %v4675_v0  ;;  %7891 = vst [vmem:[#allocation48_spill] sm:$0xff] %v4679_v59  ;;  %v4681_v60 = vld [vmem:[#allocation5 + $0x170] sm:$0xff]  ;;  %v4685_v62 = vld [vmem:[#allocation5 + $0x148] sm:$0xff] }
 0x123   :  { %735 = vmatpush1.msra.mxu0 %v4655_v39  ;;  %805 = vmatpush1.msra.mxu1 %v4657_v12  ;;  %7892 = vst [vmem:[#allocation49_spill] sm:$0xff] %v4681_v60  ;;  %7893 = vst [vmem:[#allocation50_spill] sm:$0xff] %v4685_v62  ;;  %v4687_v39 = vld [vmem:[#allocation5 + $0x158] sm:$0xff]  ;;  %v4691_v12 = vld [vmem:[#allocation5 + $0x140] sm:$0xff] }
 0x124   :  { %736 = vmatprep.subr.mxu0 %v4661_v5  ;;  %806 = vmatprep.subr.mxu1 %v4663_v63  ;;  %7894 = vst [vmem:[#allocation51_spill] sm:$0xff] %v4687_v39  ;;  %7895 = vst [vmem:[#allocation52_spill] sm:$0xff] %v4691_v12  ;;  %v4693_v5 = vld [vmem:[#allocation5 + $0x150] sm:$0xff]  ;;  %v4697_v63 = vld [vmem:[#allocation5 + $0x128] sm:$0xff] }
 0x125   :  { %737 = vmatpush1.msra.mxu0 %v4667_v21  ;;  %807 = vmatpush1.msra.mxu1 %v4669_v2  ;;  %7896 = vst [vmem:[#allocation53_spill] sm:$0xff] %v4693_v5  ;;  %7897 = vst [vmem:[#allocation54_spill] sm:$0xff] %v4697_v63  ;;  %v4699_v21 = vld [vmem:[#allocation5 + $0x138] sm:$0xff]  ;;  %v4703_v2 = vld [vmem:[#allocation5 + $0x120] sm:$0xff] }
 0x126   :  { %738 = vmatprep.subr.mxu0 %v4673_v4  ;;  %808 = vmatprep.subr.mxu1 %v4675_v0  ;;  %7898 = vst [vmem:[#allocation55_spill] sm:$0xff] %v4699_v21  ;;  %7899 = vst [vmem:[#allocation56_spill] sm:$0xff] %v4703_v2  ;;  %v4705_v4 = vld [vmem:[#allocation5 + $0x130] sm:$0xff]  ;;  %v4709_v0 = vld [vmem:[#allocation5 + $0x108] sm:$0xff] }
 0x127   :  { %739 = vmatpush1.msra.mxu0 %v4679_v59  ;;  %809 = vmatpush1.msra.mxu1 %v4681_v60  ;;  %7900 = vst [vmem:[#allocation57_spill] sm:$0xff] %v4705_v4  ;;  %7901 = vst [vmem:[#allocation58_spill] sm:$0xff] %v4709_v0  ;;  %v4711_v59 = vld [vmem:[#allocation5 + $0x118] sm:$0xff]  ;;  %v4715_v60 = vld [vmem:[#allocation5 + $0x100] sm:$0xff] }
 0x128   :  { %740 = vmatprep.subr.mxu0 %v4685_v62  ;;  %810 = vmatprep.subr.mxu1 %v4687_v39  ;;  %7902 = vst [vmem:[#allocation59_spill] sm:$0xff] %v4711_v59  ;;  %7903 = vst [vmem:[#allocation60_spill] sm:$0xff] %v4715_v60  ;;  %v4717_v62 = vld [vmem:[#allocation5 + $0x110] sm:$0xff]  ;;  %v4721_v39 = vld [vmem:[#allocation5 + $0xe8] sm:$0xff] }
 0x129   :  { %741 = vmatpush1.msra.mxu0 %v4691_v12  ;;  %811 = vmatpush1.msra.mxu1 %v4693_v5  ;;  %7904 = vst [vmem:[#allocation61_spill] sm:$0xff] %v4717_v62  ;;  %7905 = vst [vmem:[#allocation62_spill] sm:$0xff] %v4721_v39  ;;  %v4723_v12 = vld [vmem:[#allocation5 + $0xf8] sm:$0xff]  ;;  %v4727_v5 = vld [vmem:[#allocation5 + $0xe0] sm:$0xff] }
 0x12a   :  { %742 = vmatprep.subr.mxu0 %v4697_v63  ;;  %812 = vmatprep.subr.mxu1 %v4699_v21  ;;  %7906 = vst [vmem:[#allocation63_spill] sm:$0xff] %v4723_v12  ;;  %7907 = vst [vmem:[#allocation64_spill] sm:$0xff] %v4727_v5  ;;  %v4729_v63 = vld [vmem:[#allocation5 + $0xf0] sm:$0xff]  ;;  %v4733_v21 = vld [vmem:[#allocation5 + $0xc8] sm:$0xff] }
 0x12b   :  { %743 = vmatpush1.msra.mxu0 %v4703_v2  ;;  %813 = vmatpush1.msra.mxu1 %v4705_v4  ;;  %7908 = vst [vmem:[#allocation65_spill] sm:$0xff] %v4729_v63  ;;  %7909 = vst [vmem:[#allocation66_spill] sm:$0xff] %v4733_v21  ;;  %v4735_v2 = vld [vmem:[#allocation5 + $0xd8] sm:$0xff]  ;;  %v4739_v4 = vld [vmem:[#allocation5 + $0xc0] sm:$0xff] }
 0x12c   :  { %744 = vmatprep.subr.mxu0 %v4709_v0  ;;  %814 = vmatprep.subr.mxu1 %v4711_v59  ;;  %7910 = vst [vmem:[#allocation67_spill] sm:$0xff] %v4735_v2  ;;  %7911 = vst [vmem:[#allocation68_spill] sm:$0xff] %v4739_v4  ;;  %v4741_v0 = vld [vmem:[#allocation5 + $0xd0] sm:$0xff]  ;;  %v4745_v59 = vld [vmem:[#allocation5 + $0xa8] sm:$0xff] }
 0x12d   :  { %745 = vmatpush1.msra.mxu0 %v4715_v60  ;;  %815 = vmatpush1.msra.mxu1 %v4717_v62  ;;  %7912 = vst [vmem:[#allocation69_spill] sm:$0xff] %v4741_v0  ;;  %7913 = vst [vmem:[#allocation70_spill] sm:$0xff] %v4745_v59  ;;  %v4747_v60 = vld [vmem:[#allocation5 + $0xb8] sm:$0xff]  ;;  %v4751_v62 = vld [vmem:[#allocation5 + $0xa0] sm:$0xff] }
 0x12e   :  { %746 = vmatprep.subr.mxu0 %v4721_v39  ;;  %816 = vmatprep.subr.mxu1 %v4723_v12  ;;  %7914 = vst [vmem:[#allocation71_spill] sm:$0xff] %v4747_v60  ;;  %7915 = vst [vmem:[#allocation72_spill] sm:$0xff] %v4751_v62  ;;  %v4753_v39 = vld [vmem:[#allocation5 + $0xb0] sm:$0xff]  ;;  %v4757_v12 = vld [vmem:[#allocation5 + $0x88] sm:$0xff] }
 0x12f   :  { %747 = vmatpush1.msra.mxu0 %v4727_v5  ;;  %817 = vmatpush1.msra.mxu1 %v4729_v63  ;;  %7916 = vst [vmem:[#allocation73_spill] sm:$0xff] %v4753_v39  ;;  %7917 = vst [vmem:[#allocation74_spill] sm:$0xff] %v4757_v12  ;;  %v4759_v5 = vld [vmem:[#allocation5 + $0x98] sm:$0xff]  ;;  %v4763_v63 = vld [vmem:[#allocation5 + $0x80] sm:$0xff] }
 0x130   :  { %748 = vmatprep.subr.mxu0 %v4733_v21  ;;  %818 = vmatprep.subr.mxu1 %v4735_v2  ;;  %7918 = vst [vmem:[#allocation75_spill] sm:$0xff] %v4759_v5  ;;  %7919 = vst [vmem:[#allocation76_spill] sm:$0xff] %v4763_v63  ;;  %v4765_v21 = vld [vmem:[#allocation5 + $0x90] sm:$0xff]  ;;  %v4769_v2 = vld [vmem:[#allocation5 + $0x68] sm:$0xff] }
 0x131   :  { %749 = vmatpush1.msra.mxu0 %v4739_v4  ;;  %819 = vmatpush1.msra.mxu1 %v4741_v0  ;;  %7920 = vst [vmem:[#allocation77_spill] sm:$0xff] %v4765_v21  ;;  %7921 = vst [vmem:[#allocation78_spill] sm:$0xff] %v4769_v2  ;;  %v4771_v4 = vld [vmem:[#allocation5 + $0x78] sm:$0xff]  ;;  %v4775_v0 = vld [vmem:[#allocation5 + $0x60] sm:$0xff] }
 0x132   :  { %750 = vmatprep.subr.mxu0 %v4745_v59  ;;  %820 = vmatprep.subr.mxu1 %v4747_v60  ;;  %7922 = vst [vmem:[#allocation79_spill] sm:$0xff] %v4771_v4  ;;  %7923 = vst [vmem:[#allocation80_spill] sm:$0xff] %v4775_v0  ;;  %v4777_v59 = vld [vmem:[#allocation5 + $0x70] sm:$0xff]  ;;  %v4781_v60 = vld [vmem:[#allocation5 + $0x48] sm:$0xff] }
 0x133   :  { %751 = vmatpush1.msra.mxu0 %v4751_v62  ;;  %821 = vmatpush1.msra.mxu1 %v4753_v39  ;;  %7924 = vst [vmem:[#allocation81_spill] sm:$0xff] %v4777_v59  ;;  %v4783_v62 = vld [vmem:[#allocation5 + $0x58] sm:$0xff]  ;;  %v4787_v39 = vld [vmem:[#allocation5 + $0x40] sm:$0xff] }
 0x134   :  { %752 = vmatprep.subr.mxu0 %v4757_v12  ;;  %822 = vmatprep.subr.mxu1 %v4759_v5  ;;  %7925 = vst [vmem:[#allocation82_spill] sm:$0xff] %v4783_v62  ;;  %v4789_v12 = vld [vmem:[#allocation5 + $0x50] sm:$0xff]  ;;  %v4793_v5 = vld [vmem:[#allocation5 + $0x28] sm:$0xff] }
 0x135   :  { %753 = vmatpush1.msra.mxu0 %v4763_v63  ;;  %823 = vmatpush1.msra.mxu1 %v4765_v21  ;;  %v4795_v63 = vld [vmem:[#allocation5 + $0x38] sm:$0xff]  ;;  %v4799_v21 = vld [vmem:[#allocation5 + $0x20] sm:$0xff] }
 0x136   :  { %754 = vmatprep.subr.mxu0 %v4769_v2  ;;  %824 = vmatprep.subr.mxu1 %v4771_v4  ;;  %7926 = vst [vmem:[#allocation83_spill] sm:$0xff] %v4799_v21  ;;  %v4801_v2 = vld [vmem:[#allocation5 + $0x30] sm:$0xff]  ;;  %v4805_v4 = vld [vmem:[#allocation5 + $0x8] sm:$0xff] }
 0x137   :  { %755 = vmatpush1.msra.mxu0 %v4775_v0  ;;  %825 = vmatpush1.msra.mxu1 %v4777_v59  ;;  %v4807_v0 = vld [vmem:[#allocation5 + $0x18] sm:$0xff]  ;;  %v4811_v59 = vld [vmem:[#allocation5] sm:$0xff] }
 0x138   :  { %756 = vmatprep.subr.mxu0 %v4781_v60  ;;  %826 = vmatprep.subr.mxu1 %v4783_v62  ;;  %7927 = vst [vmem:[#allocation84_spill] sm:$0xff] %v4807_v0  ;;  %7928 = vst [vmem:[#allocation85_spill] sm:$0xff] %v4811_v59  ;;  %v4815_v62 = vld [vmem:[#allocation5 + $0x10] sm:$0xff] }
 0x139   :  { %757 = vmatpush1.msra.mxu0 %v4787_v39  ;;  %827 = vmatpush1.msra.mxu1 %v4789_v12 }
 0x13a   :  { %758 = vmatprep.subr.mxu0 %v4793_v5  ;;  %828 = vmatprep.subr.mxu1 %v4795_v63 }
 0x13b   :  { %759 = vmatpush1.msra.mxu0 %v4799_v21  ;;  %829 = vmatpush1.msra.mxu1 %v4801_v2  ;;  %v4825_v21 = vpop.f32.mrf.mxu0 }
 0x13c   :  { %760 = vmatprep.subr.mxu0 %v4805_v4  ;;  %830 = vmatprep.subr.mxu1 %v4807_v0 }
 0x13d   :  { %761 = vmatpush1.msra.mxu0 %v4811_v59  ;;  %794 = vmatprep.mubr.f32.mxu0 %v7872_v3  ;;  %v7448_v59 = vsub.s32 1, %v4600_v48  ;;  %v4832_v0 = vpop.f32.mrf.mxu0 }
 0x13e   :  { %831 = vmatpush1.msra.mxu1 %v4815_v62  ;;  %864 = vmatprep.mubr.f32.mxu1 %v7872_v3 }
 0x13f   :  { %795 = vmatmul.mubr.f32.vlgmr.msra.gmra.mxu0 %v4631_v1  ;;  %865 = vmatmul.mubr.f32.vlgmr.msra.gmra.mxu1 %v4631_v1 }
 0x140   :  { %891 = vmatprep.subr.mxu0 %v4353_v6  ;;  %962 = vmatprep.subr.mxu1 %v4355_v7  ;;  %v4840_v6 = vpop.f32.mrf.mxu0  ;;  %v4847_v7 = vrot.slane %v4606_v30, %v7448_v59  ;;  %v5132_v59 = vld [vmem:[#allocation5 + $0x320] sm:$0xff] }
 0x141   :  { %892 = vmatpush1.msra.mxu0 %v4359_v8  ;;  %963 = vmatpush1.msra.mxu1 %v4361_v9 }
 0x142   :  { %893 = vmatprep.subr.mxu0 %v4365_v10  ;;  %964 = vmatprep.subr.mxu1 %v4367_v11  ;;  %7929 = vst [vmem:[#allocation86_spill] sm:$0xff] %v4847_v7  ;;  %v209_v8 = vpop.f32.mrf.mxu0 }
 0x143   :  { %894 = vmatpush1.msra.mxu0 %v4374_v13  ;;  %965 = vmatpush1.msra.mxu1 %v4376_v14  ;;  %v4854_v9 = vadd.f32 %v209_v8, %v4847_v7 }
 0x144   :  { %895 = vmatprep.subr.mxu0 %v4380_v15  ;;  %966 = vmatprep.subr.mxu1 %v4382_v16  ;;  %v4862_v10 = vpop.f32.mrf.mxu0 }
 0x145   :  { %896 = vmatpush1.msra.mxu0 %v4386_v17  ;;  %967 = vmatpush1.msra.mxu1 %v4388_v18  ;;  %7930 = vst [vmem:[#allocation87_spill] sm:$0xff] %v4862_v10  ;;  %v7935_v18 = vld [vmem:[#allocation10_spill] sm:$0xff]  ;;  %v5194_v10 = vld [vmem:[#allocation5 + $0x290] sm:$0xff] }
 0x146   :  { %897 = vmatprep.subr.mxu0 %v4392_v19  ;;  %968 = vmatprep.subr.mxu1 %v4394_v20  ;;  %v215_v11 = vpop.f32.mrf.mxu0  ;;  %v7936_v19 = vld [vmem:[#allocation11_spill] sm:$0xff]  ;;  %v7937_v20 = vld [vmem:[#allocation12_spill] sm:$0xff] }
 0x147   :  { %898 = vmatpush1.msra.mxu0 %v4401_v22  ;;  %969 = vmatpush1.msra.mxu1 %v4403_v23  ;;  %v4871_v13 = vadd.f32 %v215_v11, %v4847_v7  ;;  %v7938_v22 = vld [vmem:[#allocation13_spill] sm:$0xff] }
 0x148   :  { %899 = vmatprep.subr.mxu0 %v4407_v24  ;;  %970 = vmatprep.subr.mxu1 %v4411_v25  ;;  %v4879_v14 = vpop.f32.mrf.mxu0  ;;  %v7939_v24 = vld [vmem:[#allocation14_spill] sm:$0xff]  ;;  %v7940_v25 = vld [vmem:[#allocation15_spill] sm:$0xff] }
 0x149   :  { %900 = vmatpush1.msra.mxu0 %v4415_v26  ;;  %971 = vmatpush1.msra.mxu1 %v4417_v27  ;;  %7931 = vst [vmem:[#allocation88_spill] sm:$0xff] %v4871_v13  ;;  %7932 = vst [vmem:[#allocation89_spill] sm:$0xff] %v4879_v14  ;;  %v7942_v27 = vld [vmem:[#allocation16_spill] sm:$0xff]  ;;  %v5192_v13 = vld [vmem:[#allocation5 + $0x280] sm:$0xff] }
 0x14a   :  { %901 = vmatprep.subr.mxu0 %v4421_v28  ;;  %972 = vmatprep.subr.mxu1 %v4425_v29  ;;  %v221_v15 = vpop.f32.mrf.mxu0  ;;  %v7943_v28 = vld [vmem:[#allocation17_spill] sm:$0xff]  ;;  %v7944_v29 = vld [vmem:[#allocation18_spill] sm:$0xff]  ;;  %v5182_v14 = vld [vmem:[#allocation5 + $0x2b0] sm:$0xff] }
 0x14b   :  { %902 = vmatpush1.msra.mxu0 %v4432_v31  ;;  %973 = vmatpush1.msra.mxu1 %v4434_v32  ;;  %v4888_v16 = vadd.f32 %v221_v15, %v4847_v7  ;;  %v7945_v31 = vld [vmem:[#allocation19_spill] sm:$0xff]  ;;  %v7946_v32 = vld [vmem:[#allocation20_spill] sm:$0xff] }
 0x14c   :  { %903 = vmatprep.subr.mxu0 %v4438_v33  ;;  %974 = vmatprep.subr.mxu1 %v4442_v34  ;;  %v4896_v17 = vpop.f32.mrf.mxu0  ;;  %v7947_v33 = vld [vmem:[#allocation21_spill] sm:$0xff] }
 0x14d   :  { %904 = vmatpush1.msra.mxu0 %v4446_v35  ;;  %975 = vmatpush1.msra.mxu1 %v4448_v36  ;;  %7933 = vst [vmem:[#allocation90_spill] sm:$0xff] %v4888_v16  ;;  %7934 = vst [vmem:[#allocation91_spill] sm:$0xff] %v4896_v17  ;;  %v7949_v35 = vld [vmem:[#allocation22_spill] sm:$0xff]  ;;  %v7950_v36 = vld [vmem:[#allocation23_spill] sm:$0xff] }
 0x14e   :  { %905 = vmatprep.subr.mxu0 %v4452_v37  ;;  %976 = vmatprep.subr.mxu1 %v4456_v38  ;;  %v227_v23 = vpop.f32.mrf.mxu0  ;;  %v7951_v37 = vld [vmem:[#allocation24_spill] sm:$0xff]  ;;  %v7952_v38 = vld [vmem:[#allocation25_spill] sm:$0xff]  ;;  %v5180_v16 = vld [vmem:[#allocation5 + $0x2a0] sm:$0xff] }
 0x14f   :  { %906 = vmatpush1.msra.mxu0 %v4463_v40  ;;  %977 = vmatpush1.msra.mxu1 %v4465_v41  ;;  %v4905_v26 = vadd.f32 %v227_v23, %v4847_v7  ;;  %v7953_v41 = vld [vmem:[#allocation26_spill] sm:$0xff]  ;;  %v5170_v17 = vld [vmem:[#allocation5 + $0x2d0] sm:$0xff] }
 0x150   :  { %907 = vmatprep.subr.mxu0 %v4469_v42  ;;  %978 = vmatprep.subr.mxu1 %v4473_v43  ;;  %v4913_v34 = vpop.f32.mrf.mxu0  ;;  %v7954_v42 = vld [vmem:[#allocation27_spill] sm:$0xff] }
 0x151   :  { %908 = vmatpush1.msra.mxu0 %v4477_v44  ;;  %979 = vmatpush1.msra.mxu1 %v4479_v45  ;;  %7941 = vst [vmem:[#allocation10_spill] sm:$0xff] %v4905_v26  ;;  %7948 = vst [vmem:[#allocation11_spill] sm:$0xff] %v4913_v34  ;;  %v7956_v44 = vld [vmem:[#allocation28_spill] sm:$0xff]  ;;  %v7957_v45 = vld [vmem:[#allocation29_spill] sm:$0xff] }
 0x152   :  { %909 = vmatprep.subr.mxu0 %v4483_v46  ;;  %980 = vmatprep.subr.mxu1 %v4487_v47  ;;  %v233_v40 = vpop.f32.mrf.mxu0  ;;  %v314_v46 = vpop.f32.mrf.mxu1  ;;  %v5158_v34 = vld [vmem:[#allocation5 + $0x2f0] sm:$0xff]  ;;  %v5168_v26 = vld [vmem:[#allocation5 + $0x2c0] sm:$0xff] }
 0x153   :  { %910 = vmatpush1.msra.mxu0 %v4494_v49  ;;  %981 = vmatpush1.msra.mxu1 %v4496_v50  ;;  %v4922_v43 = vadd.f32 %v233_v40, %v4847_v7  ;;  %8032 = vst [vmem:[#allocation29_spill] sm:$0xff] %v5168_v26 }
 0x154   :  { %911 = vmatprep.subr.mxu0 %v4500_v51  ;;  %982 = vmatprep.subr.mxu1 %v4504_v52  ;;  %v316_v47 = vpop.f32.mrf.mxu1  ;;  %v4948_v8 = vpop.f32.mrf.mxu0 }
 0x155   :  { %912 = vmatpush1.msra.mxu0 %v4508_v53  ;;  %983 = vmatpush1.msra.mxu1 %v4510_v54  ;;  %7955 = vst [vmem:[#allocation12_spill] sm:$0xff] %v4922_v43  ;;  %7966 = vst [vmem:[#allocation21_spill] sm:$0xff] %v4948_v8  ;;  %v5146_v8 = vld [vmem:[#allocation5 + $0x310] sm:$0xff]  ;;  %v5156_v43 = vld [vmem:[#allocation5 + $0x2e0] sm:$0xff] }
 0x156   :  { %913 = vmatprep.subr.mxu0 %v4514_v55  ;;  %984 = vmatprep.subr.mxu1 %v4518_v56  ;;  %v4928_v49 = vpop.f32.mrf.mxu1  ;;  %v4952_v15 = vpop.f32.mrf.mxu0 }
 0x157   :  { %914 = vmatpush1.msra.mxu0 %v7935_v18  ;;  %985 = vmatpush1.msra.mxu1 %v7936_v19  ;;  %7968 = vst [vmem:[#allocation23_spill] sm:$0xff] %v4952_v15  ;;  %v7969_v18 = vld [vmem:[#allocation30_spill] sm:$0xff]  ;;  %v5140_v15 = vld [vmem:[#allocation5 + $0x318] sm:$0xff] }
 0x158   :  { %915 = vmatprep.subr.mxu0 %v7937_v20  ;;  %986 = vmatprep.subr.mxu1 %v7938_v22  ;;  %v4930_v50 = vpop.f32.mrf.mxu1  ;;  %v202_v19 = vadd.f32 %v4825_v21, %v7969_v18  ;;  %v204_v22 = vadd.f32 %v4832_v0, %v4847_v7  ;;  %v315_v21 = vadd.f32 %v314_v46, %v4625_v61  ;;  %v5144_v7 = vld [vmem:[#allocation5 + $0x300] sm:$0xff] }
 0x159   :  { %916 = vmatpush1.msra.mxu0 %v7939_v24  ;;  %987 = vmatpush1.msra.mxu1 %v7940_v25 }
 0x15a   :  { %917 = vmatprep.subr.mxu0 %v7942_v27  ;;  %988 = vmatprep.subr.mxu1 %v7943_v28  ;;  %v4932_v51 = vpop.f32.mrf.mxu1 }
 0x15b   :  { %918 = vmatpush1.msra.mxu0 %v7944_v29  ;;  %989 = vmatpush1.msra.mxu1 %v7945_v31  ;;  %7958 = vst [vmem:[#allocation13_spill] sm:$0xff] %v4932_v51  ;;  %v5186_v51 = vld [vmem:[#allocation5 + $0x288] sm:$0xff] }
 0x15c   :  { %919 = vmatprep.subr.mxu0 %v7946_v32  ;;  %990 = vmatprep.subr.mxu1 %v7947_v33  ;;  %v4934_v52 = vpop.f32.mrf.mxu1  ;;  %v7971_v33 = vld [vmem:[#allocation31_spill] sm:$0xff] }
 0x15d   :  { %920 = vmatpush1.msra.mxu0 %v7949_v35  ;;  %991 = vmatpush1.msra.mxu1 %v7950_v36  ;;  %7959 = vst [vmem:[#allocation14_spill] sm:$0xff] %v4934_v52  ;;  %v317_v35 = vadd.f32 %v316_v47, %v7971_v33  ;;  %v5188_v52 = vld [vmem:[#allocation5 + $0x298] sm:$0xff] }
 0x15e   :  { %921 = vmatprep.subr.mxu0 %v7951_v37  ;;  %992 = vmatprep.subr.mxu1 %v7952_v38  ;;  %v4936_v53 = vpop.f32.mrf.mxu1 }
 0x15f   :  { %922 = vmatpush1.msra.mxu0 %v7953_v41  ;;  %993 = vmatpush1.msra.mxu1 %v7954_v42  ;;  %7960 = vst [vmem:[#allocation15_spill] sm:$0xff] %v4936_v53  ;;  %v5174_v53 = vld [vmem:[#allocation5 + $0x2a8] sm:$0xff] }
 0x160   :  { %955 = vmatprep.mubr.f32.mxu0 %v7872_v3  ;;  %1026 = vmatprep.mubr.f32.mxu1 %v7872_v3  ;;  %v4938_v54 = vpop.f32.mrf.mxu1 }
 0x161   :  { %1189 = vmatprep.subr.mxu0 %v7956_v44  ;;  %1260 = vmatprep.subr.mxu1 %v7957_v45  ;;  %7961 = vst [vmem:[#allocation16_spill] sm:$0xff] %v4938_v54  ;;  %v4965_v44 = vld [vmem:[%s7362_s5] sm:$0xf]  ;;  %v7972_v45 = vsub.s32 0, %v4600_v48  ;;  %v5176_v54 = vld [vmem:[#allocation5 + $0x2b8] sm:$0xff] }
 0x162   :  { %v4940_v55 = vpop.f32.mrf.mxu1 }
 0x163   :  { %7962 = vst [vmem:[#allocation17_spill] sm:$0xff] %v4940_v55  ;;  %v4970_v47 = vrot.slane %v4965_v44, %v7972_v45  ;;  %v5162_v55 = vld [vmem:[#allocation5 + $0x2c8] sm:$0xff] }
 0x164   :  { %v4942_v56 = vpop.f32.mrf.mxu1 }
 0x165   :  { %7963 = vst [vmem:[#allocation18_spill] sm:$0xff] %v4942_v56  ;;  %7973 = vst [vmem:[#allocation25_spill] sm:$0xff] %v4970_v47  ;;  %v5164_v56 = vld [vmem:[#allocation5 + $0x2d8] sm:$0xff] }
 0x166   :  { %v4944_v1 = vpop.f32.mrf.mxu1  ;;  %8031 = vst [vmem:[#allocation28_spill] sm:$0xff] %v5164_v56 }
 0x167   :  { %7964 = vst [vmem:[#allocation19_spill] sm:$0xff] %v4944_v1  ;;  %v5150_v1 = vld [vmem:[#allocation5 + $0x2e8] sm:$0xff] }
 0x168   :  { %v4946_v30 = vpop.f32.mrf.mxu1 }
 0x169   :  { %7965 = vst [vmem:[#allocation20_spill] sm:$0xff] %v4946_v30  ;;  %v5152_v30 = vld [vmem:[#allocation5 + $0x2f8] sm:$0xff] }
 0x16a   :  { %v4950_v11 = vpop.f32.mrf.mxu1 }
 0x16b   :  { %7967 = vst [vmem:[#allocation22_spill] sm:$0xff] %v4950_v11  ;;  %v5138_v11 = vld [vmem:[#allocation5 + $0x308] sm:$0xff] }
 0x16c   :  { %v4958_v23 = vpop.f32.mrf.mxu1 }
 0x16d   :  { %7970 = vst [vmem:[#allocation24_spill] sm:$0xff] %v4958_v23  ;;  %v5134_v23 = vld [vmem:[#allocation5 + $0x330] sm:$0xff] }
 0x1de   :  { %v540_v20 = vpop.f32.mrf.mxu0  ;;  %v611_v29 = vpop.f32.mrf.mxu1 }
 0x1df   :  { %v616_v24 = vadd.f32 %v540_v20, %v202_v19  ;;  %v618_v40 = vadd.f32 %v611_v29, %v315_v21 }
 0x1e0   :  { %v542_v25 = vpop.f32.mrf.mxu0  ;;  %v613_v32 = vpop.f32.mrf.mxu1 }
 0x1e1   :  { %v3339_v27 = vmul.f32 -1.442695, %v616_v24  ;;  %v617_v28 = vadd.f32 %v542_v25, %v204_v22  ;;  %v619_v36 = vadd.f32 %v613_v32, %v317_v35 }
 0x1e3   :  { %3457 = vpow2.f32 %v3339_v27  ;;  %v3340_v31 = vmul.f32 -1.442695, %v617_v28  ;;  %v3341_v37 = vmul.f32 -1.442695, %v619_v36  ;;  %v7974_v36 = vsub.s32 3, %v4600_v48 }
 0x1e5   :  { %3459 = vpow2.f32 %v3340_v31  ;;  %v4977_v21 = vrot.slane %v4965_v44, %v7974_v36  ;;  %v7985_v36 = vld [vmem:[#allocation40_spill] sm:$0xff] }
 0x1e6   :  { %3461 = vpow2.f32 %v3341_v37  ;;  %8040 = vst [vmem:[#allocation40_spill] sm:$0xff] %v5192_v13 }
 0x1e7   :  { %7975 = vst [vmem:[#allocation26_spill] sm:$0xff] %v4977_v21 }
 0x1f0   :  { %v3458_v38 = vpop.eup %3457 }
 0x1f1   :  { %v623_v0 = vadd.f32 1.0, %v3458_v38 }
 0x1f2   :  { %v3460_v41 = vpop.eup %3459 }
 0x1f3   :  { %3463 = vrcp.f32 %v623_v0  ;;  %v629_v42 = vadd.f32 1.0, %v3460_v41  ;;  %v3462_v46 = vpop.eup %3461  ;;  %v7976_v0 = vsub.s32 2, %v4600_v48 }
 0x1f4   :  { %3465 = vtanh.f32 %v618_v40  ;;  %v636_v29 = vadd.f32 1.0, %v3462_v46 }
 0x1f5   :  { %3467 = vrcp.f32 %v629_v42  ;;  %v4986_v41 = vrot.slane %v4965_v44, %v7976_v0  ;;  %v7989_v0 = vld [vmem:[#allocation44_spill] sm:$0xff] }
 0x1f7   :  { %7977 = vst [vmem:[#allocation27_spill] sm:$0xff] %v4986_v41 }
 0x1ff   :  { %v796_v19 = vpop.f32.mrf.mxu0  ;;  %v866_v24 = vpop.f32.mrf.mxu1 }
 0x200   :  { %v3464_v20 = vpop.eup %3463  ;;  %v797_v22 = vadd.f32 %v796_v19, %v4970_v47  ;;  %v867_v42 = vadd.f32 %v866_v24, %v4986_v41  ;;  %v7980_v24 = vld [vmem:[#allocation35_spill] sm:$0xff] }
 0x201   :  { %v3466_v25 = vpop.eup %3465  ;;  %v798_v27 = vpop.f32.mrf.mxu0  ;;  %8035 = vst [vmem:[#allocation35_spill] sm:$0xff] %v5176_v54 }
 0x202   :  { %v3468_v28 = vpop.eup %3467  ;;  %v3342_v31 = vmul.f32 -1.442695, %v797_v22  ;;  %v640_v32 = vmul.f32 %v3466_v25, %v3464_v20  ;;  %v868_v37 = vpop.f32.mrf.mxu1  ;;  %v7978_v25 = vld [vmem:[#allocation33_spill] sm:$0xff]  ;;  %v7979_v27 = vld [vmem:[#allocation34_spill] sm:$0xff] }
 0x203   :  { %v639_v35 = vmul.f32 %v3468_v28, %v4628_v58  ;;  %v869_v40 = vadd.f32 %v868_v37, %v4977_v21  ;;  %v7981_v28 = vld [vmem:[#allocation36_spill] sm:$0xff]  ;;  %v7986_v37 = vld [vmem:[#allocation41_spill] sm:$0xff]  ;;  %8033 = vst [vmem:[#allocation33_spill] sm:$0xff] %v5170_v17  ;;  %8034 = vst [vmem:[#allocation34_spill] sm:$0xff] %v5174_v53 }
 0x204   :  { %3469 = vpow2.f32 %v3342_v31  ;;  %v7983_v31 = vld [vmem:[#allocation38_spill] sm:$0xff]  ;;  %8036 = vst [vmem:[#allocation36_spill] sm:$0xff] %v5180_v16  ;;  %8041 = vst [vmem:[#allocation41_spill] sm:$0xff] %v5194_v10 }
 0x205   :  { %v4979_v38 = vadd.f32 %v640_v32, %v639_v35  ;;  %3471 = vrcp.f32 %v636_v29  ;;  %v3343_v58 = vmul.f32 -1.442695, %v869_v40  ;;  %v7982_v29 = vld [vmem:[#allocation37_spill] sm:$0xff]  ;;  %v7984_v32 = vld [vmem:[#allocation39_spill] sm:$0xff]  ;;  %8038 = vst [vmem:[#allocation38_spill] sm:$0xff] %v5186_v51 }
 0x206   :  { %v7988_v40 = vld [vmem:[#allocation43_spill] sm:$0xff]  ;;  %8037 = vst [vmem:[#allocation37_spill] sm:$0xff] %v5182_v14  ;;  %8039 = vst [vmem:[#allocation39_spill] sm:$0xff] %v5188_v52 }
 0x207   :  { %3473 = vtanh.f32 %v4979_v38 }
 0x208   :  { %3475 = vpow2.f32 %v3343_v58  ;;  %v7990_v58 = vld [vmem:[#allocation45_spill] sm:$0xff] }
 0x209   :  { %3477 = vtanh.f32 %v867_v42 }
 0x211   :  { %v3470_v45 = vpop.eup %3469 }
 0x212   :  { %v874_v46 = vadd.f32 1.0, %v3470_v45  ;;  %v3472_v19 = vpop.eup %3471  ;;  %v7991_v45 = vld [vmem:[#allocation46_spill] sm:$0xff] }
 0x214   :  { %v3474_v20 = vpop.eup %3473  ;;  %3479 = vrcp.f32 %v874_v46  ;;  %v7992_v46 = vld [vmem:[#allocation47_spill] sm:$0xff] }
 0x215   :  { %v4989_v22 = vmul.f32 %v3474_v20, %v3472_v19  ;;  %v3476_v35 = vpop.eup %3475  ;;  %v7993_v20 = vld [vmem:[#allocation48_spill] sm:$0xff] }
 0x216   :  { %v881_v42 = vadd.f32 1.0, %v3476_v35  ;;  %v3478_v19 = vpop.eup %3477  ;;  %v7999_v35 = vld [vmem:[#allocation54_spill] sm:$0xff] }
 0x217   :  { %956 = vmatmul.mubr.f32.vlgmr.msra.gmra.mxu0 %v4989_v22  ;;  %1027 = vmatmul.mubr.f32.vlgmr.msra.gmra.mxu1 %v4989_v22 }
 0x218   :  { %1190 = vmatpush1.msra.mxu0 %v4633_v57  ;;  %1261 = vmatpush1.msra.mxu1 %v7978_v25  ;;  %v7987_v57 = vld [vmem:[#allocation42_spill] sm:$0xff]  ;;  %v7994_v25 = vld [vmem:[#allocation49_spill] sm:$0xff]  ;;  %3481 = vrcp.f32 %v881_v42  ;;  %v8008_v42 = vld [vmem:[#allocation63_spill] sm:$0xff] }
 0x219   :  { %1191 = vmatprep.subr.mxu0 %v7979_v27  ;;  %1262 = vmatprep.subr.mxu1 %v7980_v24  ;;  %v7995_v24 = vld [vmem:[#allocation50_spill] sm:$0xff] }
 0x21a   :  { %1192 = vmatpush1.msra.mxu0 %v7981_v28  ;;  %1263 = vmatpush1.msra.mxu1 %v7982_v29  ;;  %v7996_v28 = vld [vmem:[#allocation51_spill] sm:$0xff] }
 0x21b   :  { %1193 = vmatprep.subr.mxu0 %v7983_v31  ;;  %1264 = vmatprep.subr.mxu1 %v7984_v32  ;;  %v7997_v31 = vld [vmem:[#allocation52_spill] sm:$0xff]  ;;  %v7998_v32 = vld [vmem:[#allocation53_spill] sm:$0xff] }
 0x21c   :  { %1194 = vmatpush1.msra.mxu0 %v7985_v36  ;;  %1265 = vmatpush1.msra.mxu1 %v7986_v37  ;;  %v8000_v36 = vld [vmem:[#allocation55_spill] sm:$0xff]  ;;  %v8001_v37 = vld [vmem:[#allocation56_spill] sm:$0xff] }
 0x21d   :  { %1195 = vmatprep.subr.mxu0 %v7987_v57  ;;  %1266 = vmatprep.subr.mxu1 %v7988_v40  ;;  %v8002_v57 = vld [vmem:[#allocation57_spill] sm:$0xff]  ;;  %v8003_v40 = vld [vmem:[#allocation58_spill] sm:$0xff] }
 0x21e   :  { %1196 = vmatpush1.msra.mxu0 %v7989_v0  ;;  %1267 = vmatpush1.msra.mxu1 %v7990_v58  ;;  %v8004_v0 = vld [vmem:[#allocation59_spill] sm:$0xff]  ;;  %v8005_v58 = vld [vmem:[#allocation60_spill] sm:$0xff] }
 0x21f   :  { %1197 = vmatprep.subr.mxu0 %v7991_v45  ;;  %1268 = vmatprep.subr.mxu1 %v7992_v46  ;;  %v8006_v45 = vld [vmem:[#allocation61_spill] sm:$0xff]  ;;  %v8007_v46 = vld [vmem:[#allocation62_spill] sm:$0xff] }
 0x220   :  { %1198 = vmatpush1.msra.mxu0 %v7993_v20  ;;  %1269 = vmatpush1.msra.mxu1 %v7994_v25  ;;  %v8010_v20 = vld [vmem:[#allocation65_spill] sm:$0xff]  ;;  %v8011_v25 = vld [vmem:[#allocation66_spill] sm:$0xff] }
 0x221   :  { %v3480_v27 = vpop.eup %3479  ;;  %1199 = vmatprep.subr.mxu0 %v7995_v24  ;;  %1270 = vmatprep.subr.mxu1 %v7996_v28  ;;  %v8013_v24 = vld [vmem:[#allocation68_spill] sm:$0xff]  ;;  %v8014_v28 = vld [vmem:[#allocation69_spill] sm:$0xff] }
 0x222   :  { %v5013_v29 = vmul.f32 %v3480_v27, %v3478_v19  ;;  %1200 = vmatpush1.msra.mxu0 %v7997_v31  ;;  %1271 = vmatpush1.msra.mxu1 %v7998_v32  ;;  %v8009_v19 = vld [vmem:[#allocation64_spill] sm:$0xff]  ;;  %v8012_v27 = vld [vmem:[#allocation67_spill] sm:$0xff]  ;;  %v8015_v31 = vld [vmem:[#allocation70_spill] sm:$0xff] }
 0x223   :  { %1201 = vmatprep.subr.mxu0 %v7999_v35  ;;  %1272 = vmatprep.subr.mxu1 %v8000_v36  ;;  %v8016_v32 = vld [vmem:[#allocation71_spill] sm:$0xff]  ;;  %v8017_v35 = vld [vmem:[#allocation72_spill] sm:$0xff]  ;;  %v8018_v36 = vld [vmem:[#allocation73_spill] sm:$0xff] }
 0x224   :  { %3483 = vtanh.f32 %v5013_v29  ;;  %1202 = vmatpush1.msra.mxu0 %v8001_v37  ;;  %1273 = vmatpush1.msra.mxu1 %v8002_v57  ;;  %v8019_v37 = vld [vmem:[#allocation74_spill] sm:$0xff]  ;;  %v8020_v57 = vld [vmem:[#allocation75_spill] sm:$0xff] }
 0x225   :  { %1203 = vmatprep.subr.mxu0 %v8003_v40  ;;  %1274 = vmatprep.subr.mxu1 %v8004_v0  ;;  %v8021_v40 = vld [vmem:[#allocation76_spill] sm:$0xff]  ;;  %v8022_v0 = vld [vmem:[#allocation77_spill] sm:$0xff] }
 0x226   :  { %1204 = vmatpush1.msra.mxu0 %v8005_v58  ;;  %1275 = vmatpush1.msra.mxu1 %v8006_v45  ;;  %v8023_v58 = vld [vmem:[#allocation78_spill] sm:$0xff]  ;;  %v8024_v45 = vld [vmem:[#allocation79_spill] sm:$0xff] }
 0x227   :  { %1205 = vmatprep.subr.mxu0 %v8007_v46  ;;  %1276 = vmatprep.subr.mxu1 %v8008_v42  ;;  %v3482_v46 = vpop.eup %3481  ;;  %v8025_v42 = vld [vmem:[#allocation80_spill] sm:$0xff] }
 0x228   :  { %1206 = vmatpush1.msra.mxu0 %v8009_v19  ;;  %1277 = vmatpush1.msra.mxu1 %v8010_v20  ;;  %v8026_v19 = vld [vmem:[#allocation81_spill] sm:$0xff] }
 0x229   :  { %1207 = vmatprep.subr.mxu0 %v8011_v25  ;;  %1278 = vmatprep.subr.mxu1 %v8012_v27  ;;  %v8027_v25 = vld [vmem:[#allocation82_spill] sm:$0xff] }
 0x22a   :  { %1208 = vmatpush1.msra.mxu0 %v8013_v24  ;;  %1279 = vmatpush1.msra.mxu1 %v8014_v28  ;;  %v8028_v24 = vld [vmem:[#allocation83_spill] sm:$0xff] }
 0x22b   :  { %1209 = vmatprep.subr.mxu0 %v8015_v31  ;;  %1280 = vmatprep.subr.mxu1 %v8016_v32  ;;  %v5054_v28 = vld [vmem:[#allocation5 + $0x3e8] sm:$0xff]  ;;  %v5062_v31 = vld [vmem:[#allocation5 + $0x3f0] sm:$0xff]  ;;  %v5068_v32 = vld [vmem:[#allocation5 + $0x3d8] sm:$0xff] }
 0x22c   :  { %1210 = vmatpush1.msra.mxu0 %v8017_v35  ;;  %1281 = vmatpush1.msra.mxu1 %v8018_v36  ;;  %v5078_v35 = vld [vmem:[#allocation5 + $0x3a8] sm:$0xff]  ;;  %v5080_v36 = vld [vmem:[#allocation5 + $0x3b8] sm:$0xff] }
 0x22d   :  { %1211 = vmatprep.subr.mxu0 %v8019_v37  ;;  %1282 = vmatprep.subr.mxu1 %v8020_v57  ;;  %v5086_v37 = vld [vmem:[#allocation5 + $0x3b0] sm:$0xff]  ;;  %v5090_v57 = vld [vmem:[#allocation5 + $0x388] sm:$0xff] }
 0x22e   :  { %1212 = vmatpush1.msra.mxu0 %v8021_v40  ;;  %1283 = vmatpush1.msra.mxu1 %v8022_v0  ;;  %v5092_v40 = vld [vmem:[#allocation5 + $0x398] sm:$0xff]  ;;  %v5096_v0 = vld [vmem:[#allocation5 + $0x380] sm:$0xff] }
 0x22f   :  { %1213 = vmatprep.subr.mxu0 %v8023_v58  ;;  %1284 = vmatprep.subr.mxu1 %v8024_v45  ;;  %v5098_v58 = vld [vmem:[#allocation5 + $0x390] sm:$0xff]  ;;  %v5102_v45 = vld [vmem:[#allocation5 + $0x368] sm:$0xff] }
 0x230   :  { %1214 = vmatpush1.msra.mxu0 %v8025_v42  ;;  %1285 = vmatpush1.msra.mxu1 %v8026_v19  ;;  %v5108_v42 = vld [vmem:[#allocation5 + $0x360] sm:$0xff]  ;;  %v5110_v19 = vld [vmem:[#allocation5 + $0x370] sm:$0xff] }
 0x231   :  { %v3484_v20 = vpop.eup %3483  ;;  %1215 = vmatprep.subr.mxu0 %v4781_v60  ;;  %1286 = vmatprep.subr.mxu1 %v8027_v25  ;;  %v5056_v60 = vld [vmem:[#allocation5 + $0x3f8] sm:$0xff] }
 0x232   :  { %1216 = vmatpush1.msra.mxu0 %v4787_v39  ;;  %1287 = vmatpush1.msra.mxu1 %v4789_v12  ;;  %v886_v27 = vmul.f32 %v3484_v20, %v3482_v46  ;;  %v8029_v39 = vld [vmem:[#allocation84_spill] sm:$0xff]  ;;  %v5060_v12 = vld [vmem:[#allocation5 + $0x3e0] sm:$0xff]  ;;  %v5104_v46 = vld [vmem:[#allocation5 + $0x378] sm:$0xff] }
 0x233   :  { %1217 = vmatprep.subr.mxu0 %v4793_v5  ;;  %1288 = vmatprep.subr.mxu1 %v4795_v63  ;;  %v8030_v5 = vld [vmem:[#allocation85_spill] sm:$0xff]  ;;  %v5066_v63 = vld [vmem:[#allocation5 + $0x3c8] sm:$0xff] }
 0x234   :  { %1253 = vmatprep.mubr.f32.mxu0 %v886_v27  ;;  %1324 = vmatprep.mubr.f32.mxu1 %v886_v27  ;;  %v5114_v20 = vld [vmem:[#allocation5 + $0x348] sm:$0xff]  ;;  %v5116_v25 = vld [vmem:[#allocation5 + $0x358] sm:$0xff]  ;;  %v5120_v27 = vld [vmem:[#allocation5 + $0x340] sm:$0xff] }
 0x235   :  { %1218 = vmatpush1.msra.mxu0 %v8028_v24  ;;  %1289 = vmatpush1.msra.mxu1 %v4801_v2  ;;  %v5072_v2 = vld [vmem:[#allocation5 + $0x3c0] sm:$0xff]  ;;  %v5122_v24 = vld [vmem:[#allocation5 + $0x350] sm:$0xff] }
 0x236   :  { %1219 = vmatprep.subr.mxu0 %v4805_v4  ;;  %1290 = vmatprep.subr.mxu1 %v8029_v39  ;;  %v5074_v4 = vld [vmem:[#allocation5 + $0x3d0] sm:$0xff]  ;;  %v5126_v39 = vld [vmem:[#allocation5 + $0x328] sm:$0xff] }
 0x237   :  { %1220 = vmatpush1.msra.mxu0 %v8030_v5  ;;  %1291 = vmatpush1.msra.mxu1 %v4815_v62  ;;  %v5084_v62 = vld [vmem:[#allocation5 + $0x3a0] sm:$0xff]  ;;  %v5128_v5 = vld [vmem:[#allocation5 + $0x338] sm:$0xff] }
 0x238   :  { %1221 = vmatprep.subr.mxu0 %v5054_v28  ;;  %1292 = vmatprep.subr.mxu1 %v5056_v60 }
 0x239   :  { %1222 = vmatpush2.msra.mxu0 %v5060_v12  ;;  %1293 = vmatpush2.msra.mxu1 %v5062_v31 }
 0x23a   :  { %1223 = vmatprep.subr.mxu0 %v5066_v63  ;;  %1294 = vmatprep.subr.mxu1 %v5068_v32 }
 0x23b   :  { %1224 = vmatpush2.msra.mxu0 %v5072_v2  ;;  %1295 = vmatpush2.msra.mxu1 %v5074_v4 }
 0x23c   :  { %1225 = vmatprep.subr.mxu0 %v5078_v35  ;;  %1296 = vmatprep.subr.mxu1 %v5080_v36 }
 0x23d   :  { %1226 = vmatpush2.msra.mxu0 %v5084_v62  ;;  %1297 = vmatpush2.msra.mxu1 %v5086_v37 }
 0x23e   :  { %1227 = vmatprep.subr.mxu0 %v5090_v57  ;;  %1298 = vmatprep.subr.mxu1 %v5092_v40 }
 0x23f   :  { %1228 = vmatpush2.msra.mxu0 %v5096_v0  ;;  %1299 = vmatpush2.msra.mxu1 %v5098_v58 }
 0x240   :  { %1229 = vmatprep.subr.mxu0 %v5102_v45  ;;  %1300 = vmatprep.subr.mxu1 %v5104_v46 }
 0x241   :  { %1230 = vmatpush2.msra.mxu0 %v5108_v42  ;;  %1301 = vmatpush2.msra.mxu1 %v5110_v19 }
 0x242   :  { %1231 = vmatprep.subr.mxu0 %v5114_v20  ;;  %1302 = vmatprep.subr.mxu1 %v5116_v25 }
 0x243   :  { %1232 = vmatpush2.msra.mxu0 %v5120_v27  ;;  %1303 = vmatpush2.msra.mxu1 %v5122_v24 }
 0x244   :  { %1233 = vmatprep.subr.mxu0 %v5126_v39  ;;  %1304 = vmatprep.subr.mxu1 %v5128_v5 }
 0x245   :  { %1234 = vmatpush2.msra.mxu0 %v5132_v59  ;;  %1305 = vmatpush2.msra.mxu1 %v5134_v23 }
 0x246   :  { %1235 = vmatprep.subr.mxu0 %v5138_v11  ;;  %1306 = vmatprep.subr.mxu1 %v5140_v15 }
 0x247   :  { %1236 = vmatpush2.msra.mxu0 %v5144_v7  ;;  %1307 = vmatpush2.msra.mxu1 %v5146_v8 }
 0x248   :  { %1237 = vmatprep.subr.mxu0 %v5150_v1  ;;  %1308 = vmatprep.subr.mxu1 %v5152_v30 }
 0x249   :  { %1238 = vmatpush2.msra.mxu0 %v5156_v43  ;;  %1309 = vmatpush2.msra.mxu1 %v5158_v34 }
 0x24a   :  { %1239 = vmatprep.subr.mxu0 %v5162_v55  ;;  %1310 = vmatprep.subr.mxu1 %v5164_v56  ;;  %v5198_v56 = vld [vmem:[#allocation5 + $0x268] sm:$0xff] }
 0x24b   :  { %1240 = vmatpush2.msra.mxu0 %v5168_v26  ;;  %1311 = vmatpush2.msra.mxu1 %v5170_v17  ;;  %8042 = vst [vmem:[#allocation42_spill] sm:$0xff] %v5198_v56  ;;  %v5200_v26 = vld [vmem:[#allocation5 + $0x278] sm:$0xff]  ;;  %v5204_v17 = vld [vmem:[#allocation5 + $0x260] sm:$0xff] }
 0x24c   :  { %1241 = vmatprep.subr.mxu0 %v5174_v53  ;;  %1312 = vmatprep.subr.mxu1 %v5176_v54  ;;  %8043 = vst [vmem:[#allocation43_spill] sm:$0xff] %v5200_v26  ;;  %8044 = vst [vmem:[#allocation44_spill] sm:$0xff] %v5204_v17  ;;  %v5206_v53 = vld [vmem:[#allocation5 + $0x270] sm:$0xff]  ;;  %v5210_v54 = vld [vmem:[#allocation5 + $0x248] sm:$0xff] }
 0x24d   :  { %1242 = vmatpush2.msra.mxu0 %v5180_v16  ;;  %1313 = vmatpush2.msra.mxu1 %v5182_v14  ;;  %8045 = vst [vmem:[#allocation45_spill] sm:$0xff] %v5206_v53  ;;  %8046 = vst [vmem:[#allocation46_spill] sm:$0xff] %v5210_v54  ;;  %v5212_v16 = vld [vmem:[#allocation5 + $0x258] sm:$0xff]  ;;  %v5216_v14 = vld [vmem:[#allocation5 + $0x240] sm:$0xff] }
 0x24e   :  { %1243 = vmatprep.subr.mxu0 %v5186_v51  ;;  %1314 = vmatprep.subr.mxu1 %v5188_v52  ;;  %8047 = vst [vmem:[#allocation47_spill] sm:$0xff] %v5212_v16  ;;  %8048 = vst [vmem:[#allocation48_spill] sm:$0xff] %v5216_v14  ;;  %v5218_v51 = vld [vmem:[#allocation5 + $0x250] sm:$0xff]  ;;  %v5222_v52 = vld [vmem:[#allocation5 + $0x228] sm:$0xff] }
 0x24f   :  { %1244 = vmatpush2.msra.mxu0 %v5192_v13  ;;  %1315 = vmatpush2.msra.mxu1 %v5194_v10  ;;  %8049 = vst [vmem:[#allocation49_spill] sm:$0xff] %v5218_v51  ;;  %8050 = vst [vmem:[#allocation50_spill] sm:$0xff] %v5222_v52  ;;  %v5224_v13 = vld [vmem:[#allocation5 + $0x238] sm:$0xff]  ;;  %v5228_v10 = vld [vmem:[#allocation5 + $0x220] sm:$0xff] }
 0x250   :  { %1245 = vmatprep.subr.mxu0 %v5198_v56  ;;  %1316 = vmatprep.subr.mxu1 %v5200_v26  ;;  %8051 = vst [vmem:[#allocation51_spill] sm:$0xff] %v5224_v13  ;;  %8052 = vst [vmem:[#allocation52_spill] sm:$0xff] %v5228_v10  ;;  %v5230_v56 = vld [vmem:[#allocation5 + $0x230] sm:$0xff]  ;;  %v5234_v26 = vld [vmem:[#allocation5 + $0x208] sm:$0xff] }
 0x251   :  { %1246 = vmatpush2.msra.mxu0 %v5204_v17  ;;  %1317 = vmatpush2.msra.mxu1 %v5206_v53  ;;  %8053 = vst [vmem:[#allocation53_spill] sm:$0xff] %v5230_v56  ;;  %8054 = vst [vmem:[#allocation54_spill] sm:$0xff] %v5234_v26  ;;  %v5236_v17 = vld [vmem:[#allocation5 + $0x218] sm:$0xff]  ;;  %v5240_v53 = vld [vmem:[#allocation5 + $0x200] sm:$0xff] }
 0x252   :  { %1247 = vmatprep.subr.mxu0 %v5210_v54  ;;  %1318 = vmatprep.subr.mxu1 %v5212_v16  ;;  %8055 = vst [vmem:[#allocation55_spill] sm:$0xff] %v5236_v17  ;;  %8056 = vst [vmem:[#allocation56_spill] sm:$0xff] %v5240_v53  ;;  %v5242_v54 = vld [vmem:[#allocation5 + $0x210] sm:$0xff] }
 0x253   :  { %1248 = vmatpush2.msra.mxu0 %v5216_v14  ;;  %1319 = vmatpush2.msra.mxu1 %v5218_v51  ;;  %8057 = vst [vmem:[#allocation57_spill] sm:$0xff] %v5242_v54 }
 0x254   :  { %1249 = vmatprep.subr.mxu0 %v5222_v52  ;;  %1320 = vmatprep.subr.mxu1 %v5224_v13  ;;  %v5252_v13 = vld [vmem:[#allocation3 + $0x1e8] sm:$0xff]  ;;  %v5255_v52 = vld [vmem:[#allocation3 + $0x1f8] sm:$0xff] }
 0x255   :  { %1250 = vmatpush2.msra.mxu0 %v5228_v10  ;;  %1321 = vmatpush2.msra.mxu1 %v5230_v56  ;;  %8058 = vst [vmem:[#allocation58_spill] sm:$0xff] %v5252_v13  ;;  %8059 = vst [vmem:[#allocation59_spill] sm:$0xff] %v5255_v52  ;;  %v5258_v56 = vld [vmem:[#allocation3 + $0x1e0] sm:$0xff] }
 0x256   :  { %1251 = vmatprep.subr.mxu0 %v5234_v26  ;;  %1322 = vmatprep.subr.mxu1 %v5236_v17  ;;  %8060 = vst [vmem:[#allocation60_spill] sm:$0xff] %v5258_v56  ;;  %v5261_v17 = vld [vmem:[#allocation3 + $0x1f0] sm:$0xff] }
 0x257   :  { %1252 = vmatpush2.msra.mxu0 %v5240_v53  ;;  %1323 = vmatpush2.msra.mxu1 %v5242_v54  ;;  %8061 = vst [vmem:[#allocation61_spill] sm:$0xff] %v5261_v17  ;;  %v5264_v54 = vld [vmem:[#allocation3 + $0x1c8] sm:$0xff] }
 0x258   :  { %1254 = vmatmul.mubr.f32.vlgmr.msra.gmra.mxu0 %v4989_v22  ;;  %1325 = vmatmul.mubr.f32.vlgmr.msra.gmra.mxu1 %v4989_v22  ;;  %8062 = vst [vmem:[#allocation62_spill] sm:$0xff] %v5264_v54  ;;  %v5267_v22 = vld [vmem:[#allocation3 + $0x1d8] sm:$0xff] }
 0x259   :  { %1359 = vmatprep.subr.mxu0 %v5252_v13  ;;  %1430 = vmatprep.subr.mxu1 %v5255_v52  ;;  %8063 = vst [vmem:[#allocation63_spill] sm:$0xff] %v5267_v22  ;;  %v5270_v13 = vld [vmem:[#allocation3 + $0x1c0] sm:$0xff]  ;;  %v5273_v52 = vld [vmem:[#allocation3 + $0x1d0] sm:$0xff] }
 0x25a   :  { %1360 = vmatpush1.msra.mxu0 %v5258_v56  ;;  %1431 = vmatpush1.msra.mxu1 %v5261_v17  ;;  %8064 = vst [vmem:[#allocation64_spill] sm:$0xff] %v5270_v13  ;;  %8065 = vst [vmem:[#allocation65_spill] sm:$0xff] %v5273_v52  ;;  %v5276_v56 = vld [vmem:[#allocation3 + $0x1a8] sm:$0xff]  ;;  %v5279_v17 = vld [vmem:[#allocation3 + $0x1b8] sm:$0xff] }
 0x25b   :  { %1361 = vmatprep.subr.mxu0 %v5264_v54  ;;  %1432 = vmatprep.subr.mxu1 %v5267_v22  ;;  %8066 = vst [vmem:[#allocation66_spill] sm:$0xff] %v5276_v56  ;;  %8067 = vst [vmem:[#allocation67_spill] sm:$0xff] %v5279_v17  ;;  %v5282_v54 = vld [vmem:[#allocation3 + $0x1a0] sm:$0xff]  ;;  %v5285_v22 = vld [vmem:[#allocation3 + $0x1b0] sm:$0xff] }
 0x25c   :  { %1362 = vmatpush1.msra.mxu0 %v5270_v13  ;;  %1433 = vmatpush1.msra.mxu1 %v5273_v52  ;;  %8068 = vst [vmem:[#allocation68_spill] sm:$0xff] %v5282_v54  ;;  %8069 = vst [vmem:[#allocation69_spill] sm:$0xff] %v5285_v22  ;;  %v5288_v13 = vld [vmem:[#allocation3 + $0x188] sm:$0xff]  ;;  %v5291_v52 = vld [vmem:[#allocation3 + $0x198] sm:$0xff] }
 0x25d   :  { %1363 = vmatprep.subr.mxu0 %v5276_v56  ;;  %1434 = vmatprep.subr.mxu1 %v5279_v17  ;;  %8070 = vst [vmem:[#allocation70_spill] sm:$0xff] %v5288_v13  ;;  %8071 = vst [vmem:[#allocation71_spill] sm:$0xff] %v5291_v52  ;;  %v5294_v56 = vld [vmem:[#allocation3 + $0x180] sm:$0xff]  ;;  %v5297_v17 = vld [vmem:[#allocation3 + $0x190] sm:$0xff] }
 0x25e   :  { %1364 = vmatpush1.msra.mxu0 %v5282_v54  ;;  %1435 = vmatpush1.msra.mxu1 %v5285_v22  ;;  %8072 = vst [vmem:[#allocation72_spill] sm:$0xff] %v5294_v56  ;;  %8073 = vst [vmem:[#allocation73_spill] sm:$0xff] %v5297_v17  ;;  %v5300_v54 = vld [vmem:[#allocation3 + $0x168] sm:$0xff]  ;;  %v5303_v22 = vld [vmem:[#allocation3 + $0x178] sm:$0xff] }
 0x25f   :  { %1365 = vmatprep.subr.mxu0 %v5288_v13  ;;  %1436 = vmatprep.subr.mxu1 %v5291_v52  ;;  %8074 = vst [vmem:[#allocation74_spill] sm:$0xff] %v5300_v54  ;;  %8075 = vst [vmem:[#allocation75_spill] sm:$0xff] %v5303_v22  ;;  %v5306_v13 = vld [vmem:[#allocation3 + $0x160] sm:$0xff]  ;;  %v5309_v52 = vld [vmem:[#allocation3 + $0x170] sm:$0xff] }
 0x260   :  { %1366 = vmatpush1.msra.mxu0 %v5294_v56  ;;  %1437 = vmatpush1.msra.mxu1 %v5297_v17  ;;  %8076 = vst [vmem:[#allocation76_spill] sm:$0xff] %v5306_v13  ;;  %8077 = vst [vmem:[#allocation77_spill] sm:$0xff] %v5309_v52  ;;  %v5312_v56 = vld [vmem:[#allocation3 + $0x148] sm:$0xff]  ;;  %v5315_v17 = vld [vmem:[#allocation3 + $0x158] sm:$0xff] }
 0x261   :  { %1367 = vmatprep.subr.mxu0 %v5300_v54  ;;  %1438 = vmatprep.subr.mxu1 %v5303_v22  ;;  %8078 = vst [vmem:[#allocation78_spill] sm:$0xff] %v5312_v56  ;;  %8079 = vst [vmem:[#allocation79_spill] sm:$0xff] %v5315_v17  ;;  %v5318_v54 = vld [vmem:[#allocation3 + $0x140] sm:$0xff]  ;;  %v5321_v22 = vld [vmem:[#allocation3 + $0x150] sm:$0xff] }
 0x262   :  { %1368 = vmatpush1.msra.mxu0 %v5306_v13  ;;  %1439 = vmatpush1.msra.mxu1 %v5309_v52  ;;  %8080 = vst [vmem:[#allocation80_spill] sm:$0xff] %v5318_v54  ;;  %8081 = vst [vmem:[#allocation81_spill] sm:$0xff] %v5321_v22  ;;  %v5324_v13 = vld [vmem:[#allocation3 + $0x128] sm:$0xff]  ;;  %v5327_v52 = vld [vmem:[#allocation3 + $0x138] sm:$0xff] }
 0x263   :  { %1369 = vmatprep.subr.mxu0 %v5312_v56  ;;  %1440 = vmatprep.subr.mxu1 %v5315_v17  ;;  %8082 = vst [vmem:[#allocation82_spill] sm:$0xff] %v5324_v13  ;;  %8083 = vst [vmem:[#allocation83_spill] sm:$0xff] %v5327_v52  ;;  %v5330_v56 = vld [vmem:[#allocation3 + $0x120] sm:$0xff]  ;;  %v5333_v17 = vld [vmem:[#allocation3 + $0x130] sm:$0xff] }
 0x264   :  { %1370 = vmatpush1.msra.mxu0 %v5318_v54  ;;  %1441 = vmatpush1.msra.mxu1 %v5321_v22  ;;  %8084 = vst [vmem:[#allocation84_spill] sm:$0xff] %v5330_v56  ;;  %8085 = vst [vmem:[#allocation85_spill] sm:$0xff] %v5333_v17  ;;  %v5336_v54 = vld [vmem:[#allocation3 + $0x108] sm:$0xff]  ;;  %v5339_v22 = vld [vmem:[#allocation3 + $0x118] sm:$0xff] }
 0x265   :  { %1371 = vmatprep.subr.mxu0 %v5324_v13  ;;  %1442 = vmatprep.subr.mxu1 %v5327_v52  ;;  %8086 = vst [vmem:[#allocation92_spill] sm:$0xff] %v5336_v54  ;;  %8087 = vst [vmem:[#allocation93_spill] sm:$0xff] %v5339_v22  ;;  %v5342_v13 = vld [vmem:[#allocation3 + $0x100] sm:$0xff]  ;;  %v5345_v52 = vld [vmem:[#allocation3 + $0x110] sm:$0xff] }
 0x266   :  { %1372 = vmatpush1.msra.mxu0 %v5330_v56  ;;  %1443 = vmatpush1.msra.mxu1 %v5333_v17  ;;  %8088 = vst [vmem:[#allocation94_spill] sm:$0xff] %v5342_v13  ;;  %8089 = vst [vmem:[#allocation95_spill] sm:$0xff] %v5345_v52  ;;  %v5348_v56 = vld [vmem:[#allocation3 + $0xe8] sm:$0xff]  ;;  %v5351_v17 = vld [vmem:[#allocation3 + $0xf8] sm:$0xff] }
 0x267   :  { %1373 = vmatprep.subr.mxu0 %v5336_v54  ;;  %1444 = vmatprep.subr.mxu1 %v5339_v22  ;;  %8090 = vst [vmem:[#allocation96_spill] sm:$0xff] %v5348_v56  ;;  %8091 = vst [vmem:[#allocation97_spill] sm:$0xff] %v5351_v17  ;;  %v5354_v54 = vld [vmem:[#allocation3 + $0xe0] sm:$0xff]  ;;  %v5357_v22 = vld [vmem:[#allocation3 + $0xf0] sm:$0xff] }
 0x268   :  { %1374 = vmatpush1.msra.mxu0 %v5342_v13  ;;  %1445 = vmatpush1.msra.mxu1 %v5345_v52  ;;  %8092 = vst [vmem:[#allocation98_spill] sm:$0xff] %v5354_v54  ;;  %8093 = vst [vmem:[#allocation99_spill] sm:$0xff] %v5357_v22  ;;  %v5360_v13 = vld [vmem:[#allocation3 + $0xc8] sm:$0xff]  ;;  %v5363_v52 = vld [vmem:[#allocation3 + $0xd8] sm:$0xff] }
 0x269   :  { %1375 = vmatprep.subr.mxu0 %v5348_v56  ;;  %1446 = vmatprep.subr.mxu1 %v5351_v17  ;;  %8094 = vst [vmem:[#allocation100_spill] sm:$0xff] %v5360_v13  ;;  %8095 = vst [vmem:[#allocation101_spill] sm:$0xff] %v5363_v52  ;;  %v5366_v56 = vld [vmem:[#allocation3 + $0xc0] sm:$0xff]  ;;  %v5369_v17 = vld [vmem:[#allocation3 + $0xd0] sm:$0xff] }
 0x26a   :  { %1376 = vmatpush1.msra.mxu0 %v5354_v54  ;;  %1447 = vmatpush1.msra.mxu1 %v5357_v22  ;;  %8096 = vst [vmem:[#allocation102_spill] sm:$0xff] %v5366_v56  ;;  %8097 = vst [vmem:[#allocation103_spill] sm:$0xff] %v5369_v17  ;;  %v5372_v54 = vld [vmem:[#allocation3 + $0xa8] sm:$0xff]  ;;  %v5375_v22 = vld [vmem:[#allocation3 + $0xb8] sm:$0xff] }
 0x26b   :  { %1377 = vmatprep.subr.mxu0 %v5360_v13  ;;  %1448 = vmatprep.subr.mxu1 %v5363_v52  ;;  %8098 = vst [vmem:[#allocation104_spill] sm:$0xff] %v5372_v54  ;;  %8099 = vst [vmem:[#allocation105_spill] sm:$0xff] %v5375_v22  ;;  %v5378_v13 = vld [vmem:[#allocation3 + $0xa0] sm:$0xff]  ;;  %v5381_v52 = vld [vmem:[#allocation3 + $0xb0] sm:$0xff] }
 0x26c   :  { %1378 = vmatpush1.msra.mxu0 %v5366_v56  ;;  %1449 = vmatpush1.msra.mxu1 %v5369_v17  ;;  %8100 = vst [vmem:[#allocation106_spill] sm:$0xff] %v5378_v13  ;;  %8101 = vst [vmem:[#allocation107_spill] sm:$0xff] %v5381_v52  ;;  %v5384_v56 = vld [vmem:[#allocation3 + $0x88] sm:$0xff]  ;;  %v5387_v17 = vld [vmem:[#allocation3 + $0x98] sm:$0xff] }
 0x26d   :  { %1379 = vmatprep.subr.mxu0 %v5372_v54  ;;  %1450 = vmatprep.subr.mxu1 %v5375_v22  ;;  %8102 = vst [vmem:[#allocation108_spill] sm:$0xff] %v5384_v56  ;;  %8103 = vst [vmem:[#allocation109_spill] sm:$0xff] %v5387_v17  ;;  %v5390_v54 = vld [vmem:[#allocation3 + $0x80] sm:$0xff]  ;;  %v5393_v22 = vld [vmem:[#allocation3 + $0x90] sm:$0xff] }
 0x26e   :  { %1380 = vmatpush1.msra.mxu0 %v5378_v13  ;;  %1451 = vmatpush1.msra.mxu1 %v5381_v52  ;;  %8104 = vst [vmem:[#allocation110_spill] sm:$0xff] %v5390_v54  ;;  %8105 = vst [vmem:[#allocation111_spill] sm:$0xff] %v5393_v22  ;;  %v5396_v13 = vld [vmem:[#allocation3 + $0x68] sm:$0xff]  ;;  %v5399_v52 = vld [vmem:[#allocation3 + $0x78] sm:$0xff] }
 0x26f   :  { %1381 = vmatprep.subr.mxu0 %v5384_v56  ;;  %1452 = vmatprep.subr.mxu1 %v5387_v17  ;;  %8106 = vst [vmem:[#allocation112_spill] sm:$0xff] %v5396_v13  ;;  %8107 = vst [vmem:[#allocation113_spill] sm:$0xff] %v5399_v52  ;;  %v5402_v56 = vld [vmem:[#allocation3 + $0x60] sm:$0xff]  ;;  %v5405_v17 = vld [vmem:[#allocation3 + $0x70] sm:$0xff] }
 0x270   :  { %1382 = vmatpush1.msra.mxu0 %v5390_v54  ;;  %1453 = vmatpush1.msra.mxu1 %v5393_v22  ;;  %8108 = vst [vmem:[#allocation114_spill] sm:$0xff] %v5402_v56  ;;  %8109 = vst [vmem:[#allocation115_spill] sm:$0xff] %v5405_v17  ;;  %v5408_v54 = vld [vmem:[#allocation3 + $0x48] sm:$0xff]  ;;  %v5411_v22 = vld [vmem:[#allocation3 + $0x58] sm:$0xff] }
 0x271   :  { %1383 = vmatprep.subr.mxu0 %v5396_v13  ;;  %1454 = vmatprep.subr.mxu1 %v5399_v52  ;;  %8110 = vst [vmem:[#allocation116_spill] sm:$0xff] %v5408_v54  ;;  %8111 = vst [vmem:[#allocation117_spill] sm:$0xff] %v5411_v22  ;;  %v5414_v13 = vld [vmem:[#allocation3 + $0x40] sm:$0xff]  ;;  %v5417_v52 = vld [vmem:[#allocation3 + $0x50] sm:$0xff] }
 0x272   :  { %1384 = vmatpush1.msra.mxu0 %v5402_v56  ;;  %1455 = vmatpush1.msra.mxu1 %v5405_v17  ;;  %8112 = vst [vmem:[#allocation118_spill] sm:$0xff] %v5414_v13  ;;  %8113 = vst [vmem:[#allocation119_spill] sm:$0xff] %v5417_v52  ;;  %v5420_v56 = vld [vmem:[#allocation3 + $0x28] sm:$0xff]  ;;  %v5423_v17 = vld [vmem:[#allocation3 + $0x38] sm:$0xff] }
 0x273   :  { %1385 = vmatprep.subr.mxu0 %v5408_v54  ;;  %1456 = vmatprep.subr.mxu1 %v5411_v22  ;;  %8114 = vst [vmem:[#allocation120_spill] sm:$0xff] %v5420_v56  ;;  %8115 = vst [vmem:[#allocation121_spill] sm:$0xff] %v5423_v17  ;;  %v5426_v54 = vld [vmem:[#allocation3 + $0x20] sm:$0xff]  ;;  %v5429_v22 = vld [vmem:[#allocation3 + $0x30] sm:$0xff] }
 0x274   :  { %1386 = vmatpush1.msra.mxu0 %v5414_v13  ;;  %1457 = vmatpush1.msra.mxu1 %v5417_v52  ;;  %8116 = vst [vmem:[#allocation122_spill] sm:$0xff] %v5426_v54  ;;  %8117 = vst [vmem:[#allocation123_spill] sm:$0xff] %v5429_v22  ;;  %v5432_v13 = vld [vmem:[#allocation3 + $0x8] sm:$0xff]  ;;  %v5435_v52 = vld [vmem:[#allocation3 + $0x18] sm:$0xff] }
 0x275   :  { %1387 = vmatprep.subr.mxu0 %v5420_v56  ;;  %1458 = vmatprep.subr.mxu1 %v5423_v17  ;;  %8118 = vst [vmem:[#allocation124_spill] sm:$0xff] %v5432_v13  ;;  %8119 = vst [vmem:[#allocation125_spill] sm:$0xff] %v5435_v52  ;;  %v5438_v56 = vld [vmem:[#allocation3] sm:$0xff]  ;;  %v5442_v17 = vld [vmem:[#allocation3 + $0x10] sm:$0xff] }
 0x276   :  { %1388 = vmatpush1.msra.mxu0 %v5426_v54  ;;  %1459 = vmatpush1.msra.mxu1 %v5429_v22  ;;  %8120 = vst [vmem:[#allocation126_spill] sm:$0xff] %v5438_v56  ;;  %8121 = vst [vmem:[#allocation127_spill] sm:$0xff] %v5442_v17  ;;  %v5446_v22 = vld [vmem:[#allocation5 + $0x1e8] sm:$0xff] }
 0x277   :  { %1389 = vmatprep.subr.mxu0 %v5432_v13  ;;  %1460 = vmatprep.subr.mxu1 %v5435_v52  ;;  %8122 = vst [vmem:[#allocation128_spill] sm:$0xff] %v5446_v22  ;;  %v5449_v13 = vld [vmem:[#allocation5 + $0x1f8] sm:$0xff]  ;;  %v208_v52 = vadd.f32 %v4840_v6, %v7969_v18 }
 0x278   :  { %1390 = vmatpush1.msra.mxu0 %v5438_v56  ;;  %1423 = vmatprep.mubr.f32.mxu0 %v7872_v3  ;;  %8123 = vst [vmem:[#allocation129_spill] sm:$0xff] %v5449_v13 }
 0x279   :  { %1461 = vmatpush1.msra.mxu1 %v5442_v17  ;;  %1494 = vmatprep.mubr.f32.mxu1 %v7872_v3 }
 0x27a   :  { %1529 = vmatprep.subr.mxu0 %v5446_v22  ;;  %1600 = vmatprep.subr.mxu1 %v5449_v13  ;;  %v323_v22 = vadd.f32 %v4930_v50, %v7971_v33  ;;  %v321_v13 = vadd.f32 %v4928_v49, %v4625_v61  ;;  %v5470_v49 = vld [vmem:[#allocation5 + $0x1f0] sm:$0xff] }
 0x2d7   :  { %v957_v56 = vpop.f32.mrf.mxu0  ;;  %v1028_v17 = vpop.f32.mrf.mxu1 }
 0x2d8   :  { %v1033_v54 = vadd.f32 %v957_v56, %v208_v52  ;;  %v1035_v16 = vadd.f32 %v1028_v17, %v321_v13  ;;  %v5467_v17 = vld [vmem:[#allocation5 + $0x1e0] sm:$0xff] }
 0x2d9   :  { %v959_v53 = vpop.f32.mrf.mxu0  ;;  %v1030_v51 = vpop.f32.mrf.mxu1 }
 0x2da   :  { %v3344_v26 = vmul.f32 -1.442695, %v1033_v54  ;;  %v1034_v10 = vadd.f32 %v959_v53, %v4854_v9  ;;  %v1036_v14 = vadd.f32 %v1030_v51, %v323_v22 }
 0x2dc   :  { %3485 = vpow2.f32 %v3344_v26  ;;  %v3345_v3 = vmul.f32 -1.442695, %v1034_v10  ;;  %v3346_v6 = vmul.f32 -1.442695, %v1036_v14 }
 0x2de   :  { %3487 = vpow2.f32 %v3345_v3 }
 0x2df   :  { %3489 = vtanh.f32 %v1035_v16 }
 0x2e0   :  { %3491 = vpow2.f32 %v3346_v6  ;;  %v5479_v6 = vld [vmem:[#allocation5 + $0x1c0] sm:$0xff] }
 0x2e9   :  { %v3486_v18 = vpop.eup %3485 }
 0x2ea   :  { %v1040_v52 = vadd.f32 1.0, %v3486_v18  ;;  %v5473_v18 = vld [vmem:[#allocation5 + $0x1c8] sm:$0xff] }
 0x2eb   :  { %v3488_v54 = vpop.eup %3487 }
 0x2ec   :  { %3493 = vrcp.f32 %v1040_v52  ;;  %v1046_v9 = vadd.f32 1.0, %v3488_v54  ;;  %v3490_v10 = vpop.eup %3489  ;;  %v5482_v52 = vld [vmem:[#allocation5 + $0x1d0] sm:$0xff]  ;;  %v5485_v54 = vld [vmem:[#allocation5 + $0x1a8] sm:$0xff] }
 0x2ed   :  { %v3492_v3 = vpop.eup %3491 }
 0x2ee   :  { %3495 = vrcp.f32 %v1046_v9  ;;  %v1053_v50 = vadd.f32 1.0, %v3492_v3  ;;  %v5488_v9 = vld [vmem:[#allocation5 + $0x1b8] sm:$0xff]  ;;  %v5494_v3 = vld [vmem:[#allocation5 + $0x1b0] sm:$0xff] }
 0x2ef   :  { %8124 = vst [vmem:[#allocation130_spill] sm:$0xff] %v5494_v3 }
 0x2f0   :  { %3497 = vrcp.f32 %v1053_v50  ;;  %v5506_v50 = vld [vmem:[#allocation5 + $0x190] sm:$0xff] }
 0x2f1   :  { %8128 = vst [vmem:[#allocation134_spill] sm:$0xff] %v5506_v50 }
 0x2f9   :  { %v3494_v26 = vpop.eup %3493 }
 0x2fa   :  { %v1057_v53 = vmul.f32 %v3494_v26, %v3490_v10  ;;  %v5491_v10 = vld [vmem:[#allocation5 + $0x1a0] sm:$0xff]  ;;  %v5497_v26 = vld [vmem:[#allocation5 + $0x188] sm:$0xff] }
 0x2fb   :  { %v3496_v56 = vpop.eup %3495  ;;  %8125 = vst [vmem:[#allocation131_spill] sm:$0xff] %v5497_v26 }
 0x2fc   :  { %v1056_v51 = vmul.f32 %v3496_v56, %v4979_v38  ;;  %v5476_v38 = vld [vmem:[#allocation5 + $0x1d8] sm:$0xff]  ;;  %v5503_v56 = vld [vmem:[#allocation5 + $0x180] sm:$0xff] }
 0x2fd   :  { %v3498_v13 = vpop.eup %3497  ;;  %8127 = vst [vmem:[#allocation133_spill] sm:$0xff] %v5503_v56 }
 0x2fe   :  { %v5460_v22 = vadd.f32 %v1057_v53, %v1056_v51  ;;  %v5500_v53 = vld [vmem:[#allocation5 + $0x198] sm:$0xff]  ;;  %v8129_v51 = vsub.s32 1, %v4600_v48 }
 0x2ff   :  { %8126 = vst [vmem:[#allocation132_spill] sm:$0xff] %v5500_v53 }
 0x300   :  { %3499 = vtanh.f32 %v5460_v22 }
 0x30d   :  { %v3500_v14 = vpop.eup %3499 }
 0x30e   :  { %v5463_v16 = vmul.f32 %v3500_v14, %v3498_v13  ;;  %v5512_v13 = vrot.slane %v4965_v44, %v8129_v51  ;;  %v5527_v44 = vld [vmem:[#allocation5 + $0x148] sm:$0xff]  ;;  %v5530_v51 = vld [vmem:[#allocation5 + $0x158] sm:$0xff] }
 0x30f   :  { %8134 = vst [vmem:[#allocation139_spill] sm:$0xff] %v5527_v44  ;;  %8135 = vst [vmem:[#allocation140_spill] sm:$0xff] %v5530_v51 }
 0x310   :  { %1424 = vmatmul.mubr.f32.vlgmr.msra.gmra.mxu0 %v5463_v16  ;;  %1495 = vmatmul.mubr.f32.vlgmr.msra.gmra.mxu1 %v5463_v16  ;;  %8130 = vst [vmem:[#allocation135_spill] sm:$0xff] %v5512_v13 }
 0x311   :  { %1530 = vmatpush1.msra.mxu0 %v5467_v17  ;;  %1601 = vmatpush1.msra.mxu1 %v5470_v49 }
 0x312   :  { %1531 = vmatprep.subr.mxu0 %v5473_v18  ;;  %1602 = vmatprep.subr.mxu1 %v5476_v38 }
 0x313   :  { %1532 = vmatpush1.msra.mxu0 %v5479_v6  ;;  %1603 = vmatpush1.msra.mxu1 %v5482_v52 }
 0x314   :  { %1533 = vmatprep.subr.mxu0 %v5485_v54  ;;  %1604 = vmatprep.subr.mxu1 %v5488_v9 }
 0x315   :  { %1534 = vmatpush1.msra.mxu0 %v5491_v10  ;;  %1605 = vmatpush1.msra.mxu1 %v5494_v3  ;;  %v5514_v3 = vld [vmem:[#allocation5 + $0x168] sm:$0xff] }
 0x316   :  { %1535 = vmatprep.subr.mxu0 %v5497_v26  ;;  %1606 = vmatprep.subr.mxu1 %v5500_v53  ;;  %v5517_v26 = vld [vmem:[#allocation5 + $0x178] sm:$0xff]  ;;  %v5521_v53 = vld [vmem:[#allocation5 + $0x160] sm:$0xff] }
 0x317   :  { %1536 = vmatpush1.msra.mxu0 %v5503_v56  ;;  %1607 = vmatpush1.msra.mxu1 %v5506_v50  ;;  %8131 = vst [vmem:[#allocation136_spill] sm:$0xff] %v5517_v26  ;;  %8132 = vst [vmem:[#allocation137_spill] sm:$0xff] %v5521_v53  ;;  %v5524_v50 = vld [vmem:[#allocation5 + $0x170] sm:$0xff] }
 0x318   :  { %v1255_v14 = vpop.f32.mrf.mxu0  ;;  %1537 = vmatprep.subr.mxu0 %v5514_v3  ;;  %1608 = vmatprep.subr.mxu1 %v5517_v26  ;;  %8133 = vst [vmem:[#allocation138_spill] sm:$0xff] %v5524_v50 }
 0x319   :  { %v1256_v56 = vadd.f32 %v1255_v14, %v4970_v47  ;;  %1538 = vmatpush1.msra.mxu0 %v5521_v53  ;;  %1609 = vmatpush1.msra.mxu1 %v5524_v50  ;;  %v5534_v47 = vld [vmem:[#allocation5 + $0x140] sm:$0xff]  ;;  %v5537_v53 = vld [vmem:[#allocation5 + $0x150] sm:$0xff]  ;;  %v5540_v50 = vld [vmem:[#allocation5 + $0x128] sm:$0xff] }
 0x31a   :  { %v1257_v48 = vpop.f32.mrf.mxu0  ;;  %1539 = vmatprep.subr.mxu0 %v5527_v44  ;;  %1610 = vmatprep.subr.mxu1 %v5530_v51  ;;  %8136 = vst [vmem:[#allocation141_spill] sm:$0xff] %v5537_v53  ;;  %8137 = vst [vmem:[#allocation142_spill] sm:$0xff] %v5540_v50  ;;  %v5543_v44 = vld [vmem:[#allocation5 + $0x138] sm:$0xff] }
 0x31b   :  { %v3347_v26 = vmul.f32 -1.442695, %v1256_v56  ;;  %v1258_v14 = vadd.f32 %v1257_v48, %v5512_v13  ;;  %1540 = vmatpush1.msra.mxu0 %v5534_v47  ;;  %1611 = vmatpush1.msra.mxu1 %v5537_v53  ;;  %8138 = vst [vmem:[#allocation143_spill] sm:$0xff] %v5543_v44  ;;  %v1326_v56 = vpop.f32.mrf.mxu1  ;;  %v5546_v48 = vld [vmem:[#allocation5 + $0x120] sm:$0xff]  ;;  %v5549_v13 = vld [vmem:[#allocation5 + $0x130] sm:$0xff]  ;;  %v5552_v53 = vld [vmem:[#allocation5 + $0x108] sm:$0xff] }
 0x31c   :  { %1541 = vmatprep.subr.mxu0 %v5540_v50  ;;  %1612 = vmatprep.subr.mxu1 %v5543_v44  ;;  %8139 = vst [vmem:[#allocation144_spill] sm:$0xff] %v5546_v48  ;;  %8140 = vst [vmem:[#allocation145_spill] sm:$0xff] %v5549_v13  ;;  %v5555_v50 = vld [vmem:[#allocation5 + $0x118] sm:$0xff]  ;;  %v5570_v44 = vld [vmem:[#allocation5 + $0xe0] sm:$0xff] }
 0x31d   :  { %3501 = vpow2.f32 %v3347_v26  ;;  %v3348_v51 = vmul.f32 -1.442695, %v1258_v14  ;;  %1542 = vmatpush1.msra.mxu0 %v5546_v48  ;;  %1613 = vmatpush1.msra.mxu1 %v5549_v13  ;;  %8141 = vst [vmem:[#allocation146_spill] sm:$0xff] %v5552_v53  ;;  %8142 = vst [vmem:[#allocation147_spill] sm:$0xff] %v5555_v50  ;;  %v5558_v26 = vld [vmem:[#allocation5 + $0x100] sm:$0xff]  ;;  %v5561_v14 = vld [vmem:[#allocation5 + $0x110] sm:$0xff] }
 0x31e   :  { %1543 = vmatprep.subr.mxu0 %v5552_v53  ;;  %1614 = vmatprep.subr.mxu1 %v5555_v50  ;;  %8143 = vst [vmem:[#allocation148_spill] sm:$0xff] %v5558_v26  ;;  %8144 = vst [vmem:[#allocation149_spill] sm:$0xff] %v5561_v14  ;;  %v5564_v48 = vld [vmem:[#allocation5 + $0xe8] sm:$0xff]  ;;  %v5567_v13 = vld [vmem:[#allocation5 + $0xf8] sm:$0xff]  ;;  %v1328_v53 = vpop.f32.mrf.mxu1 }
 0x31f   :  { %3503 = vpow2.f32 %v3348_v51  ;;  %1544 = vmatpush1.msra.mxu0 %v5558_v26  ;;  %1615 = vmatpush1.msra.mxu1 %v5561_v14  ;;  %8145 = vst [vmem:[#allocation150_spill] sm:$0xff] %v5564_v48  ;;  %8146 = vst [vmem:[#allocation151_spill] sm:$0xff] %v5567_v13  ;;  %v5573_v51 = vld [vmem:[#allocation5 + $0xf0] sm:$0xff]  ;;  %v5576_v26 = vld [vmem:[#allocation5 + $0xc8] sm:$0xff] }
 0x320   :  { %1545 = vmatprep.subr.mxu0 %v5564_v48  ;;  %1616 = vmatprep.subr.mxu1 %v5567_v13  ;;  %8147 = vst [vmem:[#allocation152_spill] sm:$0xff] %v5570_v44  ;;  %8148 = vst [vmem:[#allocation153_spill] sm:$0xff] %v5573_v51  ;;  %v5579_v14 = vld [vmem:[#allocation5 + $0xd8] sm:$0xff]  ;;  %v5582_v48 = vld [vmem:[#allocation5 + $0xc0] sm:$0xff] }
 0x321   :  { %1546 = vmatpush1.msra.mxu0 %v5570_v44  ;;  %1617 = vmatpush1.msra.mxu1 %v5573_v51  ;;  %8149 = vst [vmem:[#allocation154_spill] sm:$0xff] %v5576_v26  ;;  %8150 = vst [vmem:[#allocation155_spill] sm:$0xff] %v5579_v14  ;;  %v5585_v13 = vld [vmem:[#allocation5 + $0xd0] sm:$0xff]  ;;  %v1329_v44 = vadd.f32 %v1328_v53, %v4977_v21  ;;  %v5589_v50 = vld [vmem:[#allocation5 + $0xa8] sm:$0xff] }
 0x322   :  { %1547 = vmatprep.subr.mxu0 %v5576_v26  ;;  %1618 = vmatprep.subr.mxu1 %v5579_v14  ;;  %8151 = vst [vmem:[#allocation156_spill] sm:$0xff] %v5582_v48  ;;  %8152 = vst [vmem:[#allocation157_spill] sm:$0xff] %v5585_v13  ;;  %v5592_v51 = vld [vmem:[#allocation5 + $0xb8] sm:$0xff]  ;;  %v5595_v26 = vld [vmem:[#allocation5 + $0xa0] sm:$0xff] }
 0x323   :  { %1548 = vmatpush1.msra.mxu0 %v5582_v48  ;;  %1619 = vmatpush1.msra.mxu1 %v5585_v13  ;;  %8153 = vst [vmem:[#allocation158_spill] sm:$0xff] %v5589_v50  ;;  %8154 = vst [vmem:[#allocation159_spill] sm:$0xff] %v5592_v51  ;;  %v5598_v14 = vld [vmem:[#allocation5 + $0xb0] sm:$0xff]  ;;  %v5601_v48 = vld [vmem:[#allocation5 + $0x88] sm:$0xff] }
 0x324   :  { %1549 = vmatprep.subr.mxu0 %v5589_v50  ;;  %1620 = vmatprep.subr.mxu1 %v5592_v51  ;;  %8155 = vst [vmem:[#allocation160_spill] sm:$0xff] %v5595_v26  ;;  %8156 = vst [vmem:[#allocation161_spill] sm:$0xff] %v5598_v14  ;;  %v5604_v53 = vld [vmem:[#allocation5 + $0x98] sm:$0xff]  ;;  %v5607_v21 = vld [vmem:[#allocation5 + $0x80] sm:$0xff] }
 0x325   :  { %1550 = vmatpush1.msra.mxu0 %v5595_v26  ;;  %1621 = vmatpush1.msra.mxu1 %v5598_v14  ;;  %8157 = vst [vmem:[#allocation162_spill] sm:$0xff] %v5601_v48  ;;  %8158 = vst [vmem:[#allocation163_spill] sm:$0xff] %v5604_v53  ;;  %v5610_v51 = vld [vmem:[#allocation5 + $0x90] sm:$0xff]  ;;  %v3349_v26 = vmul.f32 -1.442695, %v1329_v44  ;;  %v5613_v50 = vld [vmem:[#allocation5 + $0x68] sm:$0xff] }
 0x326   :  { %1551 = vmatprep.subr.mxu0 %v5601_v48  ;;  %1622 = vmatprep.subr.mxu1 %v5604_v53  ;;  %8159 = vst [vmem:[#allocation164_spill] sm:$0xff] %v5607_v21  ;;  %8160 = vst [vmem:[#allocation165_spill] sm:$0xff] %v5610_v51  ;;  %v5616_v14 = vld [vmem:[#allocation5 + $0x78] sm:$0xff]  ;;  %v5619_v48 = vld [vmem:[#allocation5 + $0x60] sm:$0xff] }
 0x327   :  { %1552 = vmatpush1.msra.mxu0 %v5607_v21  ;;  %1623 = vmatpush1.msra.mxu1 %v5610_v51  ;;  %8161 = vst [vmem:[#allocation166_spill] sm:$0xff] %v5613_v50  ;;  %8162 = vst [vmem:[#allocation167_spill] sm:$0xff] %v5616_v14  ;;  %v5622_v53 = vld [vmem:[#allocation5 + $0x70] sm:$0xff]  ;;  %v1327_v51 = vadd.f32 %v1326_v56, %v4986_v41  ;;  %v5626_v44 = vld [vmem:[#allocation5 + $0x48] sm:$0xff]  ;;  %3505 = vpow2.f32 %v3349_v26 }
 0x328   :  { %1553 = vmatprep.subr.mxu0 %v5613_v50  ;;  %1624 = vmatprep.subr.mxu1 %v5616_v14  ;;  %8163 = vst [vmem:[#allocation168_spill] sm:$0xff] %v5619_v48  ;;  %8164 = vst [vmem:[#allocation169_spill] sm:$0xff] %v5622_v53  ;;  %v5629_v50 = vld [vmem:[#allocation5 + $0x58] sm:$0xff]  ;;  %v5632_v13 = vld [vmem:[#allocation5 + $0x40] sm:$0xff] }
 0x329   :  { %1554 = vmatpush1.msra.mxu0 %v5619_v48  ;;  %1625 = vmatpush1.msra.mxu1 %v5622_v53  ;;  %8165 = vst [vmem:[#allocation170_spill] sm:$0xff] %v5629_v50  ;;  %8166 = vst [vmem:[#allocation171_spill] sm:$0xff] %v5632_v13  ;;  %v5635_v48 = vld [vmem:[#allocation5 + $0x50] sm:$0xff]  ;;  %v5638_v56 = vld [vmem:[#allocation5 + $0x28] sm:$0xff] }
 0x32a   :  { %v3502_v21 = vpop.eup %3501  ;;  %1555 = vmatprep.subr.mxu0 %v5626_v44  ;;  %1626 = vmatprep.subr.mxu1 %v5629_v50  ;;  %8167 = vst [vmem:[#allocation172_spill] sm:$0xff] %v5638_v56  ;;  %v5641_v41 = vld [vmem:[#allocation5 + $0x38] sm:$0xff]  ;;  %v5644_v50 = vld [vmem:[#allocation5 + $0x20] sm:$0xff]  ;;  %v5650_v26 = vld [vmem:[#allocation5 + $0x8] sm:$0xff] }
 0x32b   :  { %v1334_v14 = vadd.f32 1.0, %v3502_v21  ;;  %1556 = vmatpush1.msra.mxu0 %v5632_v13  ;;  %1627 = vmatpush1.msra.mxu1 %v5635_v48  ;;  %v5647_v13 = vld [vmem:[#allocation5 + $0x30] sm:$0xff] }
 0x32c   :  { %v3504_v53 = vpop.eup %3503  ;;  %1557 = vmatprep.subr.mxu0 %v5638_v56  ;;  %1628 = vmatprep.subr.mxu1 %v5641_v41  ;;  %v5653_v56 = vld [vmem:[#allocation5 + $0x18] sm:$0xff] }
 0x32d   :  { %3507 = vrcp.f32 %v1334_v14  ;;  %v1340_v21 = vadd.f32 1.0, %v3504_v53  ;;  %1558 = vmatpush1.msra.mxu0 %v5644_v50  ;;  %1629 = vmatpush1.msra.mxu1 %v5647_v13  ;;  %v5656_v14 = vld [vmem:[#allocation5] sm:$0xff]  ;;  %v5659_v53 = vld [vmem:[#allocation5 + $0x10] sm:$0xff] }
 0x32e   :  { %3509 = vtanh.f32 %v1327_v51  ;;  %1559 = vmatprep.subr.mxu0 %v5650_v26  ;;  %1630 = vmatprep.subr.mxu1 %v5653_v56  ;;  %v8195_v51 = vld [vmem:[#allocation58_spill] sm:$0xff] }
 0x32f   :  { %3511 = vrcp.f32 %v1340_v21  ;;  %1560 = vmatpush1.msra.mxu0 %v5656_v14  ;;  %1631 = vmatpush1.msra.mxu1 %v5659_v53  ;;  %v8196_v21 = vld [vmem:[#allocation59_spill] sm:$0xff] }
 0x330   :  { %1561 = vmatprep.subr.mxu0 %v5054_v28  ;;  %1632 = vmatprep.subr.mxu1 %v5056_v60 }
 0x331   :  { %1562 = vmatpush2.msra.mxu0 %v5060_v12  ;;  %1633 = vmatpush2.msra.mxu1 %v5062_v31 }
 0x332   :  { %1563 = vmatprep.subr.mxu0 %v5066_v63  ;;  %1634 = vmatprep.subr.mxu1 %v5068_v32 }
 0x333   :  { %1564 = vmatpush2.msra.mxu0 %v5072_v2  ;;  %1635 = vmatpush2.msra.mxu1 %v5074_v4 }
 0x334   :  { %1565 = vmatprep.subr.mxu0 %v5078_v35  ;;  %1636 = vmatprep.subr.mxu1 %v5080_v36  ;;  %v3506_v28 = vpop.eup %3505  ;;  %v8180_v35 = vld [vmem:[#allocation43_spill] sm:$0xff]  ;;  %v8181_v36 = vld [vmem:[#allocation44_spill] sm:$0xff] }
 0x335   :  { %1566 = vmatpush2.msra.mxu0 %v5084_v62  ;;  %1637 = vmatpush2.msra.mxu1 %v5086_v37  ;;  %v1347_v63 = vadd.f32 1.0, %v3506_v28  ;;  %v8182_v62 = vld [vmem:[#allocation45_spill] sm:$0xff]  ;;  %v8183_v37 = vld [vmem:[#allocation46_spill] sm:$0xff]  ;;  %v8197_v28 = vld [vmem:[#allocation60_spill] sm:$0xff] }
 0x336   :  { %1567 = vmatprep.subr.mxu0 %v5090_v57  ;;  %1638 = vmatprep.subr.mxu1 %v5092_v40  ;;  %v8184_v57 = vld [vmem:[#allocation47_spill] sm:$0xff]  ;;  %v8185_v40 = vld [vmem:[#allocation48_spill] sm:$0xff] }
 0x337   :  { %1568 = vmatpush2.msra.mxu0 %v5096_v0  ;;  %1639 = vmatpush2.msra.mxu1 %v5098_v58  ;;  %3513 = vrcp.f32 %v1347_v63  ;;  %v8186_v0 = vld [vmem:[#allocation49_spill] sm:$0xff]  ;;  %v8187_v58 = vld [vmem:[#allocation50_spill] sm:$0xff]  ;;  %v8201_v63 = vld [vmem:[#allocation64_spill] sm:$0xff] }
 0x338   :  { %1569 = vmatprep.subr.mxu0 %v5102_v45  ;;  %1640 = vmatprep.subr.mxu1 %v5104_v46  ;;  %v8188_v45 = vld [vmem:[#allocation51_spill] sm:$0xff] }
 0x339   :  { %1570 = vmatpush2.msra.mxu0 %v5108_v42  ;;  %1641 = vmatpush2.msra.mxu1 %v5110_v19  ;;  %v8189_v42 = vld [vmem:[#allocation52_spill] sm:$0xff]  ;;  %v8190_v19 = vld [vmem:[#allocation53_spill] sm:$0xff] }
 0x33a   :  { %v3508_v60 = vpop.eup %3507  ;;  %1571 = vmatprep.subr.mxu0 %v5114_v20  ;;  %1642 = vmatprep.subr.mxu1 %v5116_v25  ;;  %v8191_v25 = vld [vmem:[#allocation54_spill] sm:$0xff] }
 0x33b   :  { %v3510_v12 = vpop.eup %3509  ;;  %1572 = vmatpush2.msra.mxu0 %v5120_v27  ;;  %1643 = vmatpush2.msra.mxu1 %v5122_v24  ;;  %v8192_v27 = vld [vmem:[#allocation55_spill] sm:$0xff]  ;;  %v8193_v24 = vld [vmem:[#allocation56_spill] sm:$0xff] }
 0x33c   :  { %v3512_v31 = vpop.eup %3511  ;;  %1573 = vmatprep.subr.mxu0 %v5126_v39  ;;  %1644 = vmatprep.subr.mxu1 %v5128_v5  ;;  %v1351_v32 = vmul.f32 %v3510_v12, %v3508_v60  ;;  %v8194_v5 = vld [vmem:[#allocation57_spill] sm:$0xff]  ;;  %v8199_v12 = vld [vmem:[#allocation62_spill] sm:$0xff] }
 0x33d   :  { %v1350_v2 = vmul.f32 %v3512_v31, %v5013_v29  ;;  %1574 = vmatpush2.msra.mxu0 %v5132_v59  ;;  %1645 = vmatpush2.msra.mxu1 %v5134_v23  ;;  %v8168_v59 = vld [vmem:[#allocation28_spill] sm:$0xff]  ;;  %v8179_v29 = vld [vmem:[#allocation42_spill] sm:$0xff]  ;;  %v8198_v60 = vld [vmem:[#allocation61_spill] sm:$0xff] }
 0x33e   :  { %1575 = vmatprep.subr.mxu0 %v5138_v11  ;;  %1646 = vmatprep.subr.mxu1 %v5140_v15  ;;  %v8171_v11 = vld [vmem:[#allocation34_spill] sm:$0xff]  ;;  %v8172_v15 = vld [vmem:[#allocation35_spill] sm:$0xff]  ;;  %v8177_v23 = vld [vmem:[#allocation40_spill] sm:$0xff] }
 0x33f   :  { %1576 = vmatpush2.msra.mxu0 %v5144_v7  ;;  %1647 = vmatpush2.msra.mxu1 %v5146_v8  ;;  %v5695_v4 = vadd.f32 %v1351_v32, %v1350_v2  ;;  %v8169_v7 = vld [vmem:[#allocation29_spill] sm:$0xff]  ;;  %v8200_v31 = vld [vmem:[#allocation63_spill] sm:$0xff]  ;;  %v8203_v2 = vld [vmem:[#allocation66_spill] sm:$0xff] }
 0x340   :  { %1577 = vmatprep.subr.mxu0 %v5150_v1  ;;  %1648 = vmatprep.subr.mxu1 %v5152_v30  ;;  %v8170_v8 = vld [vmem:[#allocation33_spill] sm:$0xff]  ;;  %v8173_v1 = vld [vmem:[#allocation36_spill] sm:$0xff] }
 0x341   :  { %1578 = vmatpush2.msra.mxu0 %v5156_v43  ;;  %1649 = vmatpush2.msra.mxu1 %v5158_v34  ;;  %3515 = vtanh.f32 %v5695_v4  ;;  %v8174_v30 = vld [vmem:[#allocation37_spill] sm:$0xff]  ;;  %v8175_v43 = vld [vmem:[#allocation38_spill] sm:$0xff]  ;;  %v8176_v34 = vld [vmem:[#allocation39_spill] sm:$0xff] }
 0x342   :  { %1579 = vmatprep.subr.mxu0 %v5162_v55  ;;  %1650 = vmatprep.subr.mxu1 %v8168_v59  ;;  %v8178_v55 = vld [vmem:[#allocation41_spill] sm:$0xff]  ;;  %v8204_v59 = vld [vmem:[#allocation67_spill] sm:$0xff] }
 0x343   :  { %1580 = vmatpush2.msra.mxu0 %v8169_v7  ;;  %1651 = vmatpush2.msra.mxu1 %v8170_v8  ;;  %v8202_v32 = vld [vmem:[#allocation65_spill] sm:$0xff]  ;;  %v8205_v7 = vld [vmem:[#allocation68_spill] sm:$0xff] }
 0x344   :  { %1581 = vmatprep.subr.mxu0 %v8171_v11  ;;  %1652 = vmatprep.subr.mxu1 %v8172_v15  ;;  %v3514_v46 = vpop.eup %3513  ;;  %v8206_v8 = vld [vmem:[#allocation69_spill] sm:$0xff]  ;;  %v8208_v11 = vld [vmem:[#allocation71_spill] sm:$0xff]  ;;  %v8209_v15 = vld [vmem:[#allocation72_spill] sm:$0xff] }
 0x345   :  { %1582 = vmatpush2.msra.mxu0 %v8173_v1  ;;  %1653 = vmatpush2.msra.mxu1 %v8174_v30  ;;  %v8210_v1 = vld [vmem:[#allocation73_spill] sm:$0xff]  ;;  %v8211_v30 = vld [vmem:[#allocation74_spill] sm:$0xff] }
 0x346   :  { %1583 = vmatprep.subr.mxu0 %v8175_v43  ;;  %1654 = vmatprep.subr.mxu1 %v8176_v34  ;;  %v8212_v43 = vld [vmem:[#allocation75_spill] sm:$0xff]  ;;  %v8213_v34 = vld [vmem:[#allocation76_spill] sm:$0xff] }
 0x347   :  { %1584 = vmatpush2.msra.mxu0 %v8177_v23  ;;  %1655 = vmatpush2.msra.mxu1 %v8178_v55  ;;  %v8214_v23 = vld [vmem:[#allocation77_spill] sm:$0xff]  ;;  %v8215_v55 = vld [vmem:[#allocation78_spill] sm:$0xff] }
 0x348   :  { %1585 = vmatprep.subr.mxu0 %v8179_v29  ;;  %1656 = vmatprep.subr.mxu1 %v8180_v35  ;;  %v8216_v29 = vld [vmem:[#allocation79_spill] sm:$0xff]  ;;  %v8217_v35 = vld [vmem:[#allocation80_spill] sm:$0xff] }
 0x349   :  { %1586 = vmatpush2.msra.mxu0 %v8181_v36  ;;  %1657 = vmatpush2.msra.mxu1 %v8182_v62  ;;  %v8218_v36 = vld [vmem:[#allocation81_spill] sm:$0xff]  ;;  %v8219_v62 = vld [vmem:[#allocation82_spill] sm:$0xff] }
 0x34a   :  { %1587 = vmatprep.subr.mxu0 %v8183_v37  ;;  %1658 = vmatprep.subr.mxu1 %v8184_v57  ;;  %v8220_v37 = vld [vmem:[#allocation83_spill] sm:$0xff]  ;;  %v8221_v57 = vld [vmem:[#allocation84_spill] sm:$0xff] }
 0x34b   :  { %1588 = vmatpush2.msra.mxu0 %v8185_v40  ;;  %1659 = vmatpush2.msra.mxu1 %v8186_v0  ;;  %v8222_v40 = vld [vmem:[#allocation85_spill] sm:$0xff]  ;;  %v8223_v0 = vld [vmem:[#allocation92_spill] sm:$0xff] }
 0x34c   :  { %1589 = vmatprep.subr.mxu0 %v8187_v58  ;;  %1660 = vmatprep.subr.mxu1 %v8188_v45  ;;  %v8224_v58 = vld [vmem:[#allocation93_spill] sm:$0xff]  ;;  %v8225_v45 = vld [vmem:[#allocation94_spill] sm:$0xff] }
 0x34d   :  { %1590 = vmatpush2.msra.mxu0 %v8189_v42  ;;  %1661 = vmatpush2.msra.mxu1 %v8190_v19  ;;  %v8227_v42 = vld [vmem:[#allocation96_spill] sm:$0xff]  ;;  %v8228_v19 = vld [vmem:[#allocation97_spill] sm:$0xff] }
 0x34e   :  { %v3516_v20 = vpop.eup %3515  ;;  %1591 = vmatprep.subr.mxu0 %v8191_v25  ;;  %1662 = vmatprep.subr.mxu1 %v8192_v27  ;;  %v8230_v25 = vld [vmem:[#allocation99_spill] sm:$0xff]  ;;  %v8231_v27 = vld [vmem:[#allocation100_spill] sm:$0xff] }
 0x34f   :  { %1592 = vmatpush2.msra.mxu0 %v8193_v24  ;;  %v1354_v39 = vmul.f32 %v3516_v20, %v3514_v46  ;;  %1663 = vmatpush2.msra.mxu1 %v8194_v5  ;;  %v8226_v46 = vld [vmem:[#allocation95_spill] sm:$0xff]  ;;  %v8229_v20 = vld [vmem:[#allocation98_spill] sm:$0xff]  ;;  %v8232_v24 = vld [vmem:[#allocation101_spill] sm:$0xff] }
 0x350   :  { %1699 = vmatprep.subr.mxu0 %v8195_v51  ;;  %1770 = vmatprep.subr.mxu1 %v8196_v21  ;;  %v8234_v5 = vld [vmem:[#allocation103_spill] sm:$0xff]  ;;  %v8235_v51 = vld [vmem:[#allocation104_spill] sm:$0xff]  ;;  %v8236_v21 = vld [vmem:[#allocation105_spill] sm:$0xff] }
 0x351   :  { %1593 = vmatprep.mubr.f32.mxu0 %v1354_v39  ;;  %1664 = vmatprep.mubr.f32.mxu1 %v1354_v39  ;;  %v8233_v39 = vld [vmem:[#allocation102_spill] sm:$0xff] }
 0x352   :  { %1594 = vmatmul.mubr.f32.vlgmr.msra.gmra.mxu0 %v5463_v16  ;;  %1665 = vmatmul.mubr.f32.vlgmr.msra.gmra.mxu1 %v5463_v16  ;;  %v8207_v16 = vld [vmem:[#allocation70_spill] sm:$0xff] }
 0x353   :  { %1700 = vmatpush1.msra.mxu0 %v8197_v28  ;;  %1771 = vmatpush1.msra.mxu1 %v8198_v60  ;;  %v8237_v28 = vld [vmem:[#allocation106_spill] sm:$0xff]  ;;  %v8238_v60 = vld [vmem:[#allocation107_spill] sm:$0xff] }
 0x354   :  { %1701 = vmatprep.subr.mxu0 %v8199_v12  ;;  %1772 = vmatprep.subr.mxu1 %v8200_v31  ;;  %v8239_v12 = vld [vmem:[#allocation108_spill] sm:$0xff]  ;;  %v8240_v31 = vld [vmem:[#allocation109_spill] sm:$0xff] }
 0x355   :  { %1702 = vmatpush1.msra.mxu0 %v8201_v63  ;;  %1773 = vmatpush1.msra.mxu1 %v8202_v32  ;;  %v8241_v63 = vld [vmem:[#allocation110_spill] sm:$0xff]  ;;  %v8242_v32 = vld [vmem:[#allocation111_spill] sm:$0xff] }
 0x356   :  { %1703 = vmatprep.subr.mxu0 %v8203_v2  ;;  %1774 = vmatprep.subr.mxu1 %v8204_v59  ;;  %v8243_v2 = vld [vmem:[#allocation112_spill] sm:$0xff]  ;;  %v8244_v59 = vld [vmem:[#allocation113_spill] sm:$0xff] }
 0x357   :  { %1704 = vmatpush1.msra.mxu0 %v8205_v7  ;;  %1775 = vmatpush1.msra.mxu1 %v8206_v8  ;;  %v8245_v7 = vld [vmem:[#allocation114_spill] sm:$0xff]  ;;  %v8246_v8 = vld [vmem:[#allocation115_spill] sm:$0xff] }
 0x358   :  { %1705 = vmatprep.subr.mxu0 %v8207_v16  ;;  %1776 = vmatprep.subr.mxu1 %v8208_v11  ;;  %v8247_v16 = vld [vmem:[#allocation116_spill] sm:$0xff]  ;;  %v8248_v11 = vld [vmem:[#allocation117_spill] sm:$0xff] }
 0x359   :  { %1706 = vmatpush1.msra.mxu0 %v8209_v15  ;;  %1777 = vmatpush1.msra.mxu1 %v8210_v1  ;;  %v8249_v15 = vld [vmem:[#allocation118_spill] sm:$0xff]  ;;  %v8250_v1 = vld [vmem:[#allocation119_spill] sm:$0xff] }
 0x35a   :  { %1707 = vmatprep.subr.mxu0 %v8211_v30  ;;  %1778 = vmatprep.subr.mxu1 %v8212_v43  ;;  %v8251_v30 = vld [vmem:[#allocation120_spill] sm:$0xff]  ;;  %v8252_v43 = vld [vmem:[#allocation121_spill] sm:$0xff] }
 0x35b   :  { %1708 = vmatpush1.msra.mxu0 %v8213_v34  ;;  %1779 = vmatpush1.msra.mxu1 %v8214_v23  ;;  %v8253_v34 = vld [vmem:[#allocation122_spill] sm:$0xff]  ;;  %v8254_v23 = vld [vmem:[#allocation123_spill] sm:$0xff] }
 0x35c   :  { %1709 = vmatprep.subr.mxu0 %v8215_v55  ;;  %1780 = vmatprep.subr.mxu1 %v8216_v29  ;;  %v8255_v55 = vld [vmem:[#allocation124_spill] sm:$0xff]  ;;  %v8256_v29 = vld [vmem:[#allocation125_spill] sm:$0xff] }
 0x35d   :  { %1710 = vmatpush1.msra.mxu0 %v8217_v35  ;;  %1781 = vmatpush1.msra.mxu1 %v8218_v36  ;;  %v8257_v35 = vld [vmem:[#allocation126_spill] sm:$0xff]  ;;  %v8258_v36 = vmov 0.0  }
 0x35e   :  { %1711 = vmatprep.subr.mxu0 %v8219_v62  ;;  %1782 = vmatprep.subr.mxu1 %v8220_v37  ;;  %v8259_v62 = vld [vmem:[#allocation127_spill] sm:$0xff]  ;;  %v8260_v37 = vld [vmem:[#allocation128_spill] sm:$0xff] }
 0x35f   :  { %1712 = vmatpush1.msra.mxu0 %v8221_v57  ;;  %1783 = vmatpush1.msra.mxu1 %v8222_v40  ;;  %v8261_v57 = vld [vmem:[#allocation129_spill] sm:$0xff]  ;;  %v8262_v40 = vld [vmem:[#allocation30_spill] sm:$0xff] }
 0x360   :  { %1713 = vmatprep.subr.mxu0 %v8223_v0  ;;  %1784 = vmatprep.subr.mxu1 %v8224_v58  ;;  %v8263_v0 = vld [vmem:[#allocation87_spill] sm:$0xff] }
 0x361   :  { %1714 = vmatpush1.msra.mxu0 %v8225_v45  ;;  %1785 = vmatpush1.msra.mxu1 %v8226_v46  ;;  %v214_v58 = vadd.f32 %v8263_v0, %v8262_v40 }
 0x362   :  { %1715 = vmatprep.subr.mxu0 %v8227_v42  ;;  %1786 = vmatprep.subr.mxu1 %v8228_v19 }
 0x363   :  { %1716 = vmatpush1.msra.mxu0 %v8229_v20  ;;  %1787 = vmatpush1.msra.mxu1 %v8230_v25  ;;  %v8264_v20 = vld [vmem:[#allocation88_spill] sm:$0xff] }
 0x364   :  { %1717 = vmatprep.subr.mxu0 %v8231_v27  ;;  %1788 = vmatprep.subr.mxu1 %v8232_v24 }
 0x365   :  { %1718 = vmatpush1.msra.mxu0 %v8233_v39  ;;  %1789 = vmatpush1.msra.mxu1 %v8234_v5  ;;  %v8265_v5 = vld [vmem:[#allocation14_spill] sm:$0xff] }
 0x366   :  { %1719 = vmatprep.subr.mxu0 %v8235_v51  ;;  %1790 = vmatprep.subr.mxu1 %v8236_v21  ;;  %v329_v51 = vadd.f32 %v8265_v5, %v7971_v33  ;;  %v8288_v5 = vld [vmem:[#allocation150_spill] sm:$0xff] }
 0x367   :  { %1720 = vmatpush1.msra.mxu0 %v8237_v28  ;;  %1791 = vmatpush1.msra.mxu1 %v8238_v60  ;;  %v8266_v28 = vld [vmem:[#allocation13_spill] sm:$0xff] }
 0x368   :  { %1721 = vmatprep.subr.mxu0 %v8239_v12  ;;  %1792 = vmatprep.subr.mxu1 %v8240_v31  ;;  %v327_v60 = vadd.f32 %v8266_v28, %v4625_v61  ;;  %v8291_v28 = vld [vmem:[#allocation153_spill] sm:$0xff] }
 0x369   :  { %1722 = vmatpush1.msra.mxu0 %v8241_v63  ;;  %1793 = vmatpush1.msra.mxu1 %v8242_v32 }
 0x36a   :  { %1723 = vmatprep.subr.mxu0 %v8243_v2  ;;  %1794 = vmatprep.subr.mxu1 %v8244_v59 }
 0x36b   :  { %1724 = vmatpush1.msra.mxu0 %v8245_v7  ;;  %1795 = vmatpush1.msra.mxu1 %v8246_v8 }
 0x36c   :  { %1725 = vmatprep.subr.mxu0 %v8247_v16  ;;  %1796 = vmatprep.subr.mxu1 %v8248_v11 }
 0x36d   :  { %1726 = vmatpush1.msra.mxu0 %v8249_v15  ;;  %1797 = vmatpush1.msra.mxu1 %v8250_v1 }
 0x36e   :  { %1727 = vmatprep.subr.mxu0 %v8251_v30  ;;  %1798 = vmatprep.subr.mxu1 %v8252_v43 }
 0x36f   :  { %1728 = vmatpush1.msra.mxu0 %v8253_v34  ;;  %1799 = vmatpush1.msra.mxu1 %v8254_v23 }
 0x370   :  { %1729 = vmatprep.subr.mxu0 %v8255_v55  ;;  %1800 = vmatprep.subr.mxu1 %v8256_v29  ;;  %v8268_v29 = vld [vmem:[#allocation131_spill] sm:$0xff] }
 0x371   :  { %1730 = vmatpush1.msra.mxu0 %v8257_v35  ;;  %1763 = vmatprep.mubr.f32.mxu0 %v8258_v36  ;;  %v8276_v35 = vld [vmem:[#allocation139_spill] sm:$0xff] }
 0x372   :  { %1801 = vmatpush1.msra.mxu1 %v8259_v62  ;;  %1834 = vmatprep.mubr.f32.mxu1 %v8258_v36  ;;  %v8277_v62 = vld [vmem:[#allocation140_spill] sm:$0xff] }
 0x373   :  { %1869 = vmatprep.subr.mxu0 %v8260_v37  ;;  %1940 = vmatprep.subr.mxu1 %v8261_v57  ;;  %v8278_v57 = vld [vmem:[#allocation141_spill] sm:$0xff] }
 0x3d0   :  { %v1425_v45 = vpop.f32.mrf.mxu0  ;;  %v1496_v27 = vpop.f32.mrf.mxu1 }
 0x3d1   :  { %v1501_v46 = vadd.f32 %v1425_v45, %v214_v58  ;;  %v1503_v12 = vadd.f32 %v1496_v27, %v327_v60  ;;  %v8280_v45 = vld [vmem:[#allocation142_spill] sm:$0xff] }
 0x3d2   :  { %v1427_v42 = vpop.f32.mrf.mxu0  ;;  %v1498_v39 = vpop.f32.mrf.mxu1  ;;  %v8284_v27 = vld [vmem:[#allocation146_spill] sm:$0xff] }
 0x3d3   :  { %v3350_v19 = vmul.f32 -1.442695, %v1501_v46  ;;  %v1502_v25 = vadd.f32 %v1427_v42, %v8264_v20  ;;  %v1504_v21 = vadd.f32 %v1498_v39, %v329_v51  ;;  %v8281_v46 = vld [vmem:[#allocation143_spill] sm:$0xff]  ;;  %v8282_v42 = vld [vmem:[#allocation144_spill] sm:$0xff]  ;;  %v8287_v39 = vld [vmem:[#allocation149_spill] sm:$0xff] }
 0x3d4   :  { %v8289_v51 = vld [vmem:[#allocation151_spill] sm:$0xff] }
 0x3d5   :  { %3517 = vpow2.f32 %v3350_v19  ;;  %v3351_v24 = vmul.f32 -1.442695, %v1502_v25  ;;  %v3352_v31 = vmul.f32 -1.442695, %v1504_v21  ;;  %v8283_v19 = vld [vmem:[#allocation145_spill] sm:$0xff]  ;;  %v8290_v21 = vld [vmem:[#allocation152_spill] sm:$0xff] }
 0x3d7   :  { %3519 = vpow2.f32 %v3351_v24  ;;  %v8285_v24 = vld [vmem:[#allocation147_spill] sm:$0xff] }
 0x3d8   :  { %3521 = vtanh.f32 %v1503_v12  ;;  %v8292_v12 = vld [vmem:[#allocation154_spill] sm:$0xff] }
 0x3d9   :  { %3523 = vpow2.f32 %v3352_v31  ;;  %v8293_v31 = vld [vmem:[#allocation155_spill] sm:$0xff] }
 0x3e2   :  { %v3518_v63 = vpop.eup %3517 }
 0x3e3   :  { %v1508_v32 = vadd.f32 1.0, %v3518_v63  ;;  %v8294_v63 = vld [vmem:[#allocation156_spill] sm:$0xff] }
 0x3e4   :  { %v3520_v2 = vpop.eup %3519 }
 0x3e5   :  { %3525 = vrcp.f32 %v1508_v32  ;;  %v1514_v59 = vadd.f32 1.0, %v3520_v2  ;;  %v3522_v7 = vpop.eup %3521  ;;  %v8295_v32 = vld [vmem:[#allocation157_spill] sm:$0xff]  ;;  %v8296_v2 = vld [vmem:[#allocation158_spill] sm:$0xff] }
 0x3e6   :  { %v3524_v8 = vpop.eup %3523 }
 0x3e7   :  { %3527 = vrcp.f32 %v1514_v59  ;;  %v1521_v1 = vadd.f32 1.0, %v3524_v8  ;;  %v8297_v59 = vld [vmem:[#allocation159_spill] sm:$0xff] }
 0x3e9   :  { %3529 = vrcp.f32 %v1521_v1  ;;  %v8302_v1 = vld [vmem:[#allocation163_spill] sm:$0xff] }
 0x3f2   :  { %v3526_v16 = vpop.eup %3525 }
 0x3f3   :  { %v1525_v11 = vmul.f32 %v3526_v16, %v3522_v7  ;;  %v8298_v7 = vld [vmem:[#allocation26_spill] sm:$0xff]  ;;  %v8299_v16 = vld [vmem:[#allocation160_spill] sm:$0xff] }
 0x3f4   :  { %v3528_v15 = vpop.eup %3527 }
 0x3f5   :  { %v1524_v30 = vmul.f32 %v3528_v15, %v5460_v22  ;;  %v8267_v22 = vld [vmem:[#allocation130_spill] sm:$0xff] }
 0x3f6   :  { %v3530_v34 = vpop.eup %3529  ;;  %v8301_v15 = vld [vmem:[#allocation162_spill] sm:$0xff] }
 0x3f7   :  { %v5808_v43 = vadd.f32 %v1525_v11, %v1524_v30  ;;  %v8300_v11 = vld [vmem:[#allocation161_spill] sm:$0xff]  ;;  %v8303_v30 = vld [vmem:[#allocation164_spill] sm:$0xff] }
 0x3f9   :  { %3531 = vtanh.f32 %v5808_v43 }
 0x406   :  { %v3532_v23 = vpop.eup %3531 }
 0x407   :  { %v5811_v55 = vmul.f32 %v3532_v23, %v3530_v34  ;;  %v8304_v34 = vld [vmem:[#allocation165_spill] sm:$0xff]  ;;  %v8305_v23 = vld [vmem:[#allocation166_spill] sm:$0xff] }
 0x409   :  { %1764 = vmatmul.mubr.f32.vlgmr.msra.gmra.mxu0 %v5811_v55  ;;  %1835 = vmatmul.mubr.f32.vlgmr.msra.gmra.mxu1 %v5811_v55 }
 0x40a   :  { %1870 = vmatpush1.msra.mxu0 %v5467_v17  ;;  %1941 = vmatpush1.msra.mxu1 %v5470_v49  ;;  %v8269_v17 = vld [vmem:[#allocation132_spill] sm:$0xff]  ;;  %v8270_v49 = vld [vmem:[#allocation133_spill] sm:$0xff] }
 0x40b   :  { %1871 = vmatprep.subr.mxu0 %v5473_v18  ;;  %1942 = vmatprep.subr.mxu1 %v5476_v38  ;;  %v8271_v18 = vld [vmem:[#allocation134_spill] sm:$0xff]  ;;  %v8272_v38 = vld [vmem:[#allocation136_spill] sm:$0xff] }
 0x40c   :  { %1872 = vmatpush1.msra.mxu0 %v5479_v6  ;;  %1943 = vmatpush1.msra.mxu1 %v5482_v52  ;;  %v8273_v52 = vld [vmem:[#allocation137_spill] sm:$0xff] }
 0x40d   :  { %1873 = vmatprep.subr.mxu0 %v5485_v54  ;;  %1944 = vmatprep.subr.mxu1 %v5488_v9  ;;  %v8274_v54 = vld [vmem:[#allocation138_spill] sm:$0xff]  ;;  %v8275_v9 = vld [vmem:[#allocation25_spill] sm:$0xff] }
 0x40e   :  { %1874 = vmatpush1.msra.mxu0 %v5491_v10  ;;  %1945 = vmatpush1.msra.mxu1 %v8267_v22  ;;  %v8306_v22 = vld [vmem:[#allocation167_spill] sm:$0xff] }
 0x40f   :  { %1875 = vmatprep.subr.mxu0 %v8268_v29  ;;  %1946 = vmatprep.subr.mxu1 %v8269_v17  ;;  %v8307_v17 = vld [vmem:[#allocation168_spill] sm:$0xff] }
 0x410   :  { %1876 = vmatpush1.msra.mxu0 %v8270_v49  ;;  %1947 = vmatpush1.msra.mxu1 %v8271_v18  ;;  %v8308_v49 = vld [vmem:[#allocation169_spill] sm:$0xff]  ;;  %v8309_v18 = vld [vmem:[#allocation170_spill] sm:$0xff] }
 0x411   :  { %1877 = vmatprep.subr.mxu0 %v5514_v3  ;;  %1948 = vmatprep.subr.mxu1 %v8272_v38  ;;  %v8279_v3 = vld [vmem:[#allocation135_spill] sm:$0xff] }
 0x412   :  { %v1595_v6 = vpop.f32.mrf.mxu0  ;;  %1878 = vmatpush1.msra.mxu0 %v8273_v52  ;;  %1949 = vmatpush1.msra.mxu1 %v8274_v54  ;;  %v1666_v20 = vpop.f32.mrf.mxu1  ;;  %v8311_v54 = vld [vmem:[#allocation171_spill] sm:$0xff] }
 0x413   :  { %v1596_v10 = vadd.f32 %v1595_v6, %v8275_v9  ;;  %1879 = vmatprep.subr.mxu0 %v8276_v35  ;;  %1950 = vmatprep.subr.mxu1 %v8277_v62  ;;  %v8310_v6 = vld [vmem:[#allocation27_spill] sm:$0xff]  ;;  %v8312_v35 = vld [vmem:[#allocation172_spill] sm:$0xff] }
 0x414   :  { %v1597_v37 = vpop.f32.mrf.mxu0  ;;  %1880 = vmatpush1.msra.mxu0 %v5534_v47  ;;  %1951 = vmatpush1.msra.mxu1 %v8278_v57  ;;  %v8286_v47 = vld [vmem:[#allocation148_spill] sm:$0xff]  ;;  %v1668_v60 = vpop.f32.mrf.mxu1  ;;  %v1667_v52 = vadd.f32 %v1666_v20, %v8310_v6  ;;  %v5908_v57 = vld [vmem:[#allocation5 + $0x3b8] sm:$0xff]  ;;  %v5929_v20 = vld [vmem:[#allocation5 + $0x368] sm:$0xff] }
 0x415   :  { %v3353_v0 = vmul.f32 -1.442695, %v1596_v10  ;;  %v1598_v58 = vadd.f32 %v1597_v37, %v8279_v3  ;;  %1881 = vmatprep.subr.mxu0 %v8280_v45  ;;  %1952 = vmatprep.subr.mxu1 %v8281_v46  ;;  %v1669_v8 = vadd.f32 %v1668_v60, %v8298_v7  ;;  %v5905_v37 = vld [vmem:[#allocation5 + $0x3a8] sm:$0xff]  ;;  %v5920_v46 = vld [vmem:[#allocation5 + $0x398] sm:$0xff] }
 0x416   :  { %1882 = vmatpush1.msra.mxu0 %v8282_v42  ;;  %1953 = vmatpush1.msra.mxu1 %v8283_v19  ;;  %v5917_v45 = vld [vmem:[#allocation5 + $0x388] sm:$0xff]  ;;  %v5923_v42 = vld [vmem:[#allocation5 + $0x380] sm:$0xff]  ;;  %v5926_v19 = vld [vmem:[#allocation5 + $0x390] sm:$0xff] }
 0x417   :  { %3533 = vpow2.f32 %v3353_v0  ;;  %v3354_v25 = vmul.f32 -1.442695, %v1598_v58  ;;  %1883 = vmatprep.subr.mxu0 %v8284_v27  ;;  %1954 = vmatprep.subr.mxu1 %v8285_v24  ;;  %v3355_v29 = vmul.f32 -1.442695, %v1669_v8  ;;  %v5911_v0 = vld [vmem:[#allocation5 + $0x3a0] sm:$0xff]  ;;  %v5914_v58 = vld [vmem:[#allocation5 + $0x3b0] sm:$0xff] }
 0x418   :  { %1884 = vmatpush1.msra.mxu0 %v8286_v47  ;;  %1955 = vmatpush1.msra.mxu1 %v8287_v39  ;;  %v5935_v27 = vld [vmem:[#allocation5 + $0x360] sm:$0xff]  ;;  %v5938_v24 = vld [vmem:[#allocation5 + $0x370] sm:$0xff]  ;;  %v5941_v39 = vld [vmem:[#allocation5 + $0x348] sm:$0xff] }
 0x419   :  { %3535 = vpow2.f32 %v3354_v25  ;;  %1885 = vmatprep.subr.mxu0 %v8288_v5  ;;  %1956 = vmatprep.subr.mxu1 %v8289_v51  ;;  %v5932_v25 = vld [vmem:[#allocation5 + $0x378] sm:$0xff] }
 0x41a   :  { %1886 = vmatpush1.msra.mxu0 %v8290_v21  ;;  %1957 = vmatpush1.msra.mxu1 %v8291_v28  ;;  %3537 = vpow2.f32 %v3355_v29  ;;  %v5944_v5 = vld [vmem:[#allocation5 + $0x358] sm:$0xff]  ;;  %v5947_v21 = vld [vmem:[#allocation5 + $0x340] sm:$0xff]  ;;  %v5950_v28 = vld [vmem:[#allocation5 + $0x350] sm:$0xff] }
 0x41b   :  { %1887 = vmatprep.subr.mxu0 %v8292_v12  ;;  %1958 = vmatprep.subr.mxu1 %v8293_v31  ;;  %v5953_v12 = vld [vmem:[#allocation5 + $0x328] sm:$0xff]  ;;  %v5956_v31 = vld [vmem:[#allocation5 + $0x338] sm:$0xff]  ;;  %v5989_v29 = vld [vmem:[#allocation5 + $0x2f0] sm:$0xff] }
 0x41c   :  { %1888 = vmatpush1.msra.mxu0 %v8294_v63  ;;  %1959 = vmatpush1.msra.mxu1 %v8295_v32 }
 0x41d   :  { %1889 = vmatprep.subr.mxu0 %v8296_v2  ;;  %1960 = vmatprep.subr.mxu1 %v8297_v59  ;;  %v5959_v2 = vld [vmem:[#allocation5 + $0x320] sm:$0xff]  ;;  %v5962_v59 = vld [vmem:[#allocation5 + $0x330] sm:$0xff] }
 0x41e   :  { %1890 = vmatpush1.msra.mxu0 %v8299_v16  ;;  %1961 = vmatpush1.msra.mxu1 %v8300_v11  ;;  %v5966_v11 = vld [vmem:[#allocation5 + $0x308] sm:$0xff] }
 0x41f   :  { %1891 = vmatprep.subr.mxu0 %v8301_v15  ;;  %1962 = vmatprep.subr.mxu1 %v8302_v1  ;;  %v5969_v15 = vld [vmem:[#allocation5 + $0x318] sm:$0xff]  ;;  %v5972_v1 = vld [vmem:[#allocation5 + $0x300] sm:$0xff] }
 0x420   :  { %1892 = vmatpush1.msra.mxu0 %v8303_v30  ;;  %1963 = vmatpush1.msra.mxu1 %v8304_v34  ;;  %v5975_v30 = vld [vmem:[#allocation5 + $0x310] sm:$0xff]  ;;  %v5978_v34 = vld [vmem:[#allocation5 + $0x2e8] sm:$0xff] }
 0x421   :  { %1893 = vmatprep.subr.mxu0 %v8305_v23  ;;  %1964 = vmatprep.subr.mxu1 %v8306_v22  ;;  %v5986_v22 = vld [vmem:[#allocation5 + $0x2e0] sm:$0xff] }
 0x422   :  { %1894 = vmatpush1.msra.mxu0 %v8307_v17  ;;  %1965 = vmatpush1.msra.mxu1 %v8308_v49  ;;  %v5992_v17 = vld [vmem:[#allocation5 + $0x2c8] sm:$0xff]  ;;  %v5995_v49 = vld [vmem:[#allocation5 + $0x2d8] sm:$0xff] }
 0x423   :  { %1895 = vmatprep.subr.mxu0 %v5626_v44  ;;  %1966 = vmatprep.subr.mxu1 %v8309_v18  ;;  %v5999_v18 = vld [vmem:[#allocation5 + $0x2c0] sm:$0xff] }
 0x424   :  { %v3534_v38 = vpop.eup %3533  ;;  %1896 = vmatpush1.msra.mxu0 %v8311_v54  ;;  %1967 = vmatpush1.msra.mxu1 %v5635_v48  ;;  %v5881_v48 = vld [vmem:[#allocation5 + $0x3e8] sm:$0xff]  ;;  %8313 = vst [vmem:[#allocation28_spill] sm:$0xff] %v5999_v18  ;;  %v6008_v54 = vld [vmem:[#allocation5 + $0x2b8] sm:$0xff] }
 0x425   :  { %v1674_v10 = vadd.f32 1.0, %v3534_v38  ;;  %1897 = vmatprep.subr.mxu0 %v8312_v35  ;;  %1968 = vmatprep.subr.mxu1 %v5641_v41  ;;  %v5884_v41 = vld [vmem:[#allocation5 + $0x3f8] sm:$0xff]  ;;  %v6002_v38 = vld [vmem:[#allocation5 + $0x2d0] sm:$0xff]  ;;  %8316 = vst [vmem:[#allocation34_spill] sm:$0xff] %v6008_v54 }
 0x426   :  { %v3536_v62 = vpop.eup %3535  ;;  %1898 = vmatpush1.msra.mxu0 %v5644_v50  ;;  %1969 = vmatpush1.msra.mxu1 %v5647_v13  ;;  %v5887_v50 = vld [vmem:[#allocation5 + $0x3e0] sm:$0xff]  ;;  %v5890_v13 = vld [vmem:[#allocation5 + $0x3f0] sm:$0xff]  ;;  %8314 = vst [vmem:[#allocation29_spill] sm:$0xff] %v6002_v38 }
 0x427   :  { %3539 = vrcp.f32 %v1674_v10  ;;  %v1680_v44 = vadd.f32 1.0, %v3536_v62  ;;  %1899 = vmatprep.subr.mxu0 %v5650_v26  ;;  %1970 = vmatprep.subr.mxu1 %v5653_v56  ;;  %v5893_v56 = vld [vmem:[#allocation5 + $0x3c8] sm:$0xff]  ;;  %v5896_v26 = vld [vmem:[#allocation5 + $0x3d8] sm:$0xff]  ;;  %v3538_v47 = vpop.eup %3537  ;;  %v6011_v10 = vld [vmem:[#allocation5 + $0x2a0] sm:$0xff] }
 0x428   :  { %3541 = vtanh.f32 %v1667_v52  ;;  %1900 = vmatpush1.msra.mxu0 %v5656_v14  ;;  %1971 = vmatpush1.msra.mxu1 %v5659_v53  ;;  %v5899_v14 = vld [vmem:[#allocation5 + $0x3c0] sm:$0xff]  ;;  %v5902_v53 = vld [vmem:[#allocation5 + $0x3d0] sm:$0xff]  ;;  %v1687_v32 = vadd.f32 1.0, %v3538_v47  ;;  %v6005_v52 = vld [vmem:[#allocation5 + $0x2a8] sm:$0xff]  ;;  %8317 = vst [vmem:[#allocation35_spill] sm:$0xff] %v6011_v10 }
 0x429   :  { %3543 = vrcp.f32 %v1680_v44  ;;  %1901 = vmatprep.subr.mxu0 %v5881_v48  ;;  %1972 = vmatprep.subr.mxu1 %v5884_v41  ;;  %8315 = vst [vmem:[#allocation33_spill] sm:$0xff] %v6005_v52  ;;  %v6014_v35 = vld [vmem:[#allocation5 + $0x2b0] sm:$0xff]  ;;  %v6017_v62 = vld [vmem:[#allocation5 + $0x288] sm:$0xff]  ;;  %v6020_v44 = vld [vmem:[#allocation5 + $0x298] sm:$0xff] }
 0x42a   :  { %1902 = vmatpush2.msra.mxu0 %v5887_v50  ;;  %1973 = vmatpush2.msra.mxu1 %v5890_v13  ;;  %3545 = vrcp.f32 %v1687_v32  ;;  %8318 = vst [vmem:[#allocation36_spill] sm:$0xff] %v6014_v35  ;;  %8319 = vst [vmem:[#allocation37_spill] sm:$0xff] %v6017_v62  ;;  %v6023_v47 = vld [vmem:[#allocation5 + $0x280] sm:$0xff] }
 0x42b   :  { %1903 = vmatprep.subr.mxu0 %v5893_v56  ;;  %1974 = vmatprep.subr.mxu1 %v5896_v26  ;;  %8320 = vst [vmem:[#allocation38_spill] sm:$0xff] %v6020_v44  ;;  %8321 = vst [vmem:[#allocation39_spill] sm:$0xff] %v6023_v47  ;;  %v6035_v32 = vld [vmem:[#allocation5 + $0x260] sm:$0xff] }
 0x42c   :  { %1904 = vmatpush2.msra.mxu0 %v5899_v14  ;;  %1975 = vmatpush2.msra.mxu1 %v5902_v53  ;;  %8325 = vst [vmem:[#allocation43_spill] sm:$0xff] %v6035_v32 }
 0x42d   :  { %1905 = vmatprep.subr.mxu0 %v5905_v37  ;;  %1976 = vmatprep.subr.mxu1 %v5908_v57 }
 0x42e   :  { %1906 = vmatpush2.msra.mxu0 %v5911_v0  ;;  %1977 = vmatpush2.msra.mxu1 %v5914_v58 }
 0x42f   :  { %1907 = vmatprep.subr.mxu0 %v5917_v45  ;;  %1978 = vmatprep.subr.mxu1 %v5920_v46 }
 0x430   :  { %1908 = vmatpush2.msra.mxu0 %v5923_v42  ;;  %1979 = vmatpush2.msra.mxu1 %v5926_v19 }
 0x431   :  { %1909 = vmatprep.subr.mxu0 %v5929_v20  ;;  %1980 = vmatprep.subr.mxu1 %v5932_v25 }
 0x432   :  { %1910 = vmatpush2.msra.mxu0 %v5935_v27  ;;  %1981 = vmatpush2.msra.mxu1 %v5938_v24 }
 0x433   :  { %1911 = vmatprep.subr.mxu0 %v5941_v39  ;;  %1982 = vmatprep.subr.mxu1 %v5944_v5 }
 0x434   :  { %v3540_v51 = vpop.eup %3539  ;;  %1912 = vmatpush2.msra.mxu0 %v5947_v21  ;;  %1983 = vmatpush2.msra.mxu1 %v5950_v28 }
 0x435   :  { %v3542_v60 = vpop.eup %3541  ;;  %1913 = vmatprep.subr.mxu0 %v5953_v12  ;;  %1984 = vmatprep.subr.mxu1 %v5956_v31 }
 0x436   :  { %v3544_v63 = vpop.eup %3543  ;;  %1914 = vmatpush2.msra.mxu0 %v5959_v2  ;;  %1985 = vmatpush2.msra.mxu1 %v5962_v59  ;;  %v1691_v8 = vmul.f32 %v3542_v60, %v3540_v51  ;;  %v6026_v51 = vld [vmem:[#allocation5 + $0x290] sm:$0xff]  ;;  %v6029_v60 = vld [vmem:[#allocation5 + $0x268] sm:$0xff] }
 0x437   :  { %v1690_v16 = vmul.f32 %v3544_v63, %v5695_v4  ;;  %1915 = vmatprep.subr.mxu0 %v5966_v11  ;;  %1986 = vmatprep.subr.mxu1 %v5969_v15  ;;  %v5981_v4 = vld [vmem:[#allocation5 + $0x2f8] sm:$0xff]  ;;  %8322 = vst [vmem:[#allocation40_spill] sm:$0xff] %v6026_v51  ;;  %8323 = vst [vmem:[#allocation41_spill] sm:$0xff] %v6029_v60 }
 0x438   :  { %1916 = vmatpush2.msra.mxu0 %v5972_v1  ;;  %1987 = vmatpush2.msra.mxu1 %v5975_v30  ;;  %v6032_v63 = vld [vmem:[#allocation5 + $0x278] sm:$0xff] }
 0x439   :  { %1917 = vmatprep.subr.mxu0 %v5978_v34  ;;  %1988 = vmatprep.subr.mxu1 %v5981_v4  ;;  %v5984_v23 = vadd.f32 %v1691_v8, %v1690_v16  ;;  %8324 = vst [vmem:[#allocation42_spill] sm:$0xff] %v6032_v63  ;;  %v6038_v8 = vld [vmem:[#allocation5 + $0x270] sm:$0xff]  ;;  %v6041_v16 = vld [vmem:[#allocation5 + $0x248] sm:$0xff] }
 0x43a   :  { %1918 = vmatpush2.msra.mxu0 %v5986_v22  ;;  %1989 = vmatpush2.msra.mxu1 %v5989_v29  ;;  %8326 = vst [vmem:[#allocation44_spill] sm:$0xff] %v6038_v8  ;;  %8327 = vst [vmem:[#allocation45_spill] sm:$0xff] %v6041_v16 }
 0x43b   :  { %1919 = vmatprep.subr.mxu0 %v5992_v17  ;;  %1990 = vmatprep.subr.mxu1 %v5995_v49  ;;  %3547 = vtanh.f32 %v5984_v23 }
 0x43c   :  { %1920 = vmatpush2.msra.mxu0 %v5999_v18  ;;  %1991 = vmatpush2.msra.mxu1 %v6002_v38 }
 0x43d   :  { %1921 = vmatprep.subr.mxu0 %v6005_v52  ;;  %1992 = vmatprep.subr.mxu1 %v6008_v54 }
 0x43e   :  { %1922 = vmatpush2.msra.mxu0 %v6011_v10  ;;  %1993 = vmatpush2.msra.mxu1 %v6014_v35 }
 0x43f   :  { %1923 = vmatprep.subr.mxu0 %v6017_v62  ;;  %1994 = vmatprep.subr.mxu1 %v6020_v44  ;;  %v6071_v44 = vld [vmem:[#allocation5 + $0x200] sm:$0xff]  ;;  %v6080_v62 = vld [vmem:[#allocation3 + $0x1f8] sm:$0xff] }
 0x440   :  { %1924 = vmatpush2.msra.mxu0 %v6023_v47  ;;  %1995 = vmatpush2.msra.mxu1 %v6026_v51  ;;  %v6044_v51 = vld [vmem:[#allocation5 + $0x258] sm:$0xff]  ;;  %v6065_v47 = vld [vmem:[#allocation5 + $0x208] sm:$0xff]  ;;  %8337 = vst [vmem:[#allocation55_spill] sm:$0xff] %v6071_v44  ;;  %8340 = vst [vmem:[#allocation58_spill] sm:$0xff] %v6080_v62 }
 0x441   :  { %1925 = vmatprep.subr.mxu0 %v6029_v60  ;;  %1996 = vmatprep.subr.mxu1 %v6032_v63  ;;  %8328 = vst [vmem:[#allocation46_spill] sm:$0xff] %v6044_v51  ;;  %v6047_v60 = vld [vmem:[#allocation5 + $0x240] sm:$0xff]  ;;  %v6050_v63 = vld [vmem:[#allocation5 + $0x250] sm:$0xff]  ;;  %8335 = vst [vmem:[#allocation53_spill] sm:$0xff] %v6065_v47 }
 0x442   :  { %1926 = vmatpush2.msra.mxu0 %v6035_v32  ;;  %1997 = vmatpush2.msra.mxu1 %v6038_v8  ;;  %8329 = vst [vmem:[#allocation47_spill] sm:$0xff] %v6047_v60  ;;  %8330 = vst [vmem:[#allocation48_spill] sm:$0xff] %v6050_v63  ;;  %v6053_v32 = vld [vmem:[#allocation5 + $0x228] sm:$0xff]  ;;  %v6056_v8 = vld [vmem:[#allocation5 + $0x238] sm:$0xff] }
 0x443   :  { %1927 = vmatprep.subr.mxu0 %v6041_v16  ;;  %1998 = vmatprep.subr.mxu1 %v6044_v51  ;;  %8331 = vst [vmem:[#allocation49_spill] sm:$0xff] %v6053_v32  ;;  %8332 = vst [vmem:[#allocation50_spill] sm:$0xff] %v6056_v8  ;;  %v6059_v16 = vld [vmem:[#allocation5 + $0x220] sm:$0xff]  ;;  %v6062_v51 = vld [vmem:[#allocation5 + $0x230] sm:$0xff] }
 0x444   :  { %1928 = vmatpush2.msra.mxu0 %v6047_v60  ;;  %1999 = vmatpush2.msra.mxu1 %v6050_v63  ;;  %8333 = vst [vmem:[#allocation51_spill] sm:$0xff] %v6059_v16  ;;  %8334 = vst [vmem:[#allocation52_spill] sm:$0xff] %v6062_v51  ;;  %v3546_v60 = vpop.eup %3545  ;;  %v6068_v63 = vld [vmem:[#allocation5 + $0x218] sm:$0xff] }
 0x445   :  { %1929 = vmatprep.subr.mxu0 %v6053_v32  ;;  %2000 = vmatprep.subr.mxu1 %v6056_v8  ;;  %8336 = vst [vmem:[#allocation54_spill] sm:$0xff] %v6068_v63  ;;  %v6074_v8 = vld [vmem:[#allocation5 + $0x210] sm:$0xff] }
 0x446   :  { %1930 = vmatpush2.msra.mxu0 %v6059_v16  ;;  %2001 = vmatpush2.msra.mxu1 %v6062_v51  ;;  %8338 = vst [vmem:[#allocation56_spill] sm:$0xff] %v6074_v8  ;;  %v6077_v51 = vld [vmem:[#allocation3 + $0x1e8] sm:$0xff] }
 0x447   :  { %1931 = vmatprep.subr.mxu0 %v6065_v47  ;;  %2002 = vmatprep.subr.mxu1 %v6068_v63  ;;  %8339 = vst [vmem:[#allocation57_spill] sm:$0xff] %v6077_v51  ;;  %v8406_v47 = vld [vmem:[#allocation90_spill] sm:$0xff] }
 0x448   :  { %v3548_v32 = vpop.eup %3547  ;;  %1932 = vmatpush2.msra.mxu0 %v6071_v44  ;;  %2003 = vmatpush2.msra.mxu1 %v6074_v8  ;;  %v6085_v44 = vld [vmem:[#allocation3 + $0x1e0] sm:$0xff]  ;;  %v6088_v8 = vld [vmem:[#allocation3 + $0x1f0] sm:$0xff] }
 0x449   :  { %v1694_v16 = vmul.f32 %v3548_v32, %v3546_v60  ;;  %2039 = vmatprep.subr.mxu0 %v6077_v51  ;;  %2110 = vmatprep.subr.mxu1 %v6080_v62  ;;  %8341 = vst [vmem:[#allocation59_spill] sm:$0xff] %v6085_v44  ;;  %8342 = vst [vmem:[#allocation60_spill] sm:$0xff] %v6088_v8  ;;  %v6091_v60 = vld [vmem:[#allocation3 + $0x1c8] sm:$0xff]  ;;  %v6094_v32 = vld [vmem:[#allocation3 + $0x1d8] sm:$0xff] }
 0x44a   :  { %8343 = vst [vmem:[#allocation61_spill] sm:$0xff] %v6091_v60  ;;  %8344 = vst [vmem:[#allocation62_spill] sm:$0xff] %v6094_v32 }
 0x44b   :  { %1933 = vmatprep.mubr.f32.mxu0 %v1694_v16  ;;  %2004 = vmatprep.mubr.f32.mxu1 %v1694_v16  ;;  %v6097_v16 = vld [vmem:[#allocation3 + $0x1c0] sm:$0xff] }
 0x44c   :  { %1934 = vmatmul.mubr.f32.vlgmr.msra.gmra.mxu0 %v5811_v55  ;;  %2005 = vmatmul.mubr.f32.vlgmr.msra.gmra.mxu1 %v5811_v55  ;;  %8345 = vst [vmem:[#allocation63_spill] sm:$0xff] %v6097_v16  ;;  %v6100_v55 = vld [vmem:[#allocation3 + $0x1d0] sm:$0xff] }
 0x44d   :  { %2040 = vmatpush1.msra.mxu0 %v6085_v44  ;;  %2111 = vmatpush1.msra.mxu1 %v6088_v8  ;;  %8346 = vst [vmem:[#allocation64_spill] sm:$0xff] %v6100_v55  ;;  %v6103_v44 = vld [vmem:[#allocation3 + $0x1a8] sm:$0xff]  ;;  %v6106_v8 = vld [vmem:[#allocation3 + $0x1b8] sm:$0xff] }
 0x44e   :  { %2041 = vmatprep.subr.mxu0 %v6091_v60  ;;  %2112 = vmatprep.subr.mxu1 %v6094_v32  ;;  %8347 = vst [vmem:[#allocation65_spill] sm:$0xff] %v6103_v44  ;;  %8348 = vst [vmem:[#allocation66_spill] sm:$0xff] %v6106_v8  ;;  %v6109_v60 = vld [vmem:[#allocation3 + $0x1a0] sm:$0xff]  ;;  %v6112_v32 = vld [vmem:[#allocation3 + $0x1b0] sm:$0xff] }
 0x44f   :  { %2042 = vmatpush1.msra.mxu0 %v6097_v16  ;;  %2113 = vmatpush1.msra.mxu1 %v6100_v55  ;;  %8349 = vst [vmem:[#allocation67_spill] sm:$0xff] %v6109_v60  ;;  %8350 = vst [vmem:[#allocation68_spill] sm:$0xff] %v6112_v32  ;;  %v6115_v16 = vld [vmem:[#allocation3 + $0x188] sm:$0xff]  ;;  %v6118_v55 = vld [vmem:[#allocation3 + $0x198] sm:$0xff] }
 0x450   :  { %2043 = vmatprep.subr.mxu0 %v6103_v44  ;;  %2114 = vmatprep.subr.mxu1 %v6106_v8  ;;  %8351 = vst [vmem:[#allocation69_spill] sm:$0xff] %v6115_v16  ;;  %8352 = vst [vmem:[#allocation70_spill] sm:$0xff] %v6118_v55  ;;  %v6121_v44 = vld [vmem:[#allocation3 + $0x180] sm:$0xff]  ;;  %v6124_v8 = vld [vmem:[#allocation3 + $0x190] sm:$0xff] }
 0x451   :  { %2044 = vmatpush1.msra.mxu0 %v6109_v60  ;;  %2115 = vmatpush1.msra.mxu1 %v6112_v32  ;;  %8353 = vst [vmem:[#allocation71_spill] sm:$0xff] %v6121_v44  ;;  %8354 = vst [vmem:[#allocation72_spill] sm:$0xff] %v6124_v8  ;;  %v6127_v60 = vld [vmem:[#allocation3 + $0x168] sm:$0xff]  ;;  %v6130_v32 = vld [vmem:[#allocation3 + $0x178] sm:$0xff] }
 0x452   :  { %2045 = vmatprep.subr.mxu0 %v6115_v16  ;;  %2116 = vmatprep.subr.mxu1 %v6118_v55  ;;  %8355 = vst [vmem:[#allocation73_spill] sm:$0xff] %v6127_v60  ;;  %8356 = vst [vmem:[#allocation74_spill] sm:$0xff] %v6130_v32  ;;  %v6133_v16 = vld [vmem:[#allocation3 + $0x160] sm:$0xff]  ;;  %v6136_v55 = vld [vmem:[#allocation3 + $0x170] sm:$0xff] }
 0x453   :  { %2046 = vmatpush1.msra.mxu0 %v6121_v44  ;;  %2117 = vmatpush1.msra.mxu1 %v6124_v8  ;;  %8357 = vst [vmem:[#allocation75_spill] sm:$0xff] %v6133_v16  ;;  %8358 = vst [vmem:[#allocation76_spill] sm:$0xff] %v6136_v55  ;;  %v6139_v44 = vld [vmem:[#allocation3 + $0x148] sm:$0xff]  ;;  %v6142_v8 = vld [vmem:[#allocation3 + $0x158] sm:$0xff] }
 0x454   :  { %2047 = vmatprep.subr.mxu0 %v6127_v60  ;;  %2118 = vmatprep.subr.mxu1 %v6130_v32  ;;  %8359 = vst [vmem:[#allocation77_spill] sm:$0xff] %v6139_v44  ;;  %8360 = vst [vmem:[#allocation78_spill] sm:$0xff] %v6142_v8  ;;  %v6145_v60 = vld [vmem:[#allocation3 + $0x140] sm:$0xff]  ;;  %v6148_v32 = vld [vmem:[#allocation3 + $0x150] sm:$0xff] }
 0x455   :  { %2048 = vmatpush1.msra.mxu0 %v6133_v16  ;;  %2119 = vmatpush1.msra.mxu1 %v6136_v55  ;;  %8361 = vst [vmem:[#allocation79_spill] sm:$0xff] %v6145_v60  ;;  %8362 = vst [vmem:[#allocation80_spill] sm:$0xff] %v6148_v32  ;;  %v6151_v16 = vld [vmem:[#allocation3 + $0x128] sm:$0xff]  ;;  %v6154_v55 = vld [vmem:[#allocation3 + $0x138] sm:$0xff] }
 0x456   :  { %2049 = vmatprep.subr.mxu0 %v6139_v44  ;;  %2120 = vmatprep.subr.mxu1 %v6142_v8  ;;  %8363 = vst [vmem:[#allocation81_spill] sm:$0xff] %v6151_v16  ;;  %8364 = vst [vmem:[#allocation82_spill] sm:$0xff] %v6154_v55  ;;  %v6157_v44 = vld [vmem:[#allocation3 + $0x120] sm:$0xff]  ;;  %v6160_v8 = vld [vmem:[#allocation3 + $0x130] sm:$0xff] }
 0x457   :  { %2050 = vmatpush1.msra.mxu0 %v6145_v60  ;;  %2121 = vmatpush1.msra.mxu1 %v6148_v32  ;;  %8365 = vst [vmem:[#allocation83_spill] sm:$0xff] %v6157_v44  ;;  %8366 = vst [vmem:[#allocation84_spill] sm:$0xff] %v6160_v8  ;;  %v6163_v60 = vld [vmem:[#allocation3 + $0x108] sm:$0xff]  ;;  %v6166_v32 = vld [vmem:[#allocation3 + $0x118] sm:$0xff] }
 0x458   :  { %2051 = vmatprep.subr.mxu0 %v6151_v16  ;;  %2122 = vmatprep.subr.mxu1 %v6154_v55  ;;  %8367 = vst [vmem:[#allocation85_spill] sm:$0xff] %v6163_v60  ;;  %8368 = vst [vmem:[#allocation92_spill] sm:$0xff] %v6166_v32  ;;  %v6169_v16 = vld [vmem:[#allocation3 + $0x100] sm:$0xff]  ;;  %v6172_v55 = vld [vmem:[#allocation3 + $0x110] sm:$0xff] }
 0x459   :  { %2052 = vmatpush1.msra.mxu0 %v6157_v44  ;;  %2123 = vmatpush1.msra.mxu1 %v6160_v8  ;;  %8369 = vst [vmem:[#allocation93_spill] sm:$0xff] %v6169_v16  ;;  %8370 = vst [vmem:[#allocation94_spill] sm:$0xff] %v6172_v55  ;;  %v6175_v44 = vld [vmem:[#allocation3 + $0xe8] sm:$0xff]  ;;  %v6178_v8 = vld [vmem:[#allocation3 + $0xf8] sm:$0xff] }
 0x45a   :  { %2053 = vmatprep.subr.mxu0 %v6163_v60  ;;  %2124 = vmatprep.subr.mxu1 %v6166_v32  ;;  %8371 = vst [vmem:[#allocation95_spill] sm:$0xff] %v6175_v44  ;;  %8372 = vst [vmem:[#allocation96_spill] sm:$0xff] %v6178_v8  ;;  %v6181_v60 = vld [vmem:[#allocation3 + $0xe0] sm:$0xff]  ;;  %v6184_v32 = vld [vmem:[#allocation3 + $0xf0] sm:$0xff] }
 0x45b   :  { %2054 = vmatpush1.msra.mxu0 %v6169_v16  ;;  %2125 = vmatpush1.msra.mxu1 %v6172_v55  ;;  %8373 = vst [vmem:[#allocation97_spill] sm:$0xff] %v6181_v60  ;;  %8374 = vst [vmem:[#allocation98_spill] sm:$0xff] %v6184_v32  ;;  %v6187_v16 = vld [vmem:[#allocation3 + $0xc8] sm:$0xff]  ;;  %v6190_v55 = vld [vmem:[#allocation3 + $0xd8] sm:$0xff] }
 0x45c   :  { %2055 = vmatprep.subr.mxu0 %v6175_v44  ;;  %2126 = vmatprep.subr.mxu1 %v6178_v8  ;;  %8375 = vst [vmem:[#allocation99_spill] sm:$0xff] %v6187_v16  ;;  %8376 = vst [vmem:[#allocation100_spill] sm:$0xff] %v6190_v55  ;;  %v6193_v44 = vld [vmem:[#allocation3 + $0xc0] sm:$0xff]  ;;  %v6196_v8 = vld [vmem:[#allocation3 + $0xd0] sm:$0xff] }
 0x45d   :  { %2056 = vmatpush1.msra.mxu0 %v6181_v60  ;;  %2127 = vmatpush1.msra.mxu1 %v6184_v32  ;;  %8377 = vst [vmem:[#allocation101_spill] sm:$0xff] %v6193_v44  ;;  %8378 = vst [vmem:[#allocation102_spill] sm:$0xff] %v6196_v8  ;;  %v6199_v60 = vld [vmem:[#allocation3 + $0xa8] sm:$0xff]  ;;  %v6202_v32 = vld [vmem:[#allocation3 + $0xb8] sm:$0xff] }
 0x45e   :  { %2057 = vmatprep.subr.mxu0 %v6187_v16  ;;  %2128 = vmatprep.subr.mxu1 %v6190_v55  ;;  %8379 = vst [vmem:[#allocation103_spill] sm:$0xff] %v6199_v60  ;;  %8380 = vst [vmem:[#allocation104_spill] sm:$0xff] %v6202_v32  ;;  %v6205_v16 = vld [vmem:[#allocation3 + $0xa0] sm:$0xff]  ;;  %v6208_v55 = vld [vmem:[#allocation3 + $0xb0] sm:$0xff] }
 0x45f   :  { %2058 = vmatpush1.msra.mxu0 %v6193_v44  ;;  %2129 = vmatpush1.msra.mxu1 %v6196_v8  ;;  %8381 = vst [vmem:[#allocation105_spill] sm:$0xff] %v6205_v16  ;;  %8382 = vst [vmem:[#allocation106_spill] sm:$0xff] %v6208_v55  ;;  %v6211_v44 = vld [vmem:[#allocation3 + $0x88] sm:$0xff]  ;;  %v6214_v8 = vld [vmem:[#allocation3 + $0x98] sm:$0xff] }
 0x460   :  { %2059 = vmatprep.subr.mxu0 %v6199_v60  ;;  %2130 = vmatprep.subr.mxu1 %v6202_v32  ;;  %8383 = vst [vmem:[#allocation107_spill] sm:$0xff] %v6211_v44  ;;  %8384 = vst [vmem:[#allocation108_spill] sm:$0xff] %v6214_v8  ;;  %v6217_v60 = vld [vmem:[#allocation3 + $0x80] sm:$0xff]  ;;  %v6220_v32 = vld [vmem:[#allocation3 + $0x90] sm:$0xff] }
 0x461   :  { %2060 = vmatpush1.msra.mxu0 %v6205_v16  ;;  %2131 = vmatpush1.msra.mxu1 %v6208_v55  ;;  %8385 = vst [vmem:[#allocation109_spill] sm:$0xff] %v6217_v60  ;;  %8386 = vst [vmem:[#allocation110_spill] sm:$0xff] %v6220_v32  ;;  %v6223_v16 = vld [vmem:[#allocation3 + $0x68] sm:$0xff]  ;;  %v6226_v55 = vld [vmem:[#allocation3 + $0x78] sm:$0xff] }
 0x462   :  { %2061 = vmatprep.subr.mxu0 %v6211_v44  ;;  %2132 = vmatprep.subr.mxu1 %v6214_v8  ;;  %8387 = vst [vmem:[#allocation111_spill] sm:$0xff] %v6223_v16  ;;  %8388 = vst [vmem:[#allocation112_spill] sm:$0xff] %v6226_v55  ;;  %v6229_v44 = vld [vmem:[#allocation3 + $0x60] sm:$0xff]  ;;  %v6232_v8 = vld [vmem:[#allocation3 + $0x70] sm:$0xff] }
 0x463   :  { %2062 = vmatpush1.msra.mxu0 %v6217_v60  ;;  %2133 = vmatpush1.msra.mxu1 %v6220_v32  ;;  %8389 = vst [vmem:[#allocation113_spill] sm:$0xff] %v6229_v44  ;;  %8390 = vst [vmem:[#allocation114_spill] sm:$0xff] %v6232_v8  ;;  %v6235_v60 = vld [vmem:[#allocation3 + $0x48] sm:$0xff]  ;;  %v6238_v32 = vld [vmem:[#allocation3 + $0x58] sm:$0xff] }
 0x464   :  { %2063 = vmatprep.subr.mxu0 %v6223_v16  ;;  %2134 = vmatprep.subr.mxu1 %v6226_v55  ;;  %8391 = vst [vmem:[#allocation115_spill] sm:$0xff] %v6235_v60  ;;  %8392 = vst [vmem:[#allocation116_spill] sm:$0xff] %v6238_v32  ;;  %v6241_v16 = vld [vmem:[#allocation3 + $0x40] sm:$0xff]  ;;  %v6244_v55 = vld [vmem:[#allocation3 + $0x50] sm:$0xff] }
 0x465   :  { %2064 = vmatpush1.msra.mxu0 %v6229_v44  ;;  %2135 = vmatpush1.msra.mxu1 %v6232_v8  ;;  %8393 = vst [vmem:[#allocation117_spill] sm:$0xff] %v6241_v16  ;;  %8394 = vst [vmem:[#allocation118_spill] sm:$0xff] %v6244_v55  ;;  %v6247_v44 = vld [vmem:[#allocation3 + $0x28] sm:$0xff]  ;;  %v6250_v8 = vld [vmem:[#allocation3 + $0x38] sm:$0xff] }
 0x466   :  { %2065 = vmatprep.subr.mxu0 %v6235_v60  ;;  %2136 = vmatprep.subr.mxu1 %v6238_v32  ;;  %8395 = vst [vmem:[#allocation119_spill] sm:$0xff] %v6247_v44  ;;  %8396 = vst [vmem:[#allocation120_spill] sm:$0xff] %v6250_v8  ;;  %v6253_v60 = vld [vmem:[#allocation3 + $0x20] sm:$0xff]  ;;  %v6256_v32 = vld [vmem:[#allocation3 + $0x30] sm:$0xff] }
 0x467   :  { %2066 = vmatpush1.msra.mxu0 %v6241_v16  ;;  %2137 = vmatpush1.msra.mxu1 %v6244_v55  ;;  %8397 = vst [vmem:[#allocation121_spill] sm:$0xff] %v6253_v60  ;;  %8398 = vst [vmem:[#allocation122_spill] sm:$0xff] %v6256_v32  ;;  %v6259_v16 = vld [vmem:[#allocation3 + $0x8] sm:$0xff]  ;;  %v6262_v55 = vld [vmem:[#allocation3 + $0x18] sm:$0xff] }
 0x468   :  { %2067 = vmatprep.subr.mxu0 %v6247_v44  ;;  %2138 = vmatprep.subr.mxu1 %v6250_v8  ;;  %8399 = vst [vmem:[#allocation123_spill] sm:$0xff] %v6259_v16  ;;  %8400 = vst [vmem:[#allocation124_spill] sm:$0xff] %v6262_v55  ;;  %v6265_v44 = vld [vmem:[#allocation3] sm:$0xff]  ;;  %v6269_v8 = vld [vmem:[#allocation3 + $0x10] sm:$0xff] }
 0x469   :  { %2068 = vmatpush1.msra.mxu0 %v6253_v60  ;;  %2139 = vmatpush1.msra.mxu1 %v6256_v32  ;;  %8401 = vst [vmem:[#allocation125_spill] sm:$0xff] %v6265_v44  ;;  %8402 = vst [vmem:[#allocation126_spill] sm:$0xff] %v6269_v8  ;;  %v6273_v32 = vld [vmem:[#allocation5 + $0x1e8] sm:$0xff] }
 0x46a   :  { %2069 = vmatprep.subr.mxu0 %v6259_v16  ;;  %2140 = vmatprep.subr.mxu1 %v6262_v55  ;;  %8403 = vst [vmem:[#allocation127_spill] sm:$0xff] %v6273_v32  ;;  %v6276_v16 = vld [vmem:[#allocation5 + $0x1f8] sm:$0xff] }
 0x46b   :  { %2070 = vmatpush1.msra.mxu0 %v6265_v44  ;;  %2103 = vmatprep.mubr.f32.mxu0 %v8258_v36  ;;  %8404 = vst [vmem:[#allocation128_spill] sm:$0xff] %v6276_v16  ;;  %v8405_v55 = vld [vmem:[#allocation89_spill] sm:$0xff] }
 0x46c   :  { %2141 = vmatpush1.msra.mxu1 %v6269_v8  ;;  %2174 = vmatprep.mubr.f32.mxu1 %v8258_v36  ;;  %v220_v60 = vadd.f32 %v8405_v55, %v8262_v40 }
 0x46d   :  { %2209 = vmatprep.subr.mxu0 %v6273_v32  ;;  %2280 = vmatprep.subr.mxu1 %v6276_v16  ;;  %v8407_v32 = vld [vmem:[#allocation16_spill] sm:$0xff]  ;;  %v8408_v16 = vld [vmem:[#allocation15_spill] sm:$0xff] }
 0x46e   :  { %v335_v54 = vadd.f32 %v8407_v32, %v7971_v33  ;;  %v333_v38 = vadd.f32 %v8408_v16, %v4625_v61  ;;  %v6303_v16 = vld [vmem:[#allocation5 + $0x1d8] sm:$0xff] }
 0x4c9   :  { %v1765_v44 = vpop.f32.mrf.mxu0  ;;  %v1836_v8 = vpop.f32.mrf.mxu1 }
 0x4ca   :  { %v1841_v62 = vadd.f32 %v1765_v44, %v220_v60  ;;  %v1843_v18 = vadd.f32 %v1836_v8, %v333_v38  ;;  %v6297_v8 = vld [vmem:[#allocation5 + $0x1f0] sm:$0xff] }
 0x4cb   :  { %v1767_v51 = vpop.f32.mrf.mxu0  ;;  %v1838_v10 = vpop.f32.mrf.mxu1 }
 0x4cc   :  { %v3356_v63 = vmul.f32 -1.442695, %v1841_v62  ;;  %v1842_v35 = vadd.f32 %v1767_v51, %v8406_v47  ;;  %v1844_v52 = vadd.f32 %v1838_v10, %v335_v54 }
 0x4ce   :  { %3549 = vpow2.f32 %v3356_v63  ;;  %v3357_v36 = vmul.f32 -1.442695, %v1842_v35  ;;  %v3358_v55 = vmul.f32 -1.442695, %v1844_v52  ;;  %v6294_v52 = vld [vmem:[#allocation5 + $0x1e0] sm:$0xff] }
 0x4d0   :  { %3551 = vpow2.f32 %v3357_v36 }
 0x4d1   :  { %3553 = vtanh.f32 %v1843_v18 }
 0x4d2   :  { %3555 = vpow2.f32 %v3358_v55  ;;  %v6306_v55 = vld [vmem:[#allocation5 + $0x1c0] sm:$0xff] }
 0x4db   :  { %v3550_v40 = vpop.eup %3549 }
 0x4dc   :  { %v1848_v44 = vadd.f32 1.0, %v3550_v40 }
 0x4dd   :  { %v3552_v62 = vpop.eup %3551 }
 0x4de   :  { %3557 = vrcp.f32 %v1848_v44  ;;  %v1854_v47 = vadd.f32 1.0, %v3552_v62  ;;  %v3554_v35 = vpop.eup %3553  ;;  %v6309_v44 = vld [vmem:[#allocation5 + $0x1d0] sm:$0xff]  ;;  %v6312_v62 = vld [vmem:[#allocation5 + $0x1a8] sm:$0xff] }
 0x4df   :  { %v3556_v36 = vpop.eup %3555 }
 0x4e0   :  { %3559 = vrcp.f32 %v1854_v47  ;;  %v1861_v32 = vadd.f32 1.0, %v3556_v36  ;;  %v6315_v47 = vld [vmem:[#allocation5 + $0x1b8] sm:$0xff]  ;;  %v6321_v36 = vld [vmem:[#allocation5 + $0x1b0] sm:$0xff] }
 0x4e1   :  { %8409 = vst [vmem:[#allocation129_spill] sm:$0xff] %v6321_v36 }
 0x4e2   :  { %3561 = vrcp.f32 %v1861_v32  ;;  %v6333_v32 = vld [vmem:[#allocation5 + $0x190] sm:$0xff] }
 0x4e3   :  { %8413 = vst [vmem:[#allocation13_spill] sm:$0xff] %v6333_v32 }
 0x4eb   :  { %v3558_v51 = vpop.eup %3557 }
 0x4ec   :  { %v1865_v63 = vmul.f32 %v3558_v51, %v3554_v35  ;;  %v6318_v35 = vld [vmem:[#allocation5 + $0x1a0] sm:$0xff]  ;;  %v6324_v51 = vld [vmem:[#allocation5 + $0x188] sm:$0xff] }
 0x4ed   :  { %v3560_v60 = vpop.eup %3559  ;;  %8410 = vst [vmem:[#allocation87_spill] sm:$0xff] %v6324_v51 }
 0x4ee   :  { %v1864_v54 = vmul.f32 %v3560_v60, %v5808_v43  ;;  %v6300_v43 = vld [vmem:[#allocation5 + $0x1c8] sm:$0xff]  ;;  %v6330_v60 = vld [vmem:[#allocation5 + $0x180] sm:$0xff] }
 0x4ef   :  { %v3562_v40 = vpop.eup %3561  ;;  %8412 = vst [vmem:[#allocation14_spill] sm:$0xff] %v6330_v60 }
 0x4f0   :  { %v6287_v10 = vadd.f32 %v1865_v63, %v1864_v54  ;;  %v6327_v63 = vld [vmem:[#allocation5 + $0x198] sm:$0xff]  ;;  %v6336_v54 = vld [vmem:[#allocation5 + $0x168] sm:$0xff] }
 0x4f1   :  { %8411 = vst [vmem:[#allocation88_spill] sm:$0xff] %v6327_v63  ;;  %8414 = vst [vmem:[#allocation130_spill] sm:$0xff] %v6336_v54 }
 0x4f2   :  { %3563 = vtanh.f32 %v6287_v10 }
 0x4ff   :  { %v3564_v18 = vpop.eup %3563 }
 0x500   :  { %v6290_v38 = vmul.f32 %v3564_v18, %v3562_v40  ;;  %v6339_v40 = vld [vmem:[#allocation5 + $0x178] sm:$0xff]  ;;  %v6342_v18 = vld [vmem:[#allocation5 + $0x160] sm:$0xff] }
 0x501   :  { %8415 = vst [vmem:[#allocation131_spill] sm:$0xff] %v6339_v40  ;;  %8416 = vst [vmem:[#allocation132_spill] sm:$0xff] %v6342_v18 }
 0x502   :  { %2104 = vmatmul.mubr.f32.vlgmr.msra.gmra.mxu0 %v6290_v38  ;;  %2175 = vmatmul.mubr.f32.vlgmr.msra.gmra.mxu1 %v6290_v38 }
 0x503   :  { %2210 = vmatpush1.msra.mxu0 %v6294_v52  ;;  %2281 = vmatpush1.msra.mxu1 %v6297_v8 }
 0x504   :  { %2211 = vmatprep.subr.mxu0 %v6300_v43  ;;  %2282 = vmatprep.subr.mxu1 %v6303_v16 }
 0x505   :  { %2212 = vmatpush1.msra.mxu0 %v6306_v55  ;;  %2283 = vmatpush1.msra.mxu1 %v6309_v44 }
 0x506   :  { %2213 = vmatprep.subr.mxu0 %v6312_v62  ;;  %2284 = vmatprep.subr.mxu1 %v6315_v47 }
 0x507   :  { %2214 = vmatpush1.msra.mxu0 %v6318_v35  ;;  %2285 = vmatpush1.msra.mxu1 %v6321_v36  ;;  %v6361_v36 = vld [vmem:[#allocation5 + $0x128] sm:$0xff] }
 0x508   :  { %2215 = vmatprep.subr.mxu0 %v6324_v51  ;;  %2286 = vmatprep.subr.mxu1 %v6327_v63  ;;  %v6345_v63 = vld [vmem:[#allocation5 + $0x170] sm:$0xff]  ;;  %v6348_v51 = vld [vmem:[#allocation5 + $0x148] sm:$0xff]  ;;  %8422 = vst [vmem:[#allocation139_spill] sm:$0xff] %v6361_v36 }
 0x509   :  { %2216 = vmatpush1.msra.mxu0 %v6330_v60  ;;  %2287 = vmatpush1.msra.mxu1 %v6333_v32  ;;  %8417 = vst [vmem:[#allocation133_spill] sm:$0xff] %v6345_v63  ;;  %8418 = vst [vmem:[#allocation134_spill] sm:$0xff] %v6348_v51  ;;  %v6351_v32 = vld [vmem:[#allocation5 + $0x158] sm:$0xff] }
 0x50a   :  { %2217 = vmatprep.subr.mxu0 %v6336_v54  ;;  %2288 = vmatprep.subr.mxu1 %v6339_v40  ;;  %8419 = vst [vmem:[#allocation136_spill] sm:$0xff] %v6351_v32  ;;  %v6355_v40 = vld [vmem:[#allocation5 + $0x140] sm:$0xff] }
 0x50b   :  { %2218 = vmatpush1.msra.mxu0 %v6342_v18  ;;  %2289 = vmatpush1.msra.mxu1 %v6345_v63  ;;  %8420 = vst [vmem:[#allocation137_spill] sm:$0xff] %v6355_v40  ;;  %v6358_v18 = vld [vmem:[#allocation5 + $0x150] sm:$0xff] }
 0x50c   :  { %v1935_v60 = vpop.f32.mrf.mxu0  ;;  %2219 = vmatprep.subr.mxu0 %v6348_v51  ;;  %2290 = vmatprep.subr.mxu1 %v6351_v32  ;;  %8421 = vst [vmem:[#allocation138_spill] sm:$0xff] %v6358_v18  ;;  %v6364_v51 = vld [vmem:[#allocation5 + $0x138] sm:$0xff] }
 0x50d   :  { %v1936_v54 = vadd.f32 %v1935_v60, %v8275_v9  ;;  %2220 = vmatpush1.msra.mxu0 %v6355_v40  ;;  %2291 = vmatpush1.msra.mxu1 %v6358_v18  ;;  %8423 = vst [vmem:[#allocation140_spill] sm:$0xff] %v6364_v51  ;;  %v6368_v9 = vld [vmem:[#allocation5 + $0x120] sm:$0xff]  ;;  %v6371_v40 = vld [vmem:[#allocation5 + $0x130] sm:$0xff]  ;;  %v6374_v18 = vld [vmem:[#allocation5 + $0x108] sm:$0xff] }
 0x50e   :  { %v1937_v63 = vpop.f32.mrf.mxu0  ;;  %2221 = vmatprep.subr.mxu0 %v6361_v36  ;;  %2292 = vmatprep.subr.mxu1 %v6364_v51  ;;  %8424 = vst [vmem:[#allocation141_spill] sm:$0xff] %v6371_v40  ;;  %8425 = vst [vmem:[#allocation142_spill] sm:$0xff] %v6374_v18  ;;  %v6377_v36 = vld [vmem:[#allocation5 + $0x118] sm:$0xff] }
 0x50f   :  { %v3359_v32 = vmul.f32 -1.442695, %v1936_v54  ;;  %v1938_v60 = vadd.f32 %v1937_v63, %v8279_v3  ;;  %2222 = vmatpush1.msra.mxu0 %v6368_v9  ;;  %2293 = vmatpush1.msra.mxu1 %v6371_v40  ;;  %8426 = vst [vmem:[#allocation143_spill] sm:$0xff] %v6377_v36  ;;  %v2006_v54 = vpop.f32.mrf.mxu1  ;;  %v6380_v63 = vld [vmem:[#allocation5 + $0x100] sm:$0xff]  ;;  %v6383_v3 = vld [vmem:[#allocation5 + $0x110] sm:$0xff]  ;;  %v6386_v40 = vld [vmem:[#allocation5 + $0xe8] sm:$0xff] }
 0x510   :  { %2223 = vmatprep.subr.mxu0 %v6374_v18  ;;  %2294 = vmatprep.subr.mxu1 %v6377_v36  ;;  %8427 = vst [vmem:[#allocation144_spill] sm:$0xff] %v6380_v63  ;;  %8428 = vst [vmem:[#allocation145_spill] sm:$0xff] %v6383_v3  ;;  %v6389_v18 = vld [vmem:[#allocation5 + $0xf8] sm:$0xff]  ;;  %v6404_v36 = vld [vmem:[#allocation5 + $0xc0] sm:$0xff] }
 0x511   :  { %3565 = vpow2.f32 %v3359_v32  ;;  %v3360_v51 = vmul.f32 -1.442695, %v1938_v60  ;;  %2224 = vmatpush1.msra.mxu0 %v6380_v63  ;;  %2295 = vmatpush1.msra.mxu1 %v6383_v3  ;;  %8429 = vst [vmem:[#allocation146_spill] sm:$0xff] %v6386_v40  ;;  %8430 = vst [vmem:[#allocation147_spill] sm:$0xff] %v6389_v18  ;;  %v6392_v32 = vld [vmem:[#allocation5 + $0xe0] sm:$0xff]  ;;  %v6395_v60 = vld [vmem:[#allocation5 + $0xf0] sm:$0xff] }
 0x512   :  { %2225 = vmatprep.subr.mxu0 %v6386_v40  ;;  %2296 = vmatprep.subr.mxu1 %v6389_v18  ;;  %8431 = vst [vmem:[#allocation148_spill] sm:$0xff] %v6392_v32  ;;  %8432 = vst [vmem:[#allocation149_spill] sm:$0xff] %v6395_v60  ;;  %v6398_v63 = vld [vmem:[#allocation5 + $0xc8] sm:$0xff]  ;;  %v6401_v3 = vld [vmem:[#allocation5 + $0xd8] sm:$0xff]  ;;  %v2008_v40 = vpop.f32.mrf.mxu1 }
 0x513   :  { %3567 = vpow2.f32 %v3360_v51  ;;  %2226 = vmatpush1.msra.mxu0 %v6392_v32  ;;  %2297 = vmatpush1.msra.mxu1 %v6395_v60  ;;  %8433 = vst [vmem:[#allocation150_spill] sm:$0xff] %v6398_v63  ;;  %8434 = vst [vmem:[#allocation151_spill] sm:$0xff] %v6401_v3  ;;  %v6407_v51 = vld [vmem:[#allocation5 + $0xd0] sm:$0xff]  ;;  %v6410_v32 = vld [vmem:[#allocation5 + $0xa8] sm:$0xff] }
 0x514   :  { %2227 = vmatprep.subr.mxu0 %v6398_v63  ;;  %2298 = vmatprep.subr.mxu1 %v6401_v3  ;;  %8435 = vst [vmem:[#allocation152_spill] sm:$0xff] %v6404_v36  ;;  %8436 = vst [vmem:[#allocation153_spill] sm:$0xff] %v6407_v51  ;;  %v6413_v60 = vld [vmem:[#allocation5 + $0xb8] sm:$0xff]  ;;  %v6416_v63 = vld [vmem:[#allocation5 + $0xa0] sm:$0xff] }
 0x515   :  { %2228 = vmatpush1.msra.mxu0 %v6404_v36  ;;  %2299 = vmatpush1.msra.mxu1 %v6407_v51  ;;  %8437 = vst [vmem:[#allocation154_spill] sm:$0xff] %v6410_v32  ;;  %8438 = vst [vmem:[#allocation155_spill] sm:$0xff] %v6413_v60  ;;  %v6419_v3 = vld [vmem:[#allocation5 + $0xb0] sm:$0xff]  ;;  %v2009_v36 = vadd.f32 %v2008_v40, %v8298_v7  ;;  %v6423_v18 = vld [vmem:[#allocation5 + $0x88] sm:$0xff] }
 0x516   :  { %2229 = vmatprep.subr.mxu0 %v6410_v32  ;;  %2300 = vmatprep.subr.mxu1 %v6413_v60  ;;  %8439 = vst [vmem:[#allocation156_spill] sm:$0xff] %v6416_v63  ;;  %8440 = vst [vmem:[#allocation157_spill] sm:$0xff] %v6419_v3  ;;  %v6426_v51 = vld [vmem:[#allocation5 + $0x98] sm:$0xff]  ;;  %v6429_v32 = vld [vmem:[#allocation5 + $0x80] sm:$0xff] }
 0x517   :  { %2230 = vmatpush1.msra.mxu0 %v6416_v63  ;;  %2301 = vmatpush1.msra.mxu1 %v6419_v3  ;;  %8441 = vst [vmem:[#allocation158_spill] sm:$0xff] %v6423_v18  ;;  %8442 = vst [vmem:[#allocation159_spill] sm:$0xff] %v6426_v51  ;;  %v6432_v60 = vld [vmem:[#allocation5 + $0x90] sm:$0xff]  ;;  %v6435_v63 = vld [vmem:[#allocation5 + $0x68] sm:$0xff] }
 0x518   :  { %2231 = vmatprep.subr.mxu0 %v6423_v18  ;;  %2302 = vmatprep.subr.mxu1 %v6426_v51  ;;  %8443 = vst [vmem:[#allocation160_spill] sm:$0xff] %v6429_v32  ;;  %8444 = vst [vmem:[#allocation161_spill] sm:$0xff] %v6432_v60  ;;  %v6438_v40 = vld [vmem:[#allocation5 + $0x78] sm:$0xff]  ;;  %v6441_v7 = vld [vmem:[#allocation5 + $0x60] sm:$0xff] }
 0x519   :  { %2232 = vmatpush1.msra.mxu0 %v6429_v32  ;;  %2303 = vmatpush1.msra.mxu1 %v6432_v60  ;;  %8445 = vst [vmem:[#allocation162_spill] sm:$0xff] %v6435_v63  ;;  %8446 = vst [vmem:[#allocation163_spill] sm:$0xff] %v6438_v40  ;;  %v6444_v51 = vld [vmem:[#allocation5 + $0x70] sm:$0xff]  ;;  %v3361_v32 = vmul.f32 -1.442695, %v2009_v36  ;;  %v6447_v18 = vld [vmem:[#allocation5 + $0x48] sm:$0xff] }
 0x51a   :  { %2233 = vmatprep.subr.mxu0 %v6435_v63  ;;  %2304 = vmatprep.subr.mxu1 %v6438_v40  ;;  %8447 = vst [vmem:[#allocation164_spill] sm:$0xff] %v6441_v7  ;;  %8448 = vst [vmem:[#allocation165_spill] sm:$0xff] %v6444_v51  ;;  %v6450_v60 = vld [vmem:[#allocation5 + $0x58] sm:$0xff]  ;;  %v6453_v63 = vld [vmem:[#allocation5 + $0x40] sm:$0xff] }
 0x51b   :  { %2234 = vmatpush1.msra.mxu0 %v6441_v7  ;;  %2305 = vmatpush1.msra.mxu1 %v6444_v51  ;;  %8449 = vst [vmem:[#allocation166_spill] sm:$0xff] %v6447_v18  ;;  %8450 = vst [vmem:[#allocation167_spill] sm:$0xff] %v6450_v60  ;;  %v6456_v40 = vld [vmem:[#allocation5 + $0x50] sm:$0xff]  ;;  %v2007_v51 = vadd.f32 %v2006_v54, %v8310_v6  ;;  %v6460_v36 = vld [vmem:[#allocation5 + $0x28] sm:$0xff]  ;;  %3569 = vpow2.f32 %v3361_v32 }
 0x51c   :  { %2235 = vmatprep.subr.mxu0 %v6447_v18  ;;  %2306 = vmatprep.subr.mxu1 %v6450_v60  ;;  %8451 = vst [vmem:[#allocation168_spill] sm:$0xff] %v6453_v63  ;;  %8452 = vst [vmem:[#allocation169_spill] sm:$0xff] %v6456_v40  ;;  %v6463_v18 = vld [vmem:[#allocation5 + $0x38] sm:$0xff]  ;;  %v6466_v3 = vld [vmem:[#allocation5 + $0x20] sm:$0xff] }
 0x51d   :  { %2236 = vmatpush1.msra.mxu0 %v6453_v63  ;;  %2307 = vmatpush1.msra.mxu1 %v6456_v40  ;;  %8453 = vst [vmem:[#allocation170_spill] sm:$0xff] %v6463_v18  ;;  %8454 = vst [vmem:[#allocation171_spill] sm:$0xff] %v6466_v3  ;;  %v6469_v63 = vld [vmem:[#allocation5 + $0x30] sm:$0xff]  ;;  %v6472_v54 = vld [vmem:[#allocation5 + $0x8] sm:$0xff] }
 0x51e   :  { %v3566_v7 = vpop.eup %3565  ;;  %2237 = vmatprep.subr.mxu0 %v6460_v36  ;;  %2308 = vmatprep.subr.mxu1 %v6463_v18  ;;  %v6475_v6 = vld [vmem:[#allocation5 + $0x18] sm:$0xff]  ;;  %v6478_v18 = vld [vmem:[#allocation5] sm:$0xff]  ;;  %v8483_v32 = vld [vmem:[#allocation59_spill] sm:$0xff] }
 0x51f   :  { %v2014_v60 = vadd.f32 1.0, %v3566_v7  ;;  %2238 = vmatpush1.msra.mxu0 %v6466_v3  ;;  %2309 = vmatpush1.msra.mxu1 %v6469_v63  ;;  %v6481_v3 = vld [vmem:[#allocation5 + $0x10] sm:$0xff] }
 0x520   :  { %v3568_v40 = vpop.eup %3567  ;;  %2239 = vmatprep.subr.mxu0 %v6472_v54  ;;  %2310 = vmatprep.subr.mxu1 %v6475_v6 }
 0x521   :  { %3571 = vrcp.f32 %v2014_v60  ;;  %v2020_v7 = vadd.f32 1.0, %v3568_v40  ;;  %2240 = vmatpush1.msra.mxu0 %v6478_v18  ;;  %2311 = vmatpush1.msra.mxu1 %v6481_v3  ;;  %v8484_v60 = vld [vmem:[#allocation60_spill] sm:$0xff]  ;;  %v8486_v40 = vld [vmem:[#allocation62_spill] sm:$0xff] }
 0x522   :  { %3573 = vtanh.f32 %v2007_v51  ;;  %2241 = vmatprep.subr.mxu0 %v5881_v48  ;;  %2312 = vmatprep.subr.mxu1 %v5884_v41  ;;  %v8485_v51 = vld [vmem:[#allocation61_spill] sm:$0xff] }
 0x523   :  { %3575 = vrcp.f32 %v2020_v7  ;;  %2242 = vmatpush2.msra.mxu0 %v5887_v50  ;;  %2313 = vmatpush2.msra.mxu1 %v5890_v13  ;;  %v8487_v7 = vld [vmem:[#allocation63_spill] sm:$0xff] }
 0x524   :  { %2243 = vmatprep.subr.mxu0 %v5893_v56  ;;  %2314 = vmatprep.subr.mxu1 %v5896_v26 }
 0x525   :  { %2244 = vmatpush2.msra.mxu0 %v5899_v14  ;;  %2315 = vmatpush2.msra.mxu1 %v5902_v53 }
 0x526   :  { %2245 = vmatprep.subr.mxu0 %v5905_v37  ;;  %2316 = vmatprep.subr.mxu1 %v5908_v57  ;;  %v8455_v37 = vld [vmem:[#allocation28_spill] sm:$0xff]  ;;  %v8456_v57 = vld [vmem:[#allocation29_spill] sm:$0xff] }
 0x527   :  { %2246 = vmatpush2.msra.mxu0 %v5911_v0  ;;  %2317 = vmatpush2.msra.mxu1 %v5914_v58  ;;  %v8457_v0 = vld [vmem:[#allocation33_spill] sm:$0xff]  ;;  %v8458_v58 = vld [vmem:[#allocation34_spill] sm:$0xff] }
 0x528   :  { %2247 = vmatprep.subr.mxu0 %v5917_v45  ;;  %2318 = vmatprep.subr.mxu1 %v5920_v46  ;;  %v3570_v48 = vpop.eup %3569  ;;  %v8459_v45 = vld [vmem:[#allocation35_spill] sm:$0xff]  ;;  %v8460_v46 = vld [vmem:[#allocation36_spill] sm:$0xff] }
 0x529   :  { %2248 = vmatpush2.msra.mxu0 %v5923_v42  ;;  %2319 = vmatpush2.msra.mxu1 %v5926_v19  ;;  %v2027_v56 = vadd.f32 1.0, %v3570_v48  ;;  %v8461_v42 = vld [vmem:[#allocation37_spill] sm:$0xff]  ;;  %v8462_v19 = vld [vmem:[#allocation38_spill] sm:$0xff]  ;;  %v8488_v48 = vld [vmem:[#allocation64_spill] sm:$0xff] }
 0x52a   :  { %2249 = vmatprep.subr.mxu0 %v5929_v20  ;;  %2320 = vmatprep.subr.mxu1 %v5932_v25  ;;  %v8463_v20 = vld [vmem:[#allocation39_spill] sm:$0xff]  ;;  %v8464_v25 = vld [vmem:[#allocation40_spill] sm:$0xff] }
 0x52b   :  { %2250 = vmatpush2.msra.mxu0 %v5935_v27  ;;  %2321 = vmatpush2.msra.mxu1 %v5938_v24  ;;  %3577 = vrcp.f32 %v2027_v56  ;;  %v8465_v27 = vld [vmem:[#allocation41_spill] sm:$0xff]  ;;  %v8466_v24 = vld [vmem:[#allocation42_spill] sm:$0xff]  ;;  %v8492_v56 = vld [vmem:[#allocation68_spill] sm:$0xff] }
 0x52c   :  { %2251 = vmatprep.subr.mxu0 %v5941_v39  ;;  %2322 = vmatprep.subr.mxu1 %v5944_v5  ;;  %v8467_v39 = vld [vmem:[#allocation43_spill] sm:$0xff]  ;;  %v8468_v5 = vld [vmem:[#allocation44_spill] sm:$0xff] }
 0x52d   :  { %2252 = vmatpush2.msra.mxu0 %v5947_v21  ;;  %2323 = vmatpush2.msra.mxu1 %v5950_v28  ;;  %v8469_v21 = vld [vmem:[#allocation45_spill] sm:$0xff]  ;;  %v8470_v28 = vld [vmem:[#allocation46_spill] sm:$0xff] }
 0x52e   :  { %v3572_v41 = vpop.eup %3571  ;;  %2253 = vmatprep.subr.mxu0 %v5953_v12  ;;  %2324 = vmatprep.subr.mxu1 %v5956_v31  ;;  %v8471_v12 = vld [vmem:[#allocation47_spill] sm:$0xff]  ;;  %v8472_v31 = vld [vmem:[#allocation48_spill] sm:$0xff] }
 0x52f   :  { %v3574_v50 = vpop.eup %3573  ;;  %2254 = vmatpush2.msra.mxu0 %v5959_v2  ;;  %2325 = vmatpush2.msra.mxu1 %v5962_v59  ;;  %v8473_v2 = vld [vmem:[#allocation49_spill] sm:$0xff]  ;;  %v8474_v59 = vld [vmem:[#allocation50_spill] sm:$0xff] }
 0x530   :  { %v3576_v13 = vpop.eup %3575  ;;  %2255 = vmatprep.subr.mxu0 %v5966_v11  ;;  %2326 = vmatprep.subr.mxu1 %v5969_v15  ;;  %v2031_v26 = vmul.f32 %v3574_v50, %v3572_v41  ;;  %v8475_v11 = vld [vmem:[#allocation51_spill] sm:$0xff]  ;;  %v8476_v15 = vld [vmem:[#allocation52_spill] sm:$0xff]  ;;  %v8489_v41 = vld [vmem:[#allocation65_spill] sm:$0xff] }
 0x531   :  { %v2030_v14 = vmul.f32 %v3576_v13, %v5984_v23  ;;  %2256 = vmatpush2.msra.mxu0 %v5972_v1  ;;  %2327 = vmatpush2.msra.mxu1 %v5975_v30  ;;  %v8477_v1 = vld [vmem:[#allocation53_spill] sm:$0xff]  ;;  %v8478_v30 = vld [vmem:[#allocation54_spill] sm:$0xff]  ;;  %v8480_v23 = vld [vmem:[#allocation56_spill] sm:$0xff] }
 0x532   :  { %2257 = vmatprep.subr.mxu0 %v5978_v34  ;;  %2328 = vmatprep.subr.mxu1 %v5981_v4  ;;  %v8479_v4 = vld [vmem:[#allocation55_spill] sm:$0xff]  ;;  %v8490_v50 = vld [vmem:[#allocation66_spill] sm:$0xff] }
 0x533   :  { %2258 = vmatpush2.msra.mxu0 %v5986_v22  ;;  %2329 = vmatpush2.msra.mxu1 %v5989_v29  ;;  %v6521_v53 = vadd.f32 %v2031_v26, %v2030_v14  ;;  %v8481_v29 = vld [vmem:[#allocation57_spill] sm:$0xff]  ;;  %v8491_v13 = vld [vmem:[#allocation67_spill] sm:$0xff]  ;;  %v8494_v26 = vld [vmem:[#allocation70_spill] sm:$0xff] }
 0x534   :  { %2259 = vmatprep.subr.mxu0 %v5992_v17  ;;  %2330 = vmatprep.subr.mxu1 %v5995_v49  ;;  %v8482_v17 = vld [vmem:[#allocation58_spill] sm:$0xff]  ;;  %v8495_v14 = vld [vmem:[#allocation71_spill] sm:$0xff] }
 0x535   :  { %2260 = vmatpush2.msra.mxu0 %v8455_v37  ;;  %2331 = vmatpush2.msra.mxu1 %v8456_v57  ;;  %3579 = vtanh.f32 %v6521_v53  ;;  %v8496_v37 = vld [vmem:[#allocation72_spill] sm:$0xff]  ;;  %v8497_v57 = vld [vmem:[#allocation73_spill] sm:$0xff] }
 0x536   :  { %2261 = vmatprep.subr.mxu0 %v8457_v0  ;;  %2332 = vmatprep.subr.mxu1 %v8458_v58  ;;  %v8498_v0 = vld [vmem:[#allocation74_spill] sm:$0xff]  ;;  %v8499_v58 = vld [vmem:[#allocation75_spill] sm:$0xff] }
 0x537   :  { %2262 = vmatpush2.msra.mxu0 %v8459_v45  ;;  %2333 = vmatpush2.msra.mxu1 %v8460_v46  ;;  %v8500_v45 = vld [vmem:[#allocation76_spill] sm:$0xff]  ;;  %v8501_v46 = vld [vmem:[#allocation77_spill] sm:$0xff] }
 0x538   :  { %2263 = vmatprep.subr.mxu0 %v8461_v42  ;;  %2334 = vmatprep.subr.mxu1 %v8462_v19  ;;  %v3578_v34 = vpop.eup %3577  ;;  %v8502_v42 = vld [vmem:[#allocation78_spill] sm:$0xff]  ;;  %v8503_v19 = vld [vmem:[#allocation79_spill] sm:$0xff] }
 0x539   :  { %2264 = vmatpush2.msra.mxu0 %v8463_v20  ;;  %2335 = vmatpush2.msra.mxu1 %v8464_v25  ;;  %v8504_v20 = vld [vmem:[#allocation80_spill] sm:$0xff]  ;;  %v8505_v25 = vld [vmem:[#allocation81_spill] sm:$0xff] }
 0x53a   :  { %2265 = vmatprep.subr.mxu0 %v8465_v27  ;;  %2336 = vmatprep.subr.mxu1 %v8466_v24  ;;  %v8506_v27 = vld [vmem:[#allocation82_spill] sm:$0xff]  ;;  %v8507_v24 = vld [vmem:[#allocation83_spill] sm:$0xff] }
 0x53b   :  { %2266 = vmatpush2.msra.mxu0 %v8467_v39  ;;  %2337 = vmatpush2.msra.mxu1 %v8468_v5  ;;  %v8508_v39 = vld [vmem:[#allocation84_spill] sm:$0xff]  ;;  %v8509_v5 = vld [vmem:[#allocation85_spill] sm:$0xff] }
 0x53c   :  { %2267 = vmatprep.subr.mxu0 %v8469_v21  ;;  %2338 = vmatprep.subr.mxu1 %v8470_v28  ;;  %v8510_v21 = vld [vmem:[#allocation92_spill] sm:$0xff]  ;;  %v8511_v28 = vld [vmem:[#allocation93_spill] sm:$0xff] }
 0x53d   :  { %2268 = vmatpush2.msra.mxu0 %v8471_v12  ;;  %2339 = vmatpush2.msra.mxu1 %v8472_v31  ;;  %v8512_v12 = vld [vmem:[#allocation94_spill] sm:$0xff]  ;;  %v8513_v31 = vld [vmem:[#allocation95_spill] sm:$0xff] }
 0x53e   :  { %2269 = vmatprep.subr.mxu0 %v8473_v2  ;;  %2340 = vmatprep.subr.mxu1 %v8474_v59  ;;  %v8514_v2 = vld [vmem:[#allocation96_spill] sm:$0xff]  ;;  %v8515_v59 = vld [vmem:[#allocation97_spill] sm:$0xff] }
 0x53f   :  { %2270 = vmatpush2.msra.mxu0 %v8475_v11  ;;  %2341 = vmatpush2.msra.mxu1 %v8476_v15  ;;  %v8516_v11 = vld [vmem:[#allocation98_spill] sm:$0xff]  ;;  %v8517_v15 = vld [vmem:[#allocation99_spill] sm:$0xff] }
 0x540   :  { %2271 = vmatprep.subr.mxu0 %v8477_v1  ;;  %2342 = vmatprep.subr.mxu1 %v8478_v30  ;;  %v8518_v1 = vld [vmem:[#allocation100_spill] sm:$0xff]  ;;  %v8519_v30 = vld [vmem:[#allocation101_spill] sm:$0xff] }
 0x541   :  { %2272 = vmatpush2.msra.mxu0 %v8479_v4  ;;  %2343 = vmatpush2.msra.mxu1 %v8480_v23  ;;  %v8521_v4 = vld [vmem:[#allocation103_spill] sm:$0xff]  ;;  %v8522_v23 = vld [vmem:[#allocation104_spill] sm:$0xff] }
 0x542   :  { %v3580_v22 = vpop.eup %3579  ;;  %2379 = vmatprep.subr.mxu0 %v8481_v29  ;;  %2450 = vmatprep.subr.mxu1 %v8482_v17  ;;  %v8524_v29 = vld [vmem:[#allocation106_spill] sm:$0xff]  ;;  %v8525_v17 = vld [vmem:[#allocation107_spill] sm:$0xff] }
 0x543   :  { %v2034_v49 = vmul.f32 %v3580_v22, %v3578_v34  ;;  %v8520_v34 = vld [vmem:[#allocation102_spill] sm:$0xff]  ;;  %v8523_v22 = vld [vmem:[#allocation105_spill] sm:$0xff] }
 0x545   :  { %2273 = vmatprep.mubr.f32.mxu0 %v2034_v49  ;;  %2344 = vmatprep.mubr.f32.mxu1 %v2034_v49  ;;  %v8526_v49 = vld [vmem:[#allocation108_spill] sm:$0xff] }
 0x546   :  { %2274 = vmatmul.mubr.f32.vlgmr.msra.gmra.mxu0 %v6290_v38  ;;  %2345 = vmatmul.mubr.f32.vlgmr.msra.gmra.mxu1 %v6290_v38  ;;  %v8493_v38 = vld [vmem:[#allocation69_spill] sm:$0xff] }
 0x547   :  { %2380 = vmatpush1.msra.mxu0 %v8483_v32  ;;  %2451 = vmatpush1.msra.mxu1 %v8484_v60  ;;  %v8527_v32 = vld [vmem:[#allocation109_spill] sm:$0xff]  ;;  %v8528_v60 = vld [vmem:[#allocation110_spill] sm:$0xff] }
 0x548   :  { %2381 = vmatprep.subr.mxu0 %v8485_v51  ;;  %2452 = vmatprep.subr.mxu1 %v8486_v40  ;;  %v8529_v51 = vld [vmem:[#allocation111_spill] sm:$0xff]  ;;  %v8530_v40 = vld [vmem:[#allocation112_spill] sm:$0xff] }
 0x549   :  { %2382 = vmatpush1.msra.mxu0 %v8487_v7  ;;  %2453 = vmatpush1.msra.mxu1 %v8488_v48  ;;  %v8531_v7 = vld [vmem:[#allocation113_spill] sm:$0xff]  ;;  %v8532_v48 = vld [vmem:[#allocation114_spill] sm:$0xff] }
 0x54a   :  { %2383 = vmatprep.subr.mxu0 %v8489_v41  ;;  %2454 = vmatprep.subr.mxu1 %v8490_v50  ;;  %v8533_v41 = vld [vmem:[#allocation115_spill] sm:$0xff]  ;;  %v8534_v50 = vld [vmem:[#allocation116_spill] sm:$0xff] }
 0x54b   :  { %2384 = vmatpush1.msra.mxu0 %v8491_v13  ;;  %2455 = vmatpush1.msra.mxu1 %v8492_v56  ;;  %v8535_v13 = vld [vmem:[#allocation117_spill] sm:$0xff]  ;;  %v8536_v56 = vld [vmem:[#allocation118_spill] sm:$0xff] }
 0x54c   :  { %2385 = vmatprep.subr.mxu0 %v8493_v38  ;;  %2456 = vmatprep.subr.mxu1 %v8494_v26  ;;  %v8537_v38 = vld [vmem:[#allocation119_spill] sm:$0xff]  ;;  %v8538_v26 = vld [vmem:[#allocation120_spill] sm:$0xff] }
 0x54d   :  { %2386 = vmatpush1.msra.mxu0 %v8495_v14  ;;  %2457 = vmatpush1.msra.mxu1 %v8496_v37  ;;  %v8539_v14 = vld [vmem:[#allocation121_spill] sm:$0xff]  ;;  %v8540_v37 = vld [vmem:[#allocation122_spill] sm:$0xff] }
 0x54e   :  { %2387 = vmatprep.subr.mxu0 %v8497_v57  ;;  %2458 = vmatprep.subr.mxu1 %v8498_v0  ;;  %v8541_v57 = vld [vmem:[#allocation123_spill] sm:$0xff]  ;;  %v8542_v0 = vld [vmem:[#allocation124_spill] sm:$0xff] }
 0x54f   :  { %2388 = vmatpush1.msra.mxu0 %v8499_v58  ;;  %2459 = vmatpush1.msra.mxu1 %v8500_v45  ;;  %v8543_v58 = vld [vmem:[#allocation125_spill] sm:$0xff]  ;;  %v8544_v45 = vmov 0.0  }
 0x550   :  { %2389 = vmatprep.subr.mxu0 %v8501_v46  ;;  %2460 = vmatprep.subr.mxu1 %v8502_v42  ;;  %v8545_v46 = vld [vmem:[#allocation126_spill] sm:$0xff]  ;;  %v8546_v42 = vld [vmem:[#allocation127_spill] sm:$0xff] }
 0x551   :  { %2390 = vmatpush1.msra.mxu0 %v8503_v19  ;;  %2461 = vmatpush1.msra.mxu1 %v8504_v20  ;;  %v8547_v19 = vld [vmem:[#allocation128_spill] sm:$0xff]  ;;  %v8548_v20 = vld [vmem:[#allocation30_spill] sm:$0xff] }
 0x552   :  { %2391 = vmatprep.subr.mxu0 %v8505_v25  ;;  %2462 = vmatprep.subr.mxu1 %v8506_v27  ;;  %v8549_v25 = vld [vmem:[#allocation91_spill] sm:$0xff] }
 0x553   :  { %2392 = vmatpush1.msra.mxu0 %v8507_v24  ;;  %2463 = vmatpush1.msra.mxu1 %v8508_v39  ;;  %v226_v27 = vadd.f32 %v8549_v25, %v8548_v20  ;;  %v8569_v25 = vld [vmem:[#allocation141_spill] sm:$0xff] }
 0x554   :  { %2393 = vmatprep.subr.mxu0 %v8509_v5  ;;  %2464 = vmatprep.subr.mxu1 %v8510_v21 }
 0x555   :  { %2394 = vmatpush1.msra.mxu0 %v8511_v28  ;;  %2465 = vmatpush1.msra.mxu1 %v8512_v12  ;;  %v8550_v28 = vld [vmem:[#allocation10_spill] sm:$0xff] }
 0x556   :  { %2395 = vmatprep.subr.mxu0 %v8513_v31  ;;  %2466 = vmatprep.subr.mxu1 %v8514_v2 }
 0x557   :  { %2396 = vmatpush1.msra.mxu0 %v8515_v59  ;;  %2467 = vmatpush1.msra.mxu1 %v8516_v11  ;;  %v8551_v11 = vld [vmem:[#allocation18_spill] sm:$0xff] }
 0x558   :  { %2397 = vmatprep.subr.mxu0 %v8517_v15  ;;  %2468 = vmatprep.subr.mxu1 %v8518_v1  ;;  %v341_v15 = vadd.f32 %v8551_v11, %v7971_v33  ;;  %v8576_v11 = vld [vmem:[#allocation147_spill] sm:$0xff] }
 0x559   :  { %2398 = vmatpush1.msra.mxu0 %v8519_v30  ;;  %2469 = vmatpush1.msra.mxu1 %v8520_v34  ;;  %v8552_v30 = vld [vmem:[#allocation17_spill] sm:$0xff] }
 0x55a   :  { %2399 = vmatprep.subr.mxu0 %v8521_v4  ;;  %2470 = vmatprep.subr.mxu1 %v8522_v23  ;;  %v339_v34 = vadd.f32 %v8552_v30, %v4625_v61  ;;  %v8580_v30 = vld [vmem:[#allocation151_spill] sm:$0xff] }
 0x55b   :  { %2400 = vmatpush1.msra.mxu0 %v8523_v22  ;;  %2471 = vmatpush1.msra.mxu1 %v8524_v29 }
 0x55c   :  { %2401 = vmatprep.subr.mxu0 %v8525_v17  ;;  %2472 = vmatprep.subr.mxu1 %v8526_v49 }
 0x55d   :  { %2402 = vmatpush1.msra.mxu0 %v8527_v32  ;;  %2473 = vmatpush1.msra.mxu1 %v8528_v60 }
 0x55e   :  { %2403 = vmatprep.subr.mxu0 %v8529_v51  ;;  %2474 = vmatprep.subr.mxu1 %v8530_v40 }
 0x55f   :  { %2404 = vmatpush1.msra.mxu0 %v8531_v7  ;;  %2475 = vmatpush1.msra.mxu1 %v8532_v48 }
 0x560   :  { %2405 = vmatprep.subr.mxu0 %v8533_v41  ;;  %2476 = vmatprep.subr.mxu1 %v8534_v50 }
 0x561   :  { %2406 = vmatpush1.msra.mxu0 %v8535_v13  ;;  %2477 = vmatpush1.msra.mxu1 %v8536_v56 }
 0x562   :  { %2407 = vmatprep.subr.mxu0 %v8537_v38  ;;  %2478 = vmatprep.subr.mxu1 %v8538_v26  ;;  %v8554_v26 = vld [vmem:[#allocation87_spill] sm:$0xff] }
 0x563   :  { %2408 = vmatpush1.msra.mxu0 %v8539_v14  ;;  %2479 = vmatpush1.msra.mxu1 %v8540_v37  ;;  %v8564_v37 = vld [vmem:[#allocation137_spill] sm:$0xff] }
 0x564   :  { %2409 = vmatprep.subr.mxu0 %v8541_v57  ;;  %2480 = vmatprep.subr.mxu1 %v8542_v0  ;;  %v8565_v57 = vld [vmem:[#allocation138_spill] sm:$0xff]  ;;  %v8566_v0 = vld [vmem:[#allocation25_spill] sm:$0xff] }
 0x565   :  { %2410 = vmatpush1.msra.mxu0 %v8543_v58  ;;  %2443 = vmatprep.mubr.f32.mxu0 %v8544_v45 }
 0x566   :  { %2481 = vmatpush1.msra.mxu1 %v8545_v46  ;;  %2514 = vmatprep.mubr.f32.mxu1 %v8544_v45  ;;  %v8567_v46 = vld [vmem:[#allocation139_spill] sm:$0xff] }
 0x567   :  { %2549 = vmatprep.subr.mxu0 %v8546_v42  ;;  %2620 = vmatprep.subr.mxu1 %v8547_v19  ;;  %v8568_v42 = vld [vmem:[#allocation140_spill] sm:$0xff] }
 0x5c2   :  { %v2105_v24 = vpop.f32.mrf.mxu0  ;;  %v2176_v31 = vpop.f32.mrf.mxu1 }
 0x5c3   :  { %v2181_v39 = vadd.f32 %v2105_v24, %v226_v27  ;;  %v2183_v4 = vadd.f32 %v2176_v31, %v339_v34  ;;  %v8570_v24 = vld [vmem:[#allocation135_spill] sm:$0xff]  ;;  %v8581_v34 = vld [vmem:[#allocation152_spill] sm:$0xff] }
 0x5c4   :  { %v2107_v5 = vpop.f32.mrf.mxu0  ;;  %v2178_v59 = vpop.f32.mrf.mxu1 }
 0x5c5   :  { %v3362_v21 = vmul.f32 -1.442695, %v2181_v39  ;;  %v2182_v12 = vadd.f32 %v2107_v5, %v8550_v28  ;;  %v2184_v1 = vadd.f32 %v2178_v59, %v341_v15  ;;  %v8571_v5 = vld [vmem:[#allocation142_spill] sm:$0xff]  ;;  %v8573_v28 = vld [vmem:[#allocation144_spill] sm:$0xff]  ;;  %v8578_v15 = vld [vmem:[#allocation149_spill] sm:$0xff] }
 0x5c6   :  { %v8575_v59 = vld [vmem:[#allocation146_spill] sm:$0xff] }
 0x5c7   :  { %3581 = vpow2.f32 %v3362_v21  ;;  %v3363_v2 = vmul.f32 -1.442695, %v2182_v12  ;;  %v3364_v23 = vmul.f32 -1.442695, %v2184_v1  ;;  %v8572_v21 = vld [vmem:[#allocation143_spill] sm:$0xff]  ;;  %v8574_v12 = vld [vmem:[#allocation145_spill] sm:$0xff] }
 0x5c8   :  { %v8579_v1 = vld [vmem:[#allocation150_spill] sm:$0xff] }
 0x5c9   :  { %3583 = vpow2.f32 %v3363_v2 }
 0x5ca   :  { %3585 = vtanh.f32 %v2183_v4  ;;  %v8582_v4 = vld [vmem:[#allocation153_spill] sm:$0xff] }
 0x5cb   :  { %3587 = vpow2.f32 %v3364_v23 }
 0x5d4   :  { %v3582_v22 = vpop.eup %3581 }
 0x5d5   :  { %v2188_v29 = vadd.f32 1.0, %v3582_v22  ;;  %v8583_v22 = vld [vmem:[#allocation154_spill] sm:$0xff] }
 0x5d6   :  { %v3584_v17 = vpop.eup %3583 }
 0x5d7   :  { %3589 = vrcp.f32 %v2188_v29  ;;  %v2194_v49 = vadd.f32 1.0, %v3584_v17  ;;  %v3586_v32 = vpop.eup %3585  ;;  %v8584_v29 = vld [vmem:[#allocation155_spill] sm:$0xff]  ;;  %v8585_v17 = vld [vmem:[#allocation156_spill] sm:$0xff] }
 0x5d8   :  { %v3588_v60 = vpop.eup %3587 }
 0x5d9   :  { %3591 = vrcp.f32 %v2194_v49  ;;  %v2201_v48 = vadd.f32 1.0, %v3588_v60  ;;  %v8586_v49 = vld [vmem:[#allocation157_spill] sm:$0xff]  ;;  %v8588_v60 = vld [vmem:[#allocation159_spill] sm:$0xff] }
 0x5db   :  { %3593 = vrcp.f32 %v2201_v48  ;;  %v8591_v48 = vld [vmem:[#allocation161_spill] sm:$0xff] }
 0x5e4   :  { %v3590_v51 = vpop.eup %3589 }
 0x5e5   :  { %v2205_v40 = vmul.f32 %v3590_v51, %v3586_v32  ;;  %v8587_v32 = vld [vmem:[#allocation158_spill] sm:$0xff] }
 0x5e6   :  { %v3592_v7 = vpop.eup %3591  ;;  %v8589_v51 = vld [vmem:[#allocation26_spill] sm:$0xff] }
 0x5e7   :  { %v2204_v41 = vmul.f32 %v3592_v7, %v6287_v10  ;;  %v8553_v10 = vld [vmem:[#allocation129_spill] sm:$0xff]  ;;  %v8590_v7 = vld [vmem:[#allocation160_spill] sm:$0xff] }
 0x5e8   :  { %v3594_v13 = vpop.eup %3593 }
 0x5e9   :  { %v6630_v50 = vadd.f32 %v2205_v40, %v2204_v41  ;;  %v8592_v41 = vld [vmem:[#allocation162_spill] sm:$0xff] }
 0x5eb   :  { %3595 = vtanh.f32 %v6630_v50 }
 0x5f8   :  { %v3596_v56 = vpop.eup %3595 }
 0x5f9   :  { %v6633_v38 = vmul.f32 %v3596_v56, %v3594_v13  ;;  %v8593_v13 = vld [vmem:[#allocation163_spill] sm:$0xff]  ;;  %v8594_v56 = vld [vmem:[#allocation164_spill] sm:$0xff] }
 0x5fb   :  { %2444 = vmatmul.mubr.f32.vlgmr.msra.gmra.mxu0 %v6633_v38  ;;  %2515 = vmatmul.mubr.f32.vlgmr.msra.gmra.mxu1 %v6633_v38 }
 0x5fc   :  { %2550 = vmatpush1.msra.mxu0 %v6294_v52  ;;  %2621 = vmatpush1.msra.mxu1 %v6297_v8  ;;  %v8555_v52 = vld [vmem:[#allocation88_spill] sm:$0xff]  ;;  %v8556_v8 = vld [vmem:[#allocation14_spill] sm:$0xff] }
 0x5fd   :  { %2551 = vmatprep.subr.mxu0 %v6300_v43  ;;  %2622 = vmatprep.subr.mxu1 %v6303_v16  ;;  %v8557_v43 = vld [vmem:[#allocation13_spill] sm:$0xff]  ;;  %v8558_v16 = vld [vmem:[#allocation130_spill] sm:$0xff] }
 0x5fe   :  { %2552 = vmatpush1.msra.mxu0 %v6306_v55  ;;  %2623 = vmatpush1.msra.mxu1 %v6309_v44  ;;  %v8559_v55 = vld [vmem:[#allocation131_spill] sm:$0xff]  ;;  %v8560_v44 = vld [vmem:[#allocation132_spill] sm:$0xff] }
 0x5ff   :  { %2553 = vmatprep.subr.mxu0 %v6312_v62  ;;  %2624 = vmatprep.subr.mxu1 %v6315_v47  ;;  %v8561_v62 = vld [vmem:[#allocation133_spill] sm:$0xff]  ;;  %v8562_v47 = vld [vmem:[#allocation134_spill] sm:$0xff] }
 0x600   :  { %2554 = vmatpush1.msra.mxu0 %v6318_v35  ;;  %2625 = vmatpush1.msra.mxu1 %v8553_v10  ;;  %v8563_v35 = vld [vmem:[#allocation136_spill] sm:$0xff]  ;;  %v8595_v10 = vld [vmem:[#allocation165_spill] sm:$0xff] }
 0x601   :  { %2555 = vmatprep.subr.mxu0 %v8554_v26  ;;  %2626 = vmatprep.subr.mxu1 %v8555_v52  ;;  %v8596_v26 = vld [vmem:[#allocation166_spill] sm:$0xff]  ;;  %v8597_v52 = vld [vmem:[#allocation167_spill] sm:$0xff] }
 0x602   :  { %2556 = vmatpush1.msra.mxu0 %v8556_v8  ;;  %2627 = vmatpush1.msra.mxu1 %v8557_v43  ;;  %v8598_v43 = vld [vmem:[#allocation168_spill] sm:$0xff] }
 0x603   :  { %2557 = vmatprep.subr.mxu0 %v8558_v16  ;;  %2628 = vmatprep.subr.mxu1 %v8559_v55  ;;  %v8599_v16 = vld [vmem:[#allocation169_spill] sm:$0xff]  ;;  %v8600_v55 = vld [vmem:[#allocation170_spill] sm:$0xff] }
 0x604   :  { %2558 = vmatpush1.msra.mxu0 %v8560_v44  ;;  %2629 = vmatpush1.msra.mxu1 %v8561_v62  ;;  %v8601_v62 = vld [vmem:[#allocation27_spill] sm:$0xff] }
 0x605   :  { %2559 = vmatprep.subr.mxu0 %v8562_v47  ;;  %2630 = vmatprep.subr.mxu1 %v8563_v35  ;;  %v8602_v35 = vld [vmem:[#allocation171_spill] sm:$0xff] }
 0x606   :  { %v2275_v14 = vpop.f32.mrf.mxu0  ;;  %2560 = vmatpush1.msra.mxu0 %v8564_v37  ;;  %2631 = vmatpush1.msra.mxu1 %v8565_v57  ;;  %v2346_v31 = vpop.f32.mrf.mxu1  ;;  %v6703_v57 = vld [vmem:[#allocation5 + $0x3e8] sm:$0xff] }
 0x607   :  { %v2276_v58 = vadd.f32 %v2275_v14, %v8566_v0  ;;  %2561 = vmatprep.subr.mxu0 %v8567_v46  ;;  %2632 = vmatprep.subr.mxu1 %v8568_v42  ;;  %v2347_v47 = vadd.f32 %v2346_v31, %v8601_v62  ;;  %v6724_v46 = vld [vmem:[#allocation5 + $0x3d0] sm:$0xff]  ;;  %v6727_v42 = vld [vmem:[#allocation5 + $0x3a8] sm:$0xff]  ;;  %v6754_v31 = vld [vmem:[#allocation5 + $0x378] sm:$0xff] }
 0x608   :  { %v2277_v19 = vpop.f32.mrf.mxu0  ;;  %2562 = vmatpush1.msra.mxu0 %v6368_v9  ;;  %2633 = vmatpush1.msra.mxu1 %v8569_v25  ;;  %v8577_v9 = vld [vmem:[#allocation148_spill] sm:$0xff]  ;;  %v2348_v23 = vpop.f32.mrf.mxu1  ;;  %v6733_v25 = vld [vmem:[#allocation5 + $0x3a0] sm:$0xff] }
 0x609   :  { %v3365_v27 = vmul.f32 -1.442695, %v2276_v58  ;;  %v2278_v39 = vadd.f32 %v2277_v19, %v8570_v24  ;;  %2563 = vmatprep.subr.mxu0 %v8571_v5  ;;  %2634 = vmatprep.subr.mxu1 %v8572_v21  ;;  %v2349_v40 = vadd.f32 %v2348_v23, %v8589_v51  ;;  %v6706_v58 = vld [vmem:[#allocation5 + $0x3f8] sm:$0xff]  ;;  %v6745_v21 = vld [vmem:[#allocation5 + $0x380] sm:$0xff] }
 0x60a   :  { %2564 = vmatpush1.msra.mxu0 %v8573_v28  ;;  %2635 = vmatpush1.msra.mxu1 %v8574_v12  ;;  %v6730_v19 = vld [vmem:[#allocation5 + $0x3b8] sm:$0xff]  ;;  %v6748_v28 = vld [vmem:[#allocation5 + $0x390] sm:$0xff]  ;;  %v6751_v12 = vld [vmem:[#allocation5 + $0x368] sm:$0xff] }
 0x60b   :  { %3597 = vpow2.f32 %v3365_v27  ;;  %v3366_v2 = vmul.f32 -1.442695, %v2278_v39  ;;  %2565 = vmatprep.subr.mxu0 %v8575_v59  ;;  %2636 = vmatprep.subr.mxu1 %v8576_v11  ;;  %v3367_v8 = vmul.f32 -1.442695, %v2349_v40  ;;  %v6736_v27 = vld [vmem:[#allocation5 + $0x3b0] sm:$0xff]  ;;  %v6739_v39 = vld [vmem:[#allocation5 + $0x388] sm:$0xff] }
 0x60c   :  { %2566 = vmatpush1.msra.mxu0 %v8577_v9  ;;  %2637 = vmatpush1.msra.mxu1 %v8578_v15  ;;  %v6742_v5 = vld [vmem:[#allocation5 + $0x398] sm:$0xff]  ;;  %v6760_v59 = vld [vmem:[#allocation5 + $0x370] sm:$0xff]  ;;  %v6763_v11 = vld [vmem:[#allocation5 + $0x348] sm:$0xff] }
 0x60d   :  { %3599 = vpow2.f32 %v3366_v2  ;;  %2567 = vmatprep.subr.mxu0 %v8579_v1  ;;  %2638 = vmatprep.subr.mxu1 %v8580_v30  ;;  %v6757_v2 = vld [vmem:[#allocation5 + $0x360] sm:$0xff]  ;;  %v6766_v9 = vld [vmem:[#allocation5 + $0x358] sm:$0xff]  ;;  %v6772_v1 = vld [vmem:[#allocation5 + $0x350] sm:$0xff] }
 0x60e   :  { %2568 = vmatpush1.msra.mxu0 %v8581_v34  ;;  %2639 = vmatpush1.msra.mxu1 %v8582_v4  ;;  %3601 = vpow2.f32 %v3367_v8  ;;  %v6769_v15 = vld [vmem:[#allocation5 + $0x340] sm:$0xff]  ;;  %v6775_v34 = vld [vmem:[#allocation5 + $0x328] sm:$0xff]  ;;  %v6778_v4 = vld [vmem:[#allocation5 + $0x338] sm:$0xff] }
 0x60f   :  { %2569 = vmatprep.subr.mxu0 %v8583_v22  ;;  %2640 = vmatprep.subr.mxu1 %v8584_v29  ;;  %v6781_v22 = vld [vmem:[#allocation5 + $0x320] sm:$0xff]  ;;  %v6784_v29 = vld [vmem:[#allocation5 + $0x330] sm:$0xff]  ;;  %v6812_v8 = vld [vmem:[#allocation5 + $0x2c8] sm:$0xff] }
 0x610   :  { %2570 = vmatpush1.msra.mxu0 %v8585_v17  ;;  %2641 = vmatpush1.msra.mxu1 %v8586_v49  ;;  %v6787_v49 = vld [vmem:[#allocation5 + $0x308] sm:$0xff] }
 0x611   :  { %2571 = vmatprep.subr.mxu0 %v8587_v32  ;;  %2642 = vmatprep.subr.mxu1 %v8588_v60  ;;  %v6790_v32 = vld [vmem:[#allocation5 + $0x318] sm:$0xff] }
 0x612   :  { %2572 = vmatpush1.msra.mxu0 %v8590_v7  ;;  %2643 = vmatpush1.msra.mxu1 %v8591_v48  ;;  %v6793_v7 = vld [vmem:[#allocation5 + $0x300] sm:$0xff]  ;;  %v6796_v48 = vld [vmem:[#allocation5 + $0x310] sm:$0xff] }
 0x613   :  { %2573 = vmatprep.subr.mxu0 %v8592_v41  ;;  %2644 = vmatprep.subr.mxu1 %v8593_v13  ;;  %8603 = vst [vmem:[#allocation172_spill] sm:$0xff] %v6793_v7  ;;  %8604 = vst [vmem:[#allocation89_spill] sm:$0xff] %v6796_v48 }
 0x614   :  { %2574 = vmatpush1.msra.mxu0 %v8594_v56  ;;  %2645 = vmatpush1.msra.mxu1 %v8595_v10  ;;  %v6800_v56 = vld [vmem:[#allocation5 + $0x2e8] sm:$0xff]  ;;  %v6803_v10 = vld [vmem:[#allocation5 + $0x2f8] sm:$0xff] }
 0x615   :  { %2575 = vmatprep.subr.mxu0 %v8596_v26  ;;  %2646 = vmatprep.subr.mxu1 %v8597_v52  ;;  %8605 = vst [vmem:[#allocation90_spill] sm:$0xff] %v6800_v56  ;;  %v6806_v26 = vld [vmem:[#allocation5 + $0x2e0] sm:$0xff]  ;;  %v6809_v52 = vld [vmem:[#allocation5 + $0x2f0] sm:$0xff] }
 0x616   :  { %2576 = vmatpush1.msra.mxu0 %v8598_v43  ;;  %2647 = vmatpush1.msra.mxu1 %v8599_v16  ;;  %v6820_v16 = vld [vmem:[#allocation5 + $0x2c0] sm:$0xff] }
 0x617   :  { %2577 = vmatprep.subr.mxu0 %v6460_v36  ;;  %2648 = vmatprep.subr.mxu1 %v8600_v55  ;;  %8607 = vst [vmem:[#allocation15_spill] sm:$0xff] %v6820_v16  ;;  %v6823_v55 = vld [vmem:[#allocation5 + $0x2d0] sm:$0xff] }
 0x618   :  { %v3598_v44 = vpop.eup %3597  ;;  %2578 = vmatpush1.msra.mxu0 %v8602_v35  ;;  %2649 = vmatpush1.msra.mxu1 %v6469_v63  ;;  %v6709_v63 = vld [vmem:[#allocation5 + $0x3e0] sm:$0xff]  ;;  %8608 = vst [vmem:[#allocation28_spill] sm:$0xff] %v6823_v55 }
 0x619   :  { %v2354_v14 = vadd.f32 1.0, %v3598_v44  ;;  %2579 = vmatprep.subr.mxu0 %v6472_v54  ;;  %2650 = vmatprep.subr.mxu1 %v6475_v6  ;;  %v6712_v6 = vld [vmem:[#allocation5 + $0x3f0] sm:$0xff]  ;;  %v6721_v54 = vld [vmem:[#allocation5 + $0x3c0] sm:$0xff]  ;;  %v6826_v44 = vld [vmem:[#allocation5 + $0x2a8] sm:$0xff] }
 0x61a   :  { %v3600_v37 = vpop.eup %3599  ;;  %2580 = vmatpush1.msra.mxu0 %v6478_v18  ;;  %2651 = vmatpush1.msra.mxu1 %v6481_v3  ;;  %v6715_v3 = vld [vmem:[#allocation5 + $0x3c8] sm:$0xff]  ;;  %v6718_v18 = vld [vmem:[#allocation5 + $0x3d8] sm:$0xff]  ;;  %8609 = vst [vmem:[#allocation29_spill] sm:$0xff] %v6826_v44  ;;  %v6833_v35 = vld [vmem:[#allocation5 + $0x2a0] sm:$0xff] }
 0x61b   :  { %3603 = vrcp.f32 %v2354_v14  ;;  %v2360_v36 = vadd.f32 1.0, %v3600_v37  ;;  %2581 = vmatprep.subr.mxu0 %v6703_v57  ;;  %2652 = vmatprep.subr.mxu1 %v6706_v58  ;;  %v3602_v30 = vpop.eup %3601  ;;  %8611 = vst [vmem:[#allocation34_spill] sm:$0xff] %v6833_v35  ;;  %v6836_v14 = vld [vmem:[#allocation5 + $0x2b0] sm:$0xff]  ;;  %v6839_v37 = vld [vmem:[#allocation5 + $0x288] sm:$0xff] }
 0x61c   :  { %3605 = vtanh.f32 %v2347_v47  ;;  %2582 = vmatpush2.msra.mxu0 %v6709_v63  ;;  %2653 = vmatpush2.msra.mxu1 %v6712_v6  ;;  %v2367_v40 = vadd.f32 1.0, %v3602_v30  ;;  %v6829_v47 = vld [vmem:[#allocation5 + $0x2b8] sm:$0xff]  ;;  %8612 = vst [vmem:[#allocation35_spill] sm:$0xff] %v6836_v14  ;;  %8613 = vst [vmem:[#allocation36_spill] sm:$0xff] %v6839_v37  ;;  %v6845_v30 = vld [vmem:[#allocation5 + $0x280] sm:$0xff] }
 0x61d   :  { %3607 = vrcp.f32 %v2360_v36  ;;  %2583 = vmatprep.subr.mxu0 %v6715_v3  ;;  %2654 = vmatprep.subr.mxu1 %v6718_v18  ;;  %8610 = vst [vmem:[#allocation33_spill] sm:$0xff] %v6829_v47  ;;  %v6842_v36 = vld [vmem:[#allocation5 + $0x298] sm:$0xff]  ;;  %8615 = vst [vmem:[#allocation38_spill] sm:$0xff] %v6845_v30 }
 0x61e   :  { %2584 = vmatpush2.msra.mxu0 %v6721_v54  ;;  %2655 = vmatpush2.msra.mxu1 %v6724_v46  ;;  %3609 = vrcp.f32 %v2367_v40  ;;  %8614 = vst [vmem:[#allocation37_spill] sm:$0xff] %v6842_v36  ;;  %v6857_v40 = vld [vmem:[#allocation5 + $0x260] sm:$0xff] }
 0x61f   :  { %2585 = vmatprep.subr.mxu0 %v6727_v42  ;;  %2656 = vmatprep.subr.mxu1 %v6730_v19  ;;  %8619 = vst [vmem:[#allocation42_spill] sm:$0xff] %v6857_v40 }
 0x620   :  { %2586 = vmatpush2.msra.mxu0 %v6733_v25  ;;  %2657 = vmatpush2.msra.mxu1 %v6736_v27 }
 0x621   :  { %2587 = vmatprep.subr.mxu0 %v6739_v39  ;;  %2658 = vmatprep.subr.mxu1 %v6742_v5 }
 0x622   :  { %2588 = vmatpush2.msra.mxu0 %v6745_v21  ;;  %2659 = vmatpush2.msra.mxu1 %v6748_v28 }
 0x623   :  { %2589 = vmatprep.subr.mxu0 %v6751_v12  ;;  %2660 = vmatprep.subr.mxu1 %v6754_v31 }
 0x624   :  { %2590 = vmatpush2.msra.mxu0 %v6757_v2  ;;  %2661 = vmatpush2.msra.mxu1 %v6760_v59 }
 0x625   :  { %2591 = vmatprep.subr.mxu0 %v6763_v11  ;;  %2662 = vmatprep.subr.mxu1 %v6766_v9 }
 0x626   :  { %2592 = vmatpush2.msra.mxu0 %v6769_v15  ;;  %2663 = vmatpush2.msra.mxu1 %v6772_v1 }
 0x627   :  { %2593 = vmatprep.subr.mxu0 %v6775_v34  ;;  %2664 = vmatprep.subr.mxu1 %v6778_v4 }
 0x628   :  { %v3604_v23 = vpop.eup %3603  ;;  %2594 = vmatpush2.msra.mxu0 %v6781_v22  ;;  %2665 = vmatpush2.msra.mxu1 %v6784_v29 }
 0x629   :  { %v3606_v17 = vpop.eup %3605  ;;  %2595 = vmatprep.subr.mxu0 %v6787_v49  ;;  %2666 = vmatprep.subr.mxu1 %v6790_v32 }
 0x62a   :  { %v3608_v60 = vpop.eup %3607  ;;  %2596 = vmatpush2.msra.mxu0 %v6793_v7  ;;  %2667 = vmatpush2.msra.mxu1 %v6796_v48  ;;  %v2371_v41 = vmul.f32 %v3606_v17, %v3604_v23  ;;  %v6848_v23 = vld [vmem:[#allocation5 + $0x290] sm:$0xff]  ;;  %v6851_v17 = vld [vmem:[#allocation5 + $0x268] sm:$0xff] }
 0x62b   :  { %v2370_v13 = vmul.f32 %v3608_v60, %v6521_v53  ;;  %2597 = vmatprep.subr.mxu0 %v6800_v56  ;;  %2668 = vmatprep.subr.mxu1 %v6803_v10  ;;  %v6815_v53 = vld [vmem:[#allocation5 + $0x2d8] sm:$0xff]  ;;  %8616 = vst [vmem:[#allocation39_spill] sm:$0xff] %v6848_v23  ;;  %8617 = vst [vmem:[#allocation40_spill] sm:$0xff] %v6851_v17 }
 0x62c   :  { %2598 = vmatpush2.msra.mxu0 %v6806_v26  ;;  %2669 = vmatpush2.msra.mxu1 %v6809_v52  ;;  %8606 = vst [vmem:[#allocation16_spill] sm:$0xff] %v6815_v53  ;;  %v6854_v60 = vld [vmem:[#allocation5 + $0x278] sm:$0xff] }
 0x62d   :  { %2599 = vmatprep.subr.mxu0 %v6812_v8  ;;  %2670 = vmatprep.subr.mxu1 %v6815_v53  ;;  %v6818_v43 = vadd.f32 %v2371_v41, %v2370_v13  ;;  %8618 = vst [vmem:[#allocation41_spill] sm:$0xff] %v6854_v60  ;;  %v6860_v41 = vld [vmem:[#allocation5 + $0x270] sm:$0xff]  ;;  %v6863_v13 = vld [vmem:[#allocation5 + $0x248] sm:$0xff] }
 0x62e   :  { %2600 = vmatpush2.msra.mxu0 %v6820_v16  ;;  %2671 = vmatpush2.msra.mxu1 %v6823_v55  ;;  %8620 = vst [vmem:[#allocation43_spill] sm:$0xff] %v6860_v41  ;;  %8621 = vst [vmem:[#allocation44_spill] sm:$0xff] %v6863_v13 }
 0x62f   :  { %2601 = vmatprep.subr.mxu0 %v6826_v44  ;;  %2672 = vmatprep.subr.mxu1 %v6829_v47  ;;  %3611 = vtanh.f32 %v6818_v43 }
 0x630   :  { %2602 = vmatpush2.msra.mxu0 %v6833_v35  ;;  %2673 = vmatpush2.msra.mxu1 %v6836_v14  ;;  %v4083_v14 = vld [vmem:[#allocation3 + $0x1c0] sm:$0xff] }
 0x631   :  { %2603 = vmatprep.subr.mxu0 %v6839_v37  ;;  %2674 = vmatprep.subr.mxu1 %v6842_v36 }
 0x632   :  { %2604 = vmatpush2.msra.mxu0 %v6845_v30  ;;  %2675 = vmatpush2.msra.mxu1 %v6848_v23  ;;  %v6866_v23 = vld [vmem:[#allocation5 + $0x258] sm:$0xff]  ;;  %v4077_v30 = vld [vmem:[#allocation3 + $0x1e8] sm:$0xff] }
 0x633   :  { %2605 = vmatprep.subr.mxu0 %v6851_v17  ;;  %2676 = vmatprep.subr.mxu1 %v6854_v60  ;;  %8622 = vst [vmem:[#allocation45_spill] sm:$0xff] %v6866_v23  ;;  %v6869_v17 = vld [vmem:[#allocation5 + $0x240] sm:$0xff]  ;;  %v6872_v60 = vld [vmem:[#allocation5 + $0x250] sm:$0xff] }
 0x634   :  { %2606 = vmatpush2.msra.mxu0 %v6857_v40  ;;  %2677 = vmatpush2.msra.mxu1 %v6860_v41  ;;  %8623 = vst [vmem:[#allocation46_spill] sm:$0xff] %v6869_v17  ;;  %8624 = vst [vmem:[#allocation47_spill] sm:$0xff] %v6872_v60  ;;  %v6875_v40 = vld [vmem:[#allocation5 + $0x228] sm:$0xff]  ;;  %v6878_v41 = vld [vmem:[#allocation5 + $0x238] sm:$0xff] }
 0x635   :  { %2607 = vmatprep.subr.mxu0 %v6863_v13  ;;  %2678 = vmatprep.subr.mxu1 %v6866_v23  ;;  %8625 = vst [vmem:[#allocation48_spill] sm:$0xff] %v6875_v40  ;;  %8626 = vst [vmem:[#allocation49_spill] sm:$0xff] %v6878_v41  ;;  %v6881_v13 = vld [vmem:[#allocation5 + $0x220] sm:$0xff]  ;;  %v6884_v23 = vld [vmem:[#allocation5 + $0x230] sm:$0xff] }
 0x636   :  { %2608 = vmatpush2.msra.mxu0 %v6869_v17  ;;  %2679 = vmatpush2.msra.mxu1 %v6872_v60  ;;  %8627 = vst [vmem:[#allocation50_spill] sm:$0xff] %v6881_v13  ;;  %8628 = vst [vmem:[#allocation51_spill] sm:$0xff] %v6884_v23  ;;  %v6887_v17 = vld [vmem:[#allocation5 + $0x208] sm:$0xff]  ;;  %v6890_v60 = vld [vmem:[#allocation5 + $0x218] sm:$0xff] }
 0x637   :  { %2609 = vmatprep.subr.mxu0 %v6875_v40  ;;  %2680 = vmatprep.subr.mxu1 %v6878_v41  ;;  %8629 = vst [vmem:[#allocation52_spill] sm:$0xff] %v6887_v17  ;;  %8630 = vst [vmem:[#allocation53_spill] sm:$0xff] %v6890_v60  ;;  %v6893_v40 = vld [vmem:[#allocation5 + $0x200] sm:$0xff]  ;;  %v6896_v41 = vld [vmem:[#allocation5 + $0x210] sm:$0xff] }
 0x638   :  { %2610 = vmatpush2.msra.mxu0 %v6881_v13  ;;  %2681 = vmatpush2.msra.mxu1 %v6884_v23  ;;  %8631 = vst [vmem:[#allocation54_spill] sm:$0xff] %v6893_v40  ;;  %8632 = vst [vmem:[#allocation55_spill] sm:$0xff] %v6896_v41  ;;  %v3610_v13 = vpop.eup %3609  ;;  %v4078_v23 = vld [vmem:[#allocation3 + $0x1f8] sm:$0xff] }
 0x639   :  { %2611 = vmatprep.subr.mxu0 %v6887_v17  ;;  %2682 = vmatprep.subr.mxu1 %v6890_v60  ;;  %v4079_v60 = vld [vmem:[#allocation3 + $0x1e0] sm:$0xff]  ;;  %v4081_v17 = vld [vmem:[#allocation3 + $0x1c8] sm:$0xff] }
 0x63a   :  { %2612 = vmatpush2.msra.mxu0 %v6893_v40  ;;  %2683 = vmatpush2.msra.mxu1 %v6896_v41  ;;  %v4080_v40 = vld [vmem:[#allocation3 + $0x1f0] sm:$0xff]  ;;  %v4082_v41 = vld [vmem:[#allocation3 + $0x1d8] sm:$0xff] }
 0x63b   :  { %2719 = vmatprep.subr.mxu0 %v4077_v30  ;;  %2790 = vmatprep.subr.mxu1 %v4078_v23  ;;  %v4084_v30 = vld [vmem:[#allocation3 + $0x1d0] sm:$0xff]  ;;  %v4085_v23 = vld [vmem:[#allocation3 + $0x1a8] sm:$0xff] }
 0x63c   :  { %v3612_v36 = vpop.eup %3611 }
 0x63d   :  { %v2374_v37 = vmul.f32 %v3612_v36, %v3610_v13  ;;  %v4086_v36 = vld [vmem:[#allocation3 + $0x1b8] sm:$0xff]  ;;  %v4088_v13 = vld [vmem:[#allocation3 + $0x1b0] sm:$0xff] }
 0x63f   :  { %2613 = vmatprep.mubr.f32.mxu0 %v2374_v37  ;;  %2684 = vmatprep.mubr.f32.mxu1 %v2374_v37  ;;  %v4087_v37 = vld [vmem:[#allocation3 + $0x1a0] sm:$0xff] }
 0x640   :  { %2614 = vmatmul.mubr.f32.vlgmr.msra.gmra.mxu0 %v6633_v38  ;;  %2685 = vmatmul.mubr.f32.vlgmr.msra.gmra.mxu1 %v6633_v38  ;;  %v4089_v38 = vld [vmem:[#allocation3 + $0x188] sm:$0xff] }
 0x641   :  { %2720 = vmatpush1.msra.mxu0 %v4079_v60  ;;  %2791 = vmatpush1.msra.mxu1 %v4080_v40  ;;  %v4090_v60 = vld [vmem:[#allocation3 + $0x198] sm:$0xff]  ;;  %v4091_v40 = vld [vmem:[#allocation3 + $0x180] sm:$0xff] }
 0x642   :  { %2721 = vmatprep.subr.mxu0 %v4081_v17  ;;  %2792 = vmatprep.subr.mxu1 %v4082_v41  ;;  %v4092_v17 = vld [vmem:[#allocation3 + $0x190] sm:$0xff]  ;;  %v4093_v41 = vld [vmem:[#allocation3 + $0x168] sm:$0xff] }
 0x643   :  { %2722 = vmatpush1.msra.mxu0 %v4083_v14  ;;  %2793 = vmatpush1.msra.mxu1 %v4084_v30  ;;  %v4094_v14 = vld [vmem:[#allocation3 + $0x178] sm:$0xff]  ;;  %v4095_v30 = vld [vmem:[#allocation3 + $0x160] sm:$0xff] }
 0x644   :  { %2723 = vmatprep.subr.mxu0 %v4085_v23  ;;  %2794 = vmatprep.subr.mxu1 %v4086_v36  ;;  %v4096_v23 = vld [vmem:[#allocation3 + $0x170] sm:$0xff]  ;;  %v4097_v36 = vld [vmem:[#allocation3 + $0x148] sm:$0xff] }
 0x645   :  { %2724 = vmatpush1.msra.mxu0 %v4087_v37  ;;  %2795 = vmatpush1.msra.mxu1 %v4088_v13  ;;  %v4098_v37 = vld [vmem:[#allocation3 + $0x158] sm:$0xff]  ;;  %v4099_v13 = vld [vmem:[#allocation3 + $0x140] sm:$0xff] }
 0x646   :  { %2725 = vmatprep.subr.mxu0 %v4089_v38  ;;  %2796 = vmatprep.subr.mxu1 %v4090_v60  ;;  %v4100_v38 = vld [vmem:[#allocation3 + $0x150] sm:$0xff]  ;;  %v4101_v60 = vld [vmem:[#allocation3 + $0x128] sm:$0xff] }
 0x647   :  { %2726 = vmatpush1.msra.mxu0 %v4091_v40  ;;  %2797 = vmatpush1.msra.mxu1 %v4092_v17  ;;  %v4102_v40 = vld [vmem:[#allocation3 + $0x138] sm:$0xff]  ;;  %v4103_v17 = vld [vmem:[#allocation3 + $0x120] sm:$0xff] }
 0x648   :  { %2727 = vmatprep.subr.mxu0 %v4093_v41  ;;  %2798 = vmatprep.subr.mxu1 %v4094_v14  ;;  %v4104_v41 = vld [vmem:[#allocation3 + $0x130] sm:$0xff]  ;;  %v4105_v14 = vld [vmem:[#allocation3 + $0x108] sm:$0xff] }
 0x649   :  { %2728 = vmatpush1.msra.mxu0 %v4095_v30  ;;  %2799 = vmatpush1.msra.mxu1 %v4096_v23  ;;  %v4106_v30 = vld [vmem:[#allocation3 + $0x118] sm:$0xff]  ;;  %v4107_v23 = vld [vmem:[#allocation3 + $0x100] sm:$0xff] }
 0x64a   :  { %2729 = vmatprep.subr.mxu0 %v4097_v36  ;;  %2800 = vmatprep.subr.mxu1 %v4098_v37  ;;  %v4108_v36 = vld [vmem:[#allocation3 + $0x110] sm:$0xff]  ;;  %v4109_v37 = vld [vmem:[#allocation3 + $0xe8] sm:$0xff] }
 0x64b   :  { %2730 = vmatpush1.msra.mxu0 %v4099_v13  ;;  %2801 = vmatpush1.msra.mxu1 %v4100_v38  ;;  %v4110_v13 = vld [vmem:[#allocation3 + $0xf8] sm:$0xff]  ;;  %v4111_v38 = vld [vmem:[#allocation3 + $0xe0] sm:$0xff] }
 0x64c   :  { %2731 = vmatprep.subr.mxu0 %v4101_v60  ;;  %2802 = vmatprep.subr.mxu1 %v4102_v40  ;;  %v4112_v60 = vld [vmem:[#allocation3 + $0xf0] sm:$0xff]  ;;  %v4113_v40 = vld [vmem:[#allocation3 + $0xc8] sm:$0xff] }
 0x64d   :  { %2732 = vmatpush1.msra.mxu0 %v4103_v17  ;;  %2803 = vmatpush1.msra.mxu1 %v4104_v41  ;;  %v4114_v17 = vld [vmem:[#allocation3 + $0xd8] sm:$0xff]  ;;  %v4115_v41 = vld [vmem:[#allocation3 + $0xc0] sm:$0xff] }
 0x64e   :  { %2733 = vmatprep.subr.mxu0 %v4105_v14  ;;  %2804 = vmatprep.subr.mxu1 %v4106_v30  ;;  %v4116_v14 = vld [vmem:[#allocation3 + $0xd0] sm:$0xff]  ;;  %v4117_v30 = vld [vmem:[#allocation3 + $0xa8] sm:$0xff] }
 0x64f   :  { %2734 = vmatpush1.msra.mxu0 %v4107_v23  ;;  %2805 = vmatpush1.msra.mxu1 %v4108_v36  ;;  %v4118_v23 = vld [vmem:[#allocation3 + $0xb8] sm:$0xff]  ;;  %v4119_v36 = vld [vmem:[#allocation3 + $0xa0] sm:$0xff] }
 0x650   :  { %2735 = vmatprep.subr.mxu0 %v4109_v37  ;;  %2806 = vmatprep.subr.mxu1 %v4110_v13  ;;  %v4120_v37 = vld [vmem:[#allocation3 + $0xb0] sm:$0xff]  ;;  %v4121_v13 = vld [vmem:[#allocation3 + $0x88] sm:$0xff] }
 0x651   :  { %2736 = vmatpush1.msra.mxu0 %v4111_v38  ;;  %2807 = vmatpush1.msra.mxu1 %v4112_v60  ;;  %v4122_v38 = vld [vmem:[#allocation3 + $0x98] sm:$0xff]  ;;  %v4123_v60 = vld [vmem:[#allocation3 + $0x80] sm:$0xff] }
 0x652   :  { %2737 = vmatprep.subr.mxu0 %v4113_v40  ;;  %2808 = vmatprep.subr.mxu1 %v4114_v17  ;;  %v4124_v40 = vld [vmem:[#allocation3 + $0x90] sm:$0xff]  ;;  %v4125_v17 = vld [vmem:[#allocation3 + $0x68] sm:$0xff] }
 0x653   :  { %2738 = vmatpush1.msra.mxu0 %v4115_v41  ;;  %2809 = vmatpush1.msra.mxu1 %v4116_v14  ;;  %v4126_v41 = vld [vmem:[#allocation3 + $0x78] sm:$0xff]  ;;  %v4127_v14 = vld [vmem:[#allocation3 + $0x60] sm:$0xff] }
 0x654   :  { %2739 = vmatprep.subr.mxu0 %v4117_v30  ;;  %2810 = vmatprep.subr.mxu1 %v4118_v23  ;;  %v4128_v30 = vld [vmem:[#allocation3 + $0x70] sm:$0xff]  ;;  %v4129_v23 = vld [vmem:[#allocation3 + $0x48] sm:$0xff] }
 0x655   :  { %2740 = vmatpush1.msra.mxu0 %v4119_v36  ;;  %2811 = vmatpush1.msra.mxu1 %v4120_v37  ;;  %v4130_v36 = vld [vmem:[#allocation3 + $0x58] sm:$0xff]  ;;  %v4131_v37 = vld [vmem:[#allocation3 + $0x40] sm:$0xff] }
 0x656   :  { %2741 = vmatprep.subr.mxu0 %v4121_v13  ;;  %2812 = vmatprep.subr.mxu1 %v4122_v38  ;;  %v4132_v13 = vld [vmem:[#allocation3 + $0x50] sm:$0xff]  ;;  %v4133_v38 = vld [vmem:[#allocation3 + $0x28] sm:$0xff] }
 0x657   :  { %2742 = vmatpush1.msra.mxu0 %v4123_v60  ;;  %2813 = vmatpush1.msra.mxu1 %v4124_v40  ;;  %v4134_v60 = vld [vmem:[#allocation3 + $0x38] sm:$0xff]  ;;  %v4135_v40 = vld [vmem:[#allocation3 + $0x20] sm:$0xff] }
 0x658   :  { %2743 = vmatprep.subr.mxu0 %v4125_v17  ;;  %2814 = vmatprep.subr.mxu1 %v4126_v41  ;;  %v4136_v17 = vld [vmem:[#allocation3 + $0x30] sm:$0xff]  ;;  %v4137_v41 = vld [vmem:[#allocation3 + $0x8] sm:$0xff] }
 0x659   :  { %2744 = vmatpush1.msra.mxu0 %v4127_v14  ;;  %2815 = vmatpush1.msra.mxu1 %v4128_v30  ;;  %v4138_v14 = vld [vmem:[#allocation3 + $0x18] sm:$0xff]  ;;  %v4139_v30 = vld [vmem:[#allocation3] sm:$0xff] }
 0x65a   :  { %2745 = vmatprep.subr.mxu0 %v4129_v23  ;;  %2816 = vmatprep.subr.mxu1 %v4130_v36  ;;  %v4140_v23 = vld [vmem:[#allocation3 + $0x10] sm:$0xff]  ;;  %v6903_v36 = vld [vmem:[#allocation5 + $0x1e8] sm:$0xff] }
 0x65b   :  { %2746 = vmatpush1.msra.mxu0 %v4131_v37  ;;  %2817 = vmatpush1.msra.mxu1 %v4132_v13  ;;  %8633 = vst [vmem:[#allocation56_spill] sm:$0xff] %v6903_v36  ;;  %v6906_v37 = vld [vmem:[#allocation5 + $0x1f8] sm:$0xff]  ;;  %v8635_v13 = vld [vmem:[#allocation11_spill] sm:$0xff] }
 0x65c   :  { %2747 = vmatprep.subr.mxu0 %v4133_v38  ;;  %2818 = vmatprep.subr.mxu1 %v4134_v60  ;;  %8634 = vst [vmem:[#allocation57_spill] sm:$0xff] %v6906_v37  ;;  %v232_v38 = vadd.f32 %v8635_v13, %v8548_v20 }
 0x65d   :  { %2748 = vmatpush1.msra.mxu0 %v4135_v40  ;;  %2819 = vmatpush1.msra.mxu1 %v4136_v17 }
 0x65e   :  { %2749 = vmatprep.subr.mxu0 %v4137_v41  ;;  %2820 = vmatprep.subr.mxu1 %v4138_v14  ;;  %v8636_v14 = vld [vmem:[#allocation12_spill] sm:$0xff] }
 0x65f   :  { %2750 = vmatpush1.msra.mxu0 %v4139_v30  ;;  %2783 = vmatprep.mubr.f32.mxu0 %v8544_v45 }
 0x660   :  { %2821 = vmatpush1.msra.mxu1 %v4140_v23  ;;  %2854 = vmatprep.mubr.f32.mxu1 %v8544_v45 }
 0x661   :  { %2889 = vmatprep.subr.mxu0 %v6903_v36  ;;  %2960 = vmatprep.subr.mxu1 %v6906_v37  ;;  %v8637_v36 = vld [vmem:[#allocation20_spill] sm:$0xff]  ;;  %v8638_v37 = vld [vmem:[#allocation19_spill] sm:$0xff] }
 0x662   :  { %v347_v47 = vadd.f32 %v8637_v36, %v7971_v33  ;;  %v345_v55 = vadd.f32 %v8638_v37, %v4625_v61  ;;  %v6927_v37 = vld [vmem:[#allocation5 + $0x1f0] sm:$0xff]  ;;  %v6981_v61 = vld [vmem:[#allocation5 + $0x158] sm:$0xff] }
 0x663   :  { %v6975_v33 = vld [vmem:[#allocation5 + $0x170] sm:$0xff]  ;;  %8647 = vst [vmem:[#allocation66_spill] sm:$0xff] %v6981_v61 }
 0x664   :  { %8645 = vst [vmem:[#allocation64_spill] sm:$0xff] %v6975_v33 }
 0x6bb   :  { %v2445_v60 = vpop.f32.mrf.mxu0  ;;  %v2516_v23 = vpop.f32.mrf.mxu1 }
 0x6bc   :  { %v2521_v40 = vadd.f32 %v2445_v60, %v232_v38  ;;  %v2523_v16 = vadd.f32 %v2516_v23, %v345_v55  ;;  %v6933_v23 = vld [vmem:[#allocation5 + $0x1d8] sm:$0xff] }
 0x6bd   :  { %v2447_v17 = vpop.f32.mrf.mxu0  ;;  %v2518_v35 = vpop.f32.mrf.mxu1 }
 0x6be   :  { %v3368_v41 = vmul.f32 -1.442695, %v2521_v40  ;;  %v2522_v30 = vadd.f32 %v2447_v17, %v8636_v14  ;;  %v2524_v44 = vadd.f32 %v2518_v35, %v347_v47 }
 0x6c0   :  { %3613 = vpow2.f32 %v3368_v41  ;;  %v3369_v45 = vmul.f32 -1.442695, %v2522_v30  ;;  %v3370_v13 = vmul.f32 -1.442695, %v2524_v44  ;;  %v6924_v44 = vld [vmem:[#allocation5 + $0x1e0] sm:$0xff] }
 0x6c2   :  { %3615 = vpow2.f32 %v3369_v45 }
 0x6c3   :  { %3617 = vtanh.f32 %v2523_v16 }
 0x6c4   :  { %3619 = vpow2.f32 %v3370_v13  ;;  %v6936_v13 = vld [vmem:[#allocation5 + $0x1c0] sm:$0xff] }
 0x6cd   :  { %v3614_v20 = vpop.eup %3613 }
 0x6ce   :  { %v2528_v38 = vadd.f32 1.0, %v3614_v20 }
 0x6cf   :  { %v3616_v60 = vpop.eup %3615 }
 0x6d0   :  { %3621 = vrcp.f32 %v2528_v38  ;;  %v2534_v40 = vadd.f32 1.0, %v3616_v60  ;;  %v3618_v17 = vpop.eup %3617  ;;  %v6939_v38 = vld [vmem:[#allocation5 + $0x1d0] sm:$0xff]  ;;  %v6942_v60 = vld [vmem:[#allocation5 + $0x1a8] sm:$0xff] }
 0x6d1   :  { %v3620_v45 = vpop.eup %3619 }
 0x6d2   :  { %3623 = vrcp.f32 %v2534_v40  ;;  %v2541_v36 = vadd.f32 1.0, %v3620_v45  ;;  %v6945_v40 = vld [vmem:[#allocation5 + $0x1b8] sm:$0xff]  ;;  %v6951_v45 = vld [vmem:[#allocation5 + $0x1b0] sm:$0xff] }
 0x6d4   :  { %3625 = vrcp.f32 %v2541_v36  ;;  %v6963_v36 = vld [vmem:[#allocation5 + $0x190] sm:$0xff] }
 0x6d5   :  { %8641 = vst [vmem:[#allocation60_spill] sm:$0xff] %v6963_v36 }
 0x6dd   :  { %v3622_v41 = vpop.eup %3621 }
 0x6de   :  { %v2545_v14 = vmul.f32 %v3622_v41, %v3618_v17  ;;  %v6948_v17 = vld [vmem:[#allocation5 + $0x1a0] sm:$0xff]  ;;  %v6954_v41 = vld [vmem:[#allocation5 + $0x188] sm:$0xff] }
 0x6df   :  { %v3624_v30 = vpop.eup %3623 }
 0x6e0   :  { %v2544_v47 = vmul.f32 %v3624_v30, %v6630_v50  ;;  %v6930_v50 = vld [vmem:[#allocation5 + $0x1c8] sm:$0xff]  ;;  %v6960_v30 = vld [vmem:[#allocation5 + $0x180] sm:$0xff] }
 0x6e1   :  { %v3626_v20 = vpop.eup %3625  ;;  %8640 = vst [vmem:[#allocation59_spill] sm:$0xff] %v6960_v30 }
 0x6e2   :  { %v6917_v35 = vadd.f32 %v2545_v14, %v2544_v47  ;;  %v6957_v14 = vld [vmem:[#allocation5 + $0x198] sm:$0xff]  ;;  %v6966_v47 = vld [vmem:[#allocation5 + $0x168] sm:$0xff] }
 0x6e3   :  { %8642 = vst [vmem:[#allocation61_spill] sm:$0xff] %v6966_v47 }
 0x6e4   :  { %8639 = vst [vmem:[#allocation58_spill] sm:$0xff] %v6917_v35  ;;  %3627 = vtanh.f32 %v6917_v35  ;;  %v6978_v35 = vld [vmem:[#allocation5 + $0x148] sm:$0xff] }
 0x6e5   :  { %8646 = vst [vmem:[#allocation65_spill] sm:$0xff] %v6978_v35 }
 0x6f1   :  { %v3628_v16 = vpop.eup %3627 }
 0x6f2   :  { %v6920_v55 = vmul.f32 %v3628_v16, %v3626_v20  ;;  %v6969_v20 = vld [vmem:[#allocation5 + $0x178] sm:$0xff]  ;;  %v6972_v16 = vld [vmem:[#allocation5 + $0x160] sm:$0xff] }
 0x6f3   :  { %8643 = vst [vmem:[#allocation62_spill] sm:$0xff] %v6969_v20  ;;  %8644 = vst [vmem:[#allocation63_spill] sm:$0xff] %v6972_v16 }
 0x6f4   :  { %2784 = vmatmul.mubr.f32.vlgmr.msra.gmra.mxu0 %v6920_v55  ;;  %2855 = vmatmul.mubr.f32.vlgmr.msra.gmra.mxu1 %v6920_v55 }
 0x6f5   :  { %2890 = vmatpush1.msra.mxu0 %v6924_v44  ;;  %2961 = vmatpush1.msra.mxu1 %v6927_v37 }
 0x6f6   :  { %2891 = vmatprep.subr.mxu0 %v6930_v50  ;;  %2962 = vmatprep.subr.mxu1 %v6933_v23 }
 0x6f7   :  { %2892 = vmatpush1.msra.mxu0 %v6936_v13  ;;  %2963 = vmatpush1.msra.mxu1 %v6939_v38 }
 0x6f8   :  { %2893 = vmatprep.subr.mxu0 %v6942_v60  ;;  %2964 = vmatprep.subr.mxu1 %v6945_v40 }
 0x6f9   :  { %2894 = vmatpush1.msra.mxu0 %v6948_v17  ;;  %2965 = vmatpush1.msra.mxu1 %v6951_v45 }
 0x6fa   :  { %2895 = vmatprep.subr.mxu0 %v6954_v41  ;;  %2966 = vmatprep.subr.mxu1 %v6957_v14 }
 0x6fb   :  { %2896 = vmatpush1.msra.mxu0 %v6960_v30  ;;  %2967 = vmatpush1.msra.mxu1 %v6963_v36  ;;  %v6990_v36 = vld [vmem:[#allocation5 + $0x128] sm:$0xff] }
 0x6fc   :  { %2897 = vmatprep.subr.mxu0 %v6966_v47  ;;  %2968 = vmatprep.subr.mxu1 %v6969_v20  ;;  %v6984_v47 = vld [vmem:[#allocation5 + $0x140] sm:$0xff]  ;;  %v6987_v20 = vld [vmem:[#allocation5 + $0x150] sm:$0xff]  ;;  %8650 = vst [vmem:[#allocation69_spill] sm:$0xff] %v6990_v36  ;;  %v7003_v30 = vld [vmem:[#allocation5 + $0x108] sm:$0xff] }
 0x6fd   :  { %2898 = vmatpush1.msra.mxu0 %v6972_v16  ;;  %2969 = vmatpush1.msra.mxu1 %v6975_v33  ;;  %8648 = vst [vmem:[#allocation67_spill] sm:$0xff] %v6984_v47  ;;  %8649 = vst [vmem:[#allocation68_spill] sm:$0xff] %v6987_v20  ;;  %v6993_v33 = vld [vmem:[#allocation5 + $0x138] sm:$0xff] }
 0x6fe   :  { %2899 = vmatprep.subr.mxu0 %v6978_v35  ;;  %2970 = vmatprep.subr.mxu1 %v6981_v61  ;;  %8651 = vst [vmem:[#allocation70_spill] sm:$0xff] %v6993_v33  ;;  %v6997_v61 = vld [vmem:[#allocation5 + $0x120] sm:$0xff]  ;;  %8654 = vst [vmem:[#allocation73_spill] sm:$0xff] %v7003_v30 }
 0x6ff   :  { %2900 = vmatpush1.msra.mxu0 %v6984_v47  ;;  %2971 = vmatpush1.msra.mxu1 %v6987_v20  ;;  %8652 = vst [vmem:[#allocation71_spill] sm:$0xff] %v6997_v61  ;;  %v7000_v47 = vld [vmem:[#allocation5 + $0x130] sm:$0xff] }
 0x700   :  { %v2615_v16 = vpop.f32.mrf.mxu0  ;;  %2901 = vmatprep.subr.mxu0 %v6990_v36  ;;  %2972 = vmatprep.subr.mxu1 %v6993_v33  ;;  %8653 = vst [vmem:[#allocation72_spill] sm:$0xff] %v7000_v47  ;;  %v7006_v36 = vld [vmem:[#allocation5 + $0x118] sm:$0xff] }
 0x701   :  { %v2616_v35 = vadd.f32 %v2615_v16, %v8566_v0  ;;  %2902 = vmatpush1.msra.mxu0 %v6997_v61  ;;  %2973 = vmatpush1.msra.mxu1 %v7000_v47  ;;  %8655 = vst [vmem:[#allocation74_spill] sm:$0xff] %v7006_v36  ;;  %v7010_v0 = vld [vmem:[#allocation5 + $0x100] sm:$0xff]  ;;  %v7013_v61 = vld [vmem:[#allocation5 + $0x110] sm:$0xff]  ;;  %v7016_v47 = vld [vmem:[#allocation5 + $0xe8] sm:$0xff] }
 0x702   :  { %v2617_v20 = vpop.f32.mrf.mxu0  ;;  %2903 = vmatprep.subr.mxu0 %v7003_v30  ;;  %2974 = vmatprep.subr.mxu1 %v7006_v36  ;;  %8656 = vst [vmem:[#allocation75_spill] sm:$0xff] %v7013_v61  ;;  %8657 = vst [vmem:[#allocation76_spill] sm:$0xff] %v7016_v47  ;;  %v7019_v30 = vld [vmem:[#allocation5 + $0xf8] sm:$0xff] }
 0x703   :  { %v3371_v33 = vmul.f32 -1.442695, %v2616_v35  ;;  %v2618_v16 = vadd.f32 %v2617_v20, %v8570_v24  ;;  %2904 = vmatpush1.msra.mxu0 %v7010_v0  ;;  %2975 = vmatpush1.msra.mxu1 %v7013_v61  ;;  %8658 = vst [vmem:[#allocation77_spill] sm:$0xff] %v7019_v30  ;;  %v2686_v35 = vpop.f32.mrf.mxu1  ;;  %v7022_v20 = vld [vmem:[#allocation5 + $0xe0] sm:$0xff]  ;;  %v7025_v24 = vld [vmem:[#allocation5 + $0xf0] sm:$0xff]  ;;  %v7028_v61 = vld [vmem:[#allocation5 + $0xc8] sm:$0xff] }
 0x704   :  { %2905 = vmatprep.subr.mxu0 %v7016_v47  ;;  %2976 = vmatprep.subr.mxu1 %v7019_v30  ;;  %8659 = vst [vmem:[#allocation78_spill] sm:$0xff] %v7022_v20  ;;  %8660 = vst [vmem:[#allocation79_spill] sm:$0xff] %v7025_v24  ;;  %v7031_v47 = vld [vmem:[#allocation5 + $0xd8] sm:$0xff]  ;;  %v7046_v30 = vld [vmem:[#allocation5 + $0xa0] sm:$0xff] }
 0x705   :  { %3629 = vpow2.f32 %v3371_v33  ;;  %v3372_v36 = vmul.f32 -1.442695, %v2618_v16  ;;  %2906 = vmatpush1.msra.mxu0 %v7022_v20  ;;  %2977 = vmatpush1.msra.mxu1 %v7025_v24  ;;  %8661 = vst [vmem:[#allocation80_spill] sm:$0xff] %v7028_v61  ;;  %8662 = vst [vmem:[#allocation81_spill] sm:$0xff] %v7031_v47  ;;  %v7034_v33 = vld [vmem:[#allocation5 + $0xc0] sm:$0xff]  ;;  %v7037_v16 = vld [vmem:[#allocation5 + $0xd0] sm:$0xff] }
 0x706   :  { %2907 = vmatprep.subr.mxu0 %v7028_v61  ;;  %2978 = vmatprep.subr.mxu1 %v7031_v47  ;;  %8663 = vst [vmem:[#allocation82_spill] sm:$0xff] %v7034_v33  ;;  %8664 = vst [vmem:[#allocation83_spill] sm:$0xff] %v7037_v16  ;;  %v7040_v20 = vld [vmem:[#allocation5 + $0xa8] sm:$0xff]  ;;  %v7043_v24 = vld [vmem:[#allocation5 + $0xb8] sm:$0xff]  ;;  %v2688_v61 = vpop.f32.mrf.mxu1 }
 0x707   :  { %3631 = vpow2.f32 %v3372_v36  ;;  %2908 = vmatpush1.msra.mxu0 %v7034_v33  ;;  %2979 = vmatpush1.msra.mxu1 %v7037_v16  ;;  %8665 = vst [vmem:[#allocation84_spill] sm:$0xff] %v7040_v20  ;;  %8666 = vst [vmem:[#allocation85_spill] sm:$0xff] %v7043_v24  ;;  %v7049_v36 = vld [vmem:[#allocation5 + $0xb0] sm:$0xff]  ;;  %v7052_v33 = vld [vmem:[#allocation5 + $0x88] sm:$0xff] }
 0x708   :  { %2909 = vmatprep.subr.mxu0 %v7040_v20  ;;  %2980 = vmatprep.subr.mxu1 %v7043_v24  ;;  %8667 = vst [vmem:[#allocation92_spill] sm:$0xff] %v7046_v30  ;;  %8668 = vst [vmem:[#allocation93_spill] sm:$0xff] %v7049_v36  ;;  %v7055_v16 = vld [vmem:[#allocation5 + $0x98] sm:$0xff]  ;;  %v7058_v20 = vld [vmem:[#allocation5 + $0x80] sm:$0xff] }
 0x709   :  { %2910 = vmatpush1.msra.mxu0 %v7046_v30  ;;  %2981 = vmatpush1.msra.mxu1 %v7049_v36  ;;  %8669 = vst [vmem:[#allocation94_spill] sm:$0xff] %v7052_v33  ;;  %8670 = vst [vmem:[#allocation95_spill] sm:$0xff] %v7055_v16  ;;  %v7061_v24 = vld [vmem:[#allocation5 + $0x90] sm:$0xff]  ;;  %v2689_v30 = vadd.f32 %v2688_v61, %v8589_v51  ;;  %v7065_v47 = vld [vmem:[#allocation5 + $0x68] sm:$0xff] }
 0x70a   :  { %2911 = vmatprep.subr.mxu0 %v7052_v33  ;;  %2982 = vmatprep.subr.mxu1 %v7055_v16  ;;  %8671 = vst [vmem:[#allocation96_spill] sm:$0xff] %v7058_v20  ;;  %8672 = vst [vmem:[#allocation97_spill] sm:$0xff] %v7061_v24  ;;  %v7068_v36 = vld [vmem:[#allocation5 + $0x78] sm:$0xff]  ;;  %v7071_v33 = vld [vmem:[#allocation5 + $0x60] sm:$0xff] }
 0x70b   :  { %2912 = vmatpush1.msra.mxu0 %v7058_v20  ;;  %2983 = vmatpush1.msra.mxu1 %v7061_v24  ;;  %8673 = vst [vmem:[#allocation98_spill] sm:$0xff] %v7065_v47  ;;  %8674 = vst [vmem:[#allocation99_spill] sm:$0xff] %v7068_v36  ;;  %v7074_v16 = vld [vmem:[#allocation5 + $0x70] sm:$0xff]  ;;  %v7077_v20 = vld [vmem:[#allocation5 + $0x48] sm:$0xff] }
 0x70c   :  { %2913 = vmatprep.subr.mxu0 %v7065_v47  ;;  %2984 = vmatprep.subr.mxu1 %v7068_v36  ;;  %8675 = vst [vmem:[#allocation100_spill] sm:$0xff] %v7071_v33  ;;  %8676 = vst [vmem:[#allocation101_spill] sm:$0xff] %v7074_v16  ;;  %v7080_v61 = vld [vmem:[#allocation5 + $0x58] sm:$0xff]  ;;  %v7083_v51 = vld [vmem:[#allocation5 + $0x40] sm:$0xff] }
 0x70d   :  { %2914 = vmatpush1.msra.mxu0 %v7071_v33  ;;  %2985 = vmatpush1.msra.mxu1 %v7074_v16  ;;  %8677 = vst [vmem:[#allocation102_spill] sm:$0xff] %v7077_v20  ;;  %8678 = vst [vmem:[#allocation103_spill] sm:$0xff] %v7080_v61  ;;  %v7086_v36 = vld [vmem:[#allocation5 + $0x50] sm:$0xff]  ;;  %v3373_v33 = vmul.f32 -1.442695, %v2689_v30  ;;  %v7089_v47 = vld [vmem:[#allocation5 + $0x28] sm:$0xff] }
 0x70e   :  { %2915 = vmatprep.subr.mxu0 %v7077_v20  ;;  %2986 = vmatprep.subr.mxu1 %v7080_v61  ;;  %8679 = vst [vmem:[#allocation104_spill] sm:$0xff] %v7083_v51  ;;  %8680 = vst [vmem:[#allocation105_spill] sm:$0xff] %v7086_v36  ;;  %v7092_v16 = vld [vmem:[#allocation5 + $0x38] sm:$0xff]  ;;  %v7095_v20 = vld [vmem:[#allocation5 + $0x20] sm:$0xff] }
 0x70f   :  { %2916 = vmatpush1.msra.mxu0 %v7083_v51  ;;  %2987 = vmatpush1.msra.mxu1 %v7086_v36  ;;  %8681 = vst [vmem:[#allocation106_spill] sm:$0xff] %v7089_v47  ;;  %8682 = vst [vmem:[#allocation107_spill] sm:$0xff] %v7092_v16  ;;  %v7098_v61 = vld [vmem:[#allocation5 + $0x30] sm:$0xff]  ;;  %v2687_v36 = vadd.f32 %v2686_v35, %v8601_v62  ;;  %v7102_v30 = vld [vmem:[#allocation5 + $0x8] sm:$0xff]  ;;  %3633 = vpow2.f32 %v3373_v33 }
 0x710   :  { %2917 = vmatprep.subr.mxu0 %v7089_v47  ;;  %2988 = vmatprep.subr.mxu1 %v7092_v16  ;;  %8683 = vst [vmem:[#allocation108_spill] sm:$0xff] %v7095_v20  ;;  %8684 = vst [vmem:[#allocation109_spill] sm:$0xff] %v7098_v61  ;;  %v7105_v47 = vld [vmem:[#allocation5 + $0x18] sm:$0xff]  ;;  %v7108_v24 = vld [vmem:[#allocation5] sm:$0xff] }
 0x711   :  { %2918 = vmatpush1.msra.mxu0 %v7095_v20  ;;  %2989 = vmatpush1.msra.mxu1 %v7098_v61  ;;  %v7111_v20 = vld [vmem:[#allocation5 + $0x10] sm:$0xff] }
 0x712   :  { %v3630_v51 = vpop.eup %3629  ;;  %2919 = vmatprep.subr.mxu0 %v7102_v30  ;;  %2990 = vmatprep.subr.mxu1 %v7105_v47 }
 0x713   :  { %v2694_v16 = vadd.f32 1.0, %v3630_v51  ;;  %2920 = vmatpush1.msra.mxu0 %v7108_v24  ;;  %2991 = vmatpush1.msra.mxu1 %v7111_v20 }
 0x714   :  { %v3632_v61 = vpop.eup %3631  ;;  %2921 = vmatprep.subr.mxu0 %v6703_v57  ;;  %2992 = vmatprep.subr.mxu1 %v6706_v58 }
 0x715   :  { %3635 = vrcp.f32 %v2694_v16  ;;  %v2700_v35 = vadd.f32 1.0, %v3632_v61  ;;  %2922 = vmatpush2.msra.mxu0 %v6709_v63  ;;  %2993 = vmatpush2.msra.mxu1 %v6712_v6 }
 0x716   :  { %3637 = vtanh.f32 %v2687_v36  ;;  %2923 = vmatprep.subr.mxu0 %v6715_v3  ;;  %2994 = vmatprep.subr.mxu1 %v6718_v18 }
 0x717   :  { %3639 = vrcp.f32 %v2700_v35  ;;  %2924 = vmatpush2.msra.mxu0 %v6721_v54  ;;  %2995 = vmatpush2.msra.mxu1 %v6724_v46 }
 0x718   :  { %2925 = vmatprep.subr.mxu0 %v6727_v42  ;;  %2996 = vmatprep.subr.mxu1 %v6730_v19 }
 0x719   :  { %2926 = vmatpush2.msra.mxu0 %v6733_v25  ;;  %2997 = vmatpush2.msra.mxu1 %v6736_v27 }
 0x71a   :  { %2927 = vmatprep.subr.mxu0 %v6739_v39  ;;  %2998 = vmatprep.subr.mxu1 %v6742_v5 }
 0x71b   :  { %2928 = vmatpush2.msra.mxu0 %v6745_v21  ;;  %2999 = vmatpush2.msra.mxu1 %v6748_v28 }
 0x71c   :  { %2929 = vmatprep.subr.mxu0 %v6751_v12  ;;  %3000 = vmatprep.subr.mxu1 %v6754_v31  ;;  %v3634_v51 = vpop.eup %3633 }
 0x71d   :  { %2930 = vmatpush2.msra.mxu0 %v6757_v2  ;;  %3001 = vmatpush2.msra.mxu1 %v6760_v59  ;;  %v2707_v61 = vadd.f32 1.0, %v3634_v51 }
 0x71e   :  { %2931 = vmatprep.subr.mxu0 %v6763_v11  ;;  %3002 = vmatprep.subr.mxu1 %v6766_v9 }
 0x71f   :  { %2932 = vmatpush2.msra.mxu0 %v6769_v15  ;;  %3003 = vmatpush2.msra.mxu1 %v6772_v1  ;;  %3641 = vrcp.f32 %v2707_v61  ;;  %v8697_v61 = vld [vmem:[#allocation41_spill] sm:$0xff] }
 0x720   :  { %2933 = vmatprep.subr.mxu0 %v6775_v34  ;;  %3004 = vmatprep.subr.mxu1 %v6778_v4 }
 0x721   :  { %2934 = vmatpush2.msra.mxu0 %v6781_v22  ;;  %3005 = vmatpush2.msra.mxu1 %v6784_v29 }
 0x722   :  { %v3636_v33 = vpop.eup %3635  ;;  %2935 = vmatprep.subr.mxu0 %v6787_v49  ;;  %3006 = vmatprep.subr.mxu1 %v6790_v32 }
 0x723   :  { %v3638_v16 = vpop.eup %3637  ;;  %2936 = vmatpush2.msra.mxu0 %v6793_v7  ;;  %3007 = vmatpush2.msra.mxu1 %v6796_v48  ;;  %v8685_v7 = vld [vmem:[#allocation15_spill] sm:$0xff]  ;;  %v8686_v48 = vld [vmem:[#allocation28_spill] sm:$0xff] }
 0x724   :  { %v3640_v36 = vpop.eup %3639  ;;  %2937 = vmatprep.subr.mxu0 %v6800_v56  ;;  %3008 = vmatprep.subr.mxu1 %v6803_v10  ;;  %v2711_v35 = vmul.f32 %v3638_v16, %v3636_v33  ;;  %v8688_v56 = vld [vmem:[#allocation29_spill] sm:$0xff]  ;;  %v8691_v16 = vld [vmem:[#allocation35_spill] sm:$0xff] }
 0x725   :  { %v2710_v62 = vmul.f32 %v3640_v36, %v6818_v43  ;;  %2938 = vmatpush2.msra.mxu0 %v6806_v26  ;;  %3009 = vmatpush2.msra.mxu1 %v6809_v52  ;;  %v8689_v33 = vld [vmem:[#allocation33_spill] sm:$0xff]  ;;  %v8690_v43 = vld [vmem:[#allocation34_spill] sm:$0xff]  ;;  %v8692_v36 = vld [vmem:[#allocation36_spill] sm:$0xff] }
 0x726   :  { %2939 = vmatprep.subr.mxu0 %v6812_v8  ;;  %3010 = vmatprep.subr.mxu1 %v6815_v53  ;;  %v8693_v53 = vld [vmem:[#allocation37_spill] sm:$0xff] }
 0x727   :  { %2940 = vmatpush2.msra.mxu0 %v8685_v7  ;;  %3011 = vmatpush2.msra.mxu1 %v8686_v48  ;;  %v7155_v51 = vadd.f32 %v2711_v35, %v2710_v62  ;;  %v8694_v7 = vld [vmem:[#allocation38_spill] sm:$0xff]  ;;  %v8695_v48 = vld [vmem:[#allocation39_spill] sm:$0xff]  ;;  %v8696_v62 = vld [vmem:[#allocation40_spill] sm:$0xff] }
 0x728   :  { %2941 = vmatprep.subr.mxu0 %v8688_v56  ;;  %3012 = vmatprep.subr.mxu1 %v8689_v33  ;;  %v8698_v35 = vld [vmem:[#allocation42_spill] sm:$0xff]  ;;  %v8699_v33 = vld [vmem:[#allocation43_spill] sm:$0xff] }
 0x729   :  { %8687 = vst [vmem:[#allocation110_spill] sm:$0xff] %v7155_v51  ;;  %2942 = vmatpush2.msra.mxu0 %v8690_v43  ;;  %3013 = vmatpush2.msra.mxu1 %v8691_v16  ;;  %3643 = vtanh.f32 %v7155_v51  ;;  %v8700_v43 = vld [vmem:[#allocation44_spill] sm:$0xff]  ;;  %v8701_v16 = vld [vmem:[#allocation45_spill] sm:$0xff]  ;;  %v8702_v51 = vld [vmem:[#allocation46_spill] sm:$0xff] }
 0x72a   :  { %2943 = vmatprep.subr.mxu0 %v8692_v36  ;;  %3014 = vmatprep.subr.mxu1 %v8693_v53  ;;  %v8703_v36 = vld [vmem:[#allocation47_spill] sm:$0xff]  ;;  %v8704_v53 = vld [vmem:[#allocation48_spill] sm:$0xff] }
 0x72b   :  { %2944 = vmatpush2.msra.mxu0 %v8694_v7  ;;  %3015 = vmatpush2.msra.mxu1 %v8695_v48  ;;  %v8705_v7 = vld [vmem:[#allocation49_spill] sm:$0xff]  ;;  %v8706_v48 = vld [vmem:[#allocation50_spill] sm:$0xff] }
 0x72c   :  { %2945 = vmatprep.subr.mxu0 %v8696_v62  ;;  %3016 = vmatprep.subr.mxu1 %v8697_v61  ;;  %v8707_v62 = vld [vmem:[#allocation51_spill] sm:$0xff]  ;;  %v8708_v61 = vld [vmem:[#allocation52_spill] sm:$0xff] }
 0x72d   :  { %2946 = vmatpush2.msra.mxu0 %v8698_v35  ;;  %3017 = vmatpush2.msra.mxu1 %v8699_v33  ;;  %v8709_v35 = vld [vmem:[#allocation53_spill] sm:$0xff]  ;;  %v8710_v33 = vld [vmem:[#allocation54_spill] sm:$0xff] }
 0x72e   :  { %2947 = vmatprep.subr.mxu0 %v8700_v43  ;;  %3018 = vmatprep.subr.mxu1 %v8701_v16  ;;  %v8711_v43 = vld [vmem:[#allocation55_spill] sm:$0xff]  ;;  %v8712_v16 = vld [vmem:[#allocation56_spill] sm:$0xff] }
 0x72f   :  { %2948 = vmatpush2.msra.mxu0 %v8702_v51  ;;  %3019 = vmatpush2.msra.mxu1 %v8703_v36  ;;  %v8713_v51 = vld [vmem:[#allocation57_spill] sm:$0xff]  ;;  %v3642_v36 = vpop.eup %3641 }
 0x730   :  { %2949 = vmatprep.subr.mxu0 %v8704_v53  ;;  %3020 = vmatprep.subr.mxu1 %v8705_v7 }
 0x731   :  { %2950 = vmatpush2.msra.mxu0 %v8706_v48  ;;  %3021 = vmatpush2.msra.mxu1 %v8707_v62 }
 0x732   :  { %2951 = vmatprep.subr.mxu0 %v8708_v61  ;;  %3022 = vmatprep.subr.mxu1 %v8709_v35 }
 0x733   :  { %2952 = vmatpush2.msra.mxu0 %v8710_v33  ;;  %3023 = vmatpush2.msra.mxu1 %v8711_v43 }
 0x734   :  { %3055 = vmatprep.subr.mxu0 %v8712_v16  ;;  %3126 = vmatprep.subr.mxu1 %v8713_v51  ;;  %v8729_v51 = vld [vmem:[#allocation74_spill] sm:$0xff]  ;;  %v8730_v16 = vld [vmem:[#allocation75_spill] sm:$0xff] }
 0x736   :  { %v3644_v53 = vpop.eup %3643 }
 0x737   :  { %v2714_v56 = vmul.f32 %v3644_v53, %v3642_v36  ;;  %v8715_v53 = vld [vmem:[#allocation60_spill] sm:$0xff] }
 0x738   :  { %v8731_v36 = vld [vmem:[#allocation76_spill] sm:$0xff] }
 0x739   :  { %2953 = vmatprep.mubr.f32.mxu0 %v2714_v56  ;;  %3024 = vmatprep.mubr.f32.mxu1 %v2714_v56  ;;  %v8714_v56 = vld [vmem:[#allocation59_spill] sm:$0xff] }
 0x73a   :  { %2954 = vmatmul.mubr.f32.vlgmr.msra.gmra.mxu0 %v6920_v55  ;;  %3025 = vmatmul.mubr.f32.vlgmr.msra.gmra.mxu1 %v6920_v55  ;;  %v8716_v55 = vld [vmem:[#allocation61_spill] sm:$0xff] }
 0x73b   :  { %3056 = vmatpush1.msra.mxu0 %v6924_v44  ;;  %3127 = vmatpush1.msra.mxu1 %v6927_v37  ;;  %v8717_v44 = vld [vmem:[#allocation62_spill] sm:$0xff]  ;;  %v8718_v37 = vld [vmem:[#allocation63_spill] sm:$0xff] }
 0x73c   :  { %3057 = vmatprep.subr.mxu0 %v6930_v50  ;;  %3128 = vmatprep.subr.mxu1 %v6933_v23  ;;  %v8719_v50 = vld [vmem:[#allocation64_spill] sm:$0xff]  ;;  %v8720_v23 = vld [vmem:[#allocation65_spill] sm:$0xff] }
 0x73d   :  { %3058 = vmatpush1.msra.mxu0 %v6936_v13  ;;  %3129 = vmatpush1.msra.mxu1 %v6939_v38  ;;  %v8721_v13 = vld [vmem:[#allocation66_spill] sm:$0xff]  ;;  %v8722_v38 = vld [vmem:[#allocation67_spill] sm:$0xff] }
 0x73e   :  { %3059 = vmatprep.subr.mxu0 %v6942_v60  ;;  %3130 = vmatprep.subr.mxu1 %v6945_v40  ;;  %v8723_v60 = vld [vmem:[#allocation68_spill] sm:$0xff]  ;;  %v8724_v40 = vld [vmem:[#allocation69_spill] sm:$0xff] }
 0x73f   :  { %3060 = vmatpush1.msra.mxu0 %v6948_v17  ;;  %3131 = vmatpush1.msra.mxu1 %v6951_v45  ;;  %v8725_v17 = vld [vmem:[#allocation70_spill] sm:$0xff]  ;;  %v8726_v45 = vld [vmem:[#allocation71_spill] sm:$0xff] }
 0x740   :  { %3061 = vmatprep.subr.mxu0 %v6954_v41  ;;  %3132 = vmatprep.subr.mxu1 %v6957_v14  ;;  %v8727_v41 = vld [vmem:[#allocation72_spill] sm:$0xff]  ;;  %v8728_v14 = vld [vmem:[#allocation73_spill] sm:$0xff] }
 0x741   :  { %3062 = vmatpush1.msra.mxu0 %v8714_v56  ;;  %3133 = vmatpush1.msra.mxu1 %v8715_v53  ;;  %v8732_v56 = vld [vmem:[#allocation77_spill] sm:$0xff]  ;;  %v8733_v53 = vld [vmem:[#allocation78_spill] sm:$0xff] }
 0x742   :  { %3063 = vmatprep.subr.mxu0 %v8716_v55  ;;  %3134 = vmatprep.subr.mxu1 %v8717_v44  ;;  %v8734_v55 = vld [vmem:[#allocation79_spill] sm:$0xff]  ;;  %v8735_v44 = vld [vmem:[#allocation80_spill] sm:$0xff] }
 0x743   :  { %3064 = vmatpush1.msra.mxu0 %v8718_v37  ;;  %3135 = vmatpush1.msra.mxu1 %v8719_v50  ;;  %v8736_v37 = vld [vmem:[#allocation81_spill] sm:$0xff]  ;;  %v8737_v50 = vld [vmem:[#allocation82_spill] sm:$0xff] }
 0x744   :  { %3065 = vmatprep.subr.mxu0 %v8720_v23  ;;  %3136 = vmatprep.subr.mxu1 %v8721_v13  ;;  %v8738_v23 = vld [vmem:[#allocation83_spill] sm:$0xff]  ;;  %v8739_v13 = vld [vmem:[#allocation84_spill] sm:$0xff] }
 0x745   :  { %3066 = vmatpush1.msra.mxu0 %v8722_v38  ;;  %3137 = vmatpush1.msra.mxu1 %v8723_v60  ;;  %v8741_v38 = vld [vmem:[#allocation92_spill] sm:$0xff]  ;;  %v8742_v60 = vld [vmem:[#allocation93_spill] sm:$0xff] }
 0x746   :  { %3067 = vmatprep.subr.mxu0 %v8724_v40  ;;  %3138 = vmatprep.subr.mxu1 %v8725_v17  ;;  %v8743_v40 = vld [vmem:[#allocation94_spill] sm:$0xff]  ;;  %v8744_v17 = vld [vmem:[#allocation95_spill] sm:$0xff] }
 0x747   :  { %3068 = vmatpush1.msra.mxu0 %v8726_v45  ;;  %3139 = vmatpush1.msra.mxu1 %v8727_v41  ;;  %v8745_v45 = vld [vmem:[#allocation96_spill] sm:$0xff]  ;;  %v8746_v41 = vld [vmem:[#allocation97_spill] sm:$0xff] }
 0x748   :  { %3069 = vmatprep.subr.mxu0 %v8728_v14  ;;  %3140 = vmatprep.subr.mxu1 %v8729_v51  ;;  %v8747_v14 = vld [vmem:[#allocation98_spill] sm:$0xff]  ;;  %v8748_v51 = vld [vmem:[#allocation99_spill] sm:$0xff] }
 0x749   :  { %3070 = vmatpush1.msra.mxu0 %v7010_v0  ;;  %3141 = vmatpush1.msra.mxu1 %v8730_v16  ;;  %v8740_v0 = vld [vmem:[#allocation85_spill] sm:$0xff]  ;;  %v8749_v16 = vld [vmem:[#allocation100_spill] sm:$0xff] }
 0x74a   :  { %3071 = vmatprep.subr.mxu0 %v8731_v36  ;;  %3142 = vmatprep.subr.mxu1 %v8732_v56  ;;  %v8750_v36 = vld [vmem:[#allocation101_spill] sm:$0xff]  ;;  %v8751_v56 = vld [vmem:[#allocation102_spill] sm:$0xff] }
 0x74b   :  { %3072 = vmatpush1.msra.mxu0 %v8733_v53  ;;  %3143 = vmatpush1.msra.mxu1 %v8734_v55  ;;  %v8752_v53 = vld [vmem:[#allocation103_spill] sm:$0xff]  ;;  %v8753_v55 = vld [vmem:[#allocation104_spill] sm:$0xff] }
 0x74c   :  { %3073 = vmatprep.subr.mxu0 %v8735_v44  ;;  %3144 = vmatprep.subr.mxu1 %v8736_v37  ;;  %v8754_v44 = vld [vmem:[#allocation105_spill] sm:$0xff]  ;;  %v8755_v37 = vld [vmem:[#allocation106_spill] sm:$0xff] }
 0x74d   :  { %3074 = vmatpush1.msra.mxu0 %v8737_v50  ;;  %3145 = vmatpush1.msra.mxu1 %v8738_v23  ;;  %v8756_v50 = vld [vmem:[#allocation107_spill] sm:$0xff]  ;;  %v8757_v23 = vld [vmem:[#allocation108_spill] sm:$0xff] }
 0x74e   :  { %3075 = vmatprep.subr.mxu0 %v8739_v13  ;;  %3146 = vmatprep.subr.mxu1 %v8740_v0  ;;  %v8758_v13 = vld [vmem:[#allocation109_spill] sm:$0xff] }
 0x74f   :  { %3076 = vmatpush1.msra.mxu0 %v8741_v38  ;;  %3147 = vmatpush1.msra.mxu1 %v8742_v60 }
 0x750   :  { %3077 = vmatprep.subr.mxu0 %v8743_v40  ;;  %3148 = vmatprep.subr.mxu1 %v8744_v17  ;;  %v8789_v17 = vld [vmem:[#allocation58_spill] sm:$0xff] }
 0x751   :  { %3078 = vmatpush1.msra.mxu0 %v8745_v45  ;;  %3149 = vmatpush1.msra.mxu1 %v8746_v41 }
 0x752   :  { %3079 = vmatprep.subr.mxu0 %v8747_v14  ;;  %3150 = vmatprep.subr.mxu1 %v8748_v51  ;;  %v8790_v51 = vld [vmem:[#allocation25_spill] sm:$0xff] }
 0x753   :  { %3080 = vmatpush1.msra.mxu0 %v8749_v16  ;;  %3151 = vmatpush1.msra.mxu1 %v8750_v36 }
 0x754   :  { %3081 = vmatprep.subr.mxu0 %v8751_v56  ;;  %3152 = vmatprep.subr.mxu1 %v8752_v53 }
 0x755   :  { %3082 = vmatpush1.msra.mxu0 %v8753_v55  ;;  %3153 = vmatpush1.msra.mxu1 %v8754_v44  ;;  %v8791_v55 = vld [vmem:[#allocation135_spill] sm:$0xff] }
 0x756   :  { %3083 = vmatprep.subr.mxu0 %v8755_v37  ;;  %3154 = vmatprep.subr.mxu1 %v8756_v50 }
 0x757   :  { %3084 = vmatpush1.msra.mxu0 %v8757_v23  ;;  %3155 = vmatpush1.msra.mxu1 %v8758_v13  ;;  %v8792_v23 = vld [vmem:[#allocation31_spill] sm:$0xff]  ;;  %v8793_v13 = vld [vmem:[#allocation24_spill] sm:$0xff] }
 0x758   :  { %3085 = vmatprep.subr.mxu0 %v7102_v30  ;;  %3156 = vmatprep.subr.mxu1 %v7105_v47  ;;  %v8787_v47 = vld [vmem:[#allocation32_spill] sm:$0xff] }
 0x759   :  { %3086 = vmatpush1.msra.mxu0 %v7108_v24  ;;  %3157 = vmatpush1.msra.mxu1 %v7111_v20  ;;  %v8759_v24 = vld [vmem:[#allocation172_spill] sm:$0xff]  ;;  %v8788_v20 = vld [vmem:[#allocation22_spill] sm:$0xff] }
 0x75a   :  { %3087 = vmatprep.subr.mxu0 %v6703_v57  ;;  %3158 = vmatprep.subr.mxu1 %v6706_v58  ;;  %v8760_v57 = vld [vmem:[#allocation89_spill] sm:$0xff]  ;;  %v8761_v58 = vld [vmem:[#allocation90_spill] sm:$0xff]  ;;  %v351_v30 = vadd.f32 %v8788_v20, %v8787_v47  ;;  %v3230_v47 = vld [vmem:[#allocation7 + $0x48] sm:$0xff] }
 0x75b   :  { %3088 = vmatpush2.msra.mxu0 %v6709_v63  ;;  %3159 = vmatpush2.msra.mxu1 %v6712_v6  ;;  %v8762_v63 = vld [vmem:[#allocation16_spill] sm:$0xff]  ;;  %v8763_v6 = vld [vmem:[#allocation15_spill] sm:$0xff]  ;;  %v3229_v20 = vld [vmem:[#allocation7 + $0x40] sm:$0xff] }
 0x75c   :  { %3089 = vmatprep.subr.mxu0 %v6715_v3  ;;  %3160 = vmatprep.subr.mxu1 %v6718_v18  ;;  %v8764_v3 = vld [vmem:[#allocation28_spill] sm:$0xff]  ;;  %v8765_v18 = vld [vmem:[#allocation29_spill] sm:$0xff] }
 0x75d   :  { %3090 = vmatpush2.msra.mxu0 %v6721_v54  ;;  %3161 = vmatpush2.msra.mxu1 %v6724_v46  ;;  %v8766_v54 = vld [vmem:[#allocation33_spill] sm:$0xff]  ;;  %v8767_v46 = vld [vmem:[#allocation34_spill] sm:$0xff] }
 0x75e   :  { %3091 = vmatprep.subr.mxu0 %v6727_v42  ;;  %3162 = vmatprep.subr.mxu1 %v6730_v19  ;;  %v8768_v42 = vld [vmem:[#allocation35_spill] sm:$0xff]  ;;  %v8769_v19 = vld [vmem:[#allocation36_spill] sm:$0xff] }
 0x75f   :  { %3092 = vmatpush2.msra.mxu0 %v6733_v25  ;;  %3163 = vmatpush2.msra.mxu1 %v6736_v27  ;;  %v8770_v25 = vld [vmem:[#allocation37_spill] sm:$0xff]  ;;  %v8771_v27 = vld [vmem:[#allocation38_spill] sm:$0xff] }
 0x760   :  { %3093 = vmatprep.subr.mxu0 %v6739_v39  ;;  %3164 = vmatprep.subr.mxu1 %v6742_v5  ;;  %v8772_v39 = vld [vmem:[#allocation39_spill] sm:$0xff]  ;;  %v8773_v5 = vld [vmem:[#allocation40_spill] sm:$0xff] }
 0x761   :  { %3094 = vmatpush2.msra.mxu0 %v6745_v21  ;;  %3165 = vmatpush2.msra.mxu1 %v6748_v28  ;;  %v8774_v21 = vld [vmem:[#allocation41_spill] sm:$0xff]  ;;  %v8775_v28 = vld [vmem:[#allocation42_spill] sm:$0xff] }
 0x762   :  { %3095 = vmatprep.subr.mxu0 %v6751_v12  ;;  %3166 = vmatprep.subr.mxu1 %v6754_v31  ;;  %v8776_v12 = vld [vmem:[#allocation43_spill] sm:$0xff]  ;;  %v8777_v31 = vld [vmem:[#allocation44_spill] sm:$0xff] }
 0x763   :  { %3096 = vmatpush2.msra.mxu0 %v6757_v2  ;;  %3167 = vmatpush2.msra.mxu1 %v6760_v59  ;;  %v8778_v2 = vld [vmem:[#allocation45_spill] sm:$0xff]  ;;  %v8779_v59 = vld [vmem:[#allocation46_spill] sm:$0xff] }
 0x764   :  { %3097 = vmatprep.subr.mxu0 %v6763_v11  ;;  %3168 = vmatprep.subr.mxu1 %v6766_v9  ;;  %v8780_v11 = vld [vmem:[#allocation47_spill] sm:$0xff]  ;;  %v8781_v9 = vld [vmem:[#allocation48_spill] sm:$0xff] }
 0x765   :  { %3098 = vmatpush2.msra.mxu0 %v6769_v15  ;;  %3169 = vmatpush2.msra.mxu1 %v6772_v1  ;;  %v8782_v15 = vmov 0.0   ;;  %v8783_v1 = vld [vmem:[#allocation30_spill] sm:$0xff] }
 0x766   :  { %3099 = vmatprep.subr.mxu0 %v6775_v34  ;;  %3170 = vmatprep.subr.mxu1 %v6778_v4  ;;  %v8784_v34 = vld [vmem:[#allocation21_spill] sm:$0xff] }
 0x767   :  { %3100 = vmatpush2.msra.mxu0 %v6781_v22  ;;  %3171 = vmatpush2.msra.mxu1 %v6784_v29  ;;  %v238_v4 = vadd.f32 %v8784_v34, %v8783_v1  ;;  %v8785_v29 = vld [vmem:[#allocation86_spill] sm:$0xff] }
 0x768   :  { %3101 = vmatprep.subr.mxu0 %v6787_v49  ;;  %3172 = vmatprep.subr.mxu1 %v6790_v32  ;;  %v8786_v49 = vld [vmem:[#allocation23_spill] sm:$0xff] }
 0x769   :  { %3102 = vmatpush2.msra.mxu0 %v8759_v24  ;;  %3173 = vmatpush2.msra.mxu1 %v8760_v57  ;;  %v240_v32 = vadd.f32 %v8786_v49, %v8785_v29  ;;  %v353_v24 = vadd.f32 %v8793_v13, %v8792_v23 }
 0x76a   :  { %3103 = vmatprep.subr.mxu0 %v8761_v58  ;;  %3174 = vmatprep.subr.mxu1 %v6803_v10 }
 0x76b   :  { %3104 = vmatpush2.msra.mxu0 %v6806_v26  ;;  %3175 = vmatpush2.msra.mxu1 %v6809_v52 }
 0x76c   :  { %3105 = vmatprep.subr.mxu0 %v6812_v8  ;;  %3176 = vmatprep.subr.mxu1 %v8762_v63  ;;  %v8794_v63 = vld [vmem:[#allocation26_spill] sm:$0xff] }
 0x76d   :  { %3106 = vmatpush2.msra.mxu0 %v8763_v6  ;;  %3177 = vmatpush2.msra.mxu1 %v8764_v3 }
 0x76e   :  { %3107 = vmatprep.subr.mxu0 %v8765_v18  ;;  %3178 = vmatprep.subr.mxu1 %v8766_v54 }
 0x76f   :  { %3108 = vmatpush2.msra.mxu0 %v8767_v46  ;;  %3179 = vmatpush2.msra.mxu1 %v8768_v42  ;;  %v8795_v46 = vld [vmem:[#allocation27_spill] sm:$0xff] }
 0x770   :  { %3109 = vmatprep.subr.mxu0 %v8769_v19  ;;  %3180 = vmatprep.subr.mxu1 %v8770_v25 }
 0x771   :  { %3110 = vmatpush2.msra.mxu0 %v8771_v27  ;;  %3181 = vmatpush2.msra.mxu1 %v8772_v39 }
 0x772   :  { %3111 = vmatprep.subr.mxu0 %v8773_v5  ;;  %3182 = vmatprep.subr.mxu1 %v8774_v21 }
 0x773   :  { %3112 = vmatpush2.msra.mxu0 %v8775_v28  ;;  %3183 = vmatpush2.msra.mxu1 %v8776_v12 }
 0x774   :  { %3113 = vmatprep.subr.mxu0 %v8777_v31  ;;  %3184 = vmatprep.subr.mxu1 %v8778_v2 }
 0x775   :  { %3114 = vmatpush2.msra.mxu0 %v8779_v59  ;;  %3185 = vmatpush2.msra.mxu1 %v8780_v11  ;;  %v8796_v59 = vld [vmem:[#allocation110_spill] sm:$0xff] }
 0x776   :  { %3115 = vmatprep.subr.mxu0 %v8781_v9  ;;  %3186 = vmatprep.subr.mxu1 %v8705_v7 }
 0x777   :  { %3116 = vmatpush2.msra.mxu0 %v8706_v48  ;;  %3187 = vmatpush2.msra.mxu1 %v8707_v62 }
 0x778   :  { %3117 = vmatprep.subr.mxu0 %v8708_v61  ;;  %3188 = vmatprep.subr.mxu1 %v8709_v35 }
 0x779   :  { %3118 = vmatpush2.msra.mxu0 %v8710_v33  ;;  %3189 = vmatpush2.msra.mxu1 %v8711_v43 }
 0x77a   :  { %3401 = vmatprep.subr.mxu0 %v8782_v15 }
 0x7b4   :  { %v2785_v22 = vpop.f32.mrf.mxu0  ;;  %v2856_v8 = vpop.f32.mrf.mxu1 }
 0x7b5   :  { %v2861_v7 = vadd.f32 %v2785_v22, %v238_v4  ;;  %v2863_v33 = vadd.f32 %v2856_v8, %v351_v30  ;;  %v3231_v8 = vld [vmem:[#allocation7 + $0x50] sm:$0xff]  ;;  %v3228_v30 = vld [vmem:[#allocation7 + $0x38] sm:$0xff] }
 0x7b6   :  { %v2787_v48 = vpop.f32.mrf.mxu0  ;;  %v2858_v56 = vpop.f32.mrf.mxu1 }
 0x7b7   :  { %v3374_v10 = vmul.f32 -1.442695, %v2861_v7  ;;  %v2862_v26 = vadd.f32 %v2787_v48, %v240_v32  ;;  %v2864_v58 = vadd.f32 %v2858_v56, %v353_v24  ;;  %v3236_v7 = vld [vmem:[#allocation7 + $0x78] sm:$0xff]  ;;  %v3235_v48 = vld [vmem:[#allocation7 + $0x70] sm:$0xff] }
 0x7b9   :  { %3645 = vpow2.f32 %v3374_v10  ;;  %v3375_v52 = vmul.f32 -1.442695, %v2862_v26  ;;  %v3376_v3 = vmul.f32 -1.442695, %v2864_v58  ;;  %v3234_v10 = vld [vmem:[#allocation7 + $0x68] sm:$0xff]  ;;  %v3233_v26 = vld [vmem:[#allocation7 + $0x60] sm:$0xff] }
 0x7bb   :  { %3647 = vpow2.f32 %v3375_v52  ;;  %v3232_v52 = vld [vmem:[#allocation7 + $0x58] sm:$0xff] }
 0x7bc   :  { %3649 = vtanh.f32 %v2863_v33  ;;  %v3227_v33 = vld [vmem:[#allocation7 + $0x30] sm:$0xff] }
 0x7c6   :  { %v3646_v43 = vpop.eup %3645 }
 0x7c7   :  { %v2868_v62 = vadd.f32 1.0, %v3646_v43  ;;  %v3226_v43 = vld [vmem:[#allocation7 + $0x28] sm:$0xff] }
 0x7c8   :  { %v3648_v61 = vpop.eup %3647 }
 0x7c9   :  { %3651 = vrcp.f32 %v2868_v62  ;;  %v2874_v35 = vadd.f32 1.0, %v3648_v61  ;;  %v3650_v0 = vpop.eup %3649  ;;  %v3225_v62 = vld [vmem:[#allocation7 + $0x20] sm:$0xff]  ;;  %v3224_v61 = vld [vmem:[#allocation7 + $0x18] sm:$0xff] }
 0x7cb   :  { %3653 = vrcp.f32 %v2874_v35  ;;  %v3223_v35 = vld [vmem:[#allocation7 + $0x10] sm:$0xff] }
 0x7d6   :  { %v3652_v38 = vpop.eup %3651 }
 0x7d7   :  { %v2885_v60 = vmul.f32 %v3652_v38, %v3650_v0  ;;  %v3222_v0 = vld [vmem:[#allocation7 + $0x8] sm:$0xff]  ;;  %v3221_v38 = vld [vmem:[#allocation7] sm:$0xff] }
 0x7d8   :  { %v3654_v40 = vpop.eup %3653 }
 0x7d9   :  { %v2884_v45 = vmul.f32 %v3654_v40, %v8789_v17 }
 0x7db   :  { %v2886_v41 = vadd.f32 %v2885_v60, %v2884_v45 }
 0x7fa   :  { %v2955_v14 = vpop.f32.mrf.mxu0  ;;  %v3026_v37 = vpop.f32.mrf.mxu1 }
 0x7fb   :  { %v2956_v16 = vadd.f32 %v2955_v14, %v8790_v51  ;;  %v3027_v42 = vadd.f32 %v3026_v37, %v8795_v46 }
 0x7fc   :  { %v2957_v36 = vpop.f32.mrf.mxu0  ;;  %v3028_v57 = vpop.f32.mrf.mxu1 }
 0x7fd   :  { %v3377_v53 = vmul.f32 -1.442695, %v2956_v16  ;;  %v2958_v44 = vadd.f32 %v2957_v36, %v8791_v55  ;;  %v3029_v6 = vadd.f32 %v3028_v57, %v8794_v63 }
 0x7ff   :  { %3655 = vpow2.f32 %v3377_v53  ;;  %v3378_v50 = vmul.f32 -1.442695, %v2958_v44  ;;  %v3379_v18 = vmul.f32 -1.442695, %v3029_v6 }
 0x801   :  { %3657 = vpow2.f32 %v3378_v50 }
 0x802   :  { %3659 = vpow2.f32 %v3376_v3 }
 0x803   :  { %3661 = vpow2.f32 %v3379_v18 }
 0x80c   :  { %v3656_v54 = vpop.eup %3655 }
 0x80d   :  { %v3034_v19 = vadd.f32 1.0, %v3656_v54 }
 0x80e   :  { %v3658_v25 = vpop.eup %3657 }
 0x80f   :  { %3663 = vrcp.f32 %v3034_v19  ;;  %v3040_v27 = vadd.f32 1.0, %v3658_v25  ;;  %v3660_v39 = vpop.eup %3659 }
 0x810   :  { %3665 = vtanh.f32 %v3027_v42  ;;  %v3662_v5 = vpop.eup %3661  ;;  %v2881_v9 = vadd.f32 1.0, %v3660_v39 }
 0x811   :  { %3667 = vrcp.f32 %v3040_v27  ;;  %v3047_v31 = vadd.f32 1.0, %v3662_v5 }
 0x812   :  { %3669 = vtanh.f32 %v2886_v41 }
 0x813   :  { %3671 = vrcp.f32 %v3047_v31 }
 0x81c   :  { %v3664_v21 = vpop.eup %3663 }
 0x81d   :  { %v3666_v28 = vpop.eup %3665 }
 0x81e   :  { %v3668_v12 = vpop.eup %3667  ;;  %v3051_v2 = vmul.f32 %v3666_v28, %v3664_v21 }
 0x81f   :  { %v3050_v11 = vmul.f32 %v3668_v12, %v8796_v59  ;;  %v3670_v34 = vpop.eup %3669 }
 0x820   :  { %v3672_v4 = vpop.eup %3671 }
 0x821   :  { %v7327_v1 = vadd.f32 %v3051_v2, %v3050_v11 }
 0x823   :  { %3673 = vtanh.f32 %v7327_v1 }
 0x824   :  { %3675 = vrcp.f32 %v2881_v9 }
 0x830   :  { %v3674_v22 = vpop.eup %3673 }
 0x831   :  { %v3676_v29 = vpop.eup %3675  ;;  %v3054_v49 = vmul.f32 %v3674_v22, %v3672_v4 }
 0x832   :  { %v2888_v32 = vmul.f32 %v3676_v29, %v3670_v34 }
 0x833   :  { %3119 = vmatprep.mubr.f32.mxu0 %v3054_v49  ;;  %3190 = vmatprep.mubr.f32.mxu1 %v3054_v49 }
 0x834   :  { %3120 = vmatmul.mubr.f32.vlgmr.msra.gmra.mxu0 %v2888_v32  ;;  %3191 = vmatmul.mubr.f32.vlgmr.msra.gmra.mxu1 %v2888_v32 }
 0x835   :  { %3402 = vmatpush3.msra.mxu0 %v3236_v7  ;;  %3433 = vmatprep.mubr.msk.f32.mxu0 %vm4277_vm1, %v8782_v15 }
 0x836   :  { %3403 = vmatprep.subr.mxu0 %v8782_v15 }
 0x837   :  { %3404 = vmatpush3.msra.mxu0 %v3235_v48 }
 0x838   :  { %3405 = vmatprep.subr.mxu0 %v8782_v15 }
 0x839   :  { %3406 = vmatpush3.msra.mxu0 %v3234_v10 }
 0x83a   :  { %3407 = vmatprep.subr.mxu0 %v8782_v15 }
 0x83b   :  { %3408 = vmatpush3.msra.mxu0 %v3233_v26 }
 0x83c   :  { %3409 = vmatprep.subr.mxu0 %v8782_v15 }
 0x83d   :  { %3410 = vmatpush3.msra.mxu0 %v3232_v52 }
 0x83e   :  { %3411 = vmatprep.subr.mxu0 %v8782_v15 }
 0x83f   :  { %3412 = vmatpush3.msra.mxu0 %v3231_v8 }
 0x840   :  { %3413 = vmatprep.subr.mxu0 %v8782_v15 }
 0x841   :  { %3414 = vmatpush3.msra.mxu0 %v3230_v47 }
 0x842   :  { %3415 = vmatprep.subr.mxu0 %v8782_v15 }
 0x843   :  { %3416 = vmatpush3.msra.mxu0 %v3229_v20 }
 0x844   :  { %3417 = vmatprep.subr.mxu0 %v8782_v15 }
 0x845   :  { %3418 = vmatpush3.msra.mxu0 %v3228_v30 }
 0x846   :  { %3419 = vmatprep.subr.mxu0 %v8782_v15 }
 0x847   :  { %3420 = vmatpush3.msra.mxu0 %v3227_v33 }
 0x848   :  { %3421 = vmatprep.subr.mxu0 %v8782_v15 }
 0x849   :  { %3422 = vmatpush3.msra.mxu0 %v3226_v43 }
 0x84a   :  { %3423 = vmatprep.subr.mxu0 %v8782_v15 }
 0x84b   :  { %3424 = vmatpush3.msra.mxu0 %v3225_v62 }
 0x84c   :  { %3425 = vmatprep.subr.mxu0 %v8782_v15 }
 0x84d   :  { %3426 = vmatpush3.msra.mxu0 %v3224_v61 }
 0x84e   :  { %3427 = vmatprep.subr.mxu0 %v8782_v15 }
 0x84f   :  { %3428 = vmatpush3.msra.mxu0 %v3223_v35 }
 0x850   :  { %3429 = vmatprep.subr.mxu0 %v8782_v15 }
 0x851   :  { %3430 = vmatpush3.msra.mxu0 %v3222_v0 }
 0x852   :  { %3431 = vmatprep.subr.mxu0 %v8782_v15 }
 0x853   :  { %3432 = vmatpush3.msra.mxu0 %v3221_v38 }
 0x8f4   :  { %v3121_v60 = vpop.f32.mrf.mxu0  ;;  %v3192_v14 = vpop.f32.mrf.mxu1 }
 0x8f5   :  { %v3122_v40 = vadd.f32 %v3121_v60, %v8790_v51  ;;  %v3193_v37 = vadd.f32 %v3192_v14, %v8795_v46  ;;  %v3383_v46 = vld [vmem:[%s7364_s7] ss:$0 sm:$0xff] }
 0x8f6   :  { %v3123_v17 = vpop.f32.mrf.mxu0  ;;  %v3194_v36 = vpop.f32.mrf.mxu1 }
 0x8f7   :  { %v3380_v45 = vmul.f32 -1.442695, %v3122_v40  ;;  %v3124_v41 = vadd.f32 %v3123_v17, %v8791_v55  ;;  %v3195_v56 = vadd.f32 %v3194_v36, %v8794_v63 }
 0x8f9   :  { %3677 = vpow2.f32 %v3380_v45  ;;  %v3381_v16 = vmul.f32 -1.442695, %v3124_v41  ;;  %v3382_v53 = vmul.f32 -1.442695, %v3195_v56 }
 0x8fb   :  { %3679 = vpow2.f32 %v3381_v16 }
 0x8fc   :  { %3681 = vpow2.f32 %v3382_v53 }
 0x906   :  { %v3678_v44 = vpop.eup %3677 }
 0x907   :  { %v3200_v15 = vadd.f32 1.0, %v3678_v44 }
 0x908   :  { %v3680_v50 = vpop.eup %3679 }
 0x909   :  { %3683 = vrcp.f32 %v3200_v15  ;;  %v3206_v51 = vadd.f32 1.0, %v3680_v50  ;;  %v3682_v23 = vpop.eup %3681 }
 0x90a   :  { %3685 = vtanh.f32 %v3193_v37  ;;  %v3213_v57 = vadd.f32 1.0, %v3682_v23 }
 0x90b   :  { %3687 = vrcp.f32 %v3206_v51 }
 0x90c   :  { %3689 = vrcp.f32 %v3213_v57 }
 0x916   :  { %v3684_v55 = vpop.eup %3683 }
 0x917   :  { %v3686_v13 = vpop.eup %3685 }
 0x918   :  { %v3688_v24 = vpop.eup %3687  ;;  %v3217_v58 = vmul.f32 %v3686_v13, %v3684_v55 }
 0x919   :  { %v3216_v6 = vmul.f32 %v3688_v24, %v7327_v1  ;;  %v3690_v3 = vpop.eup %3689 }
 0x91b   :  { %v3218_v63 = vadd.f32 %v3217_v58, %v3216_v6 }
 0x91d   :  { %3691 = vtanh.f32 %v3218_v63 }
 0x92a   :  { %v3692_v18 = vpop.eup %3691 }
 0x92b   :  { %v3220_v54 = vmul.f32 %v3692_v18, %v3690_v3 }
 0x92d   :  { %3434 = vmatmul.mubr.f32.vlgmr.msra.gmra.mxu0 %v3220_v54 }
 0x9ed   :  { %v3310_v42 = vpop.f32.mrf.mxu0 }
 0x9ee   :  { %v3311_v19 = vadd.f32 %v3383_v46, %v3310_v42 }
 0x9ef   :  { %v3435_v25 = vpop.f32.mrf.mxu0 }
 0x9f0   :  { %3314 = vst [vmem:[%s7365_s8] sm:$0xff] %v3311_v19 }
 0x9f1   :  { %3319 = vsyncpa [#allocation4], 1 }
 0x9f2   :  { %3320 = vsyncpa [#allocation6], 1 }

</bundles_post_ra>
